<compile_context>
chip_gen: v5e
topology: v5e:2x2
jax: 0.10.0
libtpu: 0.0.40
codegen_flags: <defaults>
</compile_context>

<pallas_src>
from math import sqrt

import jax
import jax.numpy as jnp
from jax.experimental import pallas as pl
from jax.experimental.pallas import tpu as pltpu


# ---------------------------------------------------------------------------
# Fused Inception kernel: one grid step == one batch element.
# ---------------------------------------------------------------------------
def inception_kernel(xp_ref, wred_ref, bred_ref, wtap_ref, w4_ref, ball_ref,
                     o_ref, red_ref):
    _, H, W, _ = o_ref.shape
    xp = xp_ref[0]                                    # (H+4, W+4, Cin), reflect pad 2

    # Fused 1x1 reductions (redu1 | redu2 | redu3): ONE MXU matmul + bias + ReLU,
    # computed over the padded slab so branches 2/3 get their halo for free.
    red = jax.lax.dot_general(
        xp, wred_ref[...],
        dimension_numbers=(((2,), (0,)), ((), ())),
        preferred_element_type=jnp.float32)
    red_ref[...] = jnp.maximum(red + bred_ref[...], 0.0)       # stays in VMEM

    # Branch 4: 3x3/stride-1 max-pool via a balanced max tree (reflect halo of the
    # pad-2 slab gives the same result as the -inf-padded nn.MaxPool2d), then its
    # 1x1 conv seeds the shared accumulator (disjoint output-channel columns).
    taps = [xp[1 + kh:1 + kh + H, 1 + kw:1 + kw + W, :]
            for kh in range(3) for kw in range(3)]
    while len(taps) > 1:
        nxt = [jnp.maximum(taps[i], taps[i + 1])
               for i in range(0, len(taps) - 1, 2)]
        if len(taps) % 2:
            nxt.append(taps[-1])
        taps = nxt
    acc = jax.lax.dot_general(
        taps[0], w4_ref[...],
        dimension_numbers=(((2,), (0,)), ((), ())),
        preferred_element_type=jnp.float32)                     # (H, W, Ctot)

    # Branches 1/2/3: one shared 5x5 tap loop over the fused reduced activation.
    # Each tap is a single (Cr -> Ctot) matmul; the 3x3 branch lives in the central
    # 3x3 taps and branch 1 is an identity at the centre tap, all in disjoint
    # output-channel columns, so one accumulator covers everything.
    # TODO(synk): once unaligned minor-dim concatenation is guaranteed, build an
    #             im2col patch matrix here and collapse the 25 taps into one matmul.
    for kh in range(5):
        for kw in range(5):
            tap = red_ref[kh:kh + H, kw:kw + W, :]
            acc = acc + jax.lax.dot_general(
                tap, wtap_ref[kh, kw],
                dimension_numbers=(((2,), (0,)), ((), ())),
                preferred_element_type=jnp.float32)

    # Single fused bias + ReLU; one lane-dense store of the concatenated output.
    o_ref[0] = jnp.maximum(acc + ball_ref[...], 0.0)


def inception_pallas(xp, w_red, b_red, w_tap, w4_full, b_all, out_hw, c_total):
    N, Hp, Wp, Cin = xp.shape
    H, W = out_hw
    Cr = w_red.shape[1]
    return pl.pallas_call(
        inception_kernel,
        out_shape=jax.ShapeDtypeStruct((N, H, W, c_total), jnp.float32),
        grid=(N,),
        in_specs=[
            pl.BlockSpec((1, Hp, Wp, Cin), lambda n: (n, 0, 0, 0)),
            pl.BlockSpec(w_red.shape, lambda n: (0, 0)),
            pl.BlockSpec(b_red.shape, lambda n: (0, 0)),
            pl.BlockSpec(w_tap.shape, lambda n: (0, 0, 0, 0)),
            pl.BlockSpec(w4_full.shape, lambda n: (0, 0)),
            pl.BlockSpec(b_all.shape, lambda n: (0, 0)),
        ],
        out_specs=pl.BlockSpec((1, H, W, c_total), lambda n: (n, 0, 0, 0)),
        scratch_shapes=[pltpu.VMEM((Hp, Wp, Cr), jnp.float32)],
        compiler_params=pltpu.CompilerParams(
            dimension_semantics=("parallel",)),
    )(xp, w_red, b_red, w_tap, w4_full, b_all)


# ---------------------------------------------------------------------------
# Fused-weight construction (done once, outside the kernel).
# ---------------------------------------------------------------------------
def build_fused_params(params, d1, dims_3, dims_5, dp):
    c3r, c3o = dims_3
    c5r, c5o = dims_5
    cr = d1 + c3r + c5r                      # fused 1x1-reduce channels
    ct = d1 + c3o + c5o + dp                 # concatenated output channels

    w1, b1 = params["redu1"]                 # (Cin, d1)
    w2, b2 = params["redu2"]                 # (Cin, c3r)
    w3, b3 = params["conv1"]                 # (3, 3, c3r, c3o)
    w3r, b3r = params["redu3"]               # (Cin, c5r)
    w5, b5 = params["conv2"]                 # (5, 5, c5r, c5o)
    w4, b4 = params["redu4"]                 # (Cin, dp)
    cin = w1.shape[0]

    # Fused 1x1 reduction weights: [redu1 | redu2 | redu3] along Cout.
    w_red = jnp.concatenate([w1, w2, w3r], axis=1)            # (Cin, Cr)
    b_red = jnp.concatenate([b1, b2, b3r])[None, :]           # (1, Cr)

    # Combined per-tap (Cr -> Ctot) weights for branches 1/2/3 over a 5x5 window.
    w_tap = jnp.zeros((5, 5, cr, ct), jnp.float32)
    # branch 3: 5x5 conv on the redu3 channels -> its output-channel columns.
    w_tap = w_tap.at[:, :, d1 + c3r:cr, d1 + c3o:d1 + c3o + c5o].set(w5)
    # branch 2: 3x3 conv on the redu2 channels, centred in the 5x5 window.
    w_tap = w_tap.at[1:4, 1:4, d1:d1 + c3r, d1:d1 + c3o].set(w3)
    # branch 1: identity placement of the redu1 channels at the centre tap.
    w_tap = w_tap.at[2, 2, :d1, :d1].set(jnp.eye(d1, dtype=jnp.float32))

    # branch 4: pooled 1x1, placed in the trailing output-channel columns.
    w4_full = jnp.zeros((cin, ct), jnp.float32).at[:, d1 + c3o + c5o:].set(w4)

    # Combined output bias (single in-kernel bias+ReLU).  Branch-1 columns stay 0:
    # its bias & ReLU were already applied inside the fused reduction.
    b_all = jnp.zeros((ct,), jnp.float32)
    b_all = b_all.at[d1:d1 + c3o].set(b3)
    b_all = b_all.at[d1 + c3o:d1 + c3o + c5o].set(b5)
    b_all = b_all.at[d1 + c3o + c5o:].set(b4)
    return w_red, b_red, w_tap, w4_full, b_all[None, :]


# ---------------------------------------------------------------------------
# Parameter construction (deterministic, PyTorch Conv2d-style uniform init).
# Weights stored channels-last: 1x1 -> (Cin, Cout); KxK -> (K, K, Cin, Cout).
# ---------------------------------------------------------------------------
def init_conv_params(key, cin, cout, k):
    kw_key, kb_key = jax.random.split(key)
    bound = 1.0 / sqrt(cin * k * k)
    if k == 1:
        w = jax.random.uniform(kw_key, (cin, cout), jnp.float32, -bound, bound)
    else:
        w = jax.random.uniform(kw_key, (k, k, cin, cout), jnp.float32, -bound, bound)
    b = jax.random.uniform(kb_key, (cout,), jnp.float32, -bound, bound)
    return w, b


def make_inception_params(key, dim_in, dim_1, dims_3, dims_5, dim_pool):
    keys = jax.random.split(key, 6)
    return {
        "redu1": init_conv_params(keys[0], dim_in, dim_1, 1),
        "redu2": init_conv_params(keys[1], dim_in, dims_3[0], 1),
        "conv1": init_conv_params(keys[2], dims_3[0], dims_3[1], 3),
        "redu3": init_conv_params(keys[3], dim_in, dims_5[0], 1),
        "conv2": init_conv_params(keys[4], dims_5[0], dims_5[1], 5),
        "redu4": init_conv_params(keys[5], dim_in, dim_pool, 1),
    }


# ---------------------------------------------------------------------------
# Forward pass (matches GoogLeNetInception.forward).
# ---------------------------------------------------------------------------
def googlenet_inception_forward(params, x_nchw):
    d1 = params["redu1"][0].shape[1]
    c3r, c3o = params["conv1"][0].shape[2:4]
    c5r, c5o = params["conv2"][0].shape[2:4]
    dp = params["redu4"][0].shape[1]
    c_total = d1 + c3o + c5o + dp

    x = jnp.transpose(x_nchw, (0, 2, 3, 1)).astype(jnp.float32)    # NCHW -> NHWC
    N, H, W, _ = x.shape

    # One reflect pad (by 2) of the raw input feeds every branch:
    #  - reflect-pad(relu(1x1(x))) == relu(1x1(reflect-pad(x)))  (pointwise commutes)
    #  - 3x3 max over the reflect halo equals the -inf-padded MaxPool2d.
    # TODO(synk): for large H*W, tile rows with an in-kernel halo DMA instead of
    #             materializing a padded copy in HBM.
    xp = jnp.pad(x, ((0, 0), (2, 2), (2, 2), (0, 0)), mode="reflect")

    w_red, b_red, w_tap, w4_full, b_all = build_fused_params(
        params, d1, (c3r, c3o), (c5r, c5o), dp)

    out = inception_pallas(xp, w_red, b_red, w_tap, w4_full, b_all, (H, W), c_total)
    return jnp.transpose(out, (0, 3, 1, 2))                        # NHWC -> NCHW


# ---------------------------------------------------------------------------
# Pure-JAX reference (mirrors the PyTorch module) for a correctness check.
# ---------------------------------------------------------------------------
def reference_forward(params, x_nchw):
    x = jnp.transpose(x_nchw, (0, 2, 3, 1)).astype(jnp.float32)

    def conv1x1(v, w, b):
        return jax.nn.relu(
            jnp.einsum("nhwc,co->nhwo", v, w,
                       precision=jax.lax.Precision.HIGHEST) + b)

    def convk(v, w, b, k):
        p = k // 2
        vp = jnp.pad(v, ((0, 0), (p, p), (p, p), (0, 0)), mode="reflect")
        y = jax.lax.conv_general_dilated(
            vp, w, (1, 1), "VALID",
            dimension_numbers=("NHWC", "HWIO", "NHWC"),
            precision=jax.lax.Precision.HIGHEST)
        return jax.nn.relu(y + b)

    x1 = conv1x1(x, *params["redu1"])
    x2 = convk(conv1x1(x, *params["redu2"]), *params["conv1"], 3)
    x3 = convk(conv1x1(x, *params["redu3"]), *params["conv2"], 5)
    pooled = jax.lax.reduce_window(x, -jnp.inf, jax.lax.max,
                                   (1, 3, 3, 1), (1, 1, 1, 1),
                                   [(0, 0), (1, 1), (1, 1), (0, 0)])
    x4 = conv1x1(pooled, *params["redu4"])
    out = jnp.concatenate([x1, x2, x3, x4], axis=-1)
    return jnp.transpose(out, (0, 3, 1, 2))


if __name__ == "__main__":
    # Small, module-consistent shapes.
    N, C_in, H, W = 2, 4, 16, 16
    dim_1, dims_3, dims_5, dim_pool = 4, (4, 8), (2, 4), 4

    key = jax.random.PRNGKey(0)
    pkey, xkey = jax.random.split(key)
    params = make_inception_params(pkey, C_in, dim_1, dims_3, dims_5, dim_pool)
    x = jax.random.normal(xkey, (N, C_in, H, W), jnp.float32)

    out = jax.jit(googlenet_inception_forward)(params, x)
    out = jax.block_until_ready(out)

    expected_c = dim_1 + dims_3[1] + dims_5[1] + dim_pool
    assert out.shape == (N, expected_c, H, W), out.shape
    assert jnp.all(jnp.isfinite(out)) and jnp.all(out >= 0.0)

    ref = reference_forward(params, x)
    max_err = float(jnp.max(jnp.abs(out - ref)))
    assert jnp.allclose(out, ref, atol=2e-2, rtol=2e-2), max_err

    print("KERNEL_OK")
</pallas_src>

<mosaic_0001>
module attributes {stable_mosaic.version = 11 : i64} {
  func.func @inception_kernel(%arg0: i32, %arg1: memref<1x20x20x4xf32, #tpu.memory_space<vmem>>, %arg2: memref<4x10xf32, #tpu.memory_space<vmem>>, %arg3: memref<1x10xf32, #tpu.memory_space<vmem>>, %arg4: memref<5x5x10x20xf32, #tpu.memory_space<vmem>>, %arg5: memref<4x20xf32, #tpu.memory_space<vmem>>, %arg6: memref<1x20xf32, #tpu.memory_space<vmem>>, %arg7: memref<1x16x16x20xf32, #tpu.memory_space<vmem>>, %arg8: memref<20x20x10xf32, #tpu.memory_space<vmem>>) attributes {dimension_semantics = [#tpu.dimension_semantics<parallel>], iteration_bounds = array<i64: 2>, scalar_prefetch = 0 : i64, scratch_operands = 1 : i64, tpu.core_type = #tpu.core_type<tc>, window_params = [{transform_indices = @transform_0, window_bounds = array<i64: 1, 20, 20, 4>}, {pipeline_mode = #tpu.pipeline_mode<synchronous>, transform_indices = @transform_1, window_bounds = array<i64: 4, 10>}, {pipeline_mode = #tpu.pipeline_mode<synchronous>, transform_indices = @transform_2, window_bounds = array<i64: 1, 10>}, {pipeline_mode = #tpu.pipeline_mode<synchronous>, transform_indices = @transform_3, window_bounds = array<i64: 5, 5, 10, 20>}, {pipeline_mode = #tpu.pipeline_mode<synchronous>, transform_indices = @transform_4, window_bounds = array<i64: 4, 20>}, {pipeline_mode = #tpu.pipeline_mode<synchronous>, transform_indices = @transform_5, window_bounds = array<i64: 1, 20>}, {transform_indices = @transform_6, window_bounds = array<i64: 1, 16, 16, 20>}]} {
    %c0 = arith.constant 0 : index
    %c0_0 = arith.constant 0 : index
    %c0_1 = arith.constant 0 : index
    %c0_2 = arith.constant 0 : index
    %0 = vector.load %arg1[%c0, %c0_0, %c0_1, %c0_2] : memref<1x20x20x4xf32, #tpu.memory_space<vmem>>, vector<1x20x20x4xf32>
    %1 = vector.shape_cast %0 : vector<1x20x20x4xf32> to vector<20x20x4xf32>
    %c0_3 = arith.constant 0 : index
    %c0_4 = arith.constant 0 : index
    %2 = vector.load %arg2[%c0_3, %c0_4] : memref<4x10xf32, #tpu.memory_space<vmem>>, vector<4x10xf32>
    %cst = arith.constant dense<0.000000e+00> : vector<20x20x10xf32>
    %3 = tpu.matmul %1, %2, %cst {dimension_numbers = #tpu.dot_dimension_numbers<[2], [0], [0, 1], [1], [0, 0, 0, 1, 1, 1], [], []>} : vector<20x20x4xf32>, vector<4x10xf32>, vector<20x20x10xf32> -> vector<20x20x10xf32>
    %c0_5 = arith.constant 0 : index
    %c0_6 = arith.constant 0 : index
    %4 = vector.load %arg3[%c0_5, %c0_6] : memref<1x10xf32, #tpu.memory_space<vmem>>, vector<1x10xf32>
    %5 = vector.shape_cast %4 : vector<1x10xf32> to vector<1x1x10xf32>
    %6 = vector.broadcast %5 : vector<1x1x10xf32> to vector<20x20x10xf32>
    %7 = arith.addf %3, %6 : vector<20x20x10xf32>
    %cst_7 = arith.constant 0.000000e+00 : f32
    %8 = vector.broadcast %cst_7 : f32 to vector<20x20x10xf32>
    %9 = arith.maximumf %7, %8 : vector<20x20x10xf32>
    %c0_8 = arith.constant 0 : index
    %c0_9 = arith.constant 0 : index
    %c0_10 = arith.constant 0 : index
    %10 = vector.load %arg8[%c0_8, %c0_9, %c0_10] : memref<20x20x10xf32, #tpu.memory_space<vmem>>, vector<20x20x10xf32>
    tpu.vector_store %arg8[%c0_8, %c0_9, %c0_10], %9 {strides = array<i32>} : memref<20x20x10xf32, #tpu.memory_space<vmem>>, vector<20x20x10xf32>,
    %11 = vector.extract_strided_slice %1 {offsets = [1, 1, 0], sizes = [16, 16, 4], strides = [1, 1, 1]} : vector<20x20x4xf32> to vector<16x16x4xf32>
    %12 = vector.extract_strided_slice %1 {offsets = [1, 2, 0], sizes = [16, 16, 4], strides = [1, 1, 1]} : vector<20x20x4xf32> to vector<16x16x4xf32>
    %13 = vector.extract_strided_slice %1 {offsets = [1, 3, 0], sizes = [16, 16, 4], strides = [1, 1, 1]} : vector<20x20x4xf32> to vector<16x16x4xf32>
    %14 = vector.extract_strided_slice %1 {offsets = [2, 1, 0], sizes = [16, 16, 4], strides = [1, 1, 1]} : vector<20x20x4xf32> to vector<16x16x4xf32>
    %15 = vector.extract_strided_slice %1 {offsets = [2, 2, 0], sizes = [16, 16, 4], strides = [1, 1, 1]} : vector<20x20x4xf32> to vector<16x16x4xf32>
    %16 = vector.extract_strided_slice %1 {offsets = [2, 3, 0], sizes = [16, 16, 4], strides = [1, 1, 1]} : vector<20x20x4xf32> to vector<16x16x4xf32>
    %17 = vector.extract_strided_slice %1 {offsets = [3, 1, 0], sizes = [16, 16, 4], strides = [1, 1, 1]} : vector<20x20x4xf32> to vector<16x16x4xf32>
    %18 = vector.extract_strided_slice %1 {offsets = [3, 2, 0], sizes = [16, 16, 4], strides = [1, 1, 1]} : vector<20x20x4xf32> to vector<16x16x4xf32>
    %19 = vector.extract_strided_slice %1 {offsets = [3, 3, 0], sizes = [16, 16, 4], strides = [1, 1, 1]} : vector<20x20x4xf32> to vector<16x16x4xf32>
    %20 = arith.maximumf %11, %12 : vector<16x16x4xf32>
    %21 = arith.maximumf %13, %14 : vector<16x16x4xf32>
    %22 = arith.maximumf %15, %16 : vector<16x16x4xf32>
    %23 = arith.maximumf %17, %18 : vector<16x16x4xf32>
    %24 = arith.maximumf %20, %21 : vector<16x16x4xf32>
    %25 = arith.maximumf %22, %23 : vector<16x16x4xf32>
    %26 = arith.maximumf %24, %25 : vector<16x16x4xf32>
    %27 = arith.maximumf %26, %19 : vector<16x16x4xf32>
    %c0_11 = arith.constant 0 : index
    %c0_12 = arith.constant 0 : index
    %28 = vector.load %arg5[%c0_11, %c0_12] : memref<4x20xf32, #tpu.memory_space<vmem>>, vector<4x20xf32>
    %cst_13 = arith.constant dense<0.000000e+00> : vector<16x16x20xf32>
    %29 = tpu.matmul %27, %28, %cst_13 {dimension_numbers = #tpu.dot_dimension_numbers<[2], [0], [0, 1], [1], [0, 0, 0, 1, 1, 1], [], []>} : vector<16x16x4xf32>, vector<4x20xf32>, vector<16x16x20xf32> -> vector<16x16x20xf32>
    %c0_14 = arith.constant 0 : index
    %c0_15 = arith.constant 0 : index
    %c0_16 = arith.constant 0 : index
    %30 = vector.load %arg8[%c0_14, %c0_15, %c0_16] : memref<20x20x10xf32, #tpu.memory_space<vmem>>, vector<16x16x10xf32>
    %c0_17 = arith.constant 0 : index
    %c0_18 = arith.constant 0 : index
    %c0_19 = arith.constant 0 : index
    %c0_20 = arith.constant 0 : index
    %31 = vector.load %arg4[%c0_17, %c0_18, %c0_19, %c0_20] : memref<5x5x10x20xf32, #tpu.memory_space<vmem>>, vector<1x1x10x20xf32>
    %32 = vector.shape_cast %31 : vector<1x1x10x20xf32> to vector<10x20xf32>
    %cst_21 = arith.constant dense<0.000000e+00> : vector<16x16x20xf32>
    %33 = tpu.matmul %30, %32, %cst_21 {dimension_numbers = #tpu.dot_dimension_numbers<[2], [0], [0, 1], [1], [0, 0, 0, 1, 1, 1], [], []>} : vector<16x16x10xf32>, vector<10x20xf32>, vector<16x16x20xf32> -> vector<16x16x20xf32>
    %34 = arith.addf %29, %33 : vector<16x16x20xf32>
    %c0_22 = arith.constant 0 : index
    %c1 = arith.constant 1 : index
    %c0_23 = arith.constant 0 : index
    %35 = vector.load %arg8[%c0_22, %c1, %c0_23] : memref<20x20x10xf32, #tpu.memory_space<vmem>>, vector<16x16x10xf32>
    %c0_24 = arith.constant 0 : index
    %c1_25 = arith.constant 1 : index
    %c0_26 = arith.constant 0 : index
    %c0_27 = arith.constant 0 : index
    %36 = vector.load %arg4[%c0_24, %c1_25, %c0_26, %c0_27] : memref<5x5x10x20xf32, #tpu.memory_space<vmem>>, vector<1x1x10x20xf32>
    %37 = vector.shape_cast %36 : vector<1x1x10x20xf32> to vector<10x20xf32>
    %cst_28 = arith.constant dense<0.000000e+00> : vector<16x16x20xf32>
    %38 = tpu.matmul %35, %37, %cst_28 {dimension_numbers = #tpu.dot_dimension_numbers<[2], [0], [0, 1], [1], [0, 0, 0, 1, 1, 1], [], []>} : vector<16x16x10xf32>, vector<10x20xf32>, vector<16x16x20xf32> -> vector<16x16x20xf32>
    %39 = arith.addf %34, %38 : vector<16x16x20xf32>
    %c0_29 = arith.constant 0 : index
    %c2 = arith.constant 2 : index
    %c0_30 = arith.constant 0 : index
    %40 = vector.load %arg8[%c0_29, %c2, %c0_30] : memref<20x20x10xf32, #tpu.memory_space<vmem>>, vector<16x16x10xf32>
    %c0_31 = arith.constant 0 : index
    %c2_32 = arith.constant 2 : index
    %c0_33 = arith.constant 0 : index
    %c0_34 = arith.constant 0 : index
    %41 = vector.load %arg4[%c0_31, %c2_32, %c0_33, %c0_34] : memref<5x5x10x20xf32, #tpu.memory_space<vmem>>, vector<1x1x10x20xf32>
    %42 = vector.shape_cast %41 : vector<1x1x10x20xf32> to vector<10x20xf32>
    %cst_35 = arith.constant dense<0.000000e+00> : vector<16x16x20xf32>
    %43 = tpu.matmul %40, %42, %cst_35 {dimension_numbers = #tpu.dot_dimension_numbers<[2], [0], [0, 1], [1], [0, 0, 0, 1, 1, 1], [], []>} : vector<16x16x10xf32>, vector<10x20xf32>, vector<16x16x20xf32> -> vector<16x16x20xf32>
    %44 = arith.addf %39, %43 : vector<16x16x20xf32>
    %c0_36 = arith.constant 0 : index
    %c3 = arith.constant 3 : index
    %c0_37 = arith.constant 0 : index
    %45 = vector.load %arg8[%c0_36, %c3, %c0_37] : memref<20x20x10xf32, #tpu.memory_space<vmem>>, vector<16x16x10xf32>
    %c0_38 = arith.constant 0 : index
    %c3_39 = arith.constant 3 : index
    %c0_40 = arith.constant 0 : index
    %c0_41 = arith.constant 0 : index
    %46 = vector.load %arg4[%c0_38, %c3_39, %c0_40, %c0_41] : memref<5x5x10x20xf32, #tpu.memory_space<vmem>>, vector<1x1x10x20xf32>
    %47 = vector.shape_cast %46 : vector<1x1x10x20xf32> to vector<10x20xf32>
    %cst_42 = arith.constant dense<0.000000e+00> : vector<16x16x20xf32>
    %48 = tpu.matmul %45, %47, %cst_42 {dimension_numbers = #tpu.dot_dimension_numbers<[2], [0], [0, 1], [1], [0, 0, 0, 1, 1, 1], [], []>} : vector<16x16x10xf32>, vector<10x20xf32>, vector<16x16x20xf32> -> vector<16x16x20xf32>
    %49 = arith.addf %44, %48 : vector<16x16x20xf32>
    %c0_43 = arith.constant 0 : index
    %c4 = arith.constant 4 : index
    %c0_44 = arith.constant 0 : index
    %50 = vector.load %arg8[%c0_43, %c4, %c0_44] : memref<20x20x10xf32, #tpu.memory_space<vmem>>, vector<16x16x10xf32>
    %c0_45 = arith.constant 0 : index
    %c4_46 = arith.constant 4 : index
    %c0_47 = arith.constant 0 : index
    %c0_48 = arith.constant 0 : index
    %51 = vector.load %arg4[%c0_45, %c4_46, %c0_47, %c0_48] : memref<5x5x10x20xf32, #tpu.memory_space<vmem>>, vector<1x1x10x20xf32>
    %52 = vector.shape_cast %51 : vector<1x1x10x20xf32> to vector<10x20xf32>
    %cst_49 = arith.constant dense<0.000000e+00> : vector<16x16x20xf32>
    %53 = tpu.matmul %50, %52, %cst_49 {dimension_numbers = #tpu.dot_dimension_numbers<[2], [0], [0, 1], [1], [0, 0, 0, 1, 1, 1], [], []>} : vector<16x16x10xf32>, vector<10x20xf32>, vector<16x16x20xf32> -> vector<16x16x20xf32>
    %54 = arith.addf %49, %53 : vector<16x16x20xf32>
    %c1_50 = arith.constant 1 : index
    %c0_51 = arith.constant 0 : index
    %c0_52 = arith.constant 0 : index
    %55 = vector.load %arg8[%c1_50, %c0_51, %c0_52] : memref<20x20x10xf32, #tpu.memory_space<vmem>>, vector<16x16x10xf32>
    %c1_53 = arith.constant 1 : index
    %c0_54 = arith.constant 0 : index
    %c0_55 = arith.constant 0 : index
    %c0_56 = arith.constant 0 : index
    %56 = vector.load %arg4[%c1_53, %c0_54, %c0_55, %c0_56] : memref<5x5x10x20xf32, #tpu.memory_space<vmem>>, vector<1x1x10x20xf32>
    %57 = vector.shape_cast %56 : vector<1x1x10x20xf32> to vector<10x20xf32>
    %cst_57 = arith.constant dense<0.000000e+00> : vector<16x16x20xf32>
    %58 = tpu.matmul %55, %57, %cst_57 {dimension_numbers = #tpu.dot_dimension_numbers<[2], [0], [0, 1], [1], [0, 0, 0, 1, 1, 1], [], []>} : vector<16x16x10xf32>, vector<10x20xf32>, vector<16x16x20xf32> -> vector<16x16x20xf32>
    %59 = arith.addf %54, %58 : vector<16x16x20xf32>
    %c1_58 = arith.constant 1 : index
    %c1_59 = arith.constant 1 : index
    %c0_60 = arith.constant 0 : index
    %60 = vector.load %arg8[%c1_58, %c1_59, %c0_60] : memref<20x20x10xf32, #tpu.memory_space<vmem>>, vector<16x16x10xf32>
    %c1_61 = arith.constant 1 : index
    %c1_62 = arith.constant 1 : index
    %c0_63 = arith.constant 0 : index
    %c0_64 = arith.constant 0 : index
    %61 = vector.load %arg4[%c1_61, %c1_62, %c0_63, %c0_64] : memref<5x5x10x20xf32, #tpu.memory_space<vmem>>, vector<1x1x10x20xf32>
    %62 = vector.shape_cast %61 : vector<1x1x10x20xf32> to vector<10x20xf32>
    %cst_65 = arith.constant dense<0.000000e+00> : vector<16x16x20xf32>
    %63 = tpu.matmul %60, %62, %cst_65 {dimension_numbers = #tpu.dot_dimension_numbers<[2], [0], [0, 1], [1], [0, 0, 0, 1, 1, 1], [], []>} : vector<16x16x10xf32>, vector<10x20xf32>, vector<16x16x20xf32> -> vector<16x16x20xf32>
    %64 = arith.addf %59, %63 : vector<16x16x20xf32>
    %c1_66 = arith.constant 1 : index
    %c2_67 = arith.constant 2 : index
    %c0_68 = arith.constant 0 : index
    %65 = vector.load %arg8[%c1_66, %c2_67, %c0_68] : memref<20x20x10xf32, #tpu.memory_space<vmem>>, vector<16x16x10xf32>
    %c1_69 = arith.constant 1 : index
    %c2_70 = arith.constant 2 : index
    %c0_71 = arith.constant 0 : index
    %c0_72 = arith.constant 0 : index
    %66 = vector.load %arg4[%c1_69, %c2_70, %c0_71, %c0_72] : memref<5x5x10x20xf32, #tpu.memory_space<vmem>>, vector<1x1x10x20xf32>
    %67 = vector.shape_cast %66 : vector<1x1x10x20xf32> to vector<10x20xf32>
    %cst_73 = arith.constant dense<0.000000e+00> : vector<16x16x20xf32>
    %68 = tpu.matmul %65, %67, %cst_73 {dimension_numbers = #tpu.dot_dimension_numbers<[2], [0], [0, 1], [1], [0, 0, 0, 1, 1, 1], [], []>} : vector<16x16x10xf32>, vector<10x20xf32>, vector<16x16x20xf32> -> vector<16x16x20xf32>
    %69 = arith.addf %64, %68 : vector<16x16x20xf32>
    %c1_74 = arith.constant 1 : index
    %c3_75 = arith.constant 3 : index
    %c0_76 = arith.constant 0 : index
    %70 = vector.load %arg8[%c1_74, %c3_75, %c0_76] : memref<20x20x10xf32, #tpu.memory_space<vmem>>, vector<16x16x10xf32>
    %c1_77 = arith.constant 1 : index
    %c3_78 = arith.constant 3 : index
    %c0_79 = arith.constant 0 : index
    %c0_80 = arith.constant 0 : index
    %71 = vector.load %arg4[%c1_77, %c3_78, %c0_79, %c0_80] : memref<5x5x10x20xf32, #tpu.memory_space<vmem>>, vector<1x1x10x20xf32>
    %72 = vector.shape_cast %71 : vector<1x1x10x20xf32> to vector<10x20xf32>
    %cst_81 = arith.constant dense<0.000000e+00> : vector<16x16x20xf32>
    %73 = tpu.matmul %70, %72, %cst_81 {dimension_numbers = #tpu.dot_dimension_numbers<[2], [0], [0, 1], [1], [0, 0, 0, 1, 1, 1], [], []>} : vector<16x16x10xf32>, vector<10x20xf32>, vector<16x16x20xf32> -> vector<16x16x20xf32>
    %74 = arith.addf %69, %73 : vector<16x16x20xf32>
    %c1_82 = arith.constant 1 : index
    %c4_83 = arith.constant 4 : index
    %c0_84 = arith.constant 0 : index
    %75 = vector.load %arg8[%c1_82, %c4_83, %c0_84] : memref<20x20x10xf32, #tpu.memory_space<vmem>>, vector<16x16x10xf32>
    %c1_85 = arith.constant 1 : index
    %c4_86 = arith.constant 4 : index
    %c0_87 = arith.constant 0 : index
    %c0_88 = arith.constant 0 : index
    %76 = vector.load %arg4[%c1_85, %c4_86, %c0_87, %c0_88] : memref<5x5x10x20xf32, #tpu.memory_space<vmem>>, vector<1x1x10x20xf32>
    %77 = vector.shape_cast %76 : vector<1x1x10x20xf32> to vector<10x20xf32>
    %cst_89 = arith.constant dense<0.000000e+00> : vector<16x16x20xf32>
    %78 = tpu.matmul %75, %77, %cst_89 {dimension_numbers = #tpu.dot_dimension_numbers<[2], [0], [0, 1], [1], [0, 0, 0, 1, 1, 1], [], []>} : vector<16x16x10xf32>, vector<10x20xf32>, vector<16x16x20xf32> -> vector<16x16x20xf32>
    %79 = arith.addf %74, %78 : vector<16x16x20xf32>
    %c2_90 = arith.constant 2 : index
    %c0_91 = arith.constant 0 : index
    %c0_92 = arith.constant 0 : index
    %80 = vector.load %arg8[%c2_90, %c0_91, %c0_92] : memref<20x20x10xf32, #tpu.memory_space<vmem>>, vector<16x16x10xf32>
    %c2_93 = arith.constant 2 : index
    %c0_94 = arith.constant 0 : index
    %c0_95 = arith.constant 0 : index
    %c0_96 = arith.constant 0 : index
    %81 = vector.load %arg4[%c2_93, %c0_94, %c0_95, %c0_96] : memref<5x5x10x20xf32, #tpu.memory_space<vmem>>, vector<1x1x10x20xf32>
    %82 = vector.shape_cast %81 : vector<1x1x10x20xf32> to vector<10x20xf32>
    %cst_97 = arith.constant dense<0.000000e+00> : vector<16x16x20xf32>
    %83 = tpu.matmul %80, %82, %cst_97 {dimension_numbers = #tpu.dot_dimension_numbers<[2], [0], [0, 1], [1], [0, 0, 0, 1, 1, 1], [], []>} : vector<16x16x10xf32>, vector<10x20xf32>, vector<16x16x20xf32> -> vector<16x16x20xf32>
    %84 = arith.addf %79, %83 : vector<16x16x20xf32>
    %c2_98 = arith.constant 2 : index
    %c1_99 = arith.constant 1 : index
    %c0_100 = arith.constant 0 : index
    %85 = vector.load %arg8[%c2_98, %c1_99, %c0_100] : memref<20x20x10xf32, #tpu.memory_space<vmem>>, vector<16x16x10xf32>
    %c2_101 = arith.constant 2 : index
    %c1_102 = arith.constant 1 : index
    %c0_103 = arith.constant 0 : index
    %c0_104 = arith.constant 0 : index
    %86 = vector.load %arg4[%c2_101, %c1_102, %c0_103, %c0_104] : memref<5x5x10x20xf32, #tpu.memory_space<vmem>>, vector<1x1x10x20xf32>
    %87 = vector.shape_cast %86 : vector<1x1x10x20xf32> to vector<10x20xf32>
    %cst_105 = arith.constant dense<0.000000e+00> : vector<16x16x20xf32>
    %88 = tpu.matmul %85, %87, %cst_105 {dimension_numbers = #tpu.dot_dimension_numbers<[2], [0], [0, 1], [1], [0, 0, 0, 1, 1, 1], [], []>} : vector<16x16x10xf32>, vector<10x20xf32>, vector<16x16x20xf32> -> vector<16x16x20xf32>
    %89 = arith.addf %84, %88 : vector<16x16x20xf32>
    %c2_106 = arith.constant 2 : index
    %c2_107 = arith.constant 2 : index
    %c0_108 = arith.constant 0 : index
    %90 = vector.load %arg8[%c2_106, %c2_107, %c0_108] : memref<20x20x10xf32, #tpu.memory_space<vmem>>, vector<16x16x10xf32>
    %c2_109 = arith.constant 2 : index
    %c2_110 = arith.constant 2 : index
    %c0_111 = arith.constant 0 : index
    %c0_112 = arith.constant 0 : index
    %91 = vector.load %arg4[%c2_109, %c2_110, %c0_111, %c0_112] : memref<5x5x10x20xf32, #tpu.memory_space<vmem>>, vector<1x1x10x20xf32>
    %92 = vector.shape_cast %91 : vector<1x1x10x20xf32> to vector<10x20xf32>
    %cst_113 = arith.constant dense<0.000000e+00> : vector<16x16x20xf32>
    %93 = tpu.matmul %90, %92, %cst_113 {dimension_numbers = #tpu.dot_dimension_numbers<[2], [0], [0, 1], [1], [0, 0, 0, 1, 1, 1], [], []>} : vector<16x16x10xf32>, vector<10x20xf32>, vector<16x16x20xf32> -> vector<16x16x20xf32>
    %94 = arith.addf %89, %93 : vector<16x16x20xf32>
    %c2_114 = arith.constant 2 : index
    %c3_115 = arith.constant 3 : index
    %c0_116 = arith.constant 0 : index
    %95 = vector.load %arg8[%c2_114, %c3_115, %c0_116] : memref<20x20x10xf32, #tpu.memory_space<vmem>>, vector<16x16x10xf32>
    %c2_117 = arith.constant 2 : index
    %c3_118 = arith.constant 3 : index
    %c0_119 = arith.constant 0 : index
    %c0_120 = arith.constant 0 : index
    %96 = vector.load %arg4[%c2_117, %c3_118, %c0_119, %c0_120] : memref<5x5x10x20xf32, #tpu.memory_space<vmem>>, vector<1x1x10x20xf32>
    %97 = vector.shape_cast %96 : vector<1x1x10x20xf32> to vector<10x20xf32>
    %cst_121 = arith.constant dense<0.000000e+00> : vector<16x16x20xf32>
    %98 = tpu.matmul %95, %97, %cst_121 {dimension_numbers = #tpu.dot_dimension_numbers<[2], [0], [0, 1], [1], [0, 0, 0, 1, 1, 1], [], []>} : vector<16x16x10xf32>, vector<10x20xf32>, vector<16x16x20xf32> -> vector<16x16x20xf32>
    %99 = arith.addf %94, %98 : vector<16x16x20xf32>
    %c2_122 = arith.constant 2 : index
    %c4_123 = arith.constant 4 : index
    %c0_124 = arith.constant 0 : index
    %100 = vector.load %arg8[%c2_122, %c4_123, %c0_124] : memref<20x20x10xf32, #tpu.memory_space<vmem>>, vector<16x16x10xf32>
    %c2_125 = arith.constant 2 : index
    %c4_126 = arith.constant 4 : index
    %c0_127 = arith.constant 0 : index
    %c0_128 = arith.constant 0 : index
    %101 = vector.load %arg4[%c2_125, %c4_126, %c0_127, %c0_128] : memref<5x5x10x20xf32, #tpu.memory_space<vmem>>, vector<1x1x10x20xf32>
    %102 = vector.shape_cast %101 : vector<1x1x10x20xf32> to vector<10x20xf32>
    %cst_129 = arith.constant dense<0.000000e+00> : vector<16x16x20xf32>
    %103 = tpu.matmul %100, %102, %cst_129 {dimension_numbers = #tpu.dot_dimension_numbers<[2], [0], [0, 1], [1], [0, 0, 0, 1, 1, 1], [], []>} : vector<16x16x10xf32>, vector<10x20xf32>, vector<16x16x20xf32> -> vector<16x16x20xf32>
    %104 = arith.addf %99, %103 : vector<16x16x20xf32>
    %c3_130 = arith.constant 3 : index
    %c0_131 = arith.constant 0 : index
    %c0_132 = arith.constant 0 : index
    %105 = vector.load %arg8[%c3_130, %c0_131, %c0_132] : memref<20x20x10xf32, #tpu.memory_space<vmem>>, vector<16x16x10xf32>
    %c3_133 = arith.constant 3 : index
    %c0_134 = arith.constant 0 : index
    %c0_135 = arith.constant 0 : index
    %c0_136 = arith.constant 0 : index
    %106 = vector.load %arg4[%c3_133, %c0_134, %c0_135, %c0_136] : memref<5x5x10x20xf32, #tpu.memory_space<vmem>>, vector<1x1x10x20xf32>
    %107 = vector.shape_cast %106 : vector<1x1x10x20xf32> to vector<10x20xf32>
    %cst_137 = arith.constant dense<0.000000e+00> : vector<16x16x20xf32>
    %108 = tpu.matmul %105, %107, %cst_137 {dimension_numbers = #tpu.dot_dimension_numbers<[2], [0], [0, 1], [1], [0, 0, 0, 1, 1, 1], [], []>} : vector<16x16x10xf32>, vector<10x20xf32>, vector<16x16x20xf32> -> vector<16x16x20xf32>
    %109 = arith.addf %104, %108 : vector<16x16x20xf32>
    %c3_138 = arith.constant 3 : index
    %c1_139 = arith.constant 1 : index
    %c0_140 = arith.constant 0 : index
    %110 = vector.load %arg8[%c3_138, %c1_139, %c0_140] : memref<20x20x10xf32, #tpu.memory_space<vmem>>, vector<16x16x10xf32>
    %c3_141 = arith.constant 3 : index
    %c1_142 = arith.constant 1 : index
    %c0_143 = arith.constant 0 : index
    %c0_144 = arith.constant 0 : index
    %111 = vector.load %arg4[%c3_141, %c1_142, %c0_143, %c0_144] : memref<5x5x10x20xf32, #tpu.memory_space<vmem>>, vector<1x1x10x20xf32>
    %112 = vector.shape_cast %111 : vector<1x1x10x20xf32> to vector<10x20xf32>
    %cst_145 = arith.constant dense<0.000000e+00> : vector<16x16x20xf32>
    %113 = tpu.matmul %110, %112, %cst_145 {dimension_numbers = #tpu.dot_dimension_numbers<[2], [0], [0, 1], [1], [0, 0, 0, 1, 1, 1], [], []>} : vector<16x16x10xf32>, vector<10x20xf32>, vector<16x16x20xf32> -> vector<16x16x20xf32>
    %114 = arith.addf %109, %113 : vector<16x16x20xf32>
    %c3_146 = arith.constant 3 : index
    %c2_147 = arith.constant 2 : index
    %c0_148 = arith.constant 0 : index
    %115 = vector.load %arg8[%c3_146, %c2_147, %c0_148] : memref<20x20x10xf32, #tpu.memory_space<vmem>>, vector<16x16x10xf32>
    %c3_149 = arith.constant 3 : index
    %c2_150 = arith.constant 2 : index
    %c0_151 = arith.constant 0 : index
    %c0_152 = arith.constant 0 : index
    %116 = vector.load %arg4[%c3_149, %c2_150, %c0_151, %c0_152] : memref<5x5x10x20xf32, #tpu.memory_space<vmem>>, vector<1x1x10x20xf32>
    %117 = vector.shape_cast %116 : vector<1x1x10x20xf32> to vector<10x20xf32>
    %cst_153 = arith.constant dense<0.000000e+00> : vector<16x16x20xf32>
    %118 = tpu.matmul %115, %117, %cst_153 {dimension_numbers = #tpu.dot_dimension_numbers<[2], [0], [0, 1], [1], [0, 0, 0, 1, 1, 1], [], []>} : vector<16x16x10xf32>, vector<10x20xf32>, vector<16x16x20xf32> -> vector<16x16x20xf32>
    %119 = arith.addf %114, %118 : vector<16x16x20xf32>
    %c3_154 = arith.constant 3 : index
    %c3_155 = arith.constant 3 : index
    %c0_156 = arith.constant 0 : index
    %120 = vector.load %arg8[%c3_154, %c3_155, %c0_156] : memref<20x20x10xf32, #tpu.memory_space<vmem>>, vector<16x16x10xf32>
    %c3_157 = arith.constant 3 : index
    %c3_158 = arith.constant 3 : index
    %c0_159 = arith.constant 0 : index
    %c0_160 = arith.constant 0 : index
    %121 = vector.load %arg4[%c3_157, %c3_158, %c0_159, %c0_160] : memref<5x5x10x20xf32, #tpu.memory_space<vmem>>, vector<1x1x10x20xf32>
    %122 = vector.shape_cast %121 : vector<1x1x10x20xf32> to vector<10x20xf32>
    %cst_161 = arith.constant dense<0.000000e+00> : vector<16x16x20xf32>
    %123 = tpu.matmul %120, %122, %cst_161 {dimension_numbers = #tpu.dot_dimension_numbers<[2], [0], [0, 1], [1], [0, 0, 0, 1, 1, 1], [], []>} : vector<16x16x10xf32>, vector<10x20xf32>, vector<16x16x20xf32> -> vector<16x16x20xf32>
    %124 = arith.addf %119, %123 : vector<16x16x20xf32>
    %c3_162 = arith.constant 3 : index
    %c4_163 = arith.constant 4 : index
    %c0_164 = arith.constant 0 : index
    %125 = vector.load %arg8[%c3_162, %c4_163, %c0_164] : memref<20x20x10xf32, #tpu.memory_space<vmem>>, vector<16x16x10xf32>
    %c3_165 = arith.constant 3 : index
    %c4_166 = arith.constant 4 : index
    %c0_167 = arith.constant 0 : index
    %c0_168 = arith.constant 0 : index
    %126 = vector.load %arg4[%c3_165, %c4_166, %c0_167, %c0_168] : memref<5x5x10x20xf32, #tpu.memory_space<vmem>>, vector<1x1x10x20xf32>
    %127 = vector.shape_cast %126 : vector<1x1x10x20xf32> to vector<10x20xf32>
    %cst_169 = arith.constant dense<0.000000e+00> : vector<16x16x20xf32>
    %128 = tpu.matmul %125, %127, %cst_169 {dimension_numbers = #tpu.dot_dimension_numbers<[2], [0], [0, 1], [1], [0, 0, 0, 1, 1, 1], [], []>} : vector<16x16x10xf32>, vector<10x20xf32>, vector<16x16x20xf32> -> vector<16x16x20xf32>
    %129 = arith.addf %124, %128 : vector<16x16x20xf32>
    %c4_170 = arith.constant 4 : index
    %c0_171 = arith.constant 0 : index
    %c0_172 = arith.constant 0 : index
    %130 = vector.load %arg8[%c4_170, %c0_171, %c0_172] : memref<20x20x10xf32, #tpu.memory_space<vmem>>, vector<16x16x10xf32>
    %c4_173 = arith.constant 4 : index
    %c0_174 = arith.constant 0 : index
    %c0_175 = arith.constant 0 : index
    %c0_176 = arith.constant 0 : index
    %131 = vector.load %arg4[%c4_173, %c0_174, %c0_175, %c0_176] : memref<5x5x10x20xf32, #tpu.memory_space<vmem>>, vector<1x1x10x20xf32>
    %132 = vector.shape_cast %131 : vector<1x1x10x20xf32> to vector<10x20xf32>
    %cst_177 = arith.constant dense<0.000000e+00> : vector<16x16x20xf32>
    %133 = tpu.matmul %130, %132, %cst_177 {dimension_numbers = #tpu.dot_dimension_numbers<[2], [0], [0, 1], [1], [0, 0, 0, 1, 1, 1], [], []>} : vector<16x16x10xf32>, vector<10x20xf32>, vector<16x16x20xf32> -> vector<16x16x20xf32>
    %134 = arith.addf %129, %133 : vector<16x16x20xf32>
    %c4_178 = arith.constant 4 : index
    %c1_179 = arith.constant 1 : index
    %c0_180 = arith.constant 0 : index
    %135 = vector.load %arg8[%c4_178, %c1_179, %c0_180] : memref<20x20x10xf32, #tpu.memory_space<vmem>>, vector<16x16x10xf32>
    %c4_181 = arith.constant 4 : index
    %c1_182 = arith.constant 1 : index
    %c0_183 = arith.constant 0 : index
    %c0_184 = arith.constant 0 : index
    %136 = vector.load %arg4[%c4_181, %c1_182, %c0_183, %c0_184] : memref<5x5x10x20xf32, #tpu.memory_space<vmem>>, vector<1x1x10x20xf32>
    %137 = vector.shape_cast %136 : vector<1x1x10x20xf32> to vector<10x20xf32>
    %cst_185 = arith.constant dense<0.000000e+00> : vector<16x16x20xf32>
    %138 = tpu.matmul %135, %137, %cst_185 {dimension_numbers = #tpu.dot_dimension_numbers<[2], [0], [0, 1], [1], [0, 0, 0, 1, 1, 1], [], []>} : vector<16x16x10xf32>, vector<10x20xf32>, vector<16x16x20xf32> -> vector<16x16x20xf32>
    %139 = arith.addf %134, %138 : vector<16x16x20xf32>
    %c4_186 = arith.constant 4 : index
    %c2_187 = arith.constant 2 : index
    %c0_188 = arith.constant 0 : index
    %140 = vector.load %arg8[%c4_186, %c2_187, %c0_188] : memref<20x20x10xf32, #tpu.memory_space<vmem>>, vector<16x16x10xf32>
    %c4_189 = arith.constant 4 : index
    %c2_190 = arith.constant 2 : index
    %c0_191 = arith.constant 0 : index
    %c0_192 = arith.constant 0 : index
    %141 = vector.load %arg4[%c4_189, %c2_190, %c0_191, %c0_192] : memref<5x5x10x20xf32, #tpu.memory_space<vmem>>, vector<1x1x10x20xf32>
    %142 = vector.shape_cast %141 : vector<1x1x10x20xf32> to vector<10x20xf32>
    %cst_193 = arith.constant dense<0.000000e+00> : vector<16x16x20xf32>
    %143 = tpu.matmul %140, %142, %cst_193 {dimension_numbers = #tpu.dot_dimension_numbers<[2], [0], [0, 1], [1], [0, 0, 0, 1, 1, 1], [], []>} : vector<16x16x10xf32>, vector<10x20xf32>, vector<16x16x20xf32> -> vector<16x16x20xf32>
    %144 = arith.addf %139, %143 : vector<16x16x20xf32>
    %c4_194 = arith.constant 4 : index
    %c3_195 = arith.constant 3 : index
    %c0_196 = arith.constant 0 : index
    %145 = vector.load %arg8[%c4_194, %c3_195, %c0_196] : memref<20x20x10xf32, #tpu.memory_space<vmem>>, vector<16x16x10xf32>
    %c4_197 = arith.constant 4 : index
    %c3_198 = arith.constant 3 : index
    %c0_199 = arith.constant 0 : index
    %c0_200 = arith.constant 0 : index
    %146 = vector.load %arg4[%c4_197, %c3_198, %c0_199, %c0_200] : memref<5x5x10x20xf32, #tpu.memory_space<vmem>>, vector<1x1x10x20xf32>
    %147 = vector.shape_cast %146 : vector<1x1x10x20xf32> to vector<10x20xf32>
    %cst_201 = arith.constant dense<0.000000e+00> : vector<16x16x20xf32>
    %148 = tpu.matmul %145, %147, %cst_201 {dimension_numbers = #tpu.dot_dimension_numbers<[2], [0], [0, 1], [1], [0, 0, 0, 1, 1, 1], [], []>} : vector<16x16x10xf32>, vector<10x20xf32>, vector<16x16x20xf32> -> vector<16x16x20xf32>
    %149 = arith.addf %144, %148 : vector<16x16x20xf32>
    %c4_202 = arith.constant 4 : index
    %c4_203 = arith.constant 4 : index
    %c0_204 = arith.constant 0 : index
    %150 = vector.load %arg8[%c4_202, %c4_203, %c0_204] : memref<20x20x10xf32, #tpu.memory_space<vmem>>, vector<16x16x10xf32>
    %c4_205 = arith.constant 4 : index
    %c4_206 = arith.constant 4 : index
    %c0_207 = arith.constant 0 : index
    %c0_208 = arith.constant 0 : index
    %151 = vector.load %arg4[%c4_205, %c4_206, %c0_207, %c0_208] : memref<5x5x10x20xf32, #tpu.memory_space<vmem>>, vector<1x1x10x20xf32>
    %152 = vector.shape_cast %151 : vector<1x1x10x20xf32> to vector<10x20xf32>
    %cst_209 = arith.constant dense<0.000000e+00> : vector<16x16x20xf32>
    %153 = tpu.matmul %150, %152, %cst_209 {dimension_numbers = #tpu.dot_dimension_numbers<[2], [0], [0, 1], [1], [0, 0, 0, 1, 1, 1], [], []>} : vector<16x16x10xf32>, vector<10x20xf32>, vector<16x16x20xf32> -> vector<16x16x20xf32>
    %154 = arith.addf %149, %153 : vector<16x16x20xf32>
    %c0_210 = arith.constant 0 : index
    %c0_211 = arith.constant 0 : index
    %155 = vector.load %arg6[%c0_210, %c0_211] : memref<1x20xf32, #tpu.memory_space<vmem>>, vector<1x20xf32>
    %156 = vector.shape_cast %155 : vector<1x20xf32> to vector<1x1x20xf32>
    %157 = vector.broadcast %156 : vector<1x1x20xf32> to vector<16x16x20xf32>
    %158 = arith.addf %154, %157 : vector<16x16x20xf32>
    %cst_212 = arith.constant 0.000000e+00 : f32
    %159 = vector.broadcast %cst_212 : f32 to vector<16x16x20xf32>
    %160 = arith.maximumf %158, %159 : vector<16x16x20xf32>
    %c0_213 = arith.constant 0 : index
    %c0_214 = arith.constant 0 : index
    %c0_215 = arith.constant 0 : index
    %c0_216 = arith.constant 0 : index
    %161 = vector.load %arg7[%c0_213, %c0_214, %c0_215, %c0_216] : memref<1x16x16x20xf32, #tpu.memory_space<vmem>>, vector<1x16x16x20xf32>
    %162 = vector.shape_cast %161 : vector<1x16x16x20xf32> to vector<16x16x20xf32>
    %163 = vector.shape_cast %160 : vector<16x16x20xf32> to vector<1x16x16x20xf32>
    tpu.vector_store %arg7[%c0_213, %c0_214, %c0_215, %c0_216], %163 {strides = array<i32>} : memref<1x16x16x20xf32, #tpu.memory_space<vmem>>, vector<1x16x16x20xf32>,
    return
  }
  func.func @transform_0(%arg0: i32) -> (i32, i32, i32, i32) {
    %c0_i32 = arith.constant 0 : i32
    %c0_i32_0 = arith.constant 0 : i32
    %c0_i32_1 = arith.constant 0 : i32
    %c0_i32_2 = arith.constant 0 : i32
    return %arg0, %c0_i32, %c0_i32_0, %c0_i32_1 : i32, i32, i32, i32
  }
  func.func @transform_1(%arg0: i32) -> (i32, i32) {
    %c0_i32 = arith.constant 0 : i32
    %c0_i32_0 = arith.constant 0 : i32
    %c0_i32_1 = arith.constant 0 : i32
    return %c0_i32, %c0_i32_0 : i32, i32
  }
  func.func @transform_2(%arg0: i32) -> (i32, i32) {
    %c0_i32 = arith.constant 0 : i32
    %c0_i32_0 = arith.constant 0 : i32
    %c0_i32_1 = arith.constant 0 : i32
    return %c0_i32, %c0_i32_0 : i32, i32
  }
  func.func @transform_3(%arg0: i32) -> (i32, i32, i32, i32) {
    %c0_i32 = arith.constant 0 : i32
    %c0_i32_0 = arith.constant 0 : i32
    %c0_i32_1 = arith.constant 0 : i32
    %c0_i32_2 = arith.constant 0 : i32
    %c0_i32_3 = arith.constant 0 : i32
    return %c0_i32, %c0_i32_0, %c0_i32_1, %c0_i32_2 : i32, i32, i32, i32
  }
  func.func @transform_4(%arg0: i32) -> (i32, i32) {
    %c0_i32 = arith.constant 0 : i32
    %c0_i32_0 = arith.constant 0 : i32
    %c0_i32_1 = arith.constant 0 : i32
    return %c0_i32, %c0_i32_0 : i32, i32
  }
  func.func @transform_5(%arg0: i32) -> (i32, i32) {
    %c0_i32 = arith.constant 0 : i32
    %c0_i32_0 = arith.constant 0 : i32
    %c0_i32_1 = arith.constant 0 : i32
    return %c0_i32, %c0_i32_0 : i32, i32
  }
  func.func @transform_6(%arg0: i32) -> (i32, i32, i32, i32) {
    %c0_i32 = arith.constant 0 : i32
    %c0_i32_0 = arith.constant 0 : i32
    %c0_i32_1 = arith.constant 0 : i32
    %c0_i32_2 = arith.constant 0 : i32
    return %arg0, %c0_i32, %c0_i32_0, %c0_i32_1 : i32, i32, i32, i32
  }
}

</mosaic_0001>

<bundles_post_ra>
// kernel: googlenet_inception_forward.1
= control target key start
LH: loop header
LB: loop body
LE: loop exit
PB: predicated region body
PF: predicated region fallthrough
CT: control target
= control target key end

     0   :  { %11 = vsyncpa [#allocation4], 0  ;;  %s15660_s0 = inlined_call_operand.vmem [shape: f32[2,20,20,4], index: 0, kind: input, shape index: {}]   ;;  %s15661_s1 = inlined_call_operand.vmem [shape: f32[4,10], index: 1, kind: input, shape index: {}]   ;;  %s15662_s2 = inlined_call_operand.vmem [shape: f32[1,10], index: 2, kind: input, shape index: {}]   ;;  %s15663_s3 = inlined_call_operand.vmem [shape: f32[5,5,10,20], index: 3, kind: input, shape index: {}]   ;;  %s15664_s4 = inlined_call_operand.vmem [shape: f32[4,20], index: 4, kind: input, shape index: {}]   ;;  %s15665_s5 = inlined_call_operand.vmem [shape: f32[1,20], index: 5, kind: input, shape index: {}]   ;;  %s15666_s6 = inlined_call_operand.hbm [shape: f32[2,16,16,20], index: 6, kind: output, shape index: {}]  }
   0x1   :  { %13 = vsyncpa [#allocation4 + $0x1], 0  ;;  %s11492_s21 = smov 0   ;;  %s11494_s22 = smov 0  }
   0x2   :  { %s11496_s23 = smov 0   ;;  %s11498_s24 = smov 0  }
   0x3 LB: > { %s11513_s25 = sadd.s32 4294967295, %s11453_s24   ;;  %s10350_s26 = sadd.s32 4294967294, %s11453_s24   ;;  %s11453_s24 = sphi %s11498_s24, %s16017_s24   ;;  %s11449_s23 = sphi %s11496_s23, %s16016_s23   ;;  %s11445_s22 = sphi %s11494_s22, %s16015_s22   ;;  %s11441_s21 = sphi %s11492_s21, %s16014_s21  }
   0x4   : > { %s11517_s27 = sadd.s32 1, %s11453_s24   ;;  %s157_s28 = sadd.s32 1, %s11449_s23 }
   0x5   : > { %s154_s29 = ssub.s32 %s11453_s24, %s11517_s27  ;;  %p167_p0 = scmp.ne.s32.totalorder %s11449_s23, %s11445_s22 }
   0x6   : > { %p155_p1 = scmp.eq.s32.totalorder %s154_s29, 0  ;;  %p168_p2 = scmp.eq.s32.totalorder %s11513_s25, 1 }
   0x7   : > { %p173_p3 = scmp.ne.s32.totalorder %s11445_s22, %s11441_s21  ;;  %p174_p4 = scmp.eq.s32.totalorder %s10350_s26, 1 }
   0x8   : > { %s11528_s30 = scalar_select %p155_p1, %s11449_s23, %s157_s28  }
   0x9   : > { %p11530_p5 = por %p168_p2, %p167_p0  ;;  %p11534_p6 = por %p174_p4, %p173_p3 }
   0xa   : > { %p10353_p7 = scmp.ge.s32.totalorder %s11453_s24, 1  ;;  %p215_p8 = scmp.lt.s32.totalorder %s11453_s24, 3 }
   0xc   : > { %p216_p9 = pnand %p10353_p7, %p215_p8 }
   0xe   : > { %219 = sbr.rel (%p216_p9) target bundleno = 2299 (0x8fb), region = 44 }
  0x13   : > { %v310_v0 = vld [vmem:[%s15661_s1] sm:$0xf]  ;;  %vm880_vm0 = vcmask 1043456   ;;  %p245_p10 = scmp.lt.s32.totalorder %s11513_s25, 1  ;;  %vm779_vm1 = vcmask 31744   ;;  %vm1690_vm2 = vcmask 1046528  }
  0x14   : > { %10356 = vmatpush.msk.msra.mxu0 %vm880_vm0, %v310_v0  ;;  %v2916_v1 = vld [vmem:[%s15664_s4] sm:$0xf]  ;;  %vm1867_vm3 = vcmask 1041408   ;;  %vm2339_vm4 = vcmask 1040384   ;;  %vm2114_vm5 = vcmask 1045504   ;;  %vm1628_vm6 = vcmask 80896  }
  0x15   : > { %s246_s13 = scalar_select %p245_p10, %s11513_s25, 1  ;;  %11321 = vmatpush.msk.msra.mxu2 %vm880_vm0, %v2916_v1  ;;  %vm1631_vm7 = vcmask 76800   ;;  %vm10239_vm8 = vcmask 162816  }
  0x16   : > { %s242_s26 = sand.u32 1, %s11445_s22   ;;  %s11318_s11 = sshll.u32 %s11513_s25, 8 }
  0x17   : > { %s11324_s14 = smul.u32 480, %s246_s13  ;;  %s10354_s9 = sshll.u32 %s242_s26, 8 }
  0x18   : > { %s15424_s10 = scalar_lea.vmem [#allocation3], %s10354_s9  ;;  %s10273_s25 = scalar_lea.sflag [#allocation4], %s242_s26 }
  0x19   : > { %s11553_s17 = scalar_lea.vmem %s15660_s0, %s11324_s14  ;;  %s10284_s14 = scalar_lea.hbm %s15666_s6, %s11318_s11 }
  0x1a   : > { %v250_v2 = vld [vmem:[%s11553_s17] sm:$0xff]  ;;  %v251_v3 = vld [vmem:[%s11553_s17 + $0x8] sm:$0xff]  ;;  %v252_v6 = vld [vmem:[%s11553_s17 + $0x10] sm:$0xf]  ;;  %s10285_s15 = sshll.u32 %s15424_s10, 4  ;;  %s10287_s16 = sshll.u32 %s10284_s14, 4  ;;  %s10286_s15 = int_to_ptr.vmem [resolvable:$true] %s10285_s15  ;;  %s10288_s16 = int_to_ptr.hbm [resolvable:$true] %s10287_s16 }
  0x1b   : > { %v374_v4 = vrot.slane %v250_v2, 4  ;;  %415 = vst [vmem:[#allocation1] ss:$2 sm:$0xff] %v250_v2  ;;  %v375_v5 = vrot.slane %v251_v3, 4  ;;  %v11559_v7 = vld [vmem:[%s11553_s17 + $0x18] sm:$0xff]  ;;  %v11562_v8 = vld [vmem:[%s11553_s17 + $0x20] sm:$0xff] }
  0x1c   : > { %419 = vst [vmem:[#allocation1 + $0x10] ss:$2 sm:$0xff] %v251_v3  ;;  %v11565_v9 = vld [vmem:[%s11553_s17 + $0x40] sm:$0xf]  ;;  %v11568_v10 = vld [vmem:[%s11553_s17 + $0x38] sm:$0xff]  ;;  %v11571_v11 = vld [vmem:[%s11553_s17 + $0x50] sm:$0xff] }
  0x1d   : > { %15719 = vst [vmem:[#allocation6_spill] sm:$0xff] %v11559_v7  ;;  %v11574_v12 = vld [vmem:[%s11553_s17 + $0x58] sm:$0xf]  ;;  %v11577_v13 = vld [vmem:[%s11553_s17 + $0x60] sm:$0xff]  ;;  %v11580_v14 = vld [vmem:[%s11553_s17 + $0x68] sm:$0xff]  ;;  %v376_v16 = vrot.slane %v11559_v7, 4 }
  0x1e   : > { %417 = vst [vmem:[#allocation1 + $0x1] ss:$2 sm:$0xff] %v374_v4  ;;  %v11583_v15 = vld [vmem:[%s11553_s17 + $0x70] sm:$0xf]  ;;  %v11590_v18 = vld [vmem:[%s11553_s17 + $0x48] sm:$0xff]  ;;  %v377_v19 = vrot.slane %v11562_v8, 4 }
  0x1f   : > { %15720 = vst [vmem:[#allocation7_spill] sm:$0xff] %v11562_v8  ;;  %v11587_v17 = vld [vmem:[%s11553_s17 + $0x30] sm:$0xff]  ;;  %v15671_v20 = vrot.slane %v11568_v10, 1  ;;  %v1699_v21 = vrot.slane %v11565_v9, 1  ;;  %v1701_v22 = vrot.slane %v11590_v18, 1  ;;  %v1702_v23 = vrot.slane %v11571_v11, 1 }
  0x20   : > { %15721 = vst [vmem:[#allocation8_spill] sm:$0xff] %v11565_v9  ;;  %v1704_v24 = vrot.slane %v11574_v12, 1  ;;  %v1706_v25 = vrot.slane %v11577_v13, 1  ;;  %v1707_v26 = vrot.slane %v11580_v14, 1  ;;  %v1709_v27 = vrot.slane %v11583_v15, 1  ;;  %s11411_s28 = scalar_lea.hbm %s15666_s6, 512 }
  0x21   : > { %421 = vst [vmem:[#allocation1 + $0x11] ss:$2 sm:$0xff] %v375_v5  ;;  %v11603_v28 = vld [vmem:[%s11553_s17 + $0x28] sm:$0xf]  ;;  %v378_v29 = vrot.slane %v11587_v17, 4  ;;  %v379_v30 = vrot.slane %v11568_v10, 4  ;;  %v1703_v31 = vsel %vm1690_vm2, %v1701_v22, %v1702_v23  ;;  %v1700_v33 = vsel %vm1690_vm2, %v15671_v20, %v1699_v21 }
  0x22   : > { %15722 = vst [vmem:[#allocation9_spill] sm:$0xff] %v11568_v10  ;;  %v1705_v34 = vsel %vm1690_vm2, %v1702_v23, %v1704_v24  ;;  %v1708_v35 = vsel %vm1690_vm2, %v1706_v25, %v1707_v26  ;;  %v1710_v36 = vsel %vm1690_vm2, %v1707_v26, %v1709_v27  ;;  %v380_v38 = vrot.slane %v11590_v18, 4  ;;  %v11855_v20 = vld [vmem:[%s11553_s17 + $0xb8] sm:$0xf] }
  0x23   : > { %15723 = vst [vmem:[#allocation10_spill] sm:$0xff] %v11571_v11  ;;  %v11618_v39 = vmax.f32 %v11590_v18, %v1703_v31  ;;  %v11621_v40 = vmax.f32 %v11571_v11, %v1705_v34  ;;  %v11624_v41 = vmax.f32 %v11574_v12, %v1704_v24  ;;  %v11628_v42 = vmax.f32 %v11577_v13, %v1708_v35 }
  0x24   : > { %15724 = vst [vmem:[#allocation11_spill] sm:$0xff] %v11574_v12  ;;  %v11631_v43 = vmax.f32 %v11580_v14, %v1710_v36  ;;  %v11634_v44 = vmax.f32 %v11583_v15, %v1709_v27  ;;  %v15669_v45 = vrot.slane %v11590_v18, 6  ;;  %v1874_v46 = vrot.slane %v11571_v11, 6  ;;  %v11696_v27 = vld [vmem:[%s11553_s17 + $0x78] sm:$0xff] }
  0x25   : > { %15725 = vst [vmem:[#allocation12_spill] sm:$0xff] %v11577_v13  ;;  %v430_v32 = vld.sshfl [vmem:[#allocation1] sm:$0xff pattern:$0x75316420]  ;;  %v1876_v47 = vrot.slane %v11574_v12, 6  ;;  %v15670_v48 = vrot.slane %v11618_v39, 7  ;;  %v11645_v51 = vmax.f32 %v11568_v10, %v1700_v33  ;;  %v11648_v52 = vmax.f32 %v11565_v9, %v1699_v21 }
  0x26   : > { %15726 = vst [vmem:[#allocation13_spill] sm:$0xff] %v11580_v14  ;;  %10357 = vmatmul.msk.f32.vlgmr.msra.gmra.mxu0 %vm779_vm1, %v430_v32  ;;  %v2341_v49 = vrot.slane %v11621_v40, 7  ;;  %v2343_v53 = vrot.slane %v11624_v41, 7  ;;  %v1875_v54 = vsel %vm1867_vm3, %v15669_v45, %v1874_v46  ;;  %v15668_v57 = vrot.slane %v11628_v42, 7 }
  0x27   : > { %15727 = vst [vmem:[#allocation14_spill] sm:$0xff] %v11587_v17  ;;  %v1877_v55 = vsel %vm1867_vm3, %v1874_v46, %v1876_v47  ;;  %v2000_v59 = vmax.f32 %v11568_v10, %v1875_v54  ;;  %v2346_v62 = vrot.slane %v11631_v43, 7  ;;  %v381_v63 = vrot.slane %v11571_v11, 4 }
  0x28   : > { %15728 = vst [vmem:[#allocation15_spill] sm:$0xff] %v11590_v18  ;;  %v431_v37 = vld.sshfl [vmem:[#allocation1 + $0x10] sm:$0xff pattern:$0x75316420]  ;;  %v11659_v56 = vsel %vm2339_vm4, %v15670_v48, %v2341_v49  ;;  %v2001_v60 = vmax.f32 %v11565_v9, %v1877_v55  ;;  %v11667_v61 = vsel %vm2339_vm4, %v2341_v49, %v2343_v53  ;;  %v2348_v0 = vrot.slane %v11634_v44, 7 }
  0x29   : > { %423 = vst [vmem:[#allocation1 + $0x20] ss:$2 sm:$0xff] %v252_v6  ;;  %v383_v3 = vrot.slane %v11580_v14, 4  ;;  %v11679_v4 = vrot.slane %v2000_v59, 2  ;;  %v2347_v6 = vsel %vm2339_vm4, %v15668_v57, %v2346_v62  ;;  %v15667_v22 = vrot.slane %v11580_v14, 2 }
  0x2a   : > { %425 = vst [vmem:[#allocation1 + $0x21] ss:$2 sm:$0xff] %v11559_v7  ;;  %v2123_v5 = vrot.slane %v2001_v60, 2  ;;  %v2472_v21 = vmax.f32 %v11621_v40, %v2347_v6  ;;  %v2748_v23 = vrot.slane %v11583_v15, 2  ;;  %v382_v35 = vrot.slane %v11577_v13, 4 }
  0x2b   : > { %427 = vst [vmem:[#allocation1 + $0x30] ss:$2 sm:$0xff] %v376_v16  ;;  %v384_v36 = vrot.slane %v11696_v27, 4  ;;  %v1711_v47 = vrot.slane %v11696_v27, 1 }
  0x2c   : > { %15729 = vst [vmem:[#allocation16_spill] sm:$0xff] %v11603_v28  ;;  %v2124_v24 = vsel %vm2114_vm5, %v11679_v4, %v2123_v5  ;;  %v2248_v25 = vmax.f32 %v11648_v52, %v2123_v5  ;;  %v11708_v33 = vrot.slane %v2472_v21, 1  ;;  %v2749_v46 = vsel %vm2114_vm5, %v15667_v22, %v2748_v23 }
  0x2d   : > { %429 = vst [vmem:[#allocation1 + $0x31] ss:$2 sm:$0xff] %v11562_v8  ;;  %v2247_v32 = vmax.f32 %v11645_v51, %v2124_v24 }
  0x2e   : > { %434 = vst [vmem:[#allocation1] ss:$2 sm:$0xff] %v377_v19  ;;  %10358 = vmatmul.msk.f32.gmra.mxu0 %vm779_vm1, %v431_v37  ;;  %v2349_v19 = vsel %vm2339_vm4, %v2346_v62, %v2348_v0  ;;  %v1878_v62 = vrot.slane %v11577_v13, 6 }
  0x2f   : > { %15730 = vst [vmem:[#allocation17_spill] sm:$0xff] %v11618_v39  ;;  %v2473_v26 = vmax.f32 %v11624_v41, %v2349_v19 }
  0x30   : > { %435 = vst [vmem:[#allocation1 + $0x1] ss:$2 sm:$0xff] %v11603_v28 }
  0x31   : > { %15731 = vst [vmem:[#allocation18_spill] sm:$0xff] %v11628_v42  ;;  %v11642_v50 = vld.sshfl [vmem:[#allocation1 + $0x20] sm:$0xff pattern:$0x75316420]  ;;  %v2572_v34 = vrot.slane %v2473_v26, 1 }
  0x32   : > { %436 = vst [vmem:[#allocation1 + $0x10] ss:$2 sm:$0xff] %v11587_v17 }
  0x33   : > { %437 = vst [vmem:[#allocation1 + $0x11] ss:$2 sm:$0xff] %v378_v29  ;;  %v11699_v29 = vld [vmem:[%s11553_s17 + $0x80] sm:$0xff]  ;;  %v2573_v49 = vsel %vm1690_vm2, %v11708_v33, %v2572_v34  ;;  %v2697_v53 = vmax.f32 %v2248_v25, %v2572_v34  ;;  %v2002_v34 = vmax.f32 %v11590_v18, %v1878_v62 }
  0x34   : > { %15732 = vst [vmem:[#allocation19_spill] sm:$0xff] %v11645_v51  ;;  %v11662_v58 = vld.sshfl [vmem:[#allocation1 + $0x30] sm:$0xff pattern:$0x75316420]  ;;  %v385_v37 = vrot.slane %v11699_v29, 4  ;;  %v1712_v54 = vrot.slane %v11699_v29, 1  ;;  %v2696_v60 = vmax.f32 %v2247_v32, %v2573_v49 }
  0x35   : > { %15733 = vst [vmem:[#allocation20_spill] sm:$0xff] %v11648_v52  ;;  %v1881_v32 = vrot.slane %v11583_v15, 6 }
  0x36   : > { %438 = vst [vmem:[#allocation1 + $0x20] ss:$2 sm:$0xff] %v11568_v10  ;;  %v1713_v0 = vsel %vm1690_vm2, %v1711_v47, %v1712_v54  ;;  %v2872_v19 = vmax.f32 %v2696_v60, %v2749_v46  ;;  %10359 = vmatmul.msk.f32.gmra.mxu0 %vm779_vm1, %v11642_v50 }
  0x37   : > { %15734 = vst [vmem:[#allocation21_spill] sm:$0xff] %v11659_v56  ;;  %v11685_v16 = vld.sshfl [vmem:[#allocation1] sm:$0xff pattern:$0x75316420]  ;;  %v11737_v21 = vmax.f32 %v11696_v27, %v1713_v0 }
  0x38   : > { %439 = vst [vmem:[#allocation1 + $0x21] ss:$2 sm:$0xff] %v379_v30  ;;  %v11702_v30 = vld [vmem:[%s11553_s17 + $0x88] sm:$0xf]  ;;  %v11749_v50 = vrot.slane %v2872_v19, 1 }
  0x39   : > { %15735 = vst [vmem:[#allocation22_spill] sm:$0xff] %v11667_v61  ;;  %v1714_v55 = vrot.slane %v11702_v30, 1  ;;  %v2350_v46 = vrot.slane %v11737_v21, 7 }
  0x3a   : > { %440 = vst [vmem:[#allocation1 + $0x30] ss:$2 sm:$0xff] %v11565_v9  ;;  %v11704_v31 = vld.sshfl [vmem:[#allocation1 + $0x10] sm:$0xff pattern:$0x75316420] }
  0x3b   : > { %441 = vst [vmem:[#allocation1 + $0x31] ss:$2 sm:$0xff] %v11590_v18  ;;  %v1715_v5 = vsel %vm1690_vm2, %v1712_v54, %v1714_v55  ;;  %v11732_v6 = vmax.f32 %v11702_v30, %v1714_v55  ;;  %v2125_v55 = vrot.slane %v2002_v34, 2 }
  0x3c   : > { %15736 = vst [vmem:[#allocation23_spill] sm:$0xff] %v11679_v4  ;;  %v11740_v24 = vmax.f32 %v11699_v29, %v1715_v5 }
  0x3d   : > { %446 = vst [vmem:[#allocation1] ss:$2 sm:$0xff] %v380_v38 }
  0x3e   : > { %447 = vst [vmem:[#allocation1 + $0x1] ss:$2 sm:$0xff] %v11571_v11  ;;  %v2351_v47 = vrot.slane %v11740_v24, 7  ;;  %10360 = vmatmul.msk.f32.gmra.mxu0 %vm779_vm1, %v11662_v58 }
  0x3f   : > { %15737 = vst [vmem:[#allocation24_spill] sm:$0xff] %v11708_v33  ;;  %v11714_v38 = vld.sshfl [vmem:[#allocation1 + $0x20] sm:$0xff pattern:$0x75316420] }
  0x40   : > { %449 = vst [vmem:[#allocation1 + $0x11] ss:$2 sm:$0xff] %v11574_v12 }
  0x41   : > { %448 = vst [vmem:[#allocation1 + $0x10] ss:$2 sm:$0xff] %v381_v63  ;;  %v2873_v63 = vmax.f32 %v2697_v53, %v2748_v23  ;;  %v1879_v23 = vrot.slane %v11580_v14, 6 }
  0x42   : > { %450 = vst [vmem:[#allocation1 + $0x20] ss:$2 sm:$0xff] %v11577_v13  ;;  %v11725_v59 = vld.sshfl [vmem:[#allocation1 + $0x30] sm:$0xff pattern:$0x75316420] }
  0x43   : > { %451 = vst [vmem:[#allocation1 + $0x21] ss:$2 sm:$0xff] %v382_v35  ;;  %v3219_v26 = vrot.slane %v2873_v63, 1  ;;  %v1880_v35 = vsel %vm1867_vm3, %v1878_v62, %v1879_v23  ;;  %v1882_v53 = vsel %vm1867_vm3, %v1879_v23, %v1881_v32  ;;  %v2352_v63 = vsel %vm2339_vm4, %v2350_v46, %v2351_v47 }
  0x44   : > { %452 = vst [vmem:[#allocation1 + $0x30] ss:$2 sm:$0xff] %v11580_v14  ;;  %v2003_v54 = vmax.f32 %v11571_v11, %v1880_v35  ;;  %v2004_v62 = vmax.f32 %v11574_v12, %v1882_v53  ;;  %v2474_v23 = vmax.f32 %v11628_v42, %v2350_v46  ;;  %v2475_v32 = vmax.f32 %v11631_v43, %v2352_v63 }
  0x45   : > { %453 = vst [vmem:[#allocation1 + $0x31] ss:$2 sm:$0xff] %v383_v3  ;;  %v11743_v25 = vld.sshfl [vmem:[#allocation1] sm:$0xff pattern:$0x75316420]  ;;  %v2353_v3 = vrot.slane %v11732_v6, 7  ;;  %v3220_v60 = vsel %vm1690_vm2, %v11749_v50, %v3219_v26 }
  0x46   : > { %458 = vst [vmem:[#allocation1] ss:$2 sm:$0xff] %v11583_v15  ;;  %10444 = vmatmul.msk.f32.vlgmr.msra.gmra.mxu2 %vm779_vm1, %v3220_v60  ;;  %v2126_v19 = vrot.slane %v2003_v54, 2  ;;  %v11772_v26 = vld [vmem:[%s11553_s17 + $0x90] sm:$0xff]  ;;  %v2128_v35 = vrot.slane %v2004_v62, 2  ;;  %v2750_v53 = vrot.slane %v11696_v27, 2  ;;  %10361 = vmatmul.msk.f32.gmra.mxu0 %vm779_vm1, %v11685_v16 }
  0x47   : > { %15738 = vst [vmem:[#allocation25_spill] sm:$0xff] %v11749_v50  ;;  %v2354_v0 = vsel %vm2339_vm4, %v2351_v47, %v2353_v3  ;;  %v2751_v3 = vrot.slane %v11699_v29, 2  ;;  %v2753_v47 = vrot.slane %v11702_v30, 2  ;;  %v2574_v60 = vrot.slane %v2474_v23, 1  ;;  %v11791_v23 = vld [vmem:[%s11553_s17 + $0x98] sm:$0xff] }
  0x48   : > { %v11754_v49 = vld.sshfl [vmem:[#allocation1 + $0x10] sm:$0xff pattern:$0x75316420]  ;;  %459 = vst [vmem:[#allocation1 + $0x1] ss:$2 sm:$0xff] %v11696_v27  ;;  %v2476_v34 = vmax.f32 %v11634_v44, %v2354_v0  ;;  %v2127_v46 = vsel %vm2114_vm5, %v2125_v55, %v2126_v19  ;;  %v2575_v62 = vrot.slane %v2475_v32, 1  ;;  %v2251_v55 = vmax.f32 %v11624_v41, %v2128_v35 }
  0x49   : > { %461 = vst [vmem:[#allocation1 + $0x11] ss:$2 sm:$0xff] %v11699_v29  ;;  %v2752_v22 = vsel %vm2114_vm5, %v2750_v53, %v2751_v3  ;;  %v2754_v57 = vsel %vm2114_vm5, %v2751_v3, %v2753_v47  ;;  %v1716_v41 = vrot.slane %v11772_v26, 1  ;;  %v1717_v3 = vrot.slane %v11791_v23, 1 }
  0x4a   : > { %v11766_v5 = vld.sshfl [vmem:[#allocation1 + $0x20] sm:$0xff pattern:$0x75316420]  ;;  %460 = vst [vmem:[#allocation1 + $0x10] ss:$2 sm:$0xff] %v384_v36  ;;  %v2129_v36 = vsel %vm2114_vm5, %v2126_v19, %v2128_v35  ;;  %v2577_v63 = vrot.slane %v2476_v34, 1  ;;  %v2576_v32 = vsel %vm1690_vm2, %v2574_v60, %v2575_v62 }
  0x4b   : > { %462 = vst [vmem:[#allocation1 + $0x20] ss:$2 sm:$0xff] %v385_v37  ;;  %v2249_v37 = vmax.f32 %v11618_v39, %v2127_v46  ;;  %v2250_v0 = vmax.f32 %v11621_v40, %v2129_v36  ;;  %v11794_v19 = vld [vmem:[%s11553_s17 + $0xa0] sm:$0xf]  ;;  %v386_v34 = vrot.slane %v11772_v26, 4  ;;  %v387_v40 = vrot.slane %v11791_v23, 4 }
  0x4c   : > { %v11777_v54 = vld.sshfl [vmem:[#allocation1 + $0x30] sm:$0xff pattern:$0x75316420]  ;;  %463 = vst [vmem:[#allocation1 + $0x21] ss:$2 sm:$0xff] %v11702_v30  ;;  %v2578_v58 = vsel %vm1690_vm2, %v2575_v62, %v2577_v63  ;;  %v2700_v45 = vmax.f32 %v2251_v55, %v2577_v63  ;;  %v1719_v2 = vrot.slane %v11794_v19, 1  ;;  %v1718_v63 = vsel %vm1690_vm2, %v1716_v41, %v1717_v3 }
  0x4d   : > { %464 = vst [vmem:[#allocation1 + $0x30] ss:$2 sm:$0xff] %v11772_v26  ;;  %v2698_v36 = vmax.f32 %v2249_v37, %v2576_v32  ;;  %v2699_v53 = vmax.f32 %v2250_v0, %v2578_v58  ;;  %v1883_v0 = vrot.slane %v11696_v27, 6  ;;  %v1884_v55 = vrot.slane %v11699_v29, 6  ;;  %v11832_v41 = vld [vmem:[%s11553_s17 + $0xa8] sm:$0xff] }
  0x4e   : > { %v2876_v62 = vmax.f32 %v2700_v45, %v2753_v47  ;;  %v1886_v32 = vrot.slane %v11702_v30, 6  ;;  %v1720_v45 = vsel %vm1690_vm2, %v1717_v3, %v1719_v2  ;;  %465 = vst [vmem:[#allocation1 + $0x31] ss:$2 sm:$0xff] %v386_v34  ;;  %v11822_v47 = vmax.f32 %v11772_v26, %v1718_v63  ;;  %10362 = vmatmul.msk.f32.gmra.mxu0 %vm779_vm1, %v11704_v31 }
  0x4f   : > { %v11796_v46 = vld.sshfl [vmem:[#allocation1] sm:$0xff pattern:$0x75316420]  ;;  %v2874_v60 = vmax.f32 %v2698_v36, %v2752_v22  ;;  %v2875_v48 = vmax.f32 %v2699_v53, %v2754_v57  ;;  %v11817_v57 = vld [vmem:[%s11553_s17 + $0xb0] sm:$0xff]  ;;  %v11825_v36 = vmax.f32 %v11791_v23, %v1720_v45  ;;  %v11828_v53 = vmax.f32 %v11794_v19, %v1719_v2 }
  0x50   : > { %470 = vst [vmem:[#allocation1] ss:$2 sm:$0xff] %v11791_v23  ;;  %v3224_v22 = vrot.slane %v2876_v62, 1  ;;  %v1887_v3 = vsel %vm1867_vm3, %v1884_v55, %v1886_v32  ;;  %v2005_v16 = vmax.f32 %v11577_v13, %v1883_v0  ;;  %v2355_v62 = vrot.slane %v11822_v47, 7 }
  0x51   : > { %v11804_v35 = vld.sshfl [vmem:[#allocation1 + $0x10] sm:$0xff pattern:$0x75316420]  ;;  %471 = vst [vmem:[#allocation1 + $0x1] ss:$2 sm:$0xff] %v387_v40  ;;  %v3221_v58 = vrot.slane %v2874_v60, 1  ;;  %v2007_v2 = vmax.f32 %v11583_v15, %v1887_v3 }
  0x52   : > { %472 = vst [vmem:[#allocation1 + $0x10] ss:$2 sm:$0xff] %v11794_v19  ;;  %v3222_v40 = vrot.slane %v2875_v48, 1  ;;  %v1885_v48 = vsel %vm1867_vm3, %v1883_v0, %v1884_v55  ;;  %v2356_v63 = vrot.slane %v11825_v36, 7  ;;  %v2130_v32 = vrot.slane %v2005_v16, 2 }
  0x53   : > { %v11809_v37 = vld.sshfl [vmem:[#allocation1 + $0x20] sm:$0xff pattern:$0x75316420]  ;;  %473 = vst [vmem:[#allocation1 + $0x11] ss:$2 sm:$0xff] %v11832_v41  ;;  %v2006_v60 = vmax.f32 %v11580_v14, %v1885_v48  ;;  %v2358_v45 = vrot.slane %v11828_v53, 7  ;;  %v2477_v3 = vmax.f32 %v11737_v21, %v2355_v62 }
  0x54   : > { %v3223_v34 = vsel %vm1690_vm2, %v3221_v58, %v3222_v40  ;;  %475 = vst [vmem:[#allocation1 + $0x21] ss:$2 sm:$0xff] %v11817_v57  ;;  %v11845_v58 = vld [vmem:[%s11553_s17 + $0xc0] sm:$0xff]  ;;  %v3225_v55 = vsel %vm1690_vm2, %v3222_v40, %v3224_v22  ;;  %v2133_v1 = vrot.slane %v2007_v2, 2  ;;  %v2357_v15 = vsel %vm2339_vm4, %v2355_v62, %v2356_v63 }
  0x55   : > { %10445 = vmatmul.msk.f32.gmra.mxu2 %vm779_vm1, %v3223_v34  ;;  %v2755_v34 = vrot.slane %v11772_v26, 2  ;;  %v2131_v48 = vrot.slane %v2006_v60, 2  ;;  %v2359_v50 = vsel %vm2339_vm4, %v2356_v63, %v2358_v45  ;;  %v2478_v40 = vmax.f32 %v11740_v24, %v2357_v15  ;;  %v11865_v33 = vld.sshfl [vmem:[#allocation1 + $0x30] sm:$0xff pattern:$0x75316420] }
  0x56   : > { %v2756_v22 = vrot.slane %v11791_v23, 2  ;;  %v2758_v16 = vrot.slane %v11794_v19, 2  ;;  %v2479_v2 = vmax.f32 %v11732_v6, %v2359_v50  ;;  %v2579_v62 = vrot.slane %v2477_v3, 1  ;;  %477 = vst [vmem:[#allocation1 + $0x31] ss:$2 sm:$0xff] %v11855_v20  ;;  %10363 = vmatmul.msk.f32.gmra.mxu0 %vm779_vm1, %v11714_v38 }
  0x57   : > { %v2132_v14 = vsel %vm2114_vm5, %v2130_v32, %v2131_v48  ;;  %v2134_v60 = vsel %vm2114_vm5, %v2131_v48, %v2133_v1  ;;  %v2580_v45 = vrot.slane %v2478_v40, 1  ;;  %v2254_v50 = vmax.f32 %v11634_v44, %v2133_v1 }
  0x58   : > { %v11848_v0 = vld.sshfl [vmem:[#allocation1] sm:$0xff pattern:$0x75316420]  ;;  %v2252_v4 = vmax.f32 %v11628_v42, %v2132_v14  ;;  %v2253_v63 = vmax.f32 %v11631_v43, %v2134_v60  ;;  %v2757_v15 = vsel %vm2114_vm5, %v2755_v34, %v2756_v22  ;;  %v2582_v13 = vrot.slane %v2479_v2, 1  ;;  %v11879_v14 = vld [vmem:[%s11553_s17 + $0xc8] sm:$0xff] }
  0x59   : > { %482 = vst [vmem:[#allocation1] ss:$2 sm:$0xff] %v11845_v58  ;;  %v2759_v32 = vsel %vm2114_vm5, %v2756_v22, %v2758_v16  ;;  %v388_v48 = vrot.slane %v11832_v41, 4  ;;  %v2581_v43 = vsel %vm1690_vm2, %v2579_v62, %v2580_v45  ;;  %v389_v34 = vrot.slane %v11817_v57, 4 }
  0x5a   : > { %v11876_v3 = vld.sshfl [vmem:[#allocation1 + $0x10] sm:$0xff pattern:$0x75316420]  ;;  %v1721_v40 = vrot.slane %v11832_v41, 1  ;;  %v1722_v60 = vrot.slane %v11817_v57, 1  ;;  %v2583_v44 = vsel %vm1690_vm2, %v2580_v45, %v2582_v13  ;;  %v2701_v1 = vmax.f32 %v2252_v4, %v2581_v43 }
  0x5b   : > { %484 = vst [vmem:[#allocation1 + $0x10] ss:$2 sm:$0xff] %v11879_v14  ;;  %v2703_v31 = vmax.f32 %v2254_v50, %v2582_v13  ;;  %v1724_v22 = vrot.slane %v11855_v20, 1  ;;  %v2702_v2 = vmax.f32 %v2253_v63, %v2583_v44  ;;  %v1888_v42 = vrot.slane %v11772_v26, 6  ;;  %v11909_v44 = vld [vmem:[%s11553_s17 + $0xd0] sm:$0xf] }
  0x5c   : > { %474 = vst [vmem:[#allocation1 + $0x20] ss:$2 sm:$0xff] %v388_v48  ;;  %v1723_v62 = vsel %vm1690_vm2, %v1721_v40, %v1722_v60  ;;  %v1889_v12 = vrot.slane %v11791_v23, 6  ;;  %v2877_v11 = vmax.f32 %v2701_v1, %v2757_v15  ;;  %v1891_v15 = vrot.slane %v11794_v19, 6 }
  0x5d   : > { %10446 = vmatmul.msk.f32.gmra.mxu2 %vm779_vm1, %v3225_v55  ;;  %476 = vst [vmem:[#allocation1 + $0x30] ss:$2 sm:$0xff] %v389_v34  ;;  %v2879_v18 = vmax.f32 %v2703_v31, %v2758_v16  ;;  %v1725_v55 = vsel %vm1690_vm2, %v1722_v60, %v1724_v22  ;;  %v11894_v45 = vmax.f32 %v11832_v41, %v1723_v62  ;;  %v1726_v39 = vrot.slane %v11845_v58, 1 }
  0x5e   : > { %v2878_v13 = vmax.f32 %v2702_v2, %v2759_v32  ;;  %v11897_v4 = vmax.f32 %v11817_v57, %v1725_v55  ;;  %v11900_v63 = vmax.f32 %v11855_v20, %v1724_v22  ;;  %v1890_v50 = vsel %vm1867_vm3, %v1888_v42, %v1889_v12  ;;  %v11925_v55 = vld [vmem:[%s11553_s17 + $0xe0] sm:$0xff]  ;;  %10364 = vmatmul.msk.f32.gmra.mxu0 %vm779_vm1, %v11725_v59 }
  0x5f   : > { %v3226_v48 = vrot.slane %v2877_v11, 1  ;;  %v3229_v43 = vrot.slane %v2879_v18, 1  ;;  %v2008_v16 = vmax.f32 %v11696_v27, %v1888_v42  ;;  %v2009_v40 = vmax.f32 %v11699_v29, %v1890_v50  ;;  %v11917_v27 = vld [vmem:[%s11553_s17 + $0xd8] sm:$0xff] }
  0x60   : > { %v3227_v34 = vrot.slane %v2878_v13, 1  ;;  %v2360_v32 = vrot.slane %v11894_v45, 7  ;;  %v2361_v60 = vrot.slane %v11897_v4, 7  ;;  %v1892_v11 = vsel %vm1867_vm3, %v1889_v12, %v1891_v15 }
  0x61   : > { %v2135_v18 = vrot.slane %v2008_v16, 2  ;;  %v2363_v1 = vrot.slane %v11900_v63, 7  ;;  %v2760_v42 = vrot.slane %v11832_v41, 2  ;;  %v2010_v22 = vmax.f32 %v11702_v30, %v1892_v11 }
  0x62   : > { %v3228_v29 = vsel %vm1690_vm2, %v3226_v48, %v3227_v34  ;;  %v3230_v31 = vsel %vm1690_vm2, %v3227_v34, %v3229_v43  ;;  %v2136_v2 = vrot.slane %v2009_v40, 2  ;;  %v2362_v38 = vsel %vm2339_vm4, %v2360_v32, %v2361_v60 }
  0x63   : > { %v11922_v62 = vld.sshfl [vmem:[#allocation1 + $0x20] sm:$0xff pattern:$0x75316420]  ;;  %v2364_v13 = vsel %vm2339_vm4, %v2361_v60, %v2363_v1  ;;  %v2480_v50 = vmax.f32 %v11822_v47, %v2360_v32  ;;  %v2761_v48 = vrot.slane %v11817_v57, 2  ;;  %v2138_v43 = vrot.slane %v2010_v22, 2 }
  0x64   : > { %v11928_v12 = vld.sshfl [vmem:[#allocation1 + $0x30] sm:$0xff pattern:$0x75316420]  ;;  %486 = vst [vmem:[#allocation1 + $0x20] ss:$2 sm:$0xff] %v11909_v44  ;;  %v2137_v30 = vsel %vm2114_vm5, %v2135_v18, %v2136_v2  ;;  %v2481_v15 = vmax.f32 %v11825_v36, %v2362_v38  ;;  %v2482_v16 = vmax.f32 %v11828_v53, %v2364_v13  ;;  %v2763_v32 = vrot.slane %v11855_v20, 2 }
  0x65   : > { %10447 = vmatmul.msk.f32.gmra.mxu2 %vm779_vm1, %v3228_v29  ;;  %487 = vst [vmem:[#allocation1 + $0x21] ss:$2 sm:$0xff] %v11917_v27  ;;  %v2255_v34 = vmax.f32 %v11737_v21, %v2137_v30  ;;  %v2584_v40 = vrot.slane %v2480_v50, 1  ;;  %v2762_v60 = vsel %vm2114_vm5, %v2760_v42, %v2761_v48  ;;  %v2139_v11 = vsel %vm2114_vm5, %v2136_v2, %v2138_v43 }
  0x66   : > { %489 = vst [vmem:[#allocation1 + $0x31] ss:$2 sm:$0xff] %v11925_v55  ;;  %v2585_v1 = vrot.slane %v2481_v15, 1  ;;  %v2587_v18 = vrot.slane %v2482_v16, 1  ;;  %v2257_v29 = vmax.f32 %v11732_v6, %v2138_v43  ;;  %v2256_v22 = vmax.f32 %v11740_v24, %v2139_v11  ;;  %10365 = vmatmul.msk.f32.gmra.mxu0 %vm779_vm1, %v11743_v25  ;;  %v12007_v25 = vld [vmem:[%s11553_s17 + $0xf0] sm:$0xff] }
  0x67   : > { %v2764_v38 = vsel %vm2114_vm5, %v2761_v48, %v2763_v32  ;;  %v390_v13 = vrot.slane %v11845_v58, 4  ;;  %v391_v21 = vrot.slane %v11879_v14, 4  ;;  %v1727_v6 = vrot.slane %v11879_v14, 1 }
  0x68   : > { %v2586_v42 = vsel %vm1690_vm2, %v2584_v40, %v2585_v1  ;;  %v2588_v50 = vsel %vm1690_vm2, %v2585_v1, %v2587_v18  ;;  %v2706_v30 = vmax.f32 %v2257_v29, %v2587_v18  ;;  %v1729_v24 = vrot.slane %v11909_v44, 1  ;;  %v11965_v29 = vld [vmem:[%s11553_s17 + $0xf8] sm:$0xff] }
  0x69   : > { %v2704_v2 = vmax.f32 %v2255_v34, %v2586_v42  ;;  %v2705_v15 = vmax.f32 %v2256_v22, %v2588_v50  ;;  %485 = vst [vmem:[#allocation1 + $0x11] ss:$2 sm:$0xff] %v391_v21  ;;  %v1893_v43 = vrot.slane %v11832_v41, 6  ;;  %v1894_v16 = vrot.slane %v11817_v57, 6 }
  0x6a   : > { %v2882_v48 = vmax.f32 %v2706_v30, %v2763_v32  ;;  %v1896_v40 = vrot.slane %v11855_v20, 6  ;;  %483 = vst [vmem:[#allocation1 + $0x1] ss:$2 sm:$0xff] %v390_v13  ;;  %v1728_v1 = vsel %vm1690_vm2, %v1726_v39, %v1727_v6  ;;  %v1730_v59 = vsel %vm1690_vm2, %v1727_v6, %v1729_v24 }
  0x6b   : > { %v2880_v34 = vmax.f32 %v2704_v2, %v2762_v60  ;;  %v2881_v11 = vmax.f32 %v2705_v15, %v2764_v38  ;;  %v11968_v22 = vmax.f32 %v11845_v58, %v1728_v1  ;;  %v11971_v21 = vmax.f32 %v11879_v14, %v1730_v59 }
  0x6c   : > { %v11962_v18 = vld.sshfl [vmem:[#allocation1 + $0x20] sm:$0xff pattern:$0x75316420]  ;;  %v3234_v32 = vrot.slane %v2882_v48, 1  ;;  %v1895_v38 = vsel %vm1867_vm3, %v1893_v43, %v1894_v16  ;;  %v1897_v13 = vsel %vm1867_vm3, %v1894_v16, %v1896_v40  ;;  %v2011_v42 = vmax.f32 %v11772_v26, %v1893_v43 }
  0x6d   : > { %10448 = vmatmul.msk.f32.gmra.mxu2 %vm779_vm1, %v3230_v31  ;;  %v11974_v31 = vmax.f32 %v11909_v44, %v1729_v24  ;;  %498 = vst [vmem:[#allocation1 + $0x20] ss:$2 sm:$0xff] %v11965_v29  ;;  %v3231_v39 = vrot.slane %v2880_v34, 1  ;;  %v3232_v60 = vrot.slane %v2881_v11, 1  ;;  %v2012_v50 = vmax.f32 %v11791_v23, %v1895_v38  ;;  %v11988_v34 = vld [vmem:[%s11553_s17 + $0xe8] sm:$0xf] }
  0x6e   : > { %v2013_v30 = vmax.f32 %v11794_v19, %v1897_v13  ;;  %v2365_v2 = vrot.slane %v11968_v22, 7  ;;  %v2366_v24 = vrot.slane %v11971_v21, 7  ;;  %v2140_v26 = vrot.slane %v2011_v42, 2  ;;  %10366 = vmatmul.msk.f32.gmra.mxu0 %vm779_vm1, %v11754_v49 }
  0x6f   : > { %v3233_v15 = vsel %vm1690_vm2, %v3231_v39, %v3232_v60  ;;  %v3235_v6 = vsel %vm1690_vm2, %v3232_v60, %v3234_v32  ;;  %v2368_v48 = vrot.slane %v11974_v31, 7  ;;  %v2141_v43 = vrot.slane %v2012_v50, 2 }
  0x70   : > { %v11990_v11 = vld.sshfl [vmem:[#allocation1 + $0x10] sm:$0xff pattern:$0x75316420]  ;;  %v2143_v23 = vrot.slane %v2013_v30, 2  ;;  %v2483_v19 = vmax.f32 %v11894_v45, %v2365_v2  ;;  %v2367_v16 = vsel %vm2339_vm4, %v2365_v2, %v2366_v24  ;;  %v2765_v1 = vrot.slane %v11845_v58, 2 }
  0x71   : > { %v2369_v40 = vsel %vm2339_vm4, %v2366_v24, %v2368_v48  ;;  %v2766_v59 = vrot.slane %v11879_v14, 2  ;;  %v11999_v32 = vld.sshfl [vmem:[#allocation1] sm:$0xff pattern:$0x75316420]  ;;  %v2142_v39 = vsel %vm2114_vm5, %v2140_v26, %v2141_v43  ;;  %v2484_v38 = vmax.f32 %v11897_v4, %v2367_v16  ;;  %496 = vst [vmem:[#allocation1 + $0x10] ss:$2 sm:$0xff] %v12007_v25 }
  0x72   : > { %v2144_v60 = vsel %vm2114_vm5, %v2141_v43, %v2143_v23  ;;  %v2485_v13 = vmax.f32 %v11900_v63, %v2369_v40  ;;  %495 = vst [vmem:[#allocation1 + $0x1] ss:$2 sm:$0xff] %v11988_v34  ;;  %v2258_v42 = vmax.f32 %v11822_v47, %v2142_v39  ;;  %v2589_v30 = vrot.slane %v2483_v19, 1 }
  0x73   : > { %v2259_v50 = vmax.f32 %v11825_v36, %v2144_v60  ;;  %v2767_v2 = vsel %vm2114_vm5, %v2765_v1, %v2766_v59  ;;  %v2590_v24 = vrot.slane %v2484_v38, 1  ;;  %v2768_v26 = vrot.slane %v11909_v44, 2 }
  0x74   : > { %v2592_v48 = vrot.slane %v2485_v13, 1  ;;  %v2260_v43 = vmax.f32 %v11828_v53, %v2143_v23  ;;  %v392_v16 = vrot.slane %v11917_v27, 4  ;;  %v393_v40 = vrot.slane %v11925_v55, 4 }
  0x75   : > { %10449 = vmatmul.msk.f32.gmra.mxu2 %vm779_vm1, %v3233_v15  ;;  %v1731_v15 = vrot.slane %v11917_v27, 1  ;;  %v1732_v47 = vrot.slane %v11925_v55, 1  ;;  %v2591_v36 = vsel %vm1690_vm2, %v2589_v30, %v2590_v24  ;;  %v2769_v1 = vsel %vm2114_vm5, %v2766_v59, %v2768_v26 }
  0x76   : > { %v2593_v19 = vsel %vm1690_vm2, %v2590_v24, %v2592_v48  ;;  %v2709_v39 = vmax.f32 %v2260_v43, %v2592_v48  ;;  %v2707_v60 = vmax.f32 %v2258_v42, %v2591_v36  ;;  %494 = vst [vmem:[#allocation1] ss:$2 sm:$0xff] %v393_v40  ;;  %v1734_v23 = vrot.slane %v11988_v34, 1  ;;  %10367 = vmatmul.msk.f32.gmra.mxu0 %vm779_vm1, %v11766_v5 }
  0x77   : > { %v2708_v38 = vmax.f32 %v2259_v50, %v2593_v19  ;;  %v1733_v53 = vsel %vm1690_vm2, %v1731_v15, %v1732_v47  ;;  %v1898_v8 = vrot.slane %v11845_v58, 6  ;;  %v1899_v30 = vrot.slane %v11879_v14, 6  ;;  %488 = vst [vmem:[#allocation1 + $0x30] ss:$2 sm:$0xff] %v392_v16 }
  0x78   : > { %v12025_v13 = vmax.f32 %v2709_v39, %v2768_v26  ;;  %v12028_v28 = vmax.f32 %v11917_v27, %v1733_v53  ;;  %v2883_v24 = vmax.f32 %v2707_v60, %v2767_v2  ;;  %v1735_v42 = vsel %vm1690_vm2, %v1732_v47, %v1734_v23 }
  0x79   : > { %v2884_v59 = vmax.f32 %v2708_v38, %v2769_v1  ;;  %v12036_v50 = vmax.f32 %v11988_v34, %v1734_v23  ;;  %v12039_v48 = vmax.f32 %v11925_v55, %v1735_v42  ;;  %v1900_v26 = vsel %vm1867_vm3, %v1898_v8, %v1899_v30 }
  0x7a   : > { %v1901_v43 = vrot.slane %v11909_v44, 6  ;;  %v3236_v2 = vrot.slane %v2883_v24, 1  ;;  %v2014_v49 = vmax.f32 %v11832_v41, %v1898_v8  ;;  %v2015_v40 = vmax.f32 %v11817_v57, %v1900_v26  ;;  %v12057_v8 = vld [vmem:[%s11553_s17 + $0x100] sm:$0xf] }
  0x7b   : > { %v12044_v16 = vrot.slane %v2884_v59, 1  ;;  %v2370_v47 = vrot.slane %v12028_v28, 7  ;;  %v2371_v36 = vrot.slane %v12039_v48, 7  ;;  %v2373_v19 = vrot.slane %v12036_v50, 7 }
  0x7c   : > { %v1902_v15 = vsel %vm1867_vm3, %v1899_v30, %v1901_v43  ;;  %v2145_v60 = vrot.slane %v2014_v49, 2  ;;  %v2146_v57 = vrot.slane %v2015_v40, 2  ;;  %v12065_v30 = vld [vmem:[%s11553_s17 + $0x108] sm:$0xff]  ;;  %v2770_v59 = vrot.slane %v11917_v27, 2 }
  0x7d   : > { %10450 = vmatmul.msk.f32.gmra.mxu2 %vm779_vm1, %v3235_v6  ;;  %v3238_v1 = vsel %vm1690_vm2, %v3236_v2, %v12044_v16  ;;  %v3239_v6 = vrot.slane %v12025_v13, 1  ;;  %v2016_v39 = vmax.f32 %v11855_v20, %v1902_v15  ;;  %v12059_v41 = vld.sshfl [vmem:[#allocation1] sm:$0xff pattern:$0x75316420]  ;;  %v2372_v38 = vsel %vm2339_vm4, %v2370_v47, %v2371_v36 }
  0x7e   : > { %v2374_v53 = vsel %vm2339_vm4, %v2371_v36, %v2373_v19  ;;  %v2486_v23 = vmax.f32 %v11968_v22, %v2370_v47  ;;  %v2487_v13 = vmax.f32 %v11971_v21, %v2372_v38  ;;  %v12070_v42 = vld.sshfl [vmem:[#allocation1 + $0x30] sm:$0xff pattern:$0x75316420]  ;;  %v2147_v26 = vsel %vm2114_vm5, %v2145_v60, %v2146_v57  ;;  %10368 = vmatmul.msk.f32.gmra.mxu0 %vm779_vm1, %v11777_v54 }
  0x7f   : > { %v2148_v24 = vrot.slane %v2016_v39, 2  ;;  %v2488_v20 = vmax.f32 %v11974_v31, %v2374_v53  ;;  %v2771_v2 = vrot.slane %v11925_v55, 2  ;;  %v2773_v49 = vrot.slane %v11988_v34, 2  ;;  %500 = vst [vmem:[#allocation1 + $0x30] ss:$2 sm:$0xff] %v12057_v8  ;;  %v12081_v19 = vld [vmem:[%s11553_s17 + $0x110] sm:$0xff] }
  0x80   : > { %v2594_v43 = vrot.slane %v2486_v23, 1  ;;  %v2261_v15 = vmax.f32 %v11894_v45, %v2147_v26  ;;  %v2595_v47 = vrot.slane %v2487_v13, 1  ;;  %501 = vst [vmem:[#allocation1 + $0x31] ss:$2 sm:$0xff] %v12065_v30  ;;  %v395_v23 = vrot.slane %v11965_v29, 4 }
  0x81   : > { %v2149_v40 = vsel %vm2114_vm5, %v2146_v57, %v2148_v24  ;;  %v2597_v36 = vrot.slane %v2488_v20, 1  ;;  %v2772_v60 = vsel %vm2114_vm5, %v2770_v59, %v2771_v2  ;;  %v2774_v38 = vsel %vm2114_vm5, %v2771_v2, %v2773_v49  ;;  %507 = vst [vmem:[#allocation1 + $0x1] ss:$2 sm:$0xff] %v12081_v19 }
  0x82   : > { %v2262_v39 = vmax.f32 %v11897_v4, %v2149_v40  ;;  %v2263_v53 = vmax.f32 %v11900_v63, %v2148_v24  ;;  %v2596_v5 = vsel %vm1690_vm2, %v2594_v43, %v2595_v47  ;;  %v394_v57 = vrot.slane %v12007_v25, 4  ;;  %499 = vst [vmem:[#allocation1 + $0x21] ss:$2 sm:$0xff] %v395_v23 }
  0x83   : > { %v2598_v45 = vsel %vm1690_vm2, %v2595_v47, %v2597_v36  ;;  %v2710_v13 = vmax.f32 %v2261_v15, %v2596_v5  ;;  %v1736_v59 = vrot.slane %v12007_v25, 1  ;;  %v1737_v63 = vrot.slane %v11965_v29, 1 }
  0x84   : > { %v2711_v4 = vmax.f32 %v2262_v39, %v2598_v45  ;;  %v2712_v20 = vmax.f32 %v2263_v53, %v2597_v36  ;;  %v1739_v24 = vrot.slane %v12057_v8, 1  ;;  %v1904_v26 = vrot.slane %v11925_v55, 6  ;;  %497 = vst [vmem:[#allocation1 + $0x11] ss:$2 sm:$0xff] %v394_v57 }
  0x85   : > { %10451 = vmatmul.msk.f32.gmra.mxu2 %vm779_vm1, %v3238_v1  ;;  %v1903_v1 = vrot.slane %v11917_v27, 6  ;;  %v2886_v43 = vmax.f32 %v2710_v13, %v2772_v60  ;;  %v1906_v15 = vrot.slane %v11988_v34, 6  ;;  %v1738_v47 = vsel %vm1690_vm2, %v1736_v59, %v1737_v63 }
  0x86   : > { %v2887_v2 = vmax.f32 %v2711_v4, %v2774_v38  ;;  %v12099_v40 = vmax.f32 %v2712_v20, %v2773_v49  ;;  %v1740_v36 = vsel %vm1690_vm2, %v1737_v63, %v1739_v24  ;;  %v12105_v39 = vmax.f32 %v12057_v8, %v1739_v24  ;;  %10369 = vmatmul.msk.f32.gmra.mxu0 %vm779_vm1, %v11796_v46 }
  0x87   : > { %v1905_v53 = vsel %vm1867_vm3, %v1903_v1, %v1904_v26  ;;  %v3240_v60 = vsel %vm1690_vm2, %v12044_v16, %v3239_v6  ;;  %v3241_v38 = vrot.slane %v2886_v43, 1  ;;  %v12111_v49 = vmax.f32 %v12007_v25, %v1738_v47  ;;  %v12113_v5 = vld.sshfl [vmem:[#allocation1 + $0x30] sm:$0xff pattern:$0x75316420]  ;;  %v12124_v16 = vld [vmem:[%s11553_s17 + $0x118] sm:$0xf] }
  0x88   : > { %v12118_v45 = vmax.f32 %v11965_v29, %v1740_v36  ;;  %v1907_v57 = vsel %vm1867_vm3, %v1904_v26, %v1906_v15  ;;  %v2017_v23 = vmax.f32 %v11845_v58, %v1903_v1  ;;  %v2018_v13 = vmax.f32 %v11879_v14, %v1905_v53  ;;  %v12127_v6 = vld [vmem:[%s11553_s17 + $0x128] sm:$0xff]  ;;  %v12137_v1 = vld [vmem:[%s11553_s17 + $0x120] sm:$0xff] }
  0x89   : > { %v3242_v4 = vrot.slane %v2887_v2, 1  ;;  %v3244_v20 = vrot.slane %v12099_v40, 1  ;;  %v2019_v59 = vmax.f32 %v11909_v44, %v1907_v57  ;;  %v2375_v54 = vrot.slane %v12111_v49, 7  ;;  %512 = vst [vmem:[#allocation1 + $0x30] ss:$2 sm:$0xff] %v12127_v6 }
  0x8a   : > { %v2150_v63 = vrot.slane %v2017_v23, 2  ;;  %v2151_v24 = vrot.slane %v2018_v13, 2  ;;  %v2376_v58 = vrot.slane %v12118_v45, 7  ;;  %v2378_v14 = vrot.slane %v12105_v39, 7 }
  0x8b   : > { %v12139_v26 = vld.sshfl [vmem:[#allocation1 + $0x20] sm:$0xff pattern:$0x75316420]  ;;  %v2153_v43 = vrot.slane %v2019_v59, 2  ;;  %v2489_v2 = vmax.f32 %v12028_v28, %v2375_v54  ;;  %v2775_v44 = vrot.slane %v12007_v25, 2  ;;  %v2776_v40 = vrot.slane %v11965_v29, 2 }
  0x8c   : > { %v2152_v15 = vsel %vm2114_vm5, %v2150_v63, %v2151_v24  ;;  %v2377_v47 = vsel %vm2339_vm4, %v2375_v54, %v2376_v58  ;;  %v2379_v36 = vsel %vm2339_vm4, %v2376_v58, %v2378_v14  ;;  %510 = vst [vmem:[#allocation1 + $0x20] ss:$2 sm:$0xff] %v12137_v1  ;;  %v3243_v57 = vsel %vm1690_vm2, %v3241_v38, %v3242_v4 }
  0x8d   : > { %10452 = vmatmul.msk.f32.gmra.mxu2 %vm779_vm1, %v3240_v60  ;;  %v12148_v60 = vld.sshfl [vmem:[#allocation1 + $0x10] sm:$0xff pattern:$0x75316420]  ;;  %v2154_v23 = vsel %vm2114_vm5, %v2151_v24, %v2153_v43  ;;  %v2490_v13 = vmax.f32 %v12039_v48, %v2377_v47  ;;  %v2491_v59 = vmax.f32 %v12036_v50, %v2379_v36  ;;  %v2264_v54 = vmax.f32 %v11968_v22, %v2152_v15 }
  0x8e   : > { %509 = vst [vmem:[#allocation1 + $0x11] ss:$2 sm:$0xff] %v12124_v16  ;;  %v2265_v63 = vmax.f32 %v11971_v21, %v2154_v23  ;;  %v2599_v58 = vrot.slane %v2489_v2, 1  ;;  %v2777_v14 = vsel %vm2114_vm5, %v2775_v44, %v2776_v40  ;;  %v15739_v61 = vrot.slane %v12057_v8, 2  ;;  %10370 = vmatmul.msk.f32.gmra.mxu0 %vm779_vm1, %v11804_v35 }
  0x8f   : > { %v2600_v53 = vrot.slane %v2490_v13, 1  ;;  %v2602_v7 = vrot.slane %v2491_v59, 1  ;;  %v396_v24 = vrot.slane %v12065_v30, 4  ;;  %v397_v47 = vrot.slane %v12081_v19, 4 }
  0x90   : > { %v2779_v38 = vsel %vm2114_vm5, %v2776_v40, %v15739_v61  ;;  %v1741_v22 = vrot.slane %v12065_v30, 1  ;;  %v1742_v21 = vrot.slane %v12081_v19, 1  ;;  %v1744_v2 = vrot.slane %v12124_v16, 1 }
  0x91   : > { %v2601_v44 = vsel %vm1690_vm2, %v2599_v58, %v2600_v53  ;;  %v2603_v15 = vsel %vm1690_vm2, %v2600_v53, %v2602_v7  ;;  %v2266_v36 = vmax.f32 %v11974_v31, %v2153_v43  ;;  %v1908_v61 = vrot.slane %v12007_v25, 6  ;;  %506 = vst [vmem:[#allocation1] ss:$2 sm:$0xff] %v396_v24 }
  0x92   : > { %v2713_v46 = vmax.f32 %v2264_v54, %v2601_v44  ;;  %v2714_v40 = vmax.f32 %v2265_v63, %v2603_v15  ;;  %508 = vst [vmem:[#allocation1 + $0x10] ss:$2 sm:$0xff] %v397_v47  ;;  %v1743_v23 = vsel %vm1690_vm2, %v1741_v22, %v1742_v21  ;;  %v1909_v13 = vrot.slane %v11965_v29, 6 }
  0x93   : > { %v1745_v59 = vsel %vm1690_vm2, %v1742_v21, %v1744_v2  ;;  %v12178_v58 = vmax.f32 %v12065_v30, %v1743_v23  ;;  %v12181_v31 = vmax.f32 %v12124_v16, %v1744_v2  ;;  %v1911_v63 = vrot.slane %v12057_v8, 6 }
  0x94   : > { %v2889_v43 = vmax.f32 %v2713_v46, %v2777_v14  ;;  %v2890_v53 = vmax.f32 %v2714_v40, %v2779_v38  ;;  %v1910_v54 = vsel %vm1867_vm3, %v1908_v61, %v1909_v13  ;;  %v2020_v24 = vmax.f32 %v11917_v27, %v1908_v61  ;;  %v12194_v14 = vld [vmem:[%s11553_s17 + $0x130] sm:$0xf] }
  0x95   : > { %10453 = vmatmul.msk.f32.gmra.mxu2 %vm779_vm1, %v3243_v57  ;;  %v12184_v57 = vmax.f32 %v12081_v19, %v1745_v59  ;;  %v2021_v47 = vmax.f32 %v11925_v55, %v1910_v54  ;;  %v3245_v22 = vsel %vm1690_vm2, %v3242_v4, %v3244_v20  ;;  %v2715_v21 = vmax.f32 %v2266_v36, %v2602_v7 }
  0x96   : > { %v2380_v44 = vrot.slane %v12178_v58, 7  ;;  %v1912_v38 = vsel %vm1867_vm3, %v1909_v13, %v1911_v63  ;;  %v2155_v15 = vrot.slane %v2020_v24, 2  ;;  %v2383_v40 = vrot.slane %v12181_v31, 7  ;;  %v12220_v63 = vld [vmem:[%s11553_s17 + $0x140] sm:$0xff]  ;;  %10371 = vmatmul.msk.f32.gmra.mxu0 %vm779_vm1, %v11809_v37 }
  0x97   : > { %v2381_v2 = vrot.slane %v12184_v57, 7  ;;  %v2156_v46 = vrot.slane %v2021_v47, 2  ;;  %v3246_v23 = vrot.slane %v2889_v43, 1  ;;  %v3247_v27 = vrot.slane %v2890_v53, 1  ;;  %v12211_v43 = vld [vmem:[%s11553_s17 + $0x138] sm:$0xff] }
  0x98   : > { %v2022_v7 = vmax.f32 %v11988_v34, %v1912_v38  ;;  %v12202_v4 = vld.sshfl [vmem:[#allocation1] sm:$0xff pattern:$0x75316420]  ;;  %v2492_v13 = vmax.f32 %v12111_v49, %v2380_v44  ;;  %v2780_v54 = vrot.slane %v12065_v30, 2 }
  0x99   : > { %v2382_v55 = vsel %vm2339_vm4, %v2380_v44, %v2381_v2  ;;  %v12204_v20 = vld.sshfl [vmem:[#allocation1 + $0x10] sm:$0xff pattern:$0x75316420]  ;;  %v2157_v36 = vsel %vm2114_vm5, %v2155_v15, %v2156_v46  ;;  %v2384_v61 = vsel %vm2339_vm4, %v2381_v2, %v2383_v40  ;;  %518 = vst [vmem:[#allocation1] ss:$2 sm:$0xff] %v12194_v14  ;;  %v2781_v44 = vrot.slane %v12081_v19, 2 }
  0x9a   : > { %15740 = vst [vmem:[#allocation26_spill] sm:$0xff] %v12204_v20  ;;  %v2493_v59 = vmax.f32 %v12118_v45, %v2382_v55  ;;  %v2158_v35 = vrot.slane %v2022_v7, 2  ;;  %v2267_v34 = vmax.f32 %v12028_v28, %v2157_v36  ;;  %v2494_v53 = vmax.f32 %v12105_v39, %v2384_v61  ;;  %v12227_v28 = vld [vmem:[%s11553_s17 + $0x158] sm:$0xff] }
  0x9b   : > { %519 = vst [vmem:[#allocation1 + $0x1] ss:$2 sm:$0xff] %v12211_v43  ;;  %v2604_v24 = vrot.slane %v2492_v13, 1  ;;  %v2783_v2 = vrot.slane %v12124_v16, 2  ;;  %v2782_v7 = vsel %vm2114_vm5, %v2780_v54, %v2781_v44  ;;  %v3248_v13 = vsel %vm1690_vm2, %v3246_v23, %v3247_v27 }
  0x9c   : > { %v2605_v47 = vrot.slane %v2493_v59, 1  ;;  %521 = vst [vmem:[#allocation1 + $0x11] ss:$2 sm:$0xff] %v12220_v63  ;;  %v2607_v38 = vrot.slane %v2494_v53, 1  ;;  %v15741_v59 = vrot.slane %v12057_v8, 2  ;;  %v403_v53 = vrot.slane %v12227_v28, 4 }
  0x9d   : > { %10454 = vmatmul.msk.f32.gmra.mxu2 %vm779_vm1, %v3245_v22  ;;  %v2159_v22 = vsel %vm2114_vm5, %v2156_v46, %v2158_v35  ;;  %v2784_v61 = vsel %vm2114_vm5, %v2781_v44, %v2783_v2  ;;  %v399_v54 = vrot.slane %v12127_v6, 4 }
  0x9e   : > { %v2268_v15 = vmax.f32 %v12039_v48, %v2159_v22  ;;  %v2606_v40 = vsel %vm1690_vm2, %v2604_v24, %v2605_v47  ;;  %v2608_v55 = vsel %vm1690_vm2, %v2605_v47, %v2607_v38  ;;  %v2891_v52 = vmax.f32 %v2715_v21, %v15741_v59  ;;  %10372 = vmatmul.msk.f32.gmra.mxu0 %vm779_vm1, %v11865_v33 }
  0x9f   : > { %v2716_v36 = vmax.f32 %v2267_v34, %v2606_v40  ;;  %v398_v34 = vrot.slane %v12137_v1, 4  ;;  %v400_v21 = vrot.slane %v12211_v43, 4  ;;  %513 = vst [vmem:[#allocation1 + $0x31] ss:$2 sm:$0xff] %v399_v54  ;;  %v12250_v40 = vld [vmem:[%s11553_s17 + $0x180] sm:$0xff]  ;;  %v12285_v54 = vld [vmem:[%s11553_s17 + $0x188] sm:$0xff] }
  0xa0   : > { %v2717_v46 = vmax.f32 %v2268_v15, %v2608_v55  ;;  %v3249_v44 = vrot.slane %v2891_v52, 1  ;;  %v2269_v15 = vmax.f32 %v12036_v50, %v2158_v35  ;;  %v406_v52 = vrot.slane %v12250_v40, 4  ;;  %v12262_v35 = vld [vmem:[%s11553_s17 + $0x160] sm:$0xf] }
  0xa1   : > { %v2892_v48 = vmax.f32 %v2716_v36, %v2782_v7  ;;  %511 = vst [vmem:[#allocation1 + $0x21] ss:$2 sm:$0xff] %v398_v34  ;;  %v401_v36 = vrot.slane %v12220_v63, 4  ;;  %v12293_v34 = vld [vmem:[%s11553_s17 + $0x1c8] sm:$0xff] }
  0xa2   : > { %v2893_v24 = vmax.f32 %v2717_v46, %v2784_v61  ;;  %v12241_v47 = vld.sshfl [vmem:[#allocation1] sm:$0xff pattern:$0x75316420]  ;;  %520 = vst [vmem:[#allocation1 + $0x10] ss:$2 sm:$0xff] %v400_v21  ;;  %v3250_v7 = vsel %vm1690_vm2, %v3247_v27, %v3249_v44  ;;  %v2718_v55 = vmax.f32 %v2269_v15, %v2607_v38  ;;  %v12268_v27 = vld [vmem:[%s11553_s17 + $0x150] sm:$0xff] }
  0xa3   : > { %15742 = vst [vmem:[#allocation27_spill] sm:$0xff] %v12241_v47  ;;  %v3251_v23 = vrot.slane %v2892_v48, 1  ;;  %v12265_v61 = vld [vmem:[%s11553_s17 + $0x148] sm:$0xf]  ;;  %v12282_v48 = vld [vmem:[%s11553_s17 + $0x1a0] sm:$0xff]  ;;  %v412_v21 = vrot.slane %v12293_v34, 4 }
  0xa4   : > { %530 = vst [vmem:[#allocation1] ss:$2 sm:$0xff] %v12227_v28  ;;  %v3252_v22 = vrot.slane %v2893_v24, 1  ;;  %v2894_v38 = vmax.f32 %v2718_v55, %v2783_v2  ;;  %v409_v2 = vrot.slane %v12282_v48, 4  ;;  %v407_v44 = vrot.slane %v12285_v54, 4 }
  0xa5   : > { %10455 = vmatmul.msk.f32.gmra.mxu2 %vm779_vm1, %v3248_v13  ;;  %531 = vst [vmem:[#allocation1 + $0x1] ss:$2 sm:$0xff] %v403_v53  ;;  %v12273_v13 = vld [vmem:[%s11553_s17 + $0x168] sm:$0xff]  ;;  %v402_v53 = vrot.slane %v12268_v27, 4  ;;  %v1913_v55 = vrot.slane %v12065_v30, 6 }
  0xa6   : > { %v3253_v37 = vsel %vm1690_vm2, %v3251_v23, %v3252_v22  ;;  %v12277_v46 = vld.sshfl [vmem:[#allocation1 + $0x30] sm:$0xff pattern:$0x75316420]  ;;  %10373 = vmatmul.msk.f32.gmra.mxu0 %vm779_vm1, %v11848_v0  ;;  %v3254_v24 = vrot.slane %v2894_v38, 1  ;;  %v12298_v23 = vld [vmem:[%s11553_s17 + $0x1a8] sm:$0xf] }
  0xa7   : > { %15746 = vst [vmem:[#allocation31_spill] sm:$0xff] %v12277_v46  ;;  %v1746_v0 = vrot.slane %v12137_v1, 1  ;;  %v404_v38 = vrot.slane %v12273_v13, 4 }
  0xa8   : > { %v12270_v33 = vld.sshfl [vmem:[#allocation1 + $0x20] sm:$0xff pattern:$0x75316420]  ;;  %524 = vst [vmem:[#allocation1 + $0x30] ss:$2 sm:$0xff] %v12268_v27  ;;  %v3255_v56 = vsel %vm1690_vm2, %v3252_v22, %v3254_v24 }
  0xa9   : > { %15744 = vst [vmem:[#allocation29_spill] sm:$0xff] %v12270_v33  ;;  %v12275_v59 = vld.sshfl [vmem:[#allocation1 + $0x10] sm:$0xff pattern:$0x75316420]  ;;  %v12379_v33 = vld [vmem:[%s11553_s17 + $0x198] sm:$0xff] }
  0xaa   : > { %15745 = vst [vmem:[#allocation30_spill] sm:$0xff] %v12275_v59 }
  0xab   : > { %522 = vst [vmem:[#allocation1 + $0x20] ss:$2 sm:$0xff] %v401_v36  ;;  %v1916_v36 = vrot.slane %v12124_v16, 6 }
  0xac   : > { %v12258_v50 = vld.sshfl [vmem:[#allocation1] sm:$0xff pattern:$0x75316420]  ;;  %532 = vst [vmem:[#allocation1 + $0x10] ss:$2 sm:$0xff] %v12262_v35 }
  0xad   : > { %10456 = vmatmul.msk.f32.gmra.mxu2 %vm779_vm1, %v3250_v7  ;;  %15743 = vst [vmem:[#allocation28_spill] sm:$0xff] %v12258_v50  ;;  %v1747_v7 = vrot.slane %v12127_v6, 1 }
  0xae   : > { %542 = vst [vmem:[#allocation1] ss:$2 sm:$0xff] %v12250_v40  ;;  %10374 = vmatmul.msk.f32.gmra.mxu0 %vm779_vm1, %v11876_v3  ;;  %v2788_v3 = vrot.slane %v12194_v14, 2 }
  0xaf   : > { %543 = vst [vmem:[#allocation1 + $0x1] ss:$2 sm:$0xff] %v406_v52  ;;  %v1749_v52 = vrot.slane %v12194_v14, 1 }
  0xb0   : > { %533 = vst [vmem:[#allocation1 + $0x11] ss:$2 sm:$0xff] %v12273_v13 }
  0xb1   : > { %523 = vst [vmem:[#allocation1 + $0x21] ss:$2 sm:$0xff] %v12265_v61  ;;  %v1750_v51 = vsel %vm1690_vm2, %v1747_v7, %v1749_v52  ;;  %v12316_v9 = vmax.f32 %v12194_v14, %v1749_v52 }
  0xb2   : > { %525 = vst [vmem:[#allocation1 + $0x31] ss:$2 sm:$0xff] %v402_v53  ;;  %v1748_v53 = vsel %vm1690_vm2, %v1746_v0, %v1747_v7  ;;  %v12325_v17 = vmax.f32 %v12127_v6, %v1750_v51  ;;  %v2023_v0 = vmax.f32 %v12007_v25, %v1913_v55 }
  0xb3   : > { %v12322_v10 = vmax.f32 %v12137_v1, %v1748_v53  ;;  %v2388_v50 = vrot.slane %v12316_v9, 7 }
  0xb4   : > { %v2386_v59 = vrot.slane %v12325_v17, 7  ;;  %v2160_v25 = vrot.slane %v2023_v0, 2 }
  0xb5   : > { %10457 = vmatmul.msk.f32.gmra.mxu2 %vm779_vm1, %v3253_v37  ;;  %v1914_v37 = vrot.slane %v12081_v19, 6  ;;  %v2385_v51 = vrot.slane %v12322_v10, 7 }
  0xb6   : > { %v12302_v15 = vld.sshfl [vmem:[#allocation1] sm:$0xff pattern:$0x75316420]  ;;  %10375 = vmatmul.msk.f32.gmra.mxu0 %vm779_vm1, %v11922_v62  ;;  %v1754_v62 = vrot.slane %v12265_v61, 1 }
  0xb7   : > { %15747 = vst [vmem:[#allocation32_spill] sm:$0xff] %v12302_v15  ;;  %v1915_v15 = vsel %vm1867_vm3, %v1913_v55, %v1914_v37  ;;  %v1917_v22 = vsel %vm1867_vm3, %v1914_v37, %v1916_v36  ;;  %v12329_v24 = vld.sshfl [vmem:[#allocation1 + $0x10] sm:$0xff pattern:$0x75316420]  ;;  %v2785_v37 = vrot.slane %v12137_v1, 2  ;;  %v2786_v55 = vrot.slane %v12127_v6, 2 }
  0xb8   : > { %554 = vst [vmem:[#allocation1] ss:$2 sm:$0xff] %v409_v2  ;;  %v12319_v2 = vld [vmem:[%s11553_s17 + $0x170] sm:$0xff]  ;;  %v2024_v7 = vmax.f32 %v11965_v29, %v1915_v15  ;;  %v2025_v52 = vmax.f32 %v12057_v8, %v1917_v22  ;;  %v12336_v53 = vld.sshfl [vmem:[#allocation1 + $0x20] sm:$0xff pattern:$0x75316420]  ;;  %v2387_v36 = vsel %vm2339_vm4, %v2385_v51, %v2386_v59  ;;  %v2389_v22 = vsel %vm2339_vm4, %v2386_v59, %v2388_v50 }
  0xb9   : > { %555 = vst [vmem:[#allocation1 + $0x1] ss:$2 sm:$0xff] %v12298_v23  ;;  %v405_v29 = vrot.slane %v12319_v2, 4  ;;  %v12353_v0 = vld.sshfl [vmem:[#allocation1 + $0x30] sm:$0xff pattern:$0x75316420]  ;;  %v2496_v50 = vmax.f32 %v12184_v57, %v2387_v36  ;;  %v2497_v59 = vmax.f32 %v12181_v31, %v2389_v22  ;;  %v2787_v46 = vsel %vm2114_vm5, %v2785_v37, %v2786_v55 }
  0xba   : > { %15748 = vst [vmem:[#allocation33_spill] sm:$0xff] %v12329_v24  ;;  %v2161_v8 = vrot.slane %v2024_v7, 2  ;;  %v2163_v15 = vrot.slane %v2025_v52, 2  ;;  %v12351_v24 = vld [vmem:[%s11553_s17 + $0x1b0] sm:$0xff]  ;;  %v12358_v7 = vld [vmem:[%s15662_s2] ss:$0 sm:$0xff] }
  0xbb   : > { %544 = vst [vmem:[#allocation1 + $0x10] ss:$2 sm:$0xff] %v12285_v54  ;;  %v12366_v52 = vld [vmem:[%s11553_s17 + $0x178] sm:$0xf]  ;;  %v2612_v36 = vrot.slane %v2497_v59, 1  ;;  %v410_v22 = vrot.slane %v12351_v24, 4 }
  0xbc   : > { %15749 = vst [vmem:[#allocation34_spill] sm:$0xff] %v12336_v53 }
  0xbd   : > { %545 = vst [vmem:[#allocation1 + $0x11] ss:$2 sm:$0xff] %v407_v44  ;;  %10458 = vmatmul.msk.f32.gmra.mxu2 %vm779_vm1, %v3255_v56  ;;  %v2495_v44 = vmax.f32 %v12178_v58, %v2385_v51  ;;  %v2162_v56 = vsel %vm2114_vm5, %v2160_v25, %v2161_v8  ;;  %v12373_v25 = vld [vmem:[%s11553_s17 + $0x1d0] sm:$0xff] }
  0xbe   : > { %534 = vst [vmem:[#allocation1 + $0x20] ss:$2 sm:$0xff] %v404_v38  ;;  %v2164_v38 = vsel %vm2114_vm5, %v2161_v8, %v2163_v15  ;;  %v2610_v8 = vrot.slane %v2496_v50, 1  ;;  %v12396_v50 = vld [vmem:[%s11553_s17 + $0x190] sm:$0xf]  ;;  %10376 = vmatmul.msk.f32.gmra.mxu0 %vm779_vm1, %v11928_v12 }
  0xbf   : > { %15750 = vst [vmem:[#allocation35_spill] sm:$0xff] %v12351_v24  ;;  %v2271_v53 = vmax.f32 %v12118_v45, %v2164_v38  ;;  %v2609_v47 = vrot.slane %v2495_v44, 1  ;;  %v2272_v44 = vmax.f32 %v12105_v39, %v2163_v15  ;;  %v408_v15 = vrot.slane %v12379_v33, 4 }
  0xc0   : > { %15751 = vst [vmem:[#allocation36_spill] sm:$0xff] %v12353_v0  ;;  %v12368_v51 = vld.sshfl [vmem:[#allocation1] sm:$0xff pattern:$0x75316420]  ;;  %v2270_v0 = vmax.f32 %v12111_v49, %v2162_v56  ;;  %v2613_v45 = vsel %vm1690_vm2, %v2610_v8, %v2612_v36  ;;  %v12392_v56 = vrot.slane %v12358_v7, 4 }
  0xc1   : > { %535 = vst [vmem:[#allocation1 + $0x21] ss:$2 sm:$0xff] %v12319_v2  ;;  %v2611_v49 = vsel %vm1690_vm2, %v2609_v47, %v2610_v8  ;;  %v2720_v38 = vmax.f32 %v2271_v53, %v2613_v45  ;;  %v413_v47 = vrot.slane %v12373_v25, 4  ;;  %v1751_v53 = vrot.slane %v12211_v43, 1 }
  0xc2   : > { %15752 = vst [vmem:[#allocation37_spill] sm:$0xff] %v12368_v51  ;;  %v12382_v51 = vld [vmem:[%s11553_s17 + $0x1b8] sm:$0xff]  ;;  %v2719_v37 = vmax.f32 %v2270_v0, %v2611_v49  ;;  %v1752_v0 = vrot.slane %v12220_v63, 1 }
  0xc3   : > { %536 = vst [vmem:[#allocation1 + $0x30] ss:$2 sm:$0xff] %v405_v29  ;;  %v2789_v29 = vsel %vm2114_vm5, %v2786_v55, %v2788_v3  ;;  %v2721_v55 = vmax.f32 %v2272_v44, %v2612_v36  ;;  %v411_v39 = vrot.slane %v12382_v51, 4  ;;  %v1919_v36 = vrot.slane %v12127_v6, 6 }
  0xc4   : > { %566 = vst [vmem:[#allocation1] ss:$2 sm:$0xff] %v412_v21  ;;  %v12387_v21 = vld.sshfl [vmem:[#allocation1 + $0x10] sm:$0xff pattern:$0x75316420]  ;;  %v2895_v59 = vmax.f32 %v2719_v37, %v2787_v46  ;;  %v2896_v8 = vmax.f32 %v2720_v38, %v2789_v29  ;;  %v1753_v46 = vsel %vm1690_vm2, %v1751_v53, %v1752_v0  ;;  %v1921_v29 = vrot.slane %v12194_v14, 6 }
  0xc5   : > { %567 = vst [vmem:[#allocation1 + $0x1] ss:$2 sm:$0xff] %v12373_v25  ;;  %v2897_v49 = vmax.f32 %v2721_v55, %v2788_v3  ;;  %v1918_v25 = vrot.slane %v12137_v1, 6  ;;  %v1755_v37 = vsel %vm1690_vm2, %v1752_v0, %v1754_v62  ;;  %v12418_v38 = vmax.f32 %v12211_v43, %v1753_v46 }
  0xc6   : > { %15753 = vst [vmem:[#allocation38_spill] sm:$0xff] %v12387_v21  ;;  %v3257_v45 = vrot.slane %v2896_v8, 1  ;;  %v12421_v55 = vmax.f32 %v12265_v61, %v1754_v62  ;;  %v309_v8 = vld [vmem:[%s11553_s17 + $0x1d8] sm:$0xf]  ;;  %v12427_v53 = vmax.f32 %v12220_v63, %v1755_v37  ;;  %10377 = vmatmul.msk.f32.gmra.mxu0 %vm779_vm1, %v11999_v32 }
  0xc7   : > { %537 = vst [vmem:[#allocation1 + $0x31] ss:$2 sm:$0xff] %v12366_v52  ;;  %v3259_v3 = vrot.slane %v2897_v49, 1  ;;  %v1922_v49 = vsel %vm1867_vm3, %v1919_v36, %v1921_v29  ;;  %v2026_v0 = vmax.f32 %v12065_v30, %v1918_v25  ;;  %v2390_v46 = vrot.slane %v12418_v38, 7 }
  0xc8   : > { %556 = vst [vmem:[#allocation1 + $0x10] ss:$2 sm:$0xff] %v12351_v24  ;;  %v12403_v21 = vld.sshfl [vmem:[#allocation1 + $0x20] sm:$0xff pattern:$0x75316420]  ;;  %v2028_v37 = vmax.f32 %v12124_v16, %v1922_v49  ;;  %v2391_v24 = vrot.slane %v12427_v53, 7 }
  0xc9   : > { %557 = vst [vmem:[#allocation1 + $0x11] ss:$2 sm:$0xff] %v410_v22  ;;  %v3256_v22 = vrot.slane %v2895_v59, 1  ;;  %v2790_v29 = vrot.slane %v12211_v43, 2  ;;  %v2165_v30 = vrot.slane %v2026_v0, 2 }
  0xca   : > { %15754 = vst [vmem:[#allocation39_spill] sm:$0xff] %v12403_v21  ;;  %v1920_v21 = vsel %vm1867_vm3, %v1918_v25, %v1919_v36  ;;  %v2393_v36 = vrot.slane %v12421_v55, 7  ;;  %v2791_v25 = vrot.slane %v12220_v63, 2  ;;  %v2392_v16 = vsel %vm2339_vm4, %v2390_v46, %v2391_v24 }
  0xcb   : > { %546 = vst [vmem:[#allocation1 + $0x20] ss:$2 sm:$0xff] %v12396_v50  ;;  %v3258_v59 = vsel %vm1690_vm2, %v3256_v22, %v3257_v45  ;;  %v2027_v62 = vmax.f32 %v12081_v19, %v1920_v21  ;;  %v2498_v21 = vmax.f32 %v12322_v10, %v2390_v46  ;;  %v2499_v12 = vmax.f32 %v12325_v17, %v2392_v16  ;;  %v12460_v46 = vpop.f32.mrf.mxu0 }
  0xcc   : > { %547 = vst [vmem:[#allocation1 + $0x21] ss:$2 sm:$0xff] %v12379_v33  ;;  %v12414_v44 = vld.sshfl [vmem:[#allocation1] sm:$0xff pattern:$0x75316420]  ;;  %10459 = vmatmul.msk.f32.gmra.mxu2 %vm779_vm1, %v3258_v59  ;;  %v2168_v59 = vrot.slane %v2028_v37, 2  ;;  %v2394_v49 = vsel %vm2339_vm4, %v2391_v24, %v2393_v36 }
  0xcd   : > { %15755 = vst [vmem:[#allocation40_spill] sm:$0xff] %v12414_v44  ;;  %v2166_v19 = vrot.slane %v2027_v62, 2  ;;  %v2614_v0 = vrot.slane %v2498_v21, 1  ;;  %v3260_v62 = vsel %vm1690_vm2, %v3257_v45, %v3259_v3  ;;  %v2615_v36 = vrot.slane %v2499_v12, 1 }
  0xce   : > { %572 = vst [vmem:[#allocation1] ss:$2 sm:$0xff] %v12358_v7  ;;  %v12436_v44 = vld.sshfl [vmem:[#allocation1 + $0x30] sm:$0xff pattern:$0x75316420]  ;;  %v2275_v16 = vmax.f32 %v12181_v31, %v2168_v59  ;;  %v1756_v45 = vrot.slane %v12268_v27, 1  ;;  %10378 = vmatmul.msk.f32.gmra.mxu0 %vm779_vm1, %v11990_v11 }
  0xcf   : > { %574 = vst [vmem:[#allocation1 + $0x1] ss:$2 sm:$0xff] %v12392_v56  ;;  %v2167_v20 = vsel %vm2114_vm5, %v2165_v30, %v2166_v19  ;;  %v1757_v31 = vrot.slane %v12227_v28, 1  ;;  %v1923_v12 = vrot.slane %v12211_v43, 6 }
  0xd0   : > { %15756 = vst [vmem:[#allocation41_spill] sm:$0xff] %v12436_v44  ;;  %v12438_v22 = vld.sshfl [vmem:[#allocation1 + $0x10] sm:$0xff pattern:$0x75316420]  ;;  %v2273_v24 = vmax.f32 %v12178_v58, %v2167_v20  ;;  %v2616_v58 = vsel %vm1690_vm2, %v2614_v0, %v2615_v36 }
  0xd1   : > { %15757 = vst [vmem:[#allocation42_spill] sm:$0xff] %v12438_v22  ;;  %v2793_v22 = vrot.slane %v12265_v61, 2 }
  0xd2   : > { %568 = vst [vmem:[#allocation1 + $0x10] ss:$2 sm:$0xff] %v413_v47  ;;  %v2500_v47 = vmax.f32 %v12316_v9, %v2394_v49 }
  0xd3   : > { %569 = vst [vmem:[#allocation1 + $0x11] ss:$2 sm:$0xff] %v309_v8  ;;  %v12451_v44 = vld.sshfl [vmem:[#allocation1 + $0x20] sm:$0xff pattern:$0x75316420]  ;;  %v2169_v8 = vsel %vm2114_vm5, %v2166_v19, %v2168_v59  ;;  %v2794_v20 = vsel %vm2114_vm5, %v2791_v25, %v2793_v22  ;;  %v1759_v19 = vrot.slane %v12262_v35, 1  ;;  %v1758_v59 = vsel %vm1690_vm2, %v1756_v45, %v1757_v31 }
  0xd4   : > { %15758 = vst [vmem:[#allocation43_spill] sm:$0xff] %v12451_v44  ;;  %v2274_v37 = vmax.f32 %v12184_v57, %v2169_v8  ;;  %v2617_v30 = vrot.slane %v2500_v47, 1  ;;  %10460 = vmatmul.msk.f32.gmra.mxu2 %vm779_vm1, %v3260_v62  ;;  %v12487_v8 = vld [vmem:[%s11553_s17 + $0x1c0] sm:$0xf]  ;;  %v12490_v32 = vmax.f32 %v12268_v27, %v1758_v59  ;;  %v1924_v45 = vrot.slane %v12220_v63, 6  ;;  %s11405_s17 = sshra.s32 %s10288_s16, 4  ;;  %s11406_s17 = int_to_ptr.hbm [resolvable:$true] %s11405_s17 }
  0xd5   : > { %548 = vst [vmem:[#allocation1 + $0x30] ss:$2 sm:$0xff] %v408_v15  ;;  %v2792_v15 = vsel %vm2114_vm5, %v2790_v29, %v2791_v25  ;;  %v1760_v62 = vsel %vm1690_vm2, %v1757_v31, %v1759_v19  ;;  %v12508_v31 = vpop.f32.mrf.mxu0  ;;  %s11407_s18 = scalar_lea.hbm %s11406_s17, 256  ;;  %p11412_p0 = scmp.lt.s32.totalorder %s11406_s17, %s15666_s6 }
  0xd6   : > { %558 = vst [vmem:[#allocation1 + $0x20] ss:$2 sm:$0xff] %v12382_v51  ;;  %v12464_v49 = vld.sshfl [vmem:[#allocation1] sm:$0xff pattern:$0x75316420]  ;;  %v2618_v57 = vsel %vm1690_vm2, %v2615_v36, %v2617_v30  ;;  %v2724_v29 = vmax.f32 %v2275_v16, %v2617_v30  ;;  %v12495_v30 = vmax.f32 %v12227_v28, %v1760_v62  ;;  %v2029_v16 = vmax.f32 %v12137_v1, %v1923_v12  ;;  %p11408_p11 = scmp.ne.s32.totalorder %s11406_s17, %s11407_s18  ;;  %p11413_p1 = scmp.lt.s32.totalorder %s11411_s28, %s11407_s18 }
  0xd7   : > { %559 = vst [vmem:[#allocation1 + $0x21] ss:$2 sm:$0xff] %v411_v39  ;;  %v2722_v39 = vmax.f32 %v2273_v24, %v2616_v58  ;;  %v2723_v3 = vmax.f32 %v2274_v37, %v2618_v57  ;;  %10379 = vmatmul.msk.f32.gmra.mxu0 %vm779_vm1, %v11962_v18 }
  0xd8   : > { %549 = vst [vmem:[#allocation1 + $0x31] ss:$2 sm:$0xff] %v12282_v48  ;;  %v2900_v0 = vmax.f32 %v2724_v29, %v2793_v22  ;;  %v2170_v59 = vrot.slane %v2029_v16, 2  ;;  %p11409_p12 = pnand %p11408_p11, %p11530_p5  ;;  %p11414_p2 = por %p11413_p1, %p11412_p0 }
  0xd9   : > { %591 = vst [vmem:[#allocation1] ss:$2 sm:$0xff] %v12392_v56  ;;  %v2898_v25 = vmax.f32 %v2722_v39, %v2792_v15  ;;  %v2899_v47 = vmax.f32 %v2723_v3, %v2794_v20  ;;  %v12502_v15 = vmax.f32 %v12262_v35, %v1759_v19  ;;  %v1926_v20 = vrot.slane %v12265_v61, 6 }
  0xda   : > { %592 = vst [vmem:[#allocation1 + $0x1] ss:$2 sm:$0xff] %v12358_v7  ;;  %v12479_v21 = vld.sshfl [vmem:[#allocation1 + $0x10] sm:$0xff pattern:$0x75316420]  ;;  %v3264_v57 = vrot.slane %v2900_v0, 1  ;;  %v1925_v39 = vsel %vm1867_vm3, %v1923_v12, %v1924_v45  ;;  %p11410_p13 = pneg %p11409_p12 }
  0xdb   : > { %15759 = vst [vmem:[#allocation44_spill] sm:$0xff] %v12479_v21  ;;  %v3261_v37 = vrot.slane %v2898_v25, 1  ;;  %v3262_v36 = vrot.slane %v2899_v47, 1  ;;  %v2395_v3 = vrot.slane %v12490_v32, 7  ;;  %v1927_v29 = vsel %vm1867_vm3, %v1924_v45, %v1926_v20 }
  0xdc   : > { %576 = vst [vmem:[#allocation1 + $0x10] ss:$2 sm:$0xff] %v12358_v7  ;;  %v2030_v19 = vmax.f32 %v12127_v6, %v1925_v39  ;;  %v2396_v25 = vrot.slane %v12495_v30, 7  ;;  %v2031_v47 = vmax.f32 %v12194_v14, %v1927_v29  ;;  %v2398_v12 = vrot.slane %v12502_v15, 7  ;;  %p11415_p3 = pnand %p11414_p2, %p11410_p13 }
  0xdd   : > { %578 = vst [vmem:[#allocation1 + $0x11] ss:$2 sm:$0xff] %v12392_v56  ;;  %v3263_v58 = vsel %vm1690_vm2, %v3261_v37, %v3262_v36  ;;  %v2501_v0 = vmax.f32 %v12418_v38, %v2395_v3  ;;  %v3265_v14 = vsel %vm1690_vm2, %v3262_v36, %v3264_v57  ;;  %v2795_v57 = vrot.slane %v12268_v27, 2 }
  0xde   : > { %v12492_v24 = vld.sshfl [vmem:[#allocation1 + $0x20] sm:$0xff pattern:$0x75316420]  ;;  %10461 = vmatmul.msk.f32.gmra.mxu2 %vm779_vm1, %v3263_v58  ;;  %v2397_v37 = vsel %vm2339_vm4, %v2395_v3, %v2396_v25  ;;  %v2173_v6 = vrot.slane %v2031_v47, 2  ;;  %v2399_v16 = vsel %vm2339_vm4, %v2396_v25, %v2398_v12 }
  0xdf   : > { %15760 = vst [vmem:[#allocation45_spill] sm:$0xff] %v12492_v24  ;;  %v12499_v22 = vld.sshfl [vmem:[#allocation1 + $0x30] sm:$0xff pattern:$0x75316420]  ;;  %v2502_v11 = vmax.f32 %v12427_v53, %v2397_v37  ;;  %v2503_v58 = vmax.f32 %v12421_v55, %v2399_v16  ;;  %v2619_v20 = vrot.slane %v2501_v0, 1  ;;  %v12555_v0 = vpop.f32.mrf.mxu2  ;;  %v2796_v16 = vrot.slane %v12227_v28, 2  ;;  %10380 = vmatmul.msk.f32.gmra.mxu0 %vm779_vm1, %v12070_v42 }
  0xe0   : > { %580 = vst [vmem:[#allocation1 + $0x20] ss:$2 sm:$0xff] %v12358_v7 }
  0xe1   : > { %15761 = vst [vmem:[#allocation46_spill] sm:$0xff] %v12499_v22  ;;  %v12512_v1 = vld.sshfl [vmem:[#allocation1] sm:$0xff pattern:$0x75316420]  ;;  %v2620_v25 = vrot.slane %v2502_v11, 1  ;;  %v2622_v47 = vrot.slane %v2503_v58, 1  ;;  %v2797_v18 = vsel %vm2114_vm5, %v2795_v57, %v2796_v16 }
  0xe2   : > { %582 = vst [vmem:[#allocation1 + $0x21] ss:$2 sm:$0xff] %v12358_v7  ;;  %v1761_v11 = vrot.slane %v12273_v13, 1  ;;  %v1929_v57 = vrot.slane %v12227_v28, 6 }
  0xe3   : > { %560 = vst [vmem:[#allocation1 + $0x30] ss:$2 sm:$0xff] %v12487_v8  ;;  %v2623_v12 = vsel %vm1690_vm2, %v2620_v25, %v2622_v47 }
  0xe4   : > { %561 = vst [vmem:[#allocation1 + $0x31] ss:$2 sm:$0xff] %v12293_v34  ;;  %v12526_v62 = vld.sshfl [vmem:[#allocation1 + $0x10] sm:$0xff pattern:$0x75316420]  ;;  %v2171_v34 = vrot.slane %v2030_v19, 2 }
  0xe5   : > { %603 = vst [vmem:[#allocation1] ss:$2 sm:$0xff] %v12392_v56 }
  0xe6   : > { %593 = vst [vmem:[#allocation1 + $0x10] ss:$2 sm:$0xff] %v12358_v7  ;;  %v2172_v45 = vsel %vm2114_vm5, %v2170_v59, %v2171_v34  ;;  %v2174_v3 = vsel %vm2114_vm5, %v2171_v34, %v2173_v6  ;;  %10462 = vmatmul.msk.f32.gmra.mxu2 %vm779_vm1, %v3265_v14  ;;  %v2278_v59 = vmax.f32 %v12316_v9, %v2173_v6  ;;  %v2798_v9 = vrot.slane %v12262_v35, 2 }
  0xe7   : > { %594 = vst [vmem:[#allocation1 + $0x11] ss:$2 sm:$0xff] %v12392_v56  ;;  %v2276_v29 = vmax.f32 %v12322_v10, %v2172_v45  ;;  %v2277_v19 = vmax.f32 %v12325_v17, %v2174_v3  ;;  %v2621_v10 = vsel %vm1690_vm2, %v2619_v20, %v2620_v25  ;;  %v12553_v17 = vpop.f32.mrf.mxu0  ;;  %v1762_v14 = vrot.slane %v12319_v2, 1  ;;  %10381 = vmatmul.msk.f32.gmra.mxu0 %vm779_vm1, %v12059_v41 }
  0xe8   : > { %15763 = vst [vmem:[#allocation48_spill] sm:$0xff] %v12555_v0  ;;  %v2727_v6 = vmax.f32 %v2278_v59, %v2622_v47  ;;  %v2799_v45 = vsel %vm2114_vm5, %v2796_v16, %v2798_v9  ;;  %v1764_v20 = vrot.slane %v12366_v52, 1  ;;  %v1928_v3 = vrot.slane %v12268_v27, 6 }
  0xe9   : > { %v12536_v39 = vld.sshfl [vmem:[#allocation1 + $0x20] sm:$0xff pattern:$0x75316420]  ;;  %v2725_v34 = vmax.f32 %v2276_v29, %v2621_v10  ;;  %v2726_v37 = vmax.f32 %v2277_v19, %v2623_v12  ;;  %604 = vst [vmem:[#allocation1 + $0x1] ss:$2 sm:$0xff] %v12358_v7  ;;  %v1763_v47 = vsel %vm1690_vm2, %v1761_v11, %v1762_v14  ;;  %v1769_v41 = vrot.slane %v12396_v50, 1 }
  0xea   : > { %595 = vst [vmem:[#allocation1 + $0x20] ss:$2 sm:$0xff] %v12358_v7  ;;  %v2903_v25 = vmax.f32 %v2727_v6, %v2798_v9  ;;  %v1765_v59 = vsel %vm1690_vm2, %v1762_v14, %v1764_v20  ;;  %v12577_v0 = vmax.f32 %v12273_v13, %v1763_v47 }
  0xeb   : > { %596 = vst [vmem:[#allocation1 + $0x21] ss:$2 sm:$0xff] %v12392_v56  ;;  %v12543_v36 = vld.sshfl [vmem:[#allocation1 + $0x30] sm:$0xff pattern:$0x75316420]  ;;  %v2901_v29 = vmax.f32 %v2725_v34, %v2797_v18  ;;  %v2902_v19 = vmax.f32 %v2726_v37, %v2799_v45  ;;  %v12580_v34 = vmax.f32 %v12366_v52, %v1764_v20  ;;  %v1930_v37 = vsel %vm1867_vm3, %v1928_v3, %v1929_v57 }
  0xec   : > { %15762 = vst [vmem:[#allocation47_spill] sm:$0xff] %v12543_v36  ;;  %v3269_v11 = vrot.slane %v2903_v25, 1  ;;  %v12588_v14 = vmax.f32 %v12319_v2, %v1765_v59  ;;  %v2032_v18 = vmax.f32 %v12211_v43, %v1928_v3  ;;  %v1931_v45 = vrot.slane %v12262_v35, 6  ;;  %v12603_v43 = vpop.f32.mrf.mxu2 }
  0xed   : > { %584 = vst [vmem:[#allocation1 + $0x30] ss:$2 sm:$0xff] %v12392_v56  ;;  %v3266_v10 = vrot.slane %v2901_v29, 1  ;;  %v3267_v12 = vrot.slane %v2902_v19, 1  ;;  %v2033_v20 = vmax.f32 %v12220_v63, %v1930_v37  ;;  %v2400_v25 = vrot.slane %v12577_v0, 7 }
  0xee   : > { %586 = vst [vmem:[#allocation1 + $0x31] ss:$2 sm:$0xff] %v12358_v7  ;;  %v12565_v58 = vld.sshfl [vmem:[#allocation1 + $0x10] sm:$0xff pattern:$0x75316420]  ;;  %v2175_v19 = vrot.slane %v2032_v18, 2  ;;  %v1932_v42 = vsel %vm1867_vm3, %v1929_v57, %v1931_v45 }
  0xef   : > { %605 = vst [vmem:[#allocation1 + $0x10] ss:$2 sm:$0xff] %v12392_v56  ;;  %v3268_v6 = vsel %vm1690_vm2, %v3266_v10, %v3267_v12  ;;  %v12601_v47 = vpop.f32.mrf.mxu0  ;;  %v2176_v3 = vrot.slane %v2033_v20, 2  ;;  %v2034_v59 = vmax.f32 %v12265_v61, %v1932_v42  ;;  %v2401_v63 = vrot.slane %v12588_v14, 7  ;;  %10382 = vmatmul.msk.f32.gmra.mxu0 %vm779_vm1, %v12148_v60 }
  0xf0   : > { %606 = vst [vmem:[#allocation1 + $0x11] ss:$2 sm:$0xff] %v12358_v7  ;;  %10463 = vmatmul.msk.f32.gmra.mxu2 %vm779_vm1, %v3268_v6  ;;  %v12597_v29 = vld.sshfl [vmem:[#allocation1] sm:$0xff pattern:$0x75316420]  ;;  %v2403_v10 = vrot.slane %v12580_v34, 7  ;;  %v3270_v37 = vsel %vm1690_vm2, %v3267_v12, %v3269_v11  ;;  %v2504_v18 = vmax.f32 %v12490_v32, %v2400_v25 }
  0xf1   : > { %15764 = vst [vmem:[#allocation49_spill] sm:$0xff] %v12603_v43  ;;  %v2177_v6 = vsel %vm2114_vm5, %v2175_v19, %v2176_v3  ;;  %v2178_v43 = vrot.slane %v2034_v59, 2  ;;  %v2402_v57 = vsel %vm2339_vm4, %v2400_v25, %v2401_v63  ;;  %v2800_v61 = vrot.slane %v12273_v13, 2 }
  0xf2   : > { %v12574_v16 = vld.sshfl [vmem:[#allocation1 + $0x20] sm:$0xff pattern:$0x75316420]  ;;  %615 = vst [vmem:[#allocation1] ss:$2 sm:$0xff] %v12358_v7  ;;  %v2404_v45 = vsel %vm2339_vm4, %v2401_v63, %v2403_v10  ;;  %v2505_v42 = vmax.f32 %v12495_v30, %v2402_v57  ;;  %v2624_v12 = vrot.slane %v2504_v18, 1  ;;  %v2279_v59 = vmax.f32 %v12418_v38, %v2177_v6 }
  0xf3   : > { %607 = vst [vmem:[#allocation1 + $0x20] ss:$2 sm:$0xff] %v12358_v7  ;;  %v2506_v21 = vmax.f32 %v12502_v15, %v2404_v45  ;;  %v2801_v11 = vrot.slane %v12319_v2, 2  ;;  %v2179_v19 = vsel %vm2114_vm5, %v2176_v3, %v2178_v43  ;;  %v2803_v25 = vrot.slane %v12366_v52, 2 }
  0xf4   : > { %608 = vst [vmem:[#allocation1 + $0x21] ss:$2 sm:$0xff] %v12392_v56  ;;  %v2281_v63 = vmax.f32 %v12421_v55, %v2178_v43  ;;  %v2280_v10 = vmax.f32 %v12427_v53, %v2179_v19  ;;  %v2625_v18 = vrot.slane %v2505_v42, 1  ;;  %v1766_v3 = vrot.slane %v12250_v40, 1  ;;  %v12649_v36 = vpop.f32.mrf.mxu2 }
  0xf5   : > { %v12583_v9 = vld.sshfl [vmem:[#allocation1 + $0x30] sm:$0xff pattern:$0x75316420]  ;;  %616 = vst [vmem:[#allocation1 + $0x1] ss:$2 sm:$0xff] %v12358_v7  ;;  %v2627_v57 = vrot.slane %v2506_v21, 1  ;;  %v2802_v38 = vsel %vm2114_vm5, %v2800_v61, %v2801_v11  ;;  %v2804_v53 = vsel %vm2114_vm5, %v2801_v11, %v2803_v25 }
  0xf6   : > { %597 = vst [vmem:[#allocation1 + $0x30] ss:$2 sm:$0xff] %v12358_v7  ;;  %v1767_v55 = vrot.slane %v12285_v54, 1  ;;  %v2626_v43 = vsel %vm1690_vm2, %v2624_v12, %v2625_v18 }
  0xf7   : > { %598 = vst [vmem:[#allocation1 + $0x31] ss:$2 sm:$0xff] %v12358_v7  ;;  %v12618_v20 = vld.sshfl [vmem:[#allocation1 + $0x10] sm:$0xff pattern:$0x75316420]  ;;  %v2730_v21 = vmax.f32 %v2281_v63, %v2627_v57  ;;  %v2728_v42 = vmax.f32 %v2279_v59, %v2626_v43  ;;  %v12647_v61 = vpop.f32.mrf.mxu0  ;;  %10383 = vmatmul.msk.f32.gmra.mxu0 %vm779_vm1, %v12139_v26 }
  0xf8   : > { %617 = vst [vmem:[#allocation1 + $0x10] ss:$2 sm:$0xff] %v12392_v56  ;;  %10464 = vmatmul.msk.f32.gmra.mxu2 %vm779_vm1, %v3270_v37  ;;  %v2628_v37 = vsel %vm1690_vm2, %v2625_v18, %v2627_v57  ;;  %v1768_v12 = vsel %vm1690_vm2, %v1766_v3, %v1767_v55  ;;  %v1770_v22 = vsel %vm1690_vm2, %v1767_v55, %v1769_v41  ;;  %v1936_v55 = vrot.slane %v12366_v52, 6 }
  0xf9   : > { %618 = vst [vmem:[#allocation1 + $0x11] ss:$2 sm:$0xff] %v12358_v7  ;;  %v2729_v19 = vmax.f32 %v2280_v10, %v2628_v37  ;;  %v2906_v24 = vmax.f32 %v2730_v21, %v2803_v25  ;;  %v2904_v18 = vmax.f32 %v2728_v42, %v2802_v38  ;;  %v12659_v10 = vmax.f32 %v12250_v40, %v1768_v12 }
  0xfa   : > { %15765 = vst [vmem:[#allocation50_spill] sm:$0xff] %v12649_v36  ;;  %v12662_v43 = vmax.f32 %v12285_v54, %v1770_v22  ;;  %v12666_v3 = vmax.f32 %v12396_v50, %v1769_v41  ;;  %v1933_v38 = vrot.slane %v12273_v13, 6 }
  0xfb   : > { %v12644_v6 = vld.sshfl [vmem:[#allocation1 + $0x20] sm:$0xff pattern:$0x75316420]  ;;  %v2905_v11 = vmax.f32 %v2729_v19, %v2804_v53  ;;  %v3274_v57 = vrot.slane %v2906_v24, 1  ;;  %v3271_v25 = vrot.slane %v2904_v18, 1  ;;  %v1934_v24 = vrot.slane %v12319_v2, 6 }
  0xfc   : > { %619 = vst [vmem:[#allocation1 + $0x20] ss:$2 sm:$0xff] %v12392_v56  ;;  %v12654_v63 = vld.sshfl [vmem:[#allocation1] sm:$0xff pattern:$0x75316420]  ;;  %v2405_v22 = vrot.slane %v12659_v10, 7  ;;  %v2035_v41 = vmax.f32 %v12268_v27, %v1933_v38 }
  0xfd   : > { %620 = vst [vmem:[#allocation1 + $0x21] ss:$2 sm:$0xff] %v12358_v7  ;;  %v3272_v37 = vrot.slane %v2905_v11, 1  ;;  %v2406_v53 = vrot.slane %v12662_v43, 7  ;;  %v2408_v42 = vrot.slane %v12666_v3, 7  ;;  %v1935_v60 = vsel %vm1867_vm3, %v1933_v38, %v1934_v24 }
  0xfe   : > { %v12633_v45 = vld.sshfl [vmem:[#allocation1 + $0x30] sm:$0xff pattern:$0x75316420]  ;;  %627 = vst [vmem:[#allocation1] ss:$2 sm:$0xff] %v12358_v7  ;;  %v1937_v12 = vsel %vm1867_vm3, %v1934_v24, %v1936_v55  ;;  %v2507_v11 = vmax.f32 %v12577_v0, %v2405_v22  ;;  %v2180_v36 = vrot.slane %v2035_v41, 2 }
  0xff   : > { %609 = vst [vmem:[#allocation1 + $0x30] ss:$2 sm:$0xff] %v12358_v7  ;;  %v3273_v21 = vsel %vm1690_vm2, %v3271_v25, %v3272_v37  ;;  %v2407_v18 = vsel %vm2339_vm4, %v2405_v22, %v2406_v53  ;;  %v2036_v25 = vmax.f32 %v12227_v28, %v1935_v60  ;;  %v2037_v27 = vmax.f32 %v12262_v35, %v1937_v12 }
 0x100   : > { %610 = vst [vmem:[#allocation1 + $0x31] ss:$2 sm:$0xff] %v12392_v56  ;;  %v12656_v59 = vld.sshfl [vmem:[#allocation1 + $0x10] sm:$0xff pattern:$0x75316420]  ;;  %10465 = vmatmul.msk.f32.gmra.mxu2 %vm779_vm1, %v3273_v21  ;;  %v2409_v44 = vsel %vm2339_vm4, %v2406_v53, %v2408_v42  ;;  %v2508_v21 = vmax.f32 %v12588_v14, %v2407_v18  ;;  %v2629_v24 = vrot.slane %v2507_v11, 1  ;;  %v12700_v53 = vpop.f32.mrf.mxu0  ;;  %v12702_v42 = vpop.f32.mrf.mxu2  ;;  %10384 = vmatmul.msk.f32.gmra.mxu0 %vm779_vm1, %v12113_v5 }
 0x101   : > { %15766 = vst [vmem:[#allocation51_spill] sm:$0xff] %v12656_v59  ;;  %v2509_v38 = vmax.f32 %v12580_v34, %v2409_v44  ;;  %v2805_v55 = vrot.slane %v12250_v40, 2  ;;  %v2181_v22 = vrot.slane %v2036_v25, 2  ;;  %v2183_v28 = vrot.slane %v2037_v27, 2 }
 0x102   : > { %629 = vst [vmem:[#allocation1 + $0x10] ss:$2 sm:$0xff] %v12358_v7  ;;  %v2806_v35 = vrot.slane %v12285_v54, 2  ;;  %v2808_v41 = vrot.slane %v12396_v50, 2  ;;  %v2630_v60 = vrot.slane %v2508_v21, 1  ;;  %v3275_v44 = vsel %vm1690_vm2, %v3272_v37, %v3274_v57 }
 0x103   : > { %630 = vst [vmem:[#allocation1 + $0x11] ss:$2 sm:$0xff] %v12358_v7  ;;  %v2632_v12 = vrot.slane %v2509_v38, 1  ;;  %v2182_v11 = vsel %vm2114_vm5, %v2180_v36, %v2181_v22  ;;  %v2184_v25 = vsel %vm2114_vm5, %v2181_v22, %v2183_v28  ;;  %v1938_v27 = vrot.slane %v12250_v40, 6 }
 0x104   : > { %v12691_v59 = vld.sshfl [vmem:[#allocation1 + $0x20] sm:$0xff pattern:$0x75316420]  ;;  %628 = vst [vmem:[#allocation1 + $0x1] ss:$2 sm:$0xff] %v12392_v56  ;;  %v2282_v21 = vmax.f32 %v12490_v32, %v2182_v11  ;;  %v2283_v38 = vmax.f32 %v12495_v30, %v2184_v25  ;;  %v2807_v37 = vsel %vm2114_vm5, %v2805_v55, %v2806_v35  ;;  %v2809_v36 = vsel %vm2114_vm5, %v2806_v35, %v2808_v41 }
 0x105   : > { %15767 = vst [vmem:[#allocation52_spill] sm:$0xff] %v12702_v42  ;;  %v2631_v42 = vsel %vm1690_vm2, %v2629_v24, %v2630_v60  ;;  %v2633_v57 = vsel %vm1690_vm2, %v2630_v60, %v2632_v12  ;;  %v2284_v26 = vmax.f32 %v12502_v15, %v2183_v28  ;;  %v1939_v22 = vrot.slane %v12285_v54, 6  ;;  %v2950_v35 = vld [vmem:[%s15663_s3 + $0x8] sm:$0x3] }
 0x106   : > { %631 = vst [vmem:[#allocation1 + $0x20] ss:$2 sm:$0xff] %v12392_v56  ;;  %v2732_v32 = vmax.f32 %v2283_v38, %v2633_v57  ;;  %v1941_v30 = vrot.slane %v12396_v50, 6  ;;  %11319 = vmatpush.msk.msra.mxu1 %vm1867_vm3, %v2950_v35  ;;  %10407 = vmatpush.msk.msrb.mxu0 %vm1867_vm3, %v2950_v35  ;;  %v2044_v25 = vrot.slane %v12379_v33, 1  ;;  %v2949_v57 = vld [vmem:[%s15663_s3] sm:$0xff] }
 0x107   : > { %v12679_v19 = vld.sshfl [vmem:[#allocation1 + $0x30] sm:$0xff pattern:$0x75316420]  ;;  %632 = vst [vmem:[#allocation1 + $0x21] ss:$2 sm:$0xff] %v12358_v7  ;;  %v2733_v24 = vmax.f32 %v2284_v26, %v2632_v12  ;;  %v1940_v55 = vsel %vm1867_vm3, %v1938_v27, %v1939_v22 }
 0x108   : > { %621 = vst [vmem:[#allocation1 + $0x30] ss:$2 sm:$0xff] %v12358_v7  ;;  %10466 = vmatmul.msk.f32.gmra.mxu2 %vm779_vm1, %v3275_v44  ;;  %v2908_v28 = vmax.f32 %v2732_v32, %v2809_v36  ;;  %v10474_v12 = vld [vmem:[%s15663_s3 + $0x18] sm:$0x3]  ;;  %v1942_v11 = vsel %vm1867_vm3, %v1939_v22, %v1941_v30  ;;  %v2047_v36 = vrot.slane %v12298_v23, 1  ;;  %11320 = vmatpush.msra.mxu1 %v2949_v57  ;;  %v10473_v32 = vld [vmem:[%s15663_s3 + $0x10] sm:$0xff] }
 0x109   : > { %622 = vst [vmem:[#allocation1 + $0x31] ss:$2 sm:$0xff] %v12392_v56  ;;  %11322 = vmatpush.msk.msra.mxu3 %vm1867_vm3, %v10474_v12  ;;  %v2040_v38 = vmax.f32 %v12366_v52, %v1942_v11  ;;  %3065 = vmatpush.msrb.mxu0 %v2949_v57  ;;  %v11368_v11 = vld [vmem:[%s15664_s4] sm:$0xf]  ;;  %v2810_v57 = vrot.slane %v12379_v33, 2 }
 0x10a   : > { %v12706_v18 = vld.sshfl [vmem:[#allocation1 + $0x10] sm:$0xff pattern:$0x75316420]  ;;  %v12767_v5 = vmax.f32 %v12298_v23, %v2047_v36  ;;  %10385 = vmatmul.msk.f32.gmra.mxu0 %vm779_vm1, %v12202_v4 }
 0x10b   : > { %15768 = vst [vmem:[#allocation53_spill] sm:$0xff] %v12706_v18  ;;  %v2731_v18 = vmax.f32 %v2282_v21, %v2631_v42  ;;  %v2038_v42 = vmax.f32 %v12273_v13, %v1938_v27  ;;  %v12740_v44 = vld.sshfl [vmem:[#allocation1] sm:$0xff pattern:$0x75316420]  ;;  %v3277_v27 = vrot.slane %v2908_v28, 1  ;;  %v2909_v21 = vmax.f32 %v2733_v24, %v2808_v41  ;;  %v12758_v41 = vpop.f32.mrf.mxu2  ;;  %11323 = vmatpush.msra.mxu3 %v10473_v32 }
 0x10c   : > { %641 = vst [vmem:[#allocation1 + $0x10] ss:$2 sm:$0xff] %v12358_v7  ;;  %v2413_v12 = vrot.slane %v12767_v5, 7  ;;  %10440 = vmatpush.msk.msra.mxu0 %vm880_vm0, %v11368_v11  ;;  %v2811_v11 = vrot.slane %v12282_v48, 2 }
 0x10d   : > { %642 = vst [vmem:[#allocation1 + $0x11] ss:$2 sm:$0xff] %v12392_v56  ;;  %v2907_v15 = vmax.f32 %v2731_v18, %v2807_v37  ;;  %v2039_v18 = vmax.f32 %v12319_v2, %v1940_v55  ;;  %v2045_v37 = vrot.slane %v12282_v48, 1  ;;  %v12756_v2 = vpop.f32.mrf.mxu0  ;;  %v2185_v26 = vrot.slane %v2038_v42, 2 }
 0x10e   : > { %640 = vst [vmem:[#allocation1 + $0x1] ss:$2 sm:$0xff] %v12392_v56  ;;  %v2188_v55 = vrot.slane %v2040_v38, 2 }
 0x10f   : > { %v3276_v13 = vrot.slane %v2907_v15, 1  ;;  %639 = vst [vmem:[#allocation1] ss:$2 sm:$0xff] %v12358_v7  ;;  %v2186_v22 = vrot.slane %v2039_v18, 2  ;;  %v2046_v30 = vsel %vm1690_vm2, %v2044_v25, %v2045_v37  ;;  %v2048_v24 = vsel %vm1690_vm2, %v2045_v37, %v2047_v36 }
 0x110   : > { %v12726_v60 = vld.sshfl [vmem:[#allocation1 + $0x30] sm:$0xff pattern:$0x75316420]  ;;  %15769 = vst [vmem:[#allocation54_spill] sm:$0xff] %v12758_v41  ;;  %v3279_v15 = vrot.slane %v2909_v21, 1  ;;  %v12773_v28 = vmax.f32 %v12379_v33, %v2046_v30  ;;  %v12776_v42 = vmax.f32 %v12282_v48, %v2048_v24  ;;  %v2813_v41 = vrot.slane %v12298_v23, 2 }
 0x111   : > { %633 = vst [vmem:[#allocation1 + $0x30] ss:$2 sm:$0xff] %v12392_v56  ;;  %v3278_v52 = vsel %vm1690_vm2, %v3276_v13, %v3277_v27  ;;  %v2187_v21 = vsel %vm2114_vm5, %v2185_v26, %v2186_v22  ;;  %v2189_v38 = vsel %vm2114_vm5, %v2186_v22, %v2188_v55  ;;  %v12792_v37 = vld.sshfl [vmem:[#allocation1 + $0x20] sm:$0xff pattern:$0x75316420] }
 0x112   : > { %634 = vst [vmem:[#allocation1 + $0x31] ss:$2 sm:$0xff] %v12358_v7  ;;  %10467 = vmatmul.msk.f32.gmra.mxu2 %vm779_vm1, %v3278_v52  ;;  %v2410_v25 = vrot.slane %v12773_v28, 7  ;;  %v2411_v13 = vrot.slane %v12776_v42, 7  ;;  %v3280_v36 = vsel %vm1690_vm2, %v3277_v27, %v3279_v15  ;;  %v2285_v27 = vmax.f32 %v12577_v0, %v2187_v21 }
 0x113   : > { %v2286_v15 = vmax.f32 %v12588_v14, %v2189_v38  ;;  %643 = vst [vmem:[#allocation1 + $0x20] ss:$2 sm:$0xff] %v12358_v7  ;;  %v2814_v14 = vsel %vm2114_vm5, %v2811_v11, %v2813_v41 }
 0x114   : > { %v12769_v35 = vld.sshfl [vmem:[#allocation1 + $0x10] sm:$0xff pattern:$0x75316420]  ;;  %v2412_v52 = vsel %vm2339_vm4, %v2410_v25, %v2411_v13  ;;  %v2414_v32 = vsel %vm2339_vm4, %v2411_v13, %v2413_v12  ;;  %v2510_v30 = vmax.f32 %v12659_v10, %v2410_v25  ;;  %v2287_v25 = vmax.f32 %v12580_v34, %v2188_v55  ;;  %644 = vst [vmem:[#allocation1 + $0x21] ss:$2 sm:$0xff] %v12358_v7 }
 0x115   : > { %15770 = vst [vmem:[#allocation55_spill] sm:$0xff] %v12769_v35  ;;  %v2511_v26 = vmax.f32 %v12662_v43, %v2412_v52  ;;  %v2512_v22 = vmax.f32 %v12666_v3, %v2414_v32  ;;  %v12813_v32 = vpop.f32.mrf.mxu0  ;;  %v12815_v35 = vpop.f32.mrf.mxu2  ;;  %v2812_v34 = vsel %vm2114_vm5, %v2810_v57, %v2811_v11 }
 0x116   : > { %653 = vst [vmem:[#allocation1 + $0x10] ss:$2 sm:$0xff] %v12358_v7  ;;  %v12799_v24 = vld.sshfl [vmem:[#allocation1] sm:$0xff pattern:$0x75316420]  ;;  %v2634_v12 = vrot.slane %v2510_v30, 1 }
 0x117   : > { %651 = vst [vmem:[#allocation1] ss:$2 sm:$0xff] %v12392_v56  ;;  %v2635_v13 = vrot.slane %v2511_v26, 1  ;;  %v2637_v52 = vrot.slane %v2512_v22, 1 }
 0x118   : > { %652 = vst [vmem:[#allocation1 + $0x1] ss:$2 sm:$0xff] %v12358_v7 }
 0x119   : > { %v12784_v18 = vld.sshfl [vmem:[#allocation1 + $0x30] sm:$0xff pattern:$0x75316420]  ;;  %654 = vst [vmem:[#allocation1 + $0x11] ss:$2 sm:$0xff] %v12392_v56  ;;  %v2636_v4 = vsel %vm1690_vm2, %v2634_v12, %v2635_v13  ;;  %v2638_v0 = vsel %vm1690_vm2, %v2635_v13, %v2637_v52  ;;  %v2736_v38 = vmax.f32 %v2287_v25, %v2637_v52  ;;  %v15774_v12 = vld [vmem:[#allocation26_spill] sm:$0xff] }
 0x11a   : > { %645 = vst [vmem:[#allocation1 + $0x30] ss:$2 sm:$0xff] %v12392_v56  ;;  %10468 = vmatmul.msk.f32.gmra.mxu2 %vm779_vm1, %v3280_v36  ;;  %v2734_v55 = vmax.f32 %v2285_v27, %v2636_v4  ;;  %v2735_v21 = vmax.f32 %v2286_v15, %v2638_v0  ;;  %10386 = vmatmul.msk.f32.gmra.mxu0 %vm779_vm1, %v15774_v12 }
 0x11b   : > { %646 = vst [vmem:[#allocation1 + $0x31] ss:$2 sm:$0xff] %v12358_v7  ;;  %v2912_v13 = vmax.f32 %v2736_v38, %v2813_v41  ;;  %v12838_v25 = vld.sshfl [vmem:[#allocation1 + $0x20] sm:$0xff pattern:$0x75316420] }
 0x11c   : > { %15771 = vst [vmem:[#allocation56_spill] sm:$0xff] %v12815_v35  ;;  %v2910_v26 = vmax.f32 %v2734_v55, %v2812_v34  ;;  %v2911_v22 = vmax.f32 %v2735_v21, %v2814_v14  ;;  %v15778_v34 = vld [vmem:[#allocation29_spill] sm:$0xff] }
 0x11d   : > { %v12842_v52 = vpop.f32.mrf.mxu0  ;;  %v12844_v4 = vpop.f32.mrf.mxu2  ;;  %v3284_v41 = vrot.slane %v2912_v13, 1  ;;  %655 = vst [vmem:[#allocation1 + $0x20] ss:$2 sm:$0xff] %v12358_v7 }
 0x11e   : > { %v3281_v57 = vrot.slane %v2910_v26, 1  ;;  %v3282_v11 = vrot.slane %v2911_v22, 1  ;;  %15776 = vst [vmem:[#allocation59_spill] sm:$0xff] %v12844_v4 }
 0x11f   : > { %v12828_v36 = vld.sshfl [vmem:[#allocation1] sm:$0xff pattern:$0x75316420]  ;;  %656 = vst [vmem:[#allocation1 + $0x21] ss:$2 sm:$0xff] %v12392_v56 }
 0x120   : > { %15773 = vst [vmem:[#allocation58_spill] sm:$0xff] %v12828_v36  ;;  %v12834_v27 = vld.sshfl [vmem:[#allocation1 + $0x10] sm:$0xff pattern:$0x75316420]  ;;  %v3283_v15 = vsel %vm1690_vm2, %v3281_v57, %v3282_v11  ;;  %v3285_v14 = vsel %vm1690_vm2, %v3282_v11, %v3284_v41 }
 0x121   : > { %663 = vst [vmem:[#allocation1] ss:$2 sm:$0xff] %v12392_v56  ;;  %v15784_v57 = vld [vmem:[#allocation31_spill] sm:$0xff] }
 0x122   : > { %v12824_v30 = vld.sshfl [vmem:[#allocation1 + $0x30] sm:$0xff pattern:$0x75316420]  ;;  %664 = vst [vmem:[#allocation1 + $0x1] ss:$2 sm:$0xff] %v12358_v7  ;;  %10469 = vmatmul.msk.f32.gmra.mxu2 %vm779_vm1, %v3283_v15  ;;  %10387 = vmatmul.msk.f32.gmra.mxu0 %vm779_vm1, %v15778_v34 }
 0x123   : > { %15772 = vst [vmem:[#allocation57_spill] sm:$0xff] %v12824_v30  ;;  %v15788_v41 = vld [vmem:[#allocation27_spill] sm:$0xff] }
 0x124   : > { %657 = vst [vmem:[#allocation1 + $0x30] ss:$2 sm:$0xff] %v12358_v7 }
 0x125   : > { %658 = vst [vmem:[#allocation1 + $0x31] ss:$2 sm:$0xff] %v12358_v7  ;;  %v12867_v26 = vpop.f32.mrf.mxu0  ;;  %v12869_v22 = vpop.f32.mrf.mxu2 }
 0x126   : > { %15775 = vst [vmem:[#allocation26_spill] sm:$0xff] %v12834_v27  ;;  %v12864_v38 = vld.sshfl [vmem:[#allocation1 + $0x20] sm:$0xff pattern:$0x75316420]  ;;  %v15806_v27 = vld [vmem:[#allocation36_spill] sm:$0xff] }
 0x127   : > { %665 = vst [vmem:[#allocation1 + $0x10] ss:$2 sm:$0xff] %v12392_v56 }
 0x128   : > { %666 = vst [vmem:[#allocation1 + $0x11] ss:$2 sm:$0xff] %v12358_v7 }
 0x129   : > { %v12854_v55 = vld.sshfl [vmem:[#allocation1] sm:$0xff pattern:$0x75316420]  ;;  %15781 = vst [vmem:[#allocation62_spill] sm:$0xff] %v12864_v38 }
 0x12a   : > { %15779 = vst [vmem:[#allocation29_spill] sm:$0xff] %v12854_v55  ;;  %10470 = vmatmul.msk.f32.gmra.mxu2 %vm779_vm1, %v3285_v14  ;;  %10388 = vmatmul.msk.f32.gmra.mxu0 %vm779_vm1, %v15784_v57 }
 0x12b   : > { %675 = vst [vmem:[#allocation1] ss:$2 sm:$0xff] %v12358_v7 }
 0x12c   : > { %v12848_v0 = vld.sshfl [vmem:[#allocation1 + $0x30] sm:$0xff pattern:$0x75316420]  ;;  %676 = vst [vmem:[#allocation1 + $0x1] ss:$2 sm:$0xff] %v12358_v7 }
 0x12d   : > { %15777 = vst [vmem:[#allocation60_spill] sm:$0xff] %v12848_v0  ;;  %v12892_v34 = vpop.f32.mrf.mxu0  ;;  %v12894_v14 = vpop.f32.mrf.mxu2  ;;  %v1943_v0 = vrot.slane %v12379_v33, 6 }
 0x12e   : > { %669 = vst [vmem:[#allocation1 + $0x30] ss:$2 sm:$0xff] %v12358_v7 }
 0x12f   : > { %670 = vst [vmem:[#allocation1 + $0x31] ss:$2 sm:$0xff] %v12392_v56  ;;  %v12859_v21 = vld.sshfl [vmem:[#allocation1 + $0x10] sm:$0xff pattern:$0x75316420] }
 0x130   : > { %15780 = vst [vmem:[#allocation61_spill] sm:$0xff] %v12859_v21 }
 0x131   : > { %677 = vst [vmem:[#allocation1 + $0x10] ss:$2 sm:$0xff] %v12392_v56 }
 0x132   : > { %678 = vst [vmem:[#allocation1 + $0x11] ss:$2 sm:$0xff] %v12358_v7  ;;  %10389 = vmatmul.msk.f32.gmra.mxu0 %vm779_vm1, %v15788_v41 }
 0x133   : > { %667 = vst [vmem:[#allocation1 + $0x20] ss:$2 sm:$0xff] %v12358_v7  ;;  %v12877_v11 = vld.sshfl [vmem:[#allocation1] sm:$0xff pattern:$0x75316420] }
 0x134   : > { %15782 = vst [vmem:[#allocation63_spill] sm:$0xff] %v12869_v22 }
 0x135   : > { %668 = vst [vmem:[#allocation1 + $0x21] ss:$2 sm:$0xff] %v12392_v56 }
 0x136   : > { %v12872_v12 = vld.sshfl [vmem:[#allocation1 + $0x30] sm:$0xff pattern:$0x75316420]  ;;  %15785 = vst [vmem:[#allocation31_spill] sm:$0xff] %v12877_v11  ;;  %v2058_v11 = vrot.slane %v12487_v8, 1 }
 0x137   : > { %15783 = vst [vmem:[#allocation64_spill] sm:$0xff] %v12872_v12 }
 0x138   : > { %681 = vst [vmem:[#allocation1 + $0x30] ss:$2 sm:$0xff] %v12358_v7  ;;  %v2065_v38 = vmax.f32 %v12487_v8, %v2058_v11 }
 0x139   : > { %682 = vst [vmem:[#allocation1 + $0x31] ss:$2 sm:$0xff] %v12392_v56  ;;  %v12882_v13 = vld.sshfl [vmem:[#allocation1 + $0x10] sm:$0xff pattern:$0x75316420] }
 0x13a   : > { %687 = vst [vmem:[#allocation1] ss:$2 sm:$0xff] %v12358_v7 }
 0x13b   : > { %688 = vst [vmem:[#allocation1 + $0x1] ss:$2 sm:$0xff] %v12392_v56 }
 0x13c   : > { %15786 = vst [vmem:[#allocation65_spill] sm:$0xff] %v12882_v13  ;;  %v12886_v15 = vld.sshfl [vmem:[#allocation1 + $0x20] sm:$0xff pattern:$0x75316420] }
 0x13d   : > { %689 = vst [vmem:[#allocation1 + $0x10] ss:$2 sm:$0xff] %v12358_v7 }
 0x13e   : > { %690 = vst [vmem:[#allocation1 + $0x11] ss:$2 sm:$0xff] %v12358_v7 }
 0x13f   : > { %15787 = vst [vmem:[#allocation66_spill] sm:$0xff] %v12886_v15 }
 0x140   : > { %679 = vst [vmem:[#allocation1 + $0x20] ss:$2 sm:$0xff] %v12392_v56  ;;  %v12896_v57 = vld.sshfl [vmem:[#allocation1 + $0x30] sm:$0xff pattern:$0x75316420] }
 0x141   : > { %680 = vst [vmem:[#allocation1 + $0x21] ss:$2 sm:$0xff] %v12358_v7 }
 0x142   : > { %15789 = vst [vmem:[#allocation27_spill] sm:$0xff] %v12894_v14  ;;  %v12899_v22 = vld.sshfl [vmem:[#allocation1] sm:$0xff pattern:$0x75316420]  ;;  %v15794_v14 = vld [vmem:[#allocation30_spill] sm:$0xff] }
 0x143   : > { %15790 = vst [vmem:[#allocation67_spill] sm:$0xff] %v12896_v57  ;;  %10390 = vmatmul.msk.f32.gmra.mxu0 %vm779_vm1, %v15794_v14  ;;  %v12918_v57 = vpop.f32.mrf.mxu2 }
 0x144   : > { %693 = vst [vmem:[#allocation1 + $0x30] ss:$2 sm:$0xff] %v12392_v56 }
 0x145   : > { %15791 = vst [vmem:[#allocation68_spill] sm:$0xff] %v12899_v22  ;;  %v12904_v4 = vld.sshfl [vmem:[#allocation1 + $0x10] sm:$0xff pattern:$0x75316420]  ;;  %v12916_v22 = vpop.f32.mrf.mxu0 }
 0x146   : > { %694 = vst [vmem:[#allocation1 + $0x31] ss:$2 sm:$0xff] %v12358_v7 }
 0x147   : > { %699 = vst [vmem:[#allocation1] ss:$2 sm:$0xff] %v12358_v7 }
 0x148   : > { %700 = vst [vmem:[#allocation1 + $0x1] ss:$2 sm:$0xff] %v12392_v56  ;;  %v12908_v41 = vld.sshfl [vmem:[#allocation1 + $0x20] sm:$0xff pattern:$0x75316420] }
 0x149   : > { %15792 = vst [vmem:[#allocation69_spill] sm:$0xff] %v12904_v4 }
 0x14a   : > { %701 = vst [vmem:[#allocation1 + $0x10] ss:$2 sm:$0xff] %v12358_v7 }
 0x14b   : > { %702 = vst [vmem:[#allocation1 + $0x11] ss:$2 sm:$0xff] %v12392_v56  ;;  %v12958_v12 = vpop.f32.mrf.mxu2 }
 0x14c   : > { %15793 = vst [vmem:[#allocation70_spill] sm:$0xff] %v12908_v41  ;;  %v12927_v41 = vadd.f32 %v12460_v46, %v12464_v49 }
 0x14d   : > { %691 = vst [vmem:[#allocation1 + $0x20] ss:$2 sm:$0xff] %v12392_v56  ;;  %v12914_v35 = vld.sshfl [vmem:[#allocation1 + $0x30] sm:$0xff pattern:$0x75316420] }
 0x14e   : > { %692 = vst [vmem:[#allocation1 + $0x21] ss:$2 sm:$0xff] %v12358_v7  ;;  %v1101_v46 = vrot.slane %v12927_v41, 4 }
 0x14f   : > { %15795 = vst [vmem:[#allocation30_spill] sm:$0xff] %v12914_v35  ;;  %v12921_v4 = vld.sshfl [vmem:[#allocation1] sm:$0xff pattern:$0x75316420]  ;;  %v15800_v35 = vld [vmem:[#allocation34_spill] sm:$0xff] }
 0x150   : > { %15796 = vst [vmem:[#allocation71_spill] sm:$0xff] %v12918_v57  ;;  %10391 = vmatmul.msk.f32.gmra.mxu0 %vm779_vm1, %v15800_v35  ;;  %v2056_v35 = vrot.slane %v12382_v51, 1 }
 0x151   : > { %705 = vst [vmem:[#allocation1 + $0x30] ss:$2 sm:$0xff] %v12392_v56 }
 0x152   : > { %15797 = vst [vmem:[#allocation72_spill] sm:$0xff] %v12921_v4  ;;  %v12930_v14 = vld.sshfl [vmem:[#allocation1 + $0x10] sm:$0xff pattern:$0x75316420]  ;;  %v12940_v4 = vadd.f32 %v12553_v17, %v12536_v39  ;;  %v12956_v17 = vpop.f32.mrf.mxu0  ;;  %v2059_v21 = vsel %vm1690_vm2, %v2056_v35, %v2058_v11  ;;  %v911_v11 = vadd.f32 %v12601_v47, %v12583_v9 }
 0x153   : > { %706 = vst [vmem:[#allocation1 + $0x31] ss:$2 sm:$0xff] %v12358_v7 }
 0x154   : > { %711 = vst [vmem:[#allocation1] ss:$2 sm:$0xff] %v12392_v56  ;;  %v1103_v39 = vrot.slane %v12940_v4, 4 }
 0x155   : > { %712 = vst [vmem:[#allocation1 + $0x1] ss:$2 sm:$0xff] %v12358_v7  ;;  %v12934_v57 = vld.sshfl [vmem:[#allocation1 + $0x20] sm:$0xff pattern:$0x75316420] }
 0x156   : > { %15798 = vst [vmem:[#allocation73_spill] sm:$0xff] %v12930_v14  ;;  %v12949_v14 = vadd.f32 %v12508_v31, %v12526_v62  ;;  %v1201_v31 = vmax.f32 %v12927_v41, 0.0  ;;  %v1202_v62 = vmax.f32 %v1101_v46, 0.0  ;;  %v1206_v33 = vmax.f32 %v1103_v39, 0.0 }
 0x157   : > { %713 = vst [vmem:[#allocation1 + $0x10] ss:$2 sm:$0xff] %v12358_v7 }
 0x158   : > { %714 = vst [vmem:[#allocation1 + $0x11] ss:$2 sm:$0xff] %v12392_v56  ;;  %v1102_v41 = vrot.slane %v12949_v14, 4  ;;  %v1203_v46 = vmax.f32 %v12949_v14, 0.0  ;;  %10392 = vmatmul.msk.f32.gmra.mxu0 %vm779_vm1, %v15806_v27 }
 0x159   : > { %15799 = vst [vmem:[#allocation74_spill] sm:$0xff] %v12934_v57  ;;  %v15802_v57 = vld [vmem:[#allocation35_spill] sm:$0xff] }
 0x15a   : > { %703 = vst [vmem:[#allocation1 + $0x20] ss:$2 sm:$0xff] %v12358_v7  ;;  %v12945_v49 = vld.sshfl [vmem:[#allocation1 + $0x30] sm:$0xff pattern:$0x75316420]  ;;  %v2055_v13 = vrot.slane %v15802_v57, 1 }
 0x15b   : > { %704 = vst [vmem:[#allocation1 + $0x21] ss:$2 sm:$0xff] %v12358_v7 }
 0x15c   : > { %15801 = vst [vmem:[#allocation34_spill] sm:$0xff] %v12945_v49  ;;  %v12960_v15 = vld.sshfl [vmem:[#allocation1] sm:$0xff pattern:$0x75316420]  ;;  %v2057_v49 = vsel %vm1690_vm2, %v2055_v13, %v2056_v35  ;;  %v1944_v13 = vrot.slane %v12282_v48, 6  ;;  %v1946_v35 = vrot.slane %v12298_v23, 6  ;;  %v2041_v48 = vmax.f32 %v12250_v40, %v1943_v0 }
 0x15d   : > { %717 = vst [vmem:[#allocation1 + $0x30] ss:$2 sm:$0xff] %v12358_v7 }
 0x15e   : > { %15803 = vst [vmem:[#allocation35_spill] sm:$0xff] %v12958_v12  ;;  %v2063_v12 = vmax.f32 %v15802_v57, %v2057_v49  ;;  %v1945_v14 = vsel %vm1867_vm3, %v1943_v0, %v1944_v13  ;;  %v1947_v36 = vsel %vm1867_vm3, %v1944_v13, %v1946_v35  ;;  %v1204_v13 = vmax.f32 %v1102_v41, 0.0 }
 0x15f   : > { %15804 = vst [vmem:[#allocation75_spill] sm:$0xff] %v12960_v15  ;;  %v12968_v55 = vld.sshfl [vmem:[#allocation1 + $0x10] sm:$0xff pattern:$0x75316420]  ;;  %v2064_v15 = vmax.f32 %v12382_v51, %v2059_v21  ;;  %v2042_v23 = vmax.f32 %v12285_v54, %v1945_v14  ;;  %v2043_v27 = vmax.f32 %v12396_v50, %v1947_v36  ;;  %v2815_v50 = vrot.slane %v15802_v57, 2 }
 0x160   : > { %718 = vst [vmem:[#allocation1 + $0x31] ss:$2 sm:$0xff] %v12358_v7  ;;  %v2415_v49 = vrot.slane %v2063_v12, 7  ;;  %v2816_v36 = vrot.slane %v12382_v51, 2  ;;  %v2818_v57 = vrot.slane %v12487_v8, 2  ;;  %v13014_v51 = vpop.f32.mrf.mxu2 }
 0x161   : > { %723 = vst [vmem:[#allocation1] ss:$2 sm:$0xff] %v12392_v56  ;;  %v2416_v21 = vrot.slane %v2064_v15, 7  ;;  %v2191_v54 = vrot.slane %v2042_v23, 2  ;;  %v13000_v0 = vrot.slane %v2043_v27, 2  ;;  %v1104_v23 = vrot.slane %v911_v11, 4 }
 0x162   : > { %724 = vst [vmem:[#allocation1 + $0x1] ss:$2 sm:$0xff] %v12358_v7  ;;  %v12987_v30 = vld.sshfl [vmem:[#allocation1 + $0x20] sm:$0xff pattern:$0x75316420]  ;;  %v2513_v9 = vmax.f32 %v12773_v28, %v2415_v49  ;;  %v2817_v14 = vsel %vm2114_vm5, %v2815_v50, %v2816_v36  ;;  %v2819_v8 = vsel %vm2114_vm5, %v2816_v36, %v2818_v57 }
 0x163   : > { %15805 = vst [vmem:[#allocation76_spill] sm:$0xff] %v12968_v55  ;;  %v2418_v55 = vrot.slane %v2065_v38, 7  ;;  %v2417_v39 = vsel %vm2339_vm4, %v2415_v49, %v2416_v21  ;;  %v2190_v38 = vrot.slane %v2041_v48, 2  ;;  %v2194_v35 = vsel %vm2114_vm5, %v2191_v54, %v13000_v0  ;;  %v13012_v49 = vpop.f32.mrf.mxu0  ;;  %v15810_v48 = vld [vmem:[#allocation28_spill] sm:$0xff] }
 0x164   : > { %725 = vst [vmem:[#allocation1 + $0x10] ss:$2 sm:$0xff] %v12392_v56  ;;  %v2514_v47 = vmax.f32 %v12776_v42, %v2417_v39  ;;  %v2639_v42 = vrot.slane %v2513_v9, 1  ;;  %10393 = vmatmul.msk.f32.gmra.mxu0 %vm779_vm1, %v15810_v48  ;;  %v1208_v9 = vmax.f32 %v1104_v23, 0.0 }
 0x165   : > { %726 = vst [vmem:[#allocation1 + $0x11] ss:$2 sm:$0xff] %v12358_v7  ;;  %v2419_v12 = vsel %vm2339_vm4, %v2416_v21, %v2418_v55  ;;  %v1207_v21 = vmax.f32 %v911_v11, 0.0 }
 0x166   : > { %715 = vst [vmem:[#allocation1 + $0x20] ss:$2 sm:$0xff] %v12358_v7  ;;  %v2515_v15 = vmax.f32 %v12767_v5, %v2419_v12  ;;  %v914_v7 = vadd.f32 %v12647_v61, %v12512_v1  ;;  %v2640_v55 = vrot.slane %v2514_v47, 1 }
 0x167   : > { %716 = vst [vmem:[#allocation1 + $0x21] ss:$2 sm:$0xff] %v12392_v56  ;;  %v12998_v40 = vld.sshfl [vmem:[#allocation1 + $0x30] sm:$0xff pattern:$0x75316420]  ;;  %v2192_v56 = vsel %vm2114_vm5, %v2190_v38, %v2191_v54 }
 0x168   : > { %15807 = vst [vmem:[#allocation36_spill] sm:$0xff] %v12998_v40  ;;  %v2642_v5 = vrot.slane %v2515_v15, 1  ;;  %v2288_v61 = vmax.f32 %v12659_v10, %v2192_v56  ;;  %v1105_v39 = vrot.slane %v914_v7, 4  ;;  %v1209_v54 = vmax.f32 %v914_v7, 0.0 }
 0x169   : > { %1414 = vst [vmem:[#allocation1 + $0x30] ss:$2 sm:$0xff] %v1206_v33  ;;  %v13006_v28 = vld.sshfl [vmem:[#allocation1] sm:$0xff pattern:$0x75316420]  ;;  %v2289_v33 = vmax.f32 %v12662_v43, %v2194_v35  ;;  %v920_v7 = vadd.f32 %v12756_v2, %v12574_v16  ;;  %v923_v56 = vadd.f32 %v12813_v32, %v12633_v45 }
 0x16a   : > { %15808 = vst [vmem:[#allocation77_spill] sm:$0xff] %v13006_v28  ;;  %v2643_v41 = vsel %vm1690_vm2, %v2640_v55, %v2642_v5  ;;  %v10509_v35 = vld [vmem:[%s15663_s3 + $0x28] sm:$0x3] }
 0x16b   : > { %1401 = vst [vmem:[#allocation1] ss:$2 sm:$0xff] %v1201_v31  ;;  %v2641_v31 = vsel %vm1690_vm2, %v2639_v42, %v2640_v55  ;;  %v2738_v27 = vmax.f32 %v2289_v33, %v2643_v41  ;;  %v13037_v55 = vpop.f32.mrf.mxu2  ;;  %10510 = vmatpush.msk.msrb.mxu2 %vm1867_vm3, %v10509_v35  ;;  %v1213_v2 = vmax.f32 %v920_v7, 0.0  ;;  %v1108_v32 = vrot.slane %v923_v56, 4 }
 0x16c   : > { %1403 = vst [vmem:[#allocation1 + $0x1] ss:$2 sm:$0xff] %v1202_v62  ;;  %v13016_v1 = vld.sshfl [vmem:[#allocation1 + $0x10] sm:$0xff pattern:$0x75316420]  ;;  %v1205_v62 = vmax.f32 %v12940_v4, 0.0  ;;  %v2737_v10 = vmax.f32 %v2288_v61, %v2641_v31  ;;  %v926_v31 = vadd.f32 %v12842_v52, %v12597_v29 }
 0x16d   : > { %15809 = vst [vmem:[#allocation78_spill] sm:$0xff] %v13016_v1  ;;  %v2914_v38 = vmax.f32 %v2738_v27, %v2819_v8  ;;  %v1210_v4 = vmax.f32 %v1105_v39, 0.0  ;;  %v1215_v41 = vmax.f32 %v923_v56, 0.0  ;;  %v10508_v52 = vld [vmem:[%s15663_s3 + $0x20] sm:$0xff]  ;;  %v1216_v23 = vmax.f32 %v1108_v32, 0.0  ;;  %v15815_v56 = vld [vmem:[#allocation51_spill] sm:$0xff] }
 0x16e   : > { %1405 = vst [vmem:[#allocation1 + $0x10] ss:$2 sm:$0xff] %v1203_v46  ;;  %v13027_v43 = vld.sshfl [vmem:[#allocation1 + $0x20] sm:$0xff pattern:$0x75316420]  ;;  %v917_v46 = vadd.f32 %v12700_v53, %v12565_v58  ;;  %v2913_v12 = vmax.f32 %v2737_v10, %v2817_v14  ;;  %v2290_v58 = vmax.f32 %v12666_v3, %v13000_v0  ;;  %v13035_v53 = vpop.f32.mrf.mxu0  ;;  %v929_v14 = vadd.f32 %v12867_v26, %v12618_v20  ;;  %v15813_v26 = vld [vmem:[#allocation39_spill] sm:$0xff] }
 0x16f   : > { %1407 = vst [vmem:[#allocation1 + $0x11] ss:$2 sm:$0xff] %v1204_v13  ;;  %v3287_v15 = vrot.slane %v2914_v38, 1  ;;  %v15812_v13 = vld [vmem:[#allocation33_spill] sm:$0xff]  ;;  %v10544_v20 = vld [vmem:[%s15663_s3 + $0x38] sm:$0x3]  ;;  %3899 = vmatpush.msrb.mxu2 %v10508_v52  ;;  %v941_v35 = vadd.f32 %v13012_v49, %v15815_v56 }
 0x170   : > { %15811 = vst [vmem:[#allocation28_spill] sm:$0xff] %v13027_v43  ;;  %v3286_v47 = vrot.slane %v2913_v12, 1  ;;  %v1106_v11 = vrot.slane %v917_v46, 4  ;;  %10394 = vmatmul.msk.f32.gmra.mxu0 %vm779_vm1, %v15812_v13  ;;  %v1211_v3 = vmax.f32 %v917_v46, 0.0  ;;  %v2739_v61 = vmax.f32 %v2290_v58, %v2642_v5  ;;  %10545 = vmatpush.msk.msrb.mxu1 %vm1867_vm3, %v10544_v20  ;;  %v15865_v1 = vld [vmem:[#allocation15_spill] sm:$0xff] }
 0x171   : > { %1416 = vst [vmem:[#allocation1 + $0x31] ss:$2 sm:$0xff] %v1207_v21  ;;  %v1109_v5 = vrot.slane %v926_v31, 4  ;;  %v1107_v27 = vrot.slane %v920_v7, 4  ;;  %v1217_v39 = vmax.f32 %v926_v31, 0.0  ;;  %v932_v46 = vadd.f32 %v12892_v34, %v12644_v6 }
 0x172   : > { %1409 = vst [vmem:[#allocation1 + $0x20] ss:$2 sm:$0xff] %v1205_v62  ;;  %v3288_v36 = vsel %vm1690_vm2, %v3286_v47, %v3287_v15  ;;  %v1212_v33 = vmax.f32 %v1106_v11, 0.0  ;;  %v2915_v45 = vmax.f32 %v2739_v61, %v2818_v57  ;;  %v10579_v57 = vld [vmem:[%s15663_s3 + $0x48] sm:$0x3]  ;;  %v1219_v12 = vmax.f32 %v929_v14, 0.0 }
 0x173   : > { %v1410_v50 = vld.sshfl [vmem:[#allocation1] sm:$0xff pattern:$0x75316420]  ;;  %10471 = vmatmul.msk.f32.gmra.mxu2 %vm779_vm1, %v3288_v36  ;;  %v13066_v62 = vpop.f32.mrf.mxu2  ;;  %10580 = vmatpush.msk.msrb.mxu3 %vm1867_vm3, %v10579_v57  ;;  %v1218_v38 = vmax.f32 %v1109_v5, 0.0  ;;  %v935_v47 = vadd.f32 %v12916_v22, %v12679_v19  ;;  %v1221_v19 = vmax.f32 %v932_v46, 0.0  ;;  %v938_v58 = vadd.f32 %v12956_v17, %v12654_v63 }
 0x174   : > { %1418 = vst [vmem:[#allocation1] ss:$2 sm:$0xff] %v1208_v9  ;;  %v3289_v21 = vrot.slane %v2915_v45, 1  ;;  %v15814_v36 = vld [vmem:[#allocation41_spill] sm:$0xff]  ;;  %v1114_v17 = vrot.slane %v941_v35, 4  ;;  %v1227_v20 = vmax.f32 %v941_v35, 0.0 }
 0x175   : > { %1419 = vst [vmem:[#allocation1 + $0x1] ss:$2 sm:$0xff] %v1209_v54  ;;  %v1111_v54 = vrot.slane %v932_v46, 4  ;;  %v1112_v22 = vrot.slane %v935_v47, 4  ;;  %v1225_v63 = vmax.f32 %v938_v58, 0.0  ;;  %v1113_v5 = vrot.slane %v938_v58, 4 }
 0x176   : > { %v1411_v42 = vld.sshfl [vmem:[#allocation1 + $0x10] sm:$0xff pattern:$0x75316420]  ;;  %1629 = vst.msk [vmem:[#allocation2] sm:$0xff] %vm1628_vm6, %v1410_v50  ;;  %v3290_v29 = vsel %vm1690_vm2, %v3287_v15, %v3289_v21  ;;  %v13064_v48 = vpop.f32.mrf.mxu0  ;;  %v1214_v15 = vmax.f32 %v1107_v27, 0.0  ;;  %v15816_v21 = vld [vmem:[#allocation32_spill] sm:$0xff] }
 0x177   : > { %1420 = vst [vmem:[#allocation1 + $0x10] ss:$2 sm:$0xff] %v1210_v4  ;;  %v1222_v7 = vmax.f32 %v1111_v54, 0.0  ;;  %v1226_v52 = vmax.f32 %v1113_v5, 0.0  ;;  %v15819_v35 = vld [vmem:[#allocation43_spill] sm:$0xff] }
 0x178   : > { %1630 = vst.msk [vmem:[#allocation2 + $0x8] sm:$0xff] %vm1628_vm6, %v1411_v42  ;;  %v1417_v16 = vld.sshfl [vmem:[#allocation1 + $0x30] sm:$0xff pattern:$0x75316420]  ;;  %10395 = vmatmul.msk.f32.gmra.mxu0 %vm779_vm1, %v15813_v26  ;;  %v1110_v42 = vrot.slane %v929_v14, 4  ;;  %v1228_v14 = vmax.f32 %v1114_v17, 0.0 }
 0x179   : > { %v1412_v0 = vld.sshfl [vmem:[#allocation1 + $0x20] sm:$0xff pattern:$0x75316420]  ;;  %1426 = vst [vmem:[#allocation1 + $0x30] ss:$2 sm:$0xff] %v1213_v2  ;;  %v944_v2 = vadd.f32 %v13035_v53, %v12691_v59  ;;  %v947_v53 = vadd.f32 %v13064_v48, %v12726_v60 }
 0x17a   : > { %1423 = vst [vmem:[#allocation1 + $0x20] ss:$2 sm:$0xff] %v1211_v3  ;;  %v1220_v61 = vmax.f32 %v1110_v42, 0.0 }
 0x17b   : > { %1425 = vst [vmem:[#allocation1 + $0x21] ss:$2 sm:$0xff] %v1212_v33  ;;  %10472 = vmatmul.msk.f32.gmra.mxu2 %vm779_vm1, %v3290_v29  ;;  %v13083_v11 = vpop.f32.mrf.mxu2  ;;  %v1224_v33 = vmax.f32 %v1112_v22, 0.0  ;;  %v1229_v59 = vmax.f32 %v944_v2, 0.0 }
 0x17c   : > { %1632 = vst.msk [vmem:[#allocation2 + $0x10] sm:$0xf] %vm1631_vm7, %v1412_v0  ;;  %v1421_v8 = vld.sshfl [vmem:[#allocation1] sm:$0xff pattern:$0x75316420]  ;;  %v1223_v0 = vmax.f32 %v935_v47, 0.0 }
 0x17d   : > { %1634 = vst.msk [vmem:[#allocation2 + $0x20] sm:$0xff] %vm1628_vm6, %v1421_v8  ;;  %v1115_v8 = vrot.slane %v944_v2, 4  ;;  %v15818_v47 = vld [vmem:[#allocation53_spill] sm:$0xff] }
 0x17e   : > { %1430 = vst [vmem:[#allocation1] ss:$2 sm:$0xff] %v1215_v41  ;;  %v1422_v10 = vld.sshfl [vmem:[#allocation1 + $0x10] sm:$0xff pattern:$0x75316420]  ;;  %v949_v4 = vpop.f32.mrf.mxu0 }
 0x17f   : > { %1635 = vst.msk [vmem:[#allocation2 + $0x28] sm:$0xf] %vm1631_vm7, %v1422_v10  ;;  %v3750_v34 = vld [vmem:[#allocation2 + $0x2] sm:$0xff]  ;;  %v1116_v10 = vrot.slane %v947_v53, 4  ;;  %v1230_v27 = vmax.f32 %v1115_v8, 0.0 }
 0x180   : > { %1432 = vst [vmem:[#allocation1 + $0x10] ss:$2 sm:$0xff] %v1216_v23  ;;  %10396 = vmatmul.msk.f32.gmra.mxu0 %vm779_vm1, %v15814_v36 }
 0x181   : > { %1433 = vst [vmem:[#allocation1 + $0x11] ss:$2 sm:$0xff] %v1217_v39 }
 0x182   : > { %v1428_v9 = vld.sshfl [vmem:[#allocation1 + $0x20] sm:$0xff pattern:$0x75316420]  ;;  %1427 = vst [vmem:[#allocation1 + $0x31] ss:$2 sm:$0xff] %v1214_v15 }
 0x183   : > { %1636 = vst.msk [vmem:[#allocation2 + $0x30] sm:$0xff] %vm1628_vm6, %v1428_v9  ;;  %10511 = vmatmul.msk.f32.vlgmr.msrb.gmra.mxu2 %vm1628_vm6, %v3750_v34  ;;  %v3751_v49 = vld [vmem:[#allocation2 + $0xa] sm:$0xff]  ;;  %v13100_v41 = vpop.f32.mrf.mxu2  ;;  %v1231_v9 = vmax.f32 %v947_v53, 0.0 }
 0x184   : > { %1434 = vst [vmem:[#allocation1 + $0x20] ss:$2 sm:$0xff] %v1218_v38  ;;  %v2920_v50 = vld [vmem:[#allocation2 + $0x20] sm:$0xff] }
 0x185   : > { %1435 = vst [vmem:[#allocation1 + $0x21] ss:$2 sm:$0xff] %v1219_v12  ;;  %10411 = vmatmul.msk.f32.vlgmr.msra.gmra.mxu1 %vm1628_vm6, %v2920_v50  ;;  %v1431_v6 = vld.sshfl [vmem:[#allocation1] sm:$0xff pattern:$0x75316420]  ;;  %v950_v12 = vadd.f32 %v949_v4, %v12740_v44  ;;  %v15817_v38 = vld [vmem:[#allocation38_spill] sm:$0xff] }
 0x186   : > { %v3474_v13 = vld [vmem:[#allocation2 + $0x21] sm:$0xff]  ;;  %1633 = vst.msk [vmem:[#allocation2 + $0x18] sm:$0xff] %vm1628_vm6, %v1417_v16  ;;  %v952_v32 = vpop.f32.mrf.mxu0  ;;  %v1232_v50 = vmax.f32 %v1116_v10, 0.0 }
 0x187   : > { %10479 = vmatmul.msk.f32.vlgmr.msra.gmra.mxu3 %vm1628_vm6, %v3474_v13  ;;  %1638 = vst.msk [vmem:[#allocation2 + $0x40] sm:$0xf] %vm1631_vm7, %v1431_v6  ;;  %v953_v15 = vadd.f32 %v952_v32, %v15818_v47  ;;  %v1117_v6 = vrot.slane %v950_v12, 4  ;;  %v1233_v42 = vmax.f32 %v950_v12, 0.0 }
 0x188   : > { %1440 = vst [vmem:[#allocation1] ss:$2 sm:$0xff] %v1221_v19  ;;  %v1437_v3 = vld.sshfl [vmem:[#allocation1 + $0x10] sm:$0xff pattern:$0x75316420]  ;;  %10397 = vmatmul.msk.f32.gmra.mxu0 %vm779_vm1, %v15816_v21 }
 0x189   : > { %1441 = vst [vmem:[#allocation1 + $0x1] ss:$2 sm:$0xff] %v1222_v7  ;;  %v1429_v45 = vld.sshfl [vmem:[#allocation1 + $0x30] sm:$0xff pattern:$0x75316420]  ;;  %v1235_v34 = vmax.f32 %v953_v15, 0.0 }
 0x18a   : > { %1639 = vst.msk [vmem:[#allocation2 + $0x48] sm:$0xff] %vm1628_vm6, %v1437_v3  ;;  %v2921_v16 = vld [vmem:[#allocation2 + $0x30] sm:$0xff]  ;;  %v1118_v36 = vrot.slane %v953_v15, 4  ;;  %v3753_v19 = vld [vmem:[#allocation2 + $0x22] sm:$0xff]  ;;  %v1234_v56 = vmax.f32 %v1117_v6, 0.0 }
 0x18b   : > { %1442 = vst [vmem:[#allocation1 + $0x10] ss:$2 sm:$0xff] %v1223_v0  ;;  %10512 = vmatmul.msk.f32.gmra.mxu2 %vm1628_vm6, %v3751_v49  ;;  %v13112_v46 = vpop.f32.mrf.mxu2  ;;  %v15820_v49 = vld [vmem:[#allocation46_spill] sm:$0xff] }
 0x18c   : > { %v1438_v31 = vld.sshfl [vmem:[#allocation1 + $0x20] sm:$0xff pattern:$0x75316420]  ;;  %1443 = vst [vmem:[#allocation1 + $0x11] ss:$2 sm:$0xff] %v1224_v33  ;;  %v1236_v0 = vmax.f32 %v1118_v36, 0.0 }
 0x18d   : > { %10412 = vmatmul.msk.f32.gmra.mxu1 %vm1628_vm6, %v2921_v16  ;;  %1637 = vst.msk [vmem:[#allocation2 + $0x38] sm:$0xff] %vm1628_vm6, %v1429_v45  ;;  %v3752_v60 = vld [vmem:[#allocation2 + $0x1a] sm:$0xff] }
 0x18e   : > { %1436 = vst [vmem:[#allocation1 + $0x30] ss:$2 sm:$0xff] %v1220_v61  ;;  %v955_v48 = vpop.f32.mrf.mxu0  ;;  %v15823_v15 = vld [vmem:[#allocation42_spill] sm:$0xff] }
 0x18f   : > { %1640 = vst.msk [vmem:[#allocation2 + $0x50] sm:$0xff] %vm1628_vm6, %v1438_v31  ;;  %v956_v22 = vadd.f32 %v955_v48, %v12792_v37 }
 0x190   : > { %1444 = vst [vmem:[#allocation1 + $0x20] ss:$2 sm:$0xff] %v1225_v63  ;;  %v1445_v29 = vld.sshfl [vmem:[#allocation1] sm:$0xff pattern:$0x75316420]  ;;  %10398 = vmatmul.msk.f32.gmra.mxu0 %vm779_vm1, %v15817_v38 }
 0x191   : > { %1642 = vst.msk [vmem:[#allocation2 + $0x60] sm:$0xff] %vm1628_vm6, %v1445_v29  ;;  %v2923_v4 = vld [vmem:[#allocation2 + $0x48] sm:$0xff]  ;;  %v1237_v61 = vmax.f32 %v956_v22, 0.0  ;;  %v1119_v33 = vrot.slane %v956_v22, 4 }
 0x192   : > { %1451 = vst [vmem:[#allocation1] ss:$2 sm:$0xff] %v1228_v14 }
 0x193   : > { %v1446_v57 = vld.sshfl [vmem:[#allocation1 + $0x10] sm:$0xff pattern:$0x75316420]  ;;  %1452 = vst [vmem:[#allocation1 + $0x1] ss:$2 sm:$0xff] %v1229_v59  ;;  %10513 = vmatmul.msk.f32.gmra.mxu2 %vm1628_vm6, %v3752_v60  ;;  %v13124_v13 = vpop.f32.mrf.mxu2 }
 0x194   : > { %v3475_v26 = vld [vmem:[#allocation2 + $0x31] sm:$0xff]  ;;  %1643 = vst.msk [vmem:[#allocation2 + $0x68] sm:$0xff] %vm1628_vm6, %v1446_v57  ;;  %v3476_v44 = vld [vmem:[#allocation2 + $0x39] sm:$0xff]  ;;  %v15822_v60 = vld [vmem:[#allocation55_spill] sm:$0xff] }
 0x195   : > { %v2922_v23 = vld [vmem:[#allocation2 + $0x38] sm:$0xff]  ;;  %10480 = vmatmul.msk.f32.gmra.mxu3 %vm1628_vm6, %v3475_v26  ;;  %v1439_v39 = vld.sshfl [vmem:[#allocation1 + $0x30] sm:$0xff pattern:$0x75316420]  ;;  %1453 = vst [vmem:[#allocation1 + $0x10] ss:$2 sm:$0xff] %v1230_v27 }
 0x196   : > { %10413 = vmatmul.msk.f32.gmra.mxu1 %vm1628_vm6, %v2922_v23  ;;  %1641 = vst.msk [vmem:[#allocation2 + $0x58] sm:$0xf] %vm1631_vm7, %v1439_v39  ;;  %v958_v58 = vpop.f32.mrf.mxu0  ;;  %v3477_v17 = vld [vmem:[#allocation2 + $0x49] sm:$0xff]  ;;  %v3754_v16 = vld [vmem:[#allocation2 + $0x32] sm:$0xff]  ;;  %v3755_v29 = vld [vmem:[#allocation2 + $0x3a] sm:$0xff] }
 0x197   : > { %1448 = vst [vmem:[#allocation1 + $0x30] ss:$2 sm:$0xff] %v1226_v52  ;;  %v1447_v54 = vld.sshfl [vmem:[#allocation1 + $0x20] sm:$0xff pattern:$0x75316420]  ;;  %v959_v63 = vadd.f32 %v958_v58, %v12784_v18  ;;  %v2924_v31 = vld [vmem:[#allocation2 + $0x50] sm:$0xff] }
 0x198   : > { %1449 = vst [vmem:[#allocation1 + $0x31] ss:$2 sm:$0xff] %v1227_v20  ;;  %10399 = vmatmul.msk.f32.gmra.mxu0 %vm779_vm1, %v15819_v35  ;;  %v1238_v18 = vmax.f32 %v1119_v33, 0.0  ;;  %v2925_v53 = vld [vmem:[#allocation2 + $0x60] sm:$0xff]  ;;  %v15821_v26 = vld [vmem:[#allocation37_spill] sm:$0xff]  ;;  %v3756_v12 = vld [vmem:[#allocation2 + $0x4a] sm:$0xff] }
 0x199   : > { %1644 = vst.msk [vmem:[#allocation2 + $0x70] sm:$0xf] %vm1631_vm7, %v1447_v54  ;;  %v1120_v32 = vrot.slane %v959_v63, 4  ;;  %v1239_v21 = vmax.f32 %v959_v63, 0.0  ;;  %v15825_v35 = vld [vmem:[#allocation57_spill] sm:$0xff] }
 0x19a   : > { %1456 = vst [vmem:[#allocation1 + $0x20] ss:$2 sm:$0xff] %v1231_v9  ;;  %v1454_v7 = vld.sshfl [vmem:[#allocation1] sm:$0xff pattern:$0x75316420] }
 0x19b   : > { %1457 = vst [vmem:[#allocation1 + $0x21] ss:$2 sm:$0xff] %v1232_v50  ;;  %10514 = vmatmul.msk.f32.gmra.mxu2 %vm1628_vm6, %v3753_v19  ;;  %v13135_v2 = vpop.f32.mrf.mxu2  ;;  %v1240_v14 = vmax.f32 %v1120_v32, 0.0  ;;  %v3479_v10 = vld [vmem:[#allocation2 + $0x61] sm:$0xff] }
 0x19c   : > { %1646 = vst.msk [vmem:[#allocation2 + $0x80] sm:$0xff] %vm1628_vm6, %v1454_v7  ;;  %v1455_v37 = vld.sshfl [vmem:[#allocation1 + $0x10] sm:$0xff pattern:$0x75316420] }
 0x19d   : > { %10481 = vmatmul.msk.f32.gmra.mxu3 %vm1628_vm6, %v3476_v44  ;;  %1462 = vst [vmem:[#allocation1] ss:$2 sm:$0xff] %v1235_v34  ;;  %v3478_v59 = vld [vmem:[#allocation2 + $0x51] sm:$0xff]  ;;  %v2926_v27 = vld [vmem:[#allocation2 + $0x68] sm:$0xff] }
 0x19e   : > { %10414 = vmatmul.msk.f32.gmra.mxu1 %vm1628_vm6, %v2923_v4  ;;  %1647 = vst.msk [vmem:[#allocation2 + $0x88] sm:$0xf] %vm1631_vm7, %v1455_v37  ;;  %v961_v45 = vpop.f32.mrf.mxu0  ;;  %v3757_v36 = vld [vmem:[#allocation2 + $0x52] sm:$0xff]  ;;  %v3758_v63 = vld [vmem:[#allocation2 + $0x62] sm:$0xff] }
 0x19f   : > { %v1450_v3 = vld.sshfl [vmem:[#allocation1 + $0x30] sm:$0xff pattern:$0x75316420]  ;;  %1464 = vst [vmem:[#allocation1 + $0x10] ss:$2 sm:$0xff] %v1236_v0  ;;  %v962_v8 = vadd.f32 %v961_v45, %v12799_v24 }
 0x1a0   : > { %1645 = vst.msk [vmem:[#allocation2 + $0x78] sm:$0xff] %vm1628_vm6, %v1450_v3  ;;  %10400 = vmatmul.msk.f32.gmra.mxu0 %vm779_vm1, %v15820_v49  ;;  %v3480_v34 = vld [vmem:[#allocation2 + $0x69] sm:$0xff] }
 0x1a1   : > { %1458 = vst [vmem:[#allocation1 + $0x30] ss:$2 sm:$0xff] %v1233_v42  ;;  %v1121_v23 = vrot.slane %v962_v8, 4  ;;  %v1241_v24 = vmax.f32 %v962_v8, 0.0  ;;  %v3759_v8 = vld [vmem:[#allocation2 + $0x6a] sm:$0xff] }
 0x1a2   : > { %1459 = vst [vmem:[#allocation1 + $0x31] ss:$2 sm:$0xff] %v1234_v56  ;;  %v1460_v5 = vld.sshfl [vmem:[#allocation1 + $0x20] sm:$0xff pattern:$0x75316420] }
 0x1a3   : > { %1465 = vst [vmem:[#allocation1 + $0x11] ss:$2 sm:$0xff] %v1237_v61  ;;  %10515 = vmatmul.msk.f32.gmra.mxu2 %vm1628_vm6, %v3754_v16  ;;  %v13144_v57 = vpop.f32.mrf.mxu2  ;;  %v1242_v39 = vmax.f32 %v1121_v23, 0.0  ;;  %v2928_v37 = vld [vmem:[#allocation2 + $0x80] sm:$0xff] }
 0x1a4   : > { %1648 = vst.msk [vmem:[#allocation2 + $0x90] sm:$0xff] %vm1628_vm6, %v1460_v5  ;;  %v1463_v47 = vld.sshfl [vmem:[#allocation1] sm:$0xff pattern:$0x75316420]  ;;  %v15826_v16 = vld [vmem:[#allocation58_spill] sm:$0xff] }
 0x1a5   : > { %10482 = vmatmul.msk.f32.gmra.mxu3 %vm1628_vm6, %v3477_v17  ;;  %1466 = vst [vmem:[#allocation1 + $0x20] ss:$2 sm:$0xff] %v1238_v18  ;;  %v15827_v18 = vld [vmem:[#allocation47_spill] sm:$0xff] }
 0x1a6   : > { %10415 = vmatmul.msk.f32.gmra.mxu1 %vm1628_vm6, %v2924_v31  ;;  %1467 = vst [vmem:[#allocation1 + $0x21] ss:$2 sm:$0xff] %v1239_v21  ;;  %v964_v52 = vpop.f32.mrf.mxu0 }
 0x1a7   : > { %v965_v48 = vadd.f32 %v964_v52, %v15822_v60  ;;  %1650 = vst.msk [vmem:[#allocation2 + $0xa0] sm:$0xf] %vm1631_vm7, %v1463_v47  ;;  %v2927_v44 = vld [vmem:[#allocation2 + $0x78] sm:$0xff] }
 0x1a8   : > { %10401 = vmatmul.msk.f32.gmra.mxu0 %vm779_vm1, %v15821_v26  ;;  %1472 = vst [vmem:[#allocation1] ss:$2 sm:$0xff] %v1241_v24  ;;  %v3481_v61 = vld [vmem:[#allocation2 + $0x79] sm:$0xff] }
 0x1a9   : > { %v1461_v20 = vld.sshfl [vmem:[#allocation1 + $0x30] sm:$0xff pattern:$0x75316420]  ;;  %v1122_v54 = vrot.slane %v965_v48, 4  ;;  %1473 = vst [vmem:[#allocation1 + $0x1] ss:$2 sm:$0xff] %v1242_v39 }
 0x1aa   : > { %1649 = vst.msk [vmem:[#allocation2 + $0x98] sm:$0xff] %vm1628_vm6, %v1461_v20  ;;  %v1243_v6 = vmax.f32 %v965_v48, 0.0  ;;  %v1469_v22 = vld.sshfl [vmem:[#allocation1 + $0x10] sm:$0xff pattern:$0x75316420]  ;;  %v15828_v26 = vld [vmem:[#allocation26_spill] sm:$0xff] }
 0x1ab   : > { %10516 = vmatmul.msk.f32.gmra.mxu2 %vm1628_vm6, %v3755_v29  ;;  %1468 = vst [vmem:[#allocation1 + $0x30] ss:$2 sm:$0xff] %v1240_v14  ;;  %v13153_v9 = vpop.f32.mrf.mxu2  ;;  %v1244_v4 = vmax.f32 %v1122_v54, 0.0  ;;  %v3482_v14 = vld [vmem:[#allocation2 + $0x81] sm:$0xff] }
 0x1ac   : > { %1651 = vst.msk [vmem:[#allocation2 + $0xa8] sm:$0xff] %vm1628_vm6, %v1469_v22  ;;  %v3760_v47 = vld [vmem:[#allocation2 + $0x7a] sm:$0xff] }
 0x1ad   : > { %10483 = vmatmul.msk.f32.gmra.mxu3 %vm1628_vm6, %v3478_v59  ;;  %v1470_v7 = vld.sshfl [vmem:[#allocation1 + $0x20] sm:$0xff pattern:$0x75316420]  ;;  %1474 = vst [vmem:[#allocation1 + $0x10] ss:$2 sm:$0xff] %v1243_v6  ;;  %v2929_v59 = vld [vmem:[#allocation2 + $0x90] sm:$0xff] }
 0x1ae   : > { %10416 = vmatmul.msk.f32.gmra.mxu1 %vm1628_vm6, %v2925_v53  ;;  %v967_v38 = vpop.f32.mrf.mxu0  ;;  %1475 = vst [vmem:[#allocation1 + $0x11] ss:$2 sm:$0xff] %v1244_v4 }
 0x1af   : > { %v968_v50 = vadd.f32 %v967_v38, %v12838_v25  ;;  %v15824_v25 = vld [vmem:[#allocation45_spill] sm:$0xff]  ;;  %1652 = vst.msk [vmem:[#allocation2 + $0xb0] sm:$0xff] %vm1628_vm6, %v1470_v7  ;;  %v3761_v7 = vld [vmem:[#allocation2 + $0x82] sm:$0xff] }
 0x1b0   : > { %10402 = vmatmul.msk.f32.gmra.mxu0 %vm779_vm1, %v15823_v15  ;;  %v1477_v52 = vld.sshfl [vmem:[#allocation1] sm:$0xff pattern:$0x75316420] }
 0x1b1   : > { %v1245_v58 = vmax.f32 %v968_v50, 0.0  ;;  %v1123_v56 = vrot.slane %v968_v50, 4  ;;  %1654 = vst.msk [vmem:[#allocation2 + $0xc0] sm:$0xff] %vm1628_vm6, %v1477_v52  ;;  %v3483_v48 = vld [vmem:[#allocation2 + $0x91] sm:$0xff]  ;;  %v15830_v50 = vld [vmem:[#allocation62_spill] sm:$0xff] }
 0x1b2   : > { %v1471_v31 = vld.sshfl [vmem:[#allocation1 + $0x30] sm:$0xff pattern:$0x75316420] }
 0x1b3   : > { %10517 = vmatmul.msk.f32.gmra.mxu2 %vm1628_vm6, %v3756_v12  ;;  %v13162_v19 = vpop.f32.mrf.mxu2  ;;  %1476 = vst [vmem:[#allocation1 + $0x20] ss:$2 sm:$0xff] %v1245_v58  ;;  %v1246_v0 = vmax.f32 %v1123_v56, 0.0  ;;  %v2930_v12 = vld [vmem:[#allocation2 + $0x98] sm:$0xff]  ;;  %v2931_v22 = vld [vmem:[#allocation2 + $0xa8] sm:$0xff] }
 0x1b4   : > { %1653 = vst.msk [vmem:[#allocation2 + $0xb8] sm:$0xf] %vm1631_vm7, %v1471_v31 }
 0x1b5   : > { %10484 = vmatmul.msk.f32.gmra.mxu3 %vm1628_vm6, %v3479_v10  ;;  %1480 = vst [vmem:[#allocation1 + $0x30] ss:$2 sm:$0xff] %v1246_v0  ;;  %v1478_v24 = vld.sshfl [vmem:[#allocation1 + $0x10] sm:$0xff pattern:$0x75316420]  ;;  %v15829_v10 = vld [vmem:[#allocation40_spill] sm:$0xff] }
 0x1b6   : > { %10417 = vmatmul.msk.f32.gmra.mxu1 %vm1628_vm6, %v2926_v27  ;;  %v970_v42 = vpop.f32.mrf.mxu0  ;;  %1655 = vst.msk [vmem:[#allocation2 + $0xc8] sm:$0xff] %vm1628_vm6, %v1478_v24 }
 0x1b7   : > { %v971_v3 = vadd.f32 %v970_v42, %v15825_v35  ;;  %v3484_v42 = vld [vmem:[#allocation2 + $0x99] sm:$0xff] }
 0x1b8   : > { %10403 = vmatmul.msk.f32.gmra.mxu0 %vm779_vm1, %v15824_v25  ;;  %v2917_v35 = vld [vmem:[#allocation2] sm:$0xff] }
 0x1b9   : > { %v1247_v33 = vmax.f32 %v971_v3, 0.0  ;;  %v1124_v32 = vrot.slane %v971_v3, 4  ;;  %v15832_v3 = vld [vmem:[#allocation60_spill] sm:$0xff] }
 0x1ba   : > { %v1479_v54 = vld.sshfl [vmem:[#allocation1 + $0x20] sm:$0xff pattern:$0x75316420] }
 0x1bb   : > { %10518 = vmatmul.msk.f32.gmra.mxu2 %vm1628_vm6, %v3757_v36  ;;  %v13174_v49 = vpop.f32.mrf.mxu2  ;;  %1481 = vst [vmem:[#allocation1 + $0x31] ss:$2 sm:$0xff] %v1247_v33  ;;  %v1248_v5 = vmax.f32 %v1124_v32, 0.0  ;;  %v3762_v32 = vld [vmem:[#allocation2 + $0x92] sm:$0xff] }
 0x1bc   : > { %1656 = vst.msk [vmem:[#allocation2 + $0xd0] sm:$0xf] %vm1631_vm7, %v1479_v54 }
 0x1bd   : > { %10485 = vmatmul.msk.f32.gmra.mxu3 %vm1628_vm6, %v3480_v34  ;;  %1483 = vst [vmem:[#allocation1] ss:$2 sm:$0xff] %v1248_v5  ;;  %v15831_v34 = vld [vmem:[#allocation44_spill] sm:$0xff] }
 0x1be   : > { %10418 = vmatmul.msk.f32.gmra.mxu1 %vm1628_vm6, %v2927_v44  ;;  %v973_v17 = vpop.f32.mrf.mxu0 }
 0x1bf   : > { %v974_v45 = vadd.f32 %v973_v17, %v15826_v16  ;;  %v11370_v17 = vld [vmem:[%s15663_s3 + $0x10] sm:$0xff] }
 0x1c0   : > { %10404 = vmatmul.msk.f32.gmra.mxu0 %vm779_vm1, %v15827_v18  ;;  %v3485_v16 = vld [vmem:[#allocation2 + $0xa9] sm:$0xff] }
 0x1c1   : > { %v1125_v21 = vrot.slane %v974_v45, 4  ;;  %v1249_v53 = vmax.f32 %v974_v45, 0.0  ;;  %v2932_v45 = vld [vmem:[#allocation2 + $0xb0] sm:$0xff] }
 0x1c2   : > { %v1482_v56 = vld.sshfl [vmem:[#allocation1 + $0x30] sm:$0xff pattern:$0x75316420] }
 0x1c3   : > { %10519 = vmatmul.msk.f32.gmra.mxu2 %vm1628_vm6, %v3758_v63  ;;  %v1250_v20 = vmax.f32 %v1125_v21, 0.0  ;;  %v13186_v39 = vpop.f32.mrf.mxu2  ;;  %1484 = vst [vmem:[#allocation1 + $0x1] ss:$2 sm:$0xff] %v1249_v53 }
 0x1c4   : > { %1657 = vst.msk [vmem:[#allocation2 + $0xd8] sm:$0xff] %vm1628_vm6, %v1482_v56  ;;  %v3488_v56 = vld [vmem:[#allocation2 + $0xc9] sm:$0xff] }
 0x1c5   : > { %10486 = vmatmul.msk.f32.gmra.mxu3 %vm1628_vm6, %v3481_v61  ;;  %1485 = vst [vmem:[#allocation1 + $0x10] ss:$2 sm:$0xff] %v1250_v20  ;;  %v3486_v20 = vld [vmem:[#allocation2 + $0xb1] sm:$0xff] }
 0x1c6   : > { %10419 = vmatmul.msk.f32.gmra.mxu1 %vm1628_vm6, %v2928_v37  ;;  %v976_v29 = vpop.f32.mrf.mxu0  ;;  %v11369_v37 = vld [vmem:[%s15663_s3 + $0x18] sm:$0x3] }
 0x1c7   : > { %v977_v23 = vadd.f32 %v976_v29, %v15828_v26  ;;  %v2933_v26 = vld [vmem:[#allocation2 + $0xc0] sm:$0xff] }
 0x1c8   : > { %10405 = vmatmul.msk.f32.gmra.mxu0 %vm779_vm1, %v15829_v10  ;;  %v10578_v10 = vld [vmem:[%s15663_s3 + $0x40] sm:$0xff] }
 0x1c9   : > { %v1126_v27 = vrot.slane %v977_v23, 4  ;;  %v1251_v60 = vmax.f32 %v977_v23, 0.0  ;;  %v3763_v23 = vld [vmem:[#allocation2 + $0x9a] sm:$0xff]  ;;  %4457 = vmatpush.msrb.mxu3 %v10578_v10 }
 0x1ca   : > { %v1486_v61 = vld.sshfl [vmem:[#allocation1] sm:$0xff pattern:$0x75316420] }
 0x1cb   : > { %10520 = vmatmul.msk.f32.gmra.mxu2 %vm1628_vm6, %v3759_v8  ;;  %v1252_v38 = vmax.f32 %v1126_v27, 0.0  ;;  %1488 = vst [vmem:[#allocation1 + $0x20] ss:$2 sm:$0xff] %v1251_v60  ;;  %v13196_v4 = vpop.f32.mrf.mxu2 }
 0x1cc   : > { %1658 = vst.msk [vmem:[#allocation2 + $0xe0] sm:$0xff] %vm1628_vm6, %v1486_v61  ;;  %v1487_v5 = vld.sshfl [vmem:[#allocation1 + $0x10] sm:$0xff pattern:$0x75316420]  ;;  %v3765_v61 = vld [vmem:[#allocation2 + $0xb2] sm:$0xff] }
 0x1cd   : > { %10487 = vmatmul.msk.f32.gmra.mxu3 %vm1628_vm6, %v3482_v14  ;;  %1489 = vst [vmem:[#allocation1 + $0x21] ss:$2 sm:$0xff] %v1252_v38  ;;  %v2918_v14 = vld [vmem:[#allocation2 + $0x8] sm:$0xff] }
 0x1ce   : > { %10420 = vmatmul.msk.f32.gmra.mxu1 %vm1628_vm6, %v2929_v59  ;;  %v979_v15 = vpop.f32.mrf.mxu0  ;;  %v15833_v59 = vld [vmem:[#allocation29_spill] sm:$0xff]  ;;  %1659 = vst.msk [vmem:[#allocation2 + $0xe8] sm:$0xf] %vm1631_vm7, %v1487_v5 }
 0x1cf   : > { %v980_v6 = vadd.f32 %v979_v15, %v15830_v50 }
 0x1d0   : > { %10406 = vmatmul.msk.f32.gmra.mxu0 %vm779_vm1, %v15831_v34  ;;  %v2934_v34 = vld [vmem:[#allocation2 + $0xc8] sm:$0xff] }
 0x1d1   : > { %v1127_v44 = vrot.slane %v980_v6, 4  ;;  %v1253_v36 = vmax.f32 %v980_v6, 0.0  ;;  %v3487_v6 = vld [vmem:[#allocation2 + $0xc1] sm:$0xff] }
 0x1d3   : > { %10521 = vmatmul.msk.f32.gmra.mxu2 %vm1628_vm6, %v3760_v47  ;;  %v1254_v58 = vmax.f32 %v1127_v44, 0.0  ;;  %1490 = vst [vmem:[#allocation1 + $0x30] ss:$2 sm:$0xff] %v1253_v36  ;;  %v13212_v18 = vpop.f32.mrf.mxu2  ;;  %v13230_v47 = vld [vmem:[#allocation2 + $0x18] sm:$0xff]  ;;  %v3764_v44 = vld [vmem:[#allocation2 + $0xaa] sm:$0xff]  ;;  %v2936_v5 = vld [vmem:[#allocation2 + $0xe0] sm:$0xff] }
 0x1d4   : > { %v1492_v27 = vld.sshfl [vmem:[#allocation1 + $0x20] sm:$0xff pattern:$0x75316420]  ;;  %v10543_v36 = vld [vmem:[%s15663_s3 + $0x30] sm:$0xff] }
 0x1d5   : > { %10488 = vmatmul.msk.f32.gmra.mxu3 %vm1628_vm6, %v3483_v48  ;;  %1491 = vst [vmem:[#allocation1 + $0x31] ss:$2 sm:$0xff] %v1254_v58  ;;  %v15834_v48 = vld [vmem:[#allocation61_spill] sm:$0xff]  ;;  %4178 = vmatpush.msrb.mxu1 %v10543_v36  ;;  %v3490_v10 = vld [vmem:[#allocation2 + $0xe1] sm:$0xff] }
 0x1d6   : > { %10421 = vmatmul.msk.f32.gmra.mxu1 %vm1628_vm6, %v2930_v12  ;;  %v982_v25 = vpop.f32.mrf.mxu0  ;;  %1660 = vst.msk [vmem:[#allocation2 + $0xf0] sm:$0xff] %vm1628_vm6, %v1492_v27  ;;  %v15839_v36 = vld [vmem:[#allocation65_spill] sm:$0xff] }
 0x1d7   : > { %v983_v0 = vadd.f32 %v982_v25, %v15832_v3 }
 0x1d8   : > { %10408 = vmatmul.msk.f32.vlgmr.msrb.gmra.mxu0 %vm1628_vm6, %v2917_v35  ;;  %v2935_v35 = vld [vmem:[#allocation2 + $0xd8] sm:$0xff] }
 0x1d9   : > { %10475 = vmatpush.msk.msrb.mxu0 %vm1867_vm3, %v11369_v37  ;;  %v1128_v33 = vrot.slane %v983_v0, 4  ;;  %v1255_v63 = vmax.f32 %v983_v0, 0.0 }
 0x1db   : > { %10522 = vmatmul.msk.f32.gmra.mxu2 %vm1628_vm6, %v3761_v7  ;;  %3620 = vmatpush.msrb.mxu0 %v11370_v17  ;;  %1494 = vst [vmem:[#allocation1] ss:$2 sm:$0xff] %v1255_v63  ;;  %v1256_v31 = vmax.f32 %v1128_v33, 0.0  ;;  %v13226_v60 = vpop.f32.mrf.mxu2  ;;  %v15835_v7 = vld [vmem:[#allocation66_spill] sm:$0xff] }
 0x1dc   : > { %v1493_v38 = vld.sshfl [vmem:[#allocation1 + $0x30] sm:$0xff pattern:$0x75316420] }
 0x1dd   : > { %10489 = vmatmul.msk.f32.gmra.mxu3 %vm1628_vm6, %v3484_v42  ;;  %1496 = vst [vmem:[#allocation1 + $0x10] ss:$2 sm:$0xff] %v1256_v31  ;;  %v2937_v27 = vld [vmem:[#allocation2 + $0xf0] sm:$0xff] }
 0x1de   : > { %10422 = vmatmul.msk.f32.gmra.mxu1 %vm1628_vm6, %v2931_v22  ;;  %v985_v21 = vpop.f32.mrf.mxu0  ;;  %1661 = vst.msk [vmem:[#allocation2 + $0xf8] sm:$0xff] %vm1628_vm6, %v1493_v38  ;;  %v3767_v38 = vld [vmem:[#allocation2 + $0xca] sm:$0xff] }
 0x1df   : > { %v986_v53 = vadd.f32 %v985_v21, %v15833_v59  ;;  %v3489_v21 = vld [vmem:[#allocation2 + $0xd9] sm:$0xff] }
 0x1e0   : > { %10409 = vmatmul.msk.f32.gmra.mxu0 %vm1628_vm6, %v2918_v14 }
 0x1e1   : > { %v1129_v8 = vrot.slane %v986_v53, 4  ;;  %v1257_v29 = vmax.f32 %v986_v53, 0.0  ;;  %v3766_v53 = vld [vmem:[#allocation2 + $0xc2] sm:$0xff] }
 0x1e2   : > { %v1495_v58 = vld.sshfl [vmem:[#allocation1] sm:$0xff pattern:$0x75316420] }
 0x1e3   : > { %10523 = vmatmul.msk.f32.gmra.mxu2 %vm1628_vm6, %v3762_v32  ;;  %1497 = vst [vmem:[#allocation1 + $0x11] ss:$2 sm:$0xff] %v1257_v29  ;;  %v1258_v52 = vmax.f32 %v1129_v8, 0.0 }
 0x1e4   : > { %1662 = vst.msk [vmem:[#allocation2 + $0x100] sm:$0xf] %vm1631_vm7, %v1495_v58 }
 0x1e5   : > { %10490 = vmatmul.msk.f32.gmra.mxu3 %vm1628_vm6, %v3485_v16  ;;  %1498 = vst [vmem:[#allocation1 + $0x20] ss:$2 sm:$0xff] %v1258_v52  ;;  %v15836_v16 = vld [vmem:[#allocation64_spill] sm:$0xff] }
 0x1e6   : > { %10423 = vmatmul.msk.f32.gmra.mxu1 %vm1628_vm6, %v2932_v45  ;;  %v988_v24 = vpop.f32.mrf.mxu0  ;;  %v3491_v58 = vld [vmem:[#allocation2 + $0xf1] sm:$0xff] }
 0x1e7   : > { %v989_v12 = vadd.f32 %v988_v24, %v15834_v48 }
 0x1e8   : > { %10410 = vmatmul.msk.f32.gmra.mxu0 %vm1628_vm6, %v13230_v47 }
 0x1e9   : > { %v1130_v15 = vrot.slane %v989_v12, 4  ;;  %v1259_v54 = vmax.f32 %v989_v12, 0.0 }
 0x1ea   : > { %v1501_v17 = vld.sshfl [vmem:[#allocation1 + $0x10] sm:$0xff pattern:$0x75316420] }
 0x1eb   : > { %10524 = vmatmul.msk.f32.gmra.mxu2 %vm1628_vm6, %v3763_v23  ;;  %v1260_v50 = vmax.f32 %v1130_v15, 0.0  ;;  %1499 = vst [vmem:[#allocation1 + $0x21] ss:$2 sm:$0xff] %v1259_v54  ;;  %v15837_v23 = vld [vmem:[#allocation31_spill] sm:$0xff] }
 0x1ec   : > { %1663 = vst.msk [vmem:[#allocation2 + $0x108] sm:$0xff] %vm1628_vm6, %v1501_v17 }
 0x1ed   : > { %10491 = vmatmul.msk.f32.gmra.mxu3 %vm1628_vm6, %v3486_v20  ;;  %1500 = vst [vmem:[#allocation1 + $0x30] ss:$2 sm:$0xff] %v1260_v50 }
 0x1ee   : > { %10424 = vmatmul.msk.f32.gmra.mxu1 %vm1628_vm6, %v2933_v26  ;;  %v991_v22 = vpop.f32.mrf.mxu0 }
 0x1ef   : > { %v992_v25 = vadd.f32 %v991_v22, %v15835_v7  ;;  %v2938_v7 = vld [vmem:[#allocation2 + $0xf8] sm:$0xff] }
 0x1f1   : > { %v1131_v3 = vrot.slane %v992_v25, 4  ;;  %v1261_v0 = vmax.f32 %v992_v25, 0.0 }
 0x1f2   : > { %v1502_v32 = vld.sshfl [vmem:[#allocation1 + $0x20] sm:$0xff pattern:$0x75316420] }
 0x1f3   : > { %10525 = vmatmul.msk.f32.gmra.mxu2 %vm1628_vm6, %v3764_v44  ;;  %v1262_v37 = vmax.f32 %v1131_v3, 0.0  ;;  %1504 = vst [vmem:[#allocation1] ss:$2 sm:$0xff] %v1261_v0 }
 0x1f4   : > { %1664 = vst.msk [vmem:[#allocation2 + $0x110] sm:$0xff] %vm1628_vm6, %v1502_v32  ;;  %v1503_v20 = vld.sshfl [vmem:[#allocation1 + $0x30] sm:$0xff pattern:$0x75316420]  ;;  %v3492_v32 = vld [vmem:[#allocation2 + $0xf9] sm:$0xff] }
 0x1f5   : > { %10492 = vmatmul.msk.f32.gmra.mxu3 %vm1628_vm6, %v3487_v6  ;;  %1505 = vst [vmem:[#allocation1 + $0x1] ss:$2 sm:$0xff] %v1262_v37 }
 0x1f6   : > { %10425 = vmatmul.msk.f32.gmra.mxu1 %vm1628_vm6, %v2934_v34  ;;  %v13241_v42 = vpop.f32.mrf.mxu2  ;;  %v994_v63 = vpop.f32.mrf.mxu0  ;;  %1665 = vst.msk [vmem:[#allocation2 + $0x118] sm:$0xf] %vm1631_vm7, %v1503_v20 }
 0x1f7   : > { %v995_v45 = vadd.f32 %v994_v63, %v15836_v16  ;;  %v15840_v16 = vld [vmem:[#allocation70_spill] sm:$0xff] }
 0x1f9   : > { %v1132_v14 = vrot.slane %v995_v45, 4  ;;  %v1263_v59 = vmax.f32 %v995_v45, 0.0 }
 0x1fb   : > { %10526 = vmatmul.msk.f32.gmra.mxu2 %vm1628_vm6, %v3765_v61  ;;  %v1264_v8 = vmax.f32 %v1132_v14, 0.0  ;;  %1506 = vst [vmem:[#allocation1 + $0x10] ss:$2 sm:$0xff] %v1263_v59  ;;  %v3769_v59 = vld [vmem:[#allocation2 + $0xe2] sm:$0xff] }
 0x1fc   : > { %v1509_v34 = vld.sshfl [vmem:[#allocation1] sm:$0xff pattern:$0x75316420] }
 0x1fd   : > { %10493 = vmatmul.msk.f32.gmra.mxu3 %vm1628_vm6, %v3488_v56  ;;  %1507 = vst [vmem:[#allocation1 + $0x11] ss:$2 sm:$0xff] %v1264_v8 }
 0x1fe   : > { %10426 = vmatmul.msk.f32.gmra.mxu1 %vm1628_vm6, %v2935_v35  ;;  %v13248_v33 = vpop.f32.mrf.mxu2  ;;  %v997_v52 = vpop.f32.mrf.mxu0  ;;  %1666 = vst.msk [vmem:[#allocation2 + $0x120] sm:$0xff] %vm1628_vm6, %v1509_v34  ;;  %v3768_v35 = vld [vmem:[#allocation2 + $0xda] sm:$0xff]  ;;  %v3770_v34 = vld [vmem:[#allocation2 + $0xf2] sm:$0xff] }
 0x1ff   : > { %v998_v24 = vadd.f32 %v997_v52, %v15837_v23 }
 0x201   : > { %v1133_v48 = vrot.slane %v998_v24, 4  ;;  %v1265_v12 = vmax.f32 %v998_v24, 0.0  ;;  %v3493_v24 = vld [vmem:[#allocation2 + $0x109] sm:$0xff] }
 0x202   : > { %v13250_v31 = vpop.f32.mrf.mxu1 }
 0x203   : > { %10527 = vmatmul.msk.f32.gmra.mxu2 %vm1628_vm6, %v3766_v53  ;;  %v1266_v54 = vmax.f32 %v1133_v48, 0.0  ;;  %1508 = vst [vmem:[#allocation1 + $0x20] ss:$2 sm:$0xff] %v1265_v12 }
 0x204   : > { %v1510_v37 = vld.sshfl [vmem:[#allocation1 + $0x10] sm:$0xff pattern:$0x75316420] }
 0x205   : > { %10494 = vmatmul.msk.f32.gmra.mxu3 %vm1628_vm6, %v3489_v21  ;;  %1512 = vst [vmem:[#allocation1 + $0x30] ss:$2 sm:$0xff] %v1266_v54  ;;  %v2939_v21 = vld [vmem:[#allocation2 + $0x108] sm:$0xff] }
 0x206   : > { %10427 = vmatmul.msk.f32.gmra.mxu1 %vm1628_vm6, %v2936_v5  ;;  %v13258_v29 = vpop.f32.mrf.mxu2  ;;  %v1000_v6 = vpop.f32.mrf.mxu0  ;;  %1667 = vst.msk [vmem:[#allocation2 + $0x128] sm:$0xff] %vm1628_vm6, %v1510_v37 }
 0x207   : > { %v1001_v22 = vadd.f32 %v1000_v6, %v15839_v36  ;;  %v15843_v36 = vld [vmem:[#allocation49_spill] sm:$0xff] }
 0x209   : > { %v1134_v25 = vrot.slane %v1001_v22, 4  ;;  %v1267_v56 = vmax.f32 %v1001_v22, 0.0 }
 0x20a   : > { %v13260_v26 = vpop.f32.mrf.mxu1  ;;  %v13266_v15 = vpop.f32.mrf.mxu3  ;;  %v1511_v20 = vld.sshfl [vmem:[#allocation1 + $0x20] sm:$0xff pattern:$0x75316420] }
 0x20b   : > { %15838 = vst [vmem:[#allocation33_spill] sm:$0xff] %v13266_v15  ;;  %10528 = vmatmul.msk.f32.gmra.mxu2 %vm1628_vm6, %v3767_v38  ;;  %v1268_v3 = vmax.f32 %v1134_v25, 0.0  ;;  %v2940_v38 = vld [vmem:[#allocation2 + $0x110] sm:$0xff]  ;;  %v3388_v22 = vadd.f32 %v15843_v36, %v13260_v26 }
 0x20c   : > { %1513 = vst [vmem:[#allocation1 + $0x31] ss:$2 sm:$0xff] %v1267_v56 }
 0x20d   : > { %10495 = vmatmul.msk.f32.gmra.mxu3 %vm1628_vm6, %v3490_v10  ;;  %1515 = vst [vmem:[#allocation1] ss:$2 sm:$0xff] %v1268_v3 }
 0x20e   : > { %10428 = vmatmul.msk.f32.gmra.mxu1 %vm1628_vm6, %v2937_v27  ;;  %v13269_v50 = vpop.f32.mrf.mxu2  ;;  %v1003_v63 = vpop.f32.mrf.mxu0  ;;  %1668 = vst.msk [vmem:[#allocation2 + $0x130] sm:$0xf] %vm1631_vm7, %v1511_v20  ;;  %v15842_v27 = vld [vmem:[#allocation67_spill] sm:$0xff] }
 0x20f   : > { %v1004_v45 = vadd.f32 %v1003_v63, %v15840_v16  ;;  %v15845_v16 = vld [vmem:[#allocation68_spill] sm:$0xff] }
 0x211   : > { %v1135_v5 = vrot.slane %v1004_v45, 4  ;;  %v1269_v14 = vmax.f32 %v1004_v45, 0.0 }
 0x213   : > { %v13271_v44 = vpop.f32.mrf.mxu1  ;;  %10529 = vmatmul.msk.f32.gmra.mxu2 %vm1628_vm6, %v3768_v35  ;;  %v1270_v53 = vmax.f32 %v1135_v5, 0.0  ;;  %1516 = vst [vmem:[#allocation1 + $0x1] ss:$2 sm:$0xff] %v1269_v14  ;;  %v1514_v12 = vld.sshfl [vmem:[#allocation1 + $0x30] sm:$0xff pattern:$0x75316420] }
 0x214   : > { %1669 = vst.msk [vmem:[#allocation2 + $0x138] sm:$0xff] %vm1628_vm6, %v1514_v12  ;;  %v2941_v5 = vld [vmem:[#allocation2 + $0x120] sm:$0xff]  ;;  %v15850_v12 = vld [vmem:[#allocation8_spill] sm:$0xff] }
 0x215   : > { %10496 = vmatmul.msk.f32.gmra.mxu3 %vm1628_vm6, %v3491_v58  ;;  %1517 = vst [vmem:[#allocation1 + $0x10] ss:$2 sm:$0xff] %v1270_v53  ;;  %v15847_v53 = vld [vmem:[#allocation50_spill] sm:$0xff] }
 0x216   : > { %10429 = vmatmul.msk.f32.gmra.mxu1 %vm1628_vm6, %v2938_v7  ;;  %v13278_v61 = vpop.f32.mrf.mxu2  ;;  %v1006_v23 = vpop.f32.mrf.mxu0  ;;  %v3391_v20 = vadd.f32 %v15847_v53, %v13271_v44 }
 0x217   : > { %v1007_v48 = vadd.f32 %v1006_v23, %v15842_v27 }
 0x218   : > { %v3634_v0 = vpop.f32.mrf.mxu3 }
 0x219   : > { %v1136_v54 = vrot.slane %v1007_v48, 4  ;;  %v1271_v6 = vmax.f32 %v1007_v48, 0.0  ;;  %v3722_v7 = vadd.f32 %v3634_v0, %v3388_v22  ;;  %v3771_v0 = vld [vmem:[#allocation2 + $0xfa] sm:$0xff]  ;;  %v15854_v22 = vld [vmem:[#allocation20_spill] sm:$0xff] }
 0x21a   : > { %v1518_v3 = vld.sshfl [vmem:[#allocation1] sm:$0xff pattern:$0x75316420] }
 0x21b   : > { %v13280_v17 = vpop.f32.mrf.mxu1  ;;  %10530 = vmatmul.msk.f32.gmra.mxu2 %vm1628_vm6, %v3769_v59  ;;  %v1272_v58 = vmax.f32 %v1136_v54, 0.0  ;;  %1520 = vst [vmem:[#allocation1 + $0x20] ss:$2 sm:$0xff] %v1271_v6  ;;  %v15851_v54 = vld [vmem:[#allocation19_spill] sm:$0xff]  ;;  %v15852_v6 = vld [vmem:[#allocation21_spill] sm:$0xff] }
 0x21c   : > { %1670 = vst.msk [vmem:[#allocation2 + $0x140] sm:$0xff] %vm1628_vm6, %v1518_v3  ;;  %v15857_v3 = vld [vmem:[#allocation52_spill] sm:$0xff]  ;;  %v2943_v40 = vld [vmem:[#allocation2 + $0x138] sm:$0xff] }
 0x21d   : > { %10497 = vmatmul.msk.f32.gmra.mxu3 %vm1628_vm6, %v3492_v32  ;;  %1521 = vst [vmem:[#allocation1 + $0x21] ss:$2 sm:$0xff] %v1272_v58  ;;  %v15846_v32 = vld [vmem:[#allocation14_spill] sm:$0xff] }
 0x21e   : > { %10430 = vmatmul.msk.f32.gmra.mxu1 %vm1628_vm6, %v2939_v21  ;;  %v13287_v52 = vpop.f32.mrf.mxu2  ;;  %v1009_v35 = vpop.f32.mrf.mxu0  ;;  %v1696_v26 = vrot.slane %v15846_v32, 1  ;;  %v3494_v21 = vld [vmem:[#allocation2 + $0x111] sm:$0xff]  ;;  %v15855_v58 = vld [vmem:[#allocation22_spill] sm:$0xff] }
 0x21f   : > { %15841 = vst [vmem:[#allocation39_spill] sm:$0xff] %v13287_v52  ;;  %v1010_v45 = vadd.f32 %v1009_v35, %v15845_v16  ;;  %v3394_v16 = vadd.f32 %v15857_v3, %v13280_v17  ;;  %v1868_v17 = vrot.slane %v15846_v32, 6  ;;  %v2942_v3 = vld [vmem:[#allocation2 + $0x128] sm:$0xff] }
 0x220   : > { %v3637_v8 = vpop.f32.mrf.mxu3  ;;  %v3496_v52 = vld [vmem:[#allocation2 + $0x129] sm:$0xff] }
 0x221   : > { %v1137_v14 = vrot.slane %v1010_v45, 4  ;;  %v1273_v59 = vmax.f32 %v1010_v45, 0.0  ;;  %v3723_v44 = vadd.f32 %v3637_v8, %v3391_v20  ;;  %v15862_v8 = vld [vmem:[#allocation69_spill] sm:$0xff] }
 0x223   : > { %v13289_v10 = vpop.f32.mrf.mxu1  ;;  %10531 = vmatmul.msk.f32.gmra.mxu2 %vm1628_vm6, %v3770_v34  ;;  %v1274_v23 = vmax.f32 %v1137_v14, 0.0  ;;  %1522 = vst [vmem:[#allocation1 + $0x30] ss:$2 sm:$0xff] %v1273_v59  ;;  %v15853_v34 = vmax.f32 %v15851_v54, %v15852_v6  ;;  %v15859_v14 = vld [vmem:[#allocation7_spill] sm:$0xff] }
 0x224   : > { %v1692_v59 = vrot.slane %v15859_v14, 1  ;;  %v1519_v6 = vld.sshfl [vmem:[#allocation1 + $0x10] sm:$0xff pattern:$0x75316420] }
 0x225   : > { %10498 = vmatmul.msk.f32.gmra.mxu3 %vm1628_vm6, %v3493_v24  ;;  %v15848_v24 = vld [vmem:[#allocation9_spill] sm:$0xff]  ;;  %v2565_v36 = vrot.slane %v15853_v34, 1  ;;  %1523 = vst [vmem:[#allocation1 + $0x31] ss:$2 sm:$0xff] %v1274_v23 }
 0x226   : > { %10431 = vmatmul.msk.f32.gmra.mxu1 %vm1628_vm6, %v2940_v38  ;;  %v3913_v56 = vpop.f32.mrf.mxu2  ;;  %v15849_v27 = vrot.slane %v15848_v24, 1  ;;  %v1871_v38 = vrot.slane %v15850_v12, 6  ;;  %1671 = vst.msk [vmem:[#allocation2 + $0x148] sm:$0xf] %vm1631_vm7, %v1519_v6  ;;  %v15863_v6 = vld [vmem:[#allocation17_spill] sm:$0xff] }
 0x227   : > { %v13301_v63 = vadd.f32 %v3913_v56, %v3722_v7  ;;  %v15856_v7 = vmax.f32 %v15854_v22, %v15855_v58  ;;  %v1524_v28 = vld.sshfl [vmem:[#allocation1 + $0x20] sm:$0xff pattern:$0x75316420] }
 0x228   : > { %v3640_v25 = vpop.f32.mrf.mxu3  ;;  %v1698_v48 = vsel %vm1690_vm2, %v1696_v26, %v15849_v27  ;;  %v1012_v26 = vpop.f32.mrf.mxu0  ;;  %v3495_v27 = vld [vmem:[#allocation2 + $0x121] sm:$0xff]  ;;  %1672 = vst.msk [vmem:[#allocation2 + $0x150] sm:$0xff] %vm1628_vm6, %v1524_v28 }
 0x229   : > { %15844 = vst [vmem:[#allocation41_spill] sm:$0xff] %v13301_v63  ;;  %v13321_v56 = vrot.slane %v15856_v7, 1  ;;  %v1013_v20 = vadd.f32 %v1012_v26, %v15862_v8  ;;  %v13336_v23 = vmax.f32 %v15846_v32, %v1698_v48  ;;  %v3724_v34 = vadd.f32 %v3640_v25, %v3394_v16  ;;  %v3772_v25 = vld [vmem:[#allocation2 + $0x10a] sm:$0xff]  ;;  %v15869_v28 = vld [vmem:[#allocation54_spill] sm:$0xff] }
 0x22a   : > { %v1869_v7 = vrot.slane %v15848_v24, 6 }
 0x22b   : > { %v13299_v37 = vpop.f32.mrf.mxu1  ;;  %10532 = vmatmul.msk.f32.gmra.mxu2 %vm1628_vm6, %v3771_v0  ;;  %v15860_v0 = vld [vmem:[#allocation16_spill] sm:$0xff] }
 0x22c   : > { %v1694_v53 = vrot.slane %v15860_v0, 1  ;;  %v1870_v16 = vsel %vm1867_vm3, %v1868_v17, %v1869_v7 }
 0x22d   : > { %10499 = vmatmul.msk.f32.gmra.mxu3 %vm1628_vm6, %v3494_v21  ;;  %v15858_v21 = vld [vmem:[#allocation6_spill] sm:$0xff]  ;;  %v1997_v8 = vmax.f32 %v15859_v14, %v1870_v16 }
 0x22e   : > { %10432 = vmatmul.msk.f32.gmra.mxu1 %vm1628_vm6, %v2941_v5  ;;  %v3916_v45 = vpop.f32.mrf.mxu2  ;;  %v1691_v5 = vrot.slane %v15858_v21, 1  ;;  %v1695_v58 = vsel %vm1690_vm2, %v1692_v59, %v1694_v53  ;;  %v1996_v24 = vmax.f32 %v15858_v21, %v1868_v17 }
 0x22f   : > { %v13332_v54 = vadd.f32 %v3916_v45, %v3723_v44  ;;  %v1138_v44 = vrot.slane %v1013_v20, 4  ;;  %v1275_v45 = vmax.f32 %v1013_v20, 0.0  ;;  %v1820_v48 = vmax.f32 %v15859_v14, %v1695_v58  ;;  %v15867_v14 = vld [vmem:[#allocation11_spill] sm:$0xff] }
 0x230   : > { %v13323_v35 = vpop.f32.mrf.mxu3  ;;  %v1693_v22 = vsel %vm1690_vm2, %v1691_v5, %v1692_v59  ;;  %v1872_v5 = vsel %vm1867_vm3, %v1869_v7, %v1871_v38  ;;  %v2115_v58 = vrot.slane %v1996_v24, 2  ;;  %v2740_v38 = vrot.slane %v15865_v1, 2  ;;  %v15866_v7 = vld [vmem:[#allocation10_spill] sm:$0xff]  ;;  %v1015_v43 = vpop.f32.mrf.mxu0 }
 0x231   : > { %15861 = vst [vmem:[#allocation51_spill] sm:$0xff] %v13332_v54  ;;  %v1819_v26 = vmax.f32 %v15858_v21, %v1693_v22  ;;  %v1276_v59 = vmax.f32 %v1138_v44, 0.0  ;;  %v1998_v20 = vmax.f32 %v15860_v0, %v1872_v5  ;;  %v15864_v22 = vrot.slane %v15863_v6, 7 }
 0x232   : > { %1526 = vst [vmem:[#allocation1] ss:$2 sm:$0xff] %v1275_v45  ;;  %v2741_v21 = vrot.slane %v15866_v7, 2  ;;  %v2116_v44 = vrot.slane %v1997_v8, 2  ;;  %v2743_v16 = vrot.slane %v15867_v14, 2  ;;  %v1821_v24 = vmax.f32 %v15860_v0, %v1694_v53 }
 0x233   : > { %v13330_v12 = vpop.f32.mrf.mxu1  ;;  %10533 = vmatmul.msk.f32.gmra.mxu2 %vm1628_vm6, %v3772_v25  ;;  %v2118_v45 = vrot.slane %v1998_v20, 2  ;;  %1528 = vst [vmem:[#allocation1 + $0x10] ss:$2 sm:$0xff] %v1276_v59 }
 0x234   : > { %v2117_v7 = vsel %vm2114_vm5, %v2115_v58, %v2116_v44  ;;  %v2742_v0 = vsel %vm2114_vm5, %v2740_v38, %v2741_v21  ;;  %v2744_v53 = vsel %vm2114_vm5, %v2741_v21, %v2743_v16 }
 0x235   : > { %10500 = vmatmul.msk.f32.gmra.mxu3 %vm1628_vm6, %v3495_v27  ;;  %v2468_v27 = vmax.f32 %v13336_v23, %v15864_v22  ;;  %v2119_v63 = vsel %vm2114_vm5, %v2116_v44, %v2118_v45  ;;  %v2243_v20 = vmax.f32 %v1819_v26, %v2117_v7  ;;  %v2245_v15 = vmax.f32 %v1821_v24, %v2118_v45  ;;  %v3773_v44 = vld [vmem:[#allocation2 + $0x112] sm:$0xff] }
 0x236   : > { %10433 = vmatmul.msk.f32.gmra.mxu1 %vm1628_vm6, %v2942_v3  ;;  %v2568_v3 = vsel %vm1690_vm2, %v2565_v36, %v13321_v56  ;;  %v3919_v5 = vpop.f32.mrf.mxu2  ;;  %v2244_v59 = vmax.f32 %v1820_v48, %v2119_v63  ;;  %v3397_v63 = vadd.f32 %v15869_v28, %v13289_v10  ;;  %v15870_v10 = vrot.slane %v15865_v1, 6 }
 0x237   : > { %v2564_v25 = vrot.slane %v2468_v27, 1  ;;  %v13366_v54 = vadd.f32 %v3919_v5, %v3724_v34  ;;  %v15868_v27 = vld [vmem:[#allocation74_spill] sm:$0xff] }
 0x238   : > { %v13360_v17 = vpop.f32.mrf.mxu3  ;;  %v1016_v14 = vadd.f32 %v1015_v43, %v15868_v27  ;;  %v2693_v58 = vmax.f32 %v2244_v59, %v2568_v3  ;;  %v2694_v43 = vmax.f32 %v2245_v15, %v13321_v56  ;;  %v1018_v24 = vpop.f32.mrf.mxu0  ;;  %v1999_v7 = vmax.f32 %v15846_v32, %v15870_v10  ;;  %v2944_v15 = vld [vmem:[#allocation2 + $0x140] sm:$0xff]  ;;  %v15874_v32 = vld [vmem:[#allocation12_spill] sm:$0xff] }
 0x239   : > { %v2566_v8 = vsel %vm1690_vm2, %v2564_v25, %v2565_v36  ;;  %v3497_v56 = vld [vmem:[#allocation2 + $0x139] sm:$0xff] }
 0x23a   : > { %v2692_v34 = vmax.f32 %v2243_v20, %v2566_v8  ;;  %v1139_v36 = vrot.slane %v1016_v14, 4  ;;  %v1277_v25 = vmax.f32 %v1016_v14, 0.0  ;;  %v2869_v48 = vmax.f32 %v2693_v58, %v2744_v53  ;;  %v15871_v27 = vld [vmem:[#allocation30_spill] sm:$0xff] }
 0x23b   : > { %v13364_v22 = vpop.f32.mrf.mxu1  ;;  %10534 = vmatmul.msk.f32.gmra.mxu2 %vm1628_vm6, %v3773_v44  ;;  %v1019_v14 = vadd.f32 %v1018_v24, %v15871_v27  ;;  %v2120_v1 = vrot.slane %v1999_v7, 2  ;;  %v2745_v58 = vrot.slane %v15874_v32, 2 }
 0x23c   : > { %v2868_v26 = vmax.f32 %v2692_v34, %v2742_v0  ;;  %v1278_v38 = vmax.f32 %v1139_v36, 0.0  ;;  %1529 = vst [vmem:[#allocation1 + $0x11] ss:$2 sm:$0xff] %v1277_v25  ;;  %v3212_v45 = vrot.slane %v2869_v48, 1 }
 0x23d   : > { %10501 = vmatmul.msk.f32.gmra.mxu3 %vm1628_vm6, %v3496_v52  ;;  %v3725_v52 = vadd.f32 %v13323_v35, %v3397_v63  ;;  %v1525_v35 = vld.sshfl [vmem:[#allocation1 + $0x30] sm:$0xff pattern:$0x75316420]  ;;  %v1140_v36 = vrot.slane %v1019_v14, 4  ;;  %v1279_v25 = vmax.f32 %v1019_v14, 0.0  ;;  %v2945_v14 = vld [vmem:[#allocation2 + $0x150] sm:$0xff] }
 0x23e   : > { %10434 = vmatmul.msk.f32.gmra.mxu1 %vm1628_vm6, %v2943_v40  ;;  %v2870_v40 = vmax.f32 %v2694_v43, %v2743_v16  ;;  %v3211_v3 = vrot.slane %v2868_v26, 1  ;;  %1530 = vst [vmem:[#allocation1 + $0x20] ss:$2 sm:$0xff] %v1278_v38  ;;  %v3922_v5 = vpop.f32.mrf.mxu2  ;;  %v15872_v16 = vld [vmem:[#allocation18_spill] sm:$0xff]  ;;  %v15876_v26 = vld [vmem:[#allocation56_spill] sm:$0xff] }
 0x23f   : > { %v13389_v20 = vadd.f32 %v3922_v5, %v3725_v52  ;;  %v15873_v0 = vrot.slane %v15872_v16, 7  ;;  %1673 = vst.msk [vmem:[#allocation2 + $0x158] sm:$0xff] %vm1628_vm6, %v1525_v35  ;;  %v3774_v63 = vld [vmem:[#allocation2 + $0x122] sm:$0xff]  ;;  %v3400_v48 = vadd.f32 %v15876_v26, %v13299_v37  ;;  %v1280_v38 = vmax.f32 %v1140_v36, 0.0 }
 0x240   : > { %v13382_v21 = vpop.f32.mrf.mxu3  ;;  %v3214_v59 = vrot.slane %v2870_v40, 1  ;;  %v3213_v34 = vsel %vm1690_vm2, %v3211_v3, %v3212_v45  ;;  %1531 = vst [vmem:[#allocation1 + $0x21] ss:$2 sm:$0xff] %v1279_v25  ;;  %v15877_v40 = vld [vmem:[#allocation24_spill] sm:$0xff]  ;;  %v15881_v36 = vld [vmem:[#allocation59_spill] sm:$0xff] }
 0x241   : > { %v2471_v53 = vmax.f32 %v15863_v6, %v15873_v0  ;;  %10441 = vmatmul.msk.f32.vlgmr.msra.gmra.mxu0 %vm779_vm1, %v3213_v34  ;;  %v15875_v6 = vld [vmem:[#allocation23_spill] sm:$0xff]  ;;  %v3726_v10 = vadd.f32 %v13360_v17, %v3400_v48  ;;  %1532 = vst [vmem:[#allocation1 + $0x30] ss:$2 sm:$0xff] %v1280_v38  ;;  %v1527_v37 = vld.sshfl [vmem:[#allocation1] sm:$0xff pattern:$0x75316420]  ;;  %v3403_v25 = vadd.f32 %v15881_v36, %v13330_v12 }
 0x242   : > { %v3215_v44 = vsel %vm1690_vm2, %v3212_v45, %v3214_v59  ;;  %v2122_v43 = vsel %vm2114_vm5, %v2120_v1, %v15875_v6  ;;  %v15878_v45 = vld [vmem:[#allocation13_spill] sm:$0xff]  ;;  %v1021_v59 = vpop.f32.mrf.mxu0  ;;  %1674 = vst.msk [vmem:[#allocation2 + $0x160] sm:$0xf] %vm1631_vm7, %v1527_v37  ;;  %v15880_v0 = vld [vmem:[#allocation72_spill] sm:$0xff]  ;;  %v3498_v17 = vld [vmem:[#allocation2 + $0x141] sm:$0xff] }
 0x243   : > { %v13387_v8 = vpop.f32.mrf.mxu1  ;;  %v2569_v28 = vrot.slane %v2471_v53, 1  ;;  %10535 = vmatmul.msk.f32.gmra.mxu2 %vm1628_vm6, %v3774_v63  ;;  %v2246_v52 = vmax.f32 %v13336_v23, %v2122_v43  ;;  %v15879_v5 = vrot.slane %v15878_v45, 2  ;;  %v1533_v35 = vld.sshfl [vmem:[#allocation1 + $0x10] sm:$0xff pattern:$0x75316420]  ;;  %v1022_v53 = vadd.f32 %v1021_v59, %v15880_v0  ;;  %v15883_v12 = vld [vmem:[#allocation73_spill] sm:$0xff] }
 0x244   : > { %1675 = vst.msk [vmem:[#allocation2 + $0x168] sm:$0xff] %vm1628_vm6, %v1533_v35  ;;  %v3727_v63 = vadd.f32 %v13382_v21, %v3403_v25  ;;  %v3777_v36 = vld [vmem:[#allocation2 + $0x142] sm:$0xff] }
 0x245   : > { %10502 = vmatmul.msk.f32.gmra.mxu3 %vm1628_vm6, %v3497_v56  ;;  %v2571_v3 = vsel %vm1690_vm2, %v2569_v28, %v15877_v40  ;;  %v2747_v24 = vsel %vm2114_vm5, %v2745_v58, %v15879_v5  ;;  %v1141_v34 = vrot.slane %v1022_v53, 4  ;;  %v1281_v1 = vmax.f32 %v1022_v53, 0.0  ;;  %v3775_v58 = vld [vmem:[#allocation2 + $0x12a] sm:$0xff] }
 0x246   : > { %10435 = vmatmul.msk.f32.gmra.mxu1 %vm1628_vm6, %v2944_v15  ;;  %v2695_v15 = vmax.f32 %v2246_v52, %v2571_v3  ;;  %v3925_v56 = vpop.f32.mrf.mxu2  ;;  %v2946_v40 = vld [vmem:[#allocation2 + $0x158] sm:$0xff]  ;;  %v15885_v25 = vld [vmem:[#allocation27_spill] sm:$0xff] }
 0x247   : > { %v13416_v23 = vadd.f32 %v3925_v56, %v3726_v10  ;;  %v1282_v28 = vmax.f32 %v1141_v34, 0.0  ;;  %1536 = vst [vmem:[#allocation1] ss:$2 sm:$0xff] %v1281_v1  ;;  %v1534_v38 = vld.sshfl [vmem:[#allocation1 + $0x20] sm:$0xff pattern:$0x75316420] }
 0x248   : > { %v3652_v7 = vpop.f32.mrf.mxu3  ;;  %v2871_v16 = vmax.f32 %v2695_v15, %v2747_v24  ;;  %v3499_v3 = vld [vmem:[#allocation2 + $0x151] sm:$0xff]  ;;  %1676 = vst.msk [vmem:[#allocation2 + $0x170] sm:$0xff] %vm1628_vm6, %v1534_v38  ;;  %v3776_v10 = vld [vmem:[#allocation2 + $0x13a] sm:$0xff]  ;;  %v15884_v15 = vld [vmem:[#allocation63_spill] sm:$0xff] }
 0x249   : > { %10442 = vmatmul.msk.f32.gmra.mxu0 %vm779_vm1, %v3215_v44  ;;  %1537 = vst [vmem:[#allocation1 + $0x1] ss:$2 sm:$0xff] %v1282_v28  ;;  %v15882_v44 = vld [vmem:[#allocation25_spill] sm:$0xff]  ;;  %v3406_v56 = vadd.f32 %v15884_v15, %v13364_v22  ;;  %v1535_v0 = vld.sshfl [vmem:[#allocation1 + $0x30] sm:$0xff pattern:$0x75316420]  ;;  %v3409_v28 = vadd.f32 %v15885_v25, %v13387_v8 }
 0x24a   : > { %v3216_v32 = vrot.slane %v2871_v16, 1  ;;  %v1024_v48 = vpop.f32.mrf.mxu0  ;;  %1677 = vst.msk [vmem:[#allocation2 + $0x178] sm:$0xf] %vm1631_vm7, %v1535_v0  ;;  %v3471_v22 = vld [vmem:[#allocation2 + $0x1] sm:$0xff] }
 0x24b   : > { %v13414_v27 = vpop.f32.mrf.mxu1  ;;  %10536 = vmatmul.msk.f32.gmra.mxu2 %vm1628_vm6, %v3775_v58  ;;  %v1025_v5 = vadd.f32 %v1024_v48, %v15883_v12  ;;  %v3728_v59 = vadd.f32 %v3652_v7, %v3406_v56  ;;  %v10614_v48 = vld [vmem:[%s15663_s3 + $0x58] sm:$0x3]  ;;  %v10649_v38 = vld [vmem:[%s15663_s3 + $0x68] sm:$0x3]  ;;  %v3778_v56 = vld [vmem:[#allocation2 + $0x152] sm:$0xff] }
 0x24c   : > { %v3218_v43 = vsel %vm1690_vm2, %v3216_v32, %v15882_v44  ;;  %v3500_v32 = vld [vmem:[#allocation2 + $0x159] sm:$0xff]  ;;  %10615 = vmatpush.msk.msra.mxu0 %vm1867_vm3, %v10614_v48  ;;  %10650 = vmatpush.msk.msra.mxu2 %vm1867_vm3, %v10649_v38  ;;  %v4030_v38 = vld [vmem:[#allocation2 + $0xb] sm:$0xff] }
 0x24d   : > { %10503 = vmatmul.msk.f32.gmra.mxu3 %vm1628_vm6, %v3498_v17  ;;  %v1142_v21 = vrot.slane %v1025_v5, 4  ;;  %v1283_v24 = vmax.f32 %v1025_v5, 0.0  ;;  %v2947_v17 = vld [vmem:[#allocation2 + $0x168] sm:$0xff]  ;;  %v15886_v5 = vld [vmem:[#allocation34_spill] sm:$0xff] }
 0x24e   : > { %10436 = vmatmul.msk.f32.gmra.mxu1 %vm1628_vm6, %v2945_v14  ;;  %v3928_v26 = vpop.f32.mrf.mxu2 }
 0x24f   : > { %v13432_v45 = vadd.f32 %v3928_v26, %v3727_v63  ;;  %v1284_v37 = vmax.f32 %v1142_v21, 0.0  ;;  %1538 = vst [vmem:[#allocation1 + $0x10] ss:$2 sm:$0xff] %v1283_v24  ;;  %v2948_v8 = vld [vmem:[#allocation2 + $0x170] sm:$0xff]  ;;  %v10719_v21 = vld [vmem:[%s15663_s3 + $0x88] sm:$0x3] }
 0x250   : > { %v3655_v6 = vpop.f32.mrf.mxu3  ;;  %v3472_v24 = vld [vmem:[#allocation2 + $0x9] sm:$0xff]  ;;  %10720 = vmatpush.msk.msra.mxu3 %vm1867_vm3, %v10719_v21 }
 0x251   : > { %10443 = vmatmul.msk.f32.gmra.mxu0 %vm779_vm1, %v3218_v43  ;;  %1539 = vst [vmem:[#allocation1 + $0x11] ss:$2 sm:$0xff] %v1284_v37  ;;  %v15887_v37 = vld [vmem:[#allocation71_spill] sm:$0xff] }
 0x252   : > { %v1027_v16 = vpop.f32.mrf.mxu0 }
 0x253   : > { %v13430_v52 = vpop.f32.mrf.mxu1  ;;  %10537 = vmatmul.msk.f32.gmra.mxu2 %vm1628_vm6, %v3776_v10  ;;  %v1028_v1 = vadd.f32 %v1027_v16, %v12987_v30  ;;  %v3729_v30 = vadd.f32 %v3655_v6, %v3409_v28  ;;  %v10613_v10 = vld [vmem:[%s15663_s3 + $0x50] sm:$0xff] }
 0x254   : > { %4737 = vmatpush.msra.mxu0 %v10613_v10  ;;  %v15889_v10 = vld [vmem:[#allocation75_spill] sm:$0xff] }
 0x255   : > { %10504 = vmatmul.msk.f32.gmra.mxu3 %vm1628_vm6, %v3499_v3  ;;  %v1143_v58 = vrot.slane %v1028_v1, 4  ;;  %v1285_v7 = vmax.f32 %v1028_v1, 0.0  ;;  %v3501_v3 = vld [vmem:[#allocation2 + $0x169] sm:$0xff] }
 0x256   : > { %10437 = vmatmul.msk.f32.gmra.mxu1 %vm1628_vm6, %v2946_v40  ;;  %v3931_v14 = vpop.f32.mrf.mxu2  ;;  %v10684_v1 = vld [vmem:[%s15663_s3 + $0x78] sm:$0x3] }
 0x257   : > { %v13444_v34 = vadd.f32 %v3931_v14, %v3728_v59  ;;  %v1286_v63 = vmax.f32 %v1143_v58, 0.0  ;;  %1540 = vst [vmem:[#allocation1 + $0x20] ss:$2 sm:$0xff] %v1285_v7  ;;  %v3412_v59 = vadd.f32 %v15887_v37, %v13414_v27  ;;  %10685 = vmatpush.msk.msra.mxu1 %vm1867_vm3, %v10684_v1  ;;  %v3473_v58 = vld [vmem:[#allocation2 + $0x19] sm:$0xff]  ;;  %v3502_v27 = vld [vmem:[#allocation2 + $0x171] sm:$0xff]  ;;  %v4029_v7 = vld [vmem:[#allocation2 + $0x3] sm:$0xff] }
 0x258   : > { %v3658_v35 = vpop.f32.mrf.mxu3  ;;  %v4589_v37 = vld [vmem:[#allocation2 + $0x20] sm:$0xff] }
 0x259   : > { %10476 = vmatmul.msk.f32.vlgmr.msrb.gmra.mxu0 %vm1628_vm6, %v3471_v22  ;;  %1544 = vst [vmem:[#allocation1 + $0x30] ss:$2 sm:$0xff] %v1286_v63  ;;  %v3730_v14 = vadd.f32 %v3658_v35, %v3412_v59  ;;  %v3779_v35 = vld [vmem:[#allocation2 + $0x15a] sm:$0xff] }
 0x25a   : > { %v1030_v26 = vpop.f32.mrf.mxu0 }
 0x25b   : > { %v13442_v53 = vpop.f32.mrf.mxu1  ;;  %10538 = vmatmul.msk.f32.gmra.mxu2 %vm1628_vm6, %v3777_v36  ;;  %v13465_v6 = vadd.f32 %v1030_v26, %v15886_v5  ;;  %v15888_v36 = vld [vmem:[#allocation35_spill] sm:$0xff] }
 0x25c   : > { %v3415_v25 = vadd.f32 %v15888_v36, %v13430_v52  ;;  %v3780_v52 = vld [vmem:[#allocation2 + $0x16a] sm:$0xff] }
 0x25d   : > { %10505 = vmatmul.msk.f32.gmra.mxu3 %vm1628_vm6, %v3500_v32  ;;  %v1287_v15 = vmax.f32 %v13465_v6, 0.0 }
 0x25e   : > { %10438 = vmatmul.msk.f32.gmra.mxu1 %vm1628_vm6, %v2947_v17  ;;  %v3934_v43 = vpop.f32.mrf.mxu2 }
 0x25f   : > { %v13462_v12 = vadd.f32 %v3934_v43, %v3729_v30  ;;  %1545 = vst [vmem:[#allocation1 + $0x31] ss:$2 sm:$0xff] %v1287_v15 }
 0x260   : > { %v3661_v44 = vpop.f32.mrf.mxu3 }
 0x261   : > { %10477 = vmatmul.msk.f32.gmra.mxu0 %vm1628_vm6, %v3472_v24  ;;  %v3731_v28 = vadd.f32 %v3661_v44, %v3415_v25  ;;  %v3418_v44 = vadd.f32 %v13014_v51, %v13442_v53  ;;  %v10648_v24 = vld [vmem:[%s15663_s3 + $0x60] sm:$0xff]  ;;  %v4309_v53 = vld [vmem:[#allocation2 + $0xc] sm:$0xff] }
 0x262   : > { %v1033_v17 = vpop.f32.mrf.mxu0  ;;  %5016 = vmatpush.msra.mxu2 %v10648_v24  ;;  %v4031_v51 = vld [vmem:[#allocation2 + $0x1b] sm:$0xff]  ;;  %v4590_v25 = vld [vmem:[#allocation2 + $0x30] sm:$0xff] }
 0x263   : > { %v13460_v40 = vpop.f32.mrf.mxu1  ;;  %10539 = vmatmul.msk.f32.gmra.mxu2 %vm1628_vm6, %v3778_v56  ;;  %v13512_v15 = vadd.f32 %v1033_v17, %v15889_v10 }
 0x265   : > { %10506 = vmatmul.msk.f32.gmra.mxu3 %vm1628_vm6, %v3501_v3 }
 0x266   : > { %10439 = vmatmul.msk.f32.gmra.mxu1 %vm1628_vm6, %v2948_v8  ;;  %v3937_v0 = vpop.f32.mrf.mxu2  ;;  %v4308_v8 = vld [vmem:[#allocation2 + $0x4] sm:$0xff] }
 0x267   : > { %v13486_v32 = vadd.f32 %v3937_v0, %v3730_v14  ;;  %v3781_v14 = vld [vmem:[#allocation2 + $0x172] sm:$0xff]  ;;  %v1145_v0 = vrot.slane %v13512_v15, 4 }
 0x268   : > { %v3664_v16 = vpop.f32.mrf.mxu3 }
 0x269   : > { %10478 = vmatmul.msk.f32.gmra.mxu0 %vm1628_vm6, %v3473_v58  ;;  %v3732_v3 = vadd.f32 %v3664_v16, %v3418_v44  ;;  %v3421_v16 = vadd.f32 %v13037_v55, %v13460_v40  ;;  %v1542_v55 = vld.sshfl [vmem:[#allocation1 + $0x10] sm:$0xff pattern:$0x75316420] }
 0x26a   : > { %v1036_v43 = vpop.f32.mrf.mxu0  ;;  %1679 = vst.msk [vmem:[#allocation2 + $0x188] sm:$0xff] %vm1628_vm6, %v1542_v55 }
 0x26b   : > { %v3115_v22 = vpop.f32.mrf.mxu1  ;;  %10540 = vmatmul.msk.f32.gmra.mxu2 %vm1628_vm6, %v3779_v35 }
 0x26d   : > { %10507 = vmatmul.msk.f32.gmra.mxu3 %vm1628_vm6, %v3502_v27 }
 0x26e   : > { %10546 = vmatmul.msk.f32.vlgmr.msrb.gmra.mxu1 %vm1628_vm6, %v4029_v7  ;;  %v3940_v30 = vpop.f32.mrf.mxu2  ;;  %v1290_v7 = vmax.f32 %v1145_v0, 0.0 }
 0x26f   : > { %v13497_v48 = vadd.f32 %v3940_v30, %v3731_v28  ;;  %v15890_v28 = vld [vmem:[#allocation76_spill] sm:$0xff] }
 0x270   : > { %v3667_v63 = vpop.f32.mrf.mxu3  ;;  %v1037_v30 = vadd.f32 %v1036_v43, %v15890_v28  ;;  %1549 = vst [vmem:[#allocation1 + $0x10] ss:$2 sm:$0xff] %v1290_v7  ;;  %v4034_v28 = vld [vmem:[#allocation2 + $0x3b] sm:$0xff] }
 0x271   : > { %10616 = vmatmul.msk.f32.vlgmr.msra.gmra.mxu0 %vm1628_vm6, %v13230_v47  ;;  %v3733_v17 = vadd.f32 %v3667_v63, %v3421_v16  ;;  %v3424_v63 = vadd.f32 %v13066_v62, %v3115_v22  ;;  %v4868_v62 = vld [vmem:[#allocation2 + $0x21] sm:$0xff]  ;;  %v1543_v22 = vld.sshfl [vmem:[#allocation1 + $0x20] sm:$0xff pattern:$0x75316420] }
 0x272   : > { %v13516_v59 = vpop.f32.mrf.mxu0  ;;  %v1146_v44 = vrot.slane %v1037_v30, 4  ;;  %v1291_v10 = vmax.f32 %v1037_v30, 0.0  ;;  %1680 = vst.msk [vmem:[#allocation2 + $0x190] sm:$0xf] %vm1631_vm7, %v1543_v22  ;;  %v13558_v30 = vld [vmem:[#allocation2 + $0x34] sm:$0xff] }
 0x273   : > { %v13495_v26 = vpop.f32.mrf.mxu1  ;;  %10541 = vmatmul.msk.f32.gmra.mxu2 %vm1628_vm6, %v3780_v52 }
 0x274   : > { %1552 = vst [vmem:[#allocation1 + $0x20] ss:$2 sm:$0xff] %v1291_v10  ;;  %v4035_v10 = vld [vmem:[#allocation2 + $0x4b] sm:$0xff] }
 0x275   : > { %10581 = vmatmul.msk.f32.vlgmr.msrb.gmra.mxu3 %vm1628_vm6, %v4308_v8  ;;  %v13531_v8 = vld [vmem:[#allocation2 + $0x1c] sm:$0xff] }
 0x276   : > { %10547 = vmatmul.msk.f32.gmra.mxu1 %vm1628_vm6, %v4030_v38  ;;  %v3943_v21 = vpop.f32.mrf.mxu2  ;;  %v4032_v38 = vld [vmem:[#allocation2 + $0x23] sm:$0xff] }
 0x277   : > { %v13514_v56 = vadd.f32 %v3943_v21, %v3732_v3 }
 0x278   : > { %v3670_v5 = vpop.f32.mrf.mxu3 }
 0x279   : > { %10617 = vmatmul.msk.f32.gmra.mxu0 %vm1628_vm6, %v4589_v37  ;;  %v3734_v43 = vadd.f32 %v3670_v5, %v3424_v63  ;;  %v4591_v37 = vld [vmem:[#allocation2 + $0x38] sm:$0xff] }
 0x27a   : > { %v13536_v40 = vpop.f32.mrf.mxu0 }
 0x27b   : > { %v13509_v47 = vpop.f32.mrf.mxu1  ;;  %10542 = vmatmul.msk.f32.gmra.mxu2 %vm1628_vm6, %v3781_v14  ;;  %v13544_v14 = vld [vmem:[#allocation2 + $0x24] sm:$0xff] }
 0x27d   : > { %10582 = vmatmul.msk.f32.gmra.mxu3 %vm1628_vm6, %v4309_v53  ;;  %v4033_v53 = vld [vmem:[#allocation2 + $0x33] sm:$0xff] }
 0x27e   : > { %10548 = vmatmul.msk.f32.gmra.mxu1 %vm1628_vm6, %v4031_v51  ;;  %v3946_v27 = vpop.f32.mrf.mxu2  ;;  %v1292_v51 = vmax.f32 %v1146_v44, 0.0 }
 0x27f   : > { %v13527_v36 = vadd.f32 %v3946_v27, %v3733_v17 }
 0x280   : > { %v3673_v1 = vpop.f32.mrf.mxu3  ;;  %1553 = vst [vmem:[#allocation1 + $0x21] ss:$2 sm:$0xff] %v1292_v51 }
 0x281   : > { %10618 = vmatmul.msk.f32.gmra.mxu0 %vm1628_vm6, %v4590_v25  ;;  %v4592_v25 = vld [vmem:[#allocation2 + $0x48] sm:$0xff] }
 0x282   : > { %v13553_v5 = vpop.f32.mrf.mxu0 }
 0x283   : > { %v13525_v35 = vpop.f32.mrf.mxu1  ;;  %10651 = vmatmul.msk.f32.vlgmr.msra.gmra.mxu2 %vm1628_vm6, %v3473_v58  ;;  %v3427_v58 = vadd.f32 %v13083_v11, %v13495_v26  ;;  %v4869_v11 = vld [vmem:[#allocation2 + $0x31] sm:$0xff]  ;;  %v3430_v26 = vadd.f32 %v13100_v41, %v13509_v47  ;;  %v4870_v41 = vld [vmem:[#allocation2 + $0x39] sm:$0xff] }
 0x284   : > { %v3433_v47 = vadd.f32 %v13112_v46, %v13525_v35  ;;  %v4871_v46 = vld [vmem:[#allocation2 + $0x49] sm:$0xff] }
 0x285   : > { %10583 = vmatmul.msk.f32.gmra.mxu3 %vm1628_vm6, %v13531_v8  ;;  %v3735_v16 = vadd.f32 %v3673_v1, %v3427_v58  ;;  %v4594_v58 = vld [vmem:[#allocation2 + $0x60] sm:$0xff] }
 0x286   : > { %10549 = vmatmul.msk.f32.gmra.mxu1 %vm1628_vm6, %v4032_v38  ;;  %v3949_v3 = vpop.f32.mrf.mxu2 }
 0x287   : > { %v13541_v24 = vadd.f32 %v3949_v3, %v3734_v43  ;;  %v4593_v3 = vld [vmem:[#allocation2 + $0x50] sm:$0xff] }
 0x288   : > { %v3676_v52 = vpop.f32.mrf.mxu3 }
 0x289   : > { %10619 = vmatmul.msk.f32.gmra.mxu0 %vm1628_vm6, %v4591_v37  ;;  %v3736_v1 = vadd.f32 %v3676_v52, %v3430_v26  ;;  %v13571_v37 = vld [vmem:[#allocation2 + $0x3c] sm:$0xff] }
 0x28a   : > { %v13566_v55 = vpop.f32.mrf.mxu0 }
 0x28b   : > { %v3127_v21 = vpop.f32.mrf.mxu1  ;;  %10652 = vmatmul.msk.f32.gmra.mxu2 %vm1628_vm6, %v4868_v62 }
 0x28c   : > { %v3436_v35 = vadd.f32 %v13124_v13, %v3127_v21  ;;  %v4872_v13 = vld [vmem:[#allocation2 + $0x51] sm:$0xff] }
 0x28d   : > { %10584 = vmatmul.msk.f32.gmra.mxu3 %vm1628_vm6, %v13544_v14 }
 0x28e   : > { %10550 = vmatmul.msk.f32.gmra.mxu1 %vm1628_vm6, %v4033_v53  ;;  %v3952_v17 = vpop.f32.mrf.mxu2 }
 0x28f   : > { %v13555_v7 = vadd.f32 %v3952_v17, %v3735_v16  ;;  %v4036_v17 = vld [vmem:[#allocation2 + $0x53] sm:$0xff] }
 0x290   : > { %v3679_v0 = vpop.f32.mrf.mxu3 }
 0x291   : > { %10620 = vmatmul.msk.f32.gmra.mxu0 %vm1628_vm6, %v4592_v25  ;;  %v3737_v52 = vadd.f32 %v3679_v0, %v3433_v47  ;;  %v13584_v25 = vld [vmem:[#allocation2 + $0x4c] sm:$0xff] }
 0x292   : > { %v13581_v16 = vpop.f32.mrf.mxu0 }
 0x293   : > { %v3130_v27 = vpop.f32.mrf.mxu1  ;;  %10653 = vmatmul.msk.f32.gmra.mxu2 %vm1628_vm6, %v4869_v11 }
 0x294   : > { %v3439_v21 = vadd.f32 %v13135_v2, %v3130_v27 }
 0x295   : > { %10585 = vmatmul.msk.f32.gmra.mxu3 %vm1628_vm6, %v13558_v30 }
 0x296   : > { %10551 = vmatmul.msk.f32.gmra.mxu1 %vm1628_vm6, %v4034_v28  ;;  %v3955_v63 = vpop.f32.mrf.mxu2 }
 0x297   : > { %v13568_v44 = vadd.f32 %v3955_v63, %v3736_v1  ;;  %v4595_v63 = vld [vmem:[#allocation2 + $0x68] sm:$0xff] }
 0x298   : > { %v3682_v38 = vpop.f32.mrf.mxu3 }
 0x299   : > { %10621 = vmatmul.msk.f32.gmra.mxu0 %vm1628_vm6, %v4593_v3  ;;  %v3738_v0 = vadd.f32 %v3682_v38, %v3436_v35  ;;  %v4037_v3 = vld [vmem:[#allocation2 + $0x63] sm:$0xff] }
 0x29a   : > { %v4316_v35 = vld [vmem:[#allocation2 + $0x64] sm:$0xff] }
 0x29b   : > { %v3133_v43 = vpop.f32.mrf.mxu1  ;;  %10654 = vmatmul.msk.f32.gmra.mxu2 %vm1628_vm6, %v4870_v41  ;;  %v13596_v41 = vpop.f32.mrf.mxu0 }
 0x29c   : > { %v3442_v2 = vadd.f32 %v13144_v57, %v3133_v43  ;;  %v4874_v57 = vld [vmem:[#allocation2 + $0x69] sm:$0xff] }
 0x29d   : > { %10586 = vmatmul.msk.f32.gmra.mxu3 %vm1628_vm6, %v13571_v37 }
 0x29e   : > { %10552 = vmatmul.msk.f32.gmra.mxu1 %vm1628_vm6, %v4035_v10  ;;  %v3958_v53 = vpop.f32.mrf.mxu2  ;;  %v4315_v10 = vld [vmem:[#allocation2 + $0x54] sm:$0xff] }
 0x29f   : > { %v13579_v22 = vadd.f32 %v3958_v53, %v3737_v52 }
 0x2a0   : > { %v3685_v51 = vpop.f32.mrf.mxu3 }
 0x2a1   : > { %10622 = vmatmul.msk.f32.gmra.mxu0 %vm1628_vm6, %v4594_v58  ;;  %v3739_v38 = vadd.f32 %v3685_v51, %v3439_v21  ;;  %v4039_v21 = vld [vmem:[#allocation2 + $0x7b] sm:$0xff] }
 0x2a3   : > { %v3136_v62 = vpop.f32.mrf.mxu1  ;;  %10655 = vmatmul.msk.f32.gmra.mxu2 %vm1628_vm6, %v4871_v46  ;;  %v4038_v46 = vld [vmem:[#allocation2 + $0x6b] sm:$0xff]  ;;  %v13607_v27 = vpop.f32.mrf.mxu0 }
 0x2a4   : > { %v3445_v43 = vadd.f32 %v13153_v9, %v3136_v62  ;;  %v4875_v9 = vld [vmem:[#allocation2 + $0x79] sm:$0xff] }
 0x2a5   : > { %10587 = vmatmul.msk.f32.gmra.mxu3 %vm1628_vm6, %v13584_v25 }
 0x2a6   : > { %10553 = vmatmul.msk.f32.gmra.mxu1 %vm1628_vm6, %v4036_v17  ;;  %v3961_v11 = vpop.f32.mrf.mxu2  ;;  %v4596_v17 = vld [vmem:[#allocation2 + $0x78] sm:$0xff] }
 0x2a7   : > { %v13591_v1 = vadd.f32 %v3961_v11, %v3738_v0  ;;  %v4873_v0 = vld [vmem:[#allocation2 + $0x61] sm:$0xff] }
 0x2a8   : > { %v3688_v28 = vpop.f32.mrf.mxu3 }
 0x2a9   : > { %10623 = vmatmul.msk.f32.gmra.mxu0 %vm1628_vm6, %v4595_v63  ;;  %v3740_v51 = vadd.f32 %v3688_v28, %v3442_v2  ;;  %v4598_v2 = vld [vmem:[#allocation2 + $0x90] sm:$0xff] }
 0x2ab   : > { %v3139_v26 = vpop.f32.mrf.mxu1  ;;  %10656 = vmatmul.msk.f32.gmra.mxu2 %vm1628_vm6, %v4872_v13  ;;  %v4597_v13 = vld [vmem:[#allocation2 + $0x80] sm:$0xff] }
 0x2ac   : > { %v3448_v62 = vadd.f32 %v13162_v19, %v3139_v26  ;;  %v4876_v19 = vld [vmem:[#allocation2 + $0x81] sm:$0xff] }
 0x2ad   : > { %10588 = vmatmul.msk.f32.gmra.mxu3 %vm1628_vm6, %v4315_v10 }
 0x2ae   : > { %10554 = vmatmul.msk.f32.gmra.mxu1 %vm1628_vm6, %v4037_v3  ;;  %v3964_v52 = vpop.f32.mrf.mxu2 }
 0x2af   : > { %v13600_v58 = vadd.f32 %v3964_v52, %v3739_v38  ;;  %v4317_v38 = vld [vmem:[#allocation2 + $0x6c] sm:$0xff] }
 0x2b0   : > { %v3691_v47 = vpop.f32.mrf.mxu3 }
 0x2b1   : > { %10624 = vmatmul.msk.f32.gmra.mxu0 %vm1628_vm6, %v4596_v17  ;;  %v3741_v28 = vadd.f32 %v3691_v47, %v3445_v43 }
 0x2b3   : > { %v3142_v53 = vpop.f32.mrf.mxu1  ;;  %10657 = vmatmul.msk.f32.gmra.mxu2 %vm1628_vm6, %v4873_v0 }
 0x2b4   : > { %v3451_v26 = vadd.f32 %v13174_v49, %v3142_v53  ;;  %v4877_v49 = vld [vmem:[#allocation2 + $0x91] sm:$0xff] }
 0x2b5   : > { %10589 = vmatmul.msk.f32.gmra.mxu3 %vm1628_vm6, %v4316_v35  ;;  %v10718_v53 = vld [vmem:[%s15663_s3 + $0x80] sm:$0xff] }
 0x2b6   : > { %10555 = vmatmul.msk.f32.gmra.mxu1 %vm1628_vm6, %v4038_v46  ;;  %v3967_v63 = vpop.f32.mrf.mxu2  ;;  %5574 = vmatpush.msra.mxu3 %v10718_v53 }
 0x2b7   : > { %v13609_v10 = vadd.f32 %v3967_v63, %v3740_v51  ;;  %v4040_v51 = vld [vmem:[#allocation2 + $0x83] sm:$0xff] }
 0x2b8   : > { %v3694_v11 = vpop.f32.mrf.mxu3  ;;  %v4318_v63 = vld [vmem:[#allocation2 + $0x7c] sm:$0xff] }
 0x2b9   : > { %10625 = vmatmul.msk.f32.gmra.mxu0 %vm1628_vm6, %v4597_v13  ;;  %v3742_v47 = vadd.f32 %v3694_v11, %v3448_v62 }
 0x2bb   : > { %v3145_v3 = vpop.f32.mrf.mxu1  ;;  %10658 = vmatmul.msk.f32.gmra.mxu2 %vm1628_vm6, %v4874_v57 }
 0x2bd   : > { %10590 = vmatmul.msk.f32.gmra.mxu3 %vm1628_vm6, %v4317_v38 }
 0x2be   : > { %10556 = vmatmul.msk.f32.gmra.mxu1 %vm1628_vm6, %v4039_v21  ;;  %v13616_v17 = vpop.f32.mrf.mxu0  ;;  %v3970_v46 = vpop.f32.mrf.mxu2 }
 0x2bf   : > { %v13618_v0 = vadd.f32 %v3970_v46, %v3741_v28  ;;  %v4599_v28 = vld [vmem:[#allocation2 + $0x98] sm:$0xff] }
 0x2c0   : > { %v3697_v52 = vpop.f32.mrf.mxu3  ;;  %v4041_v46 = vld [vmem:[#allocation2 + $0x93] sm:$0xff] }
 0x2c1   : > { %10626 = vmatmul.msk.f32.gmra.mxu0 %vm1628_vm6, %v4598_v2  ;;  %v4319_v2 = vld [vmem:[#allocation2 + $0x84] sm:$0xff]  ;;  %v3743_v11 = vadd.f32 %v3697_v52, %v3451_v26  ;;  %v3454_v52 = vadd.f32 %v13186_v39, %v3145_v3  ;;  %v4321_v39 = vld [vmem:[#allocation2 + $0x9c] sm:$0xff] }
 0x2c2   : > { %v4878_v3 = vld [vmem:[#allocation2 + $0x99] sm:$0xff] }
 0x2c3   : > { %v3148_v35 = vpop.f32.mrf.mxu1  ;;  %10659 = vmatmul.msk.f32.gmra.mxu2 %vm1628_vm6, %v4875_v9 }
 0x2c5   : > { %10591 = vmatmul.msk.f32.gmra.mxu3 %vm1628_vm6, %v4318_v63 }
 0x2c6   : > { %10557 = vmatmul.msk.f32.gmra.mxu1 %vm1628_vm6, %v4040_v51  ;;  %v13625_v21 = vpop.f32.mrf.mxu0  ;;  %v3973_v38 = vpop.f32.mrf.mxu2 }
 0x2c7   : > { %v13627_v43 = vadd.f32 %v3973_v38, %v3742_v47  ;;  %v4600_v38 = vld [vmem:[#allocation2 + $0xa8] sm:$0xff] }
 0x2c8   : > { %v3700_v13 = vpop.f32.mrf.mxu3 }
 0x2c9   : > { %15891 = vst [vmem:[#allocation32_spill] sm:$0xff] %v13627_v43  ;;  %10627 = vmatmul.msk.f32.gmra.mxu0 %vm1628_vm6, %v4599_v28  ;;  %v4042_v28 = vld [vmem:[#allocation2 + $0x9b] sm:$0xff] }
 0x2ca   : > { %v4323_v43 = vld [vmem:[#allocation2 + $0xb4] sm:$0xff] }
 0x2cb   : > { %v3151_v57 = vpop.f32.mrf.mxu1  ;;  %10660 = vmatmul.msk.f32.gmra.mxu2 %vm1628_vm6, %v4876_v19 }
 0x2cd   : > { %10592 = vmatmul.msk.f32.gmra.mxu3 %vm1628_vm6, %v4319_v2  ;;  %v3744_v2 = vadd.f32 %v3700_v13, %v3454_v52  ;;  %v3457_v13 = vadd.f32 %v13196_v4, %v3148_v35  ;;  %v4879_v4 = vld [vmem:[#allocation2 + $0xa9] sm:$0xff]  ;;  %v3460_v35 = vadd.f32 %v13212_v18, %v3151_v57  ;;  %v3376_v57 = vadd.f32 %v13616_v17, %v13581_v16  ;;  %v4881_v16 = vld [vmem:[#allocation2 + $0xc1] sm:$0xff] }
 0x2ce   : > { %10558 = vmatmul.msk.f32.gmra.mxu1 %vm1628_vm6, %v4041_v46  ;;  %v13634_v63 = vpop.f32.mrf.mxu0  ;;  %v3976_v9 = vpop.f32.mrf.mxu2  ;;  %v4320_v46 = vld [vmem:[#allocation2 + $0x94] sm:$0xff] }
 0x2cf   : > { %v13636_v47 = vadd.f32 %v3976_v9, %v3743_v11  ;;  %v10683_v9 = vld [vmem:[%s15663_s3 + $0x70] sm:$0xff] }
 0x2d0   : > { %v3703_v51 = vpop.f32.mrf.mxu3  ;;  %5295 = vmatpush.msra.mxu1 %v10683_v9 }
 0x2d1   : > { %15892 = vst [vmem:[#allocation38_spill] sm:$0xff] %v13636_v47  ;;  %10628 = vmatmul.msk.f32.gmra.mxu0 %vm1628_vm6, %v4600_v38  ;;  %v4043_v47 = vld [vmem:[#allocation2 + $0xab] sm:$0xff] }
 0x2d3   : > { %v3154_v62 = vpop.f32.mrf.mxu1  ;;  %10661 = vmatmul.msk.f32.gmra.mxu2 %vm1628_vm6, %v4877_v49  ;;  %v3745_v49 = vadd.f32 %v3703_v51, %v3457_v13 }
 0x2d4   : > { %v3463_v18 = vadd.f32 %v13226_v60, %v3154_v62  ;;  %v3379_v62 = vadd.f32 %v13625_v21, %v13596_v41  ;;  %v4882_v41 = vld [vmem:[#allocation2 + $0xc9] sm:$0xff] }
 0x2d5   : > { %10593 = vmatmul.msk.f32.gmra.mxu3 %vm1628_vm6, %v4320_v46  ;;  %v4601_v46 = vld [vmem:[#allocation2 + $0xb0] sm:$0xff] }
 0x2d6   : > { %10559 = vmatmul.msk.f32.gmra.mxu1 %vm1628_vm6, %v4042_v28  ;;  %v3622_v26 = vpop.f32.mrf.mxu0  ;;  %v3979_v11 = vpop.f32.mrf.mxu2 }
 0x2d7   : > { %v13649_v28 = vadd.f32 %v3979_v11, %v3744_v2 }
 0x2d8   : > { %v3706_v19 = vpop.f32.mrf.mxu3 }
 0x2d9   : > { %15893 = vst [vmem:[#allocation53_spill] sm:$0xff] %v13649_v28  ;;  %10629 = vmatmul.msk.f32.gmra.mxu0 %vm1628_vm6, %v4601_v46  ;;  %v4602_v46 = vld [vmem:[#allocation2 + $0xc0] sm:$0xff]  ;;  %v4044_v28 = vld [vmem:[#allocation2 + $0xb3] sm:$0xff]  ;;  %v3746_v51 = vadd.f32 %v3706_v19, %v3460_v35 }
 0x2db   : > { %v3157_v38 = vpop.f32.mrf.mxu1  ;;  %10662 = vmatmul.msk.f32.gmra.mxu2 %vm1628_vm6, %v4878_v3 }
 0x2dc   : > { %v3466_v17 = vadd.f32 %v13241_v42, %v3157_v38  ;;  %v4047_v42 = vld [vmem:[#allocation2 + $0xdb] sm:$0xff]  ;;  %v4325_v38 = vld [vmem:[#allocation2 + $0xcc] sm:$0xff] }
 0x2dd   : > { %10594 = vmatmul.msk.f32.gmra.mxu3 %vm1628_vm6, %v4321_v39 }
 0x2de   : > { %10560 = vmatmul.msk.f32.gmra.mxu1 %vm1628_vm6, %v4043_v47  ;;  %v3625_v52 = vpop.f32.mrf.mxu0  ;;  %v3982_v2 = vpop.f32.mrf.mxu2  ;;  %v4322_v47 = vld [vmem:[#allocation2 + $0xac] sm:$0xff] }
 0x2df   : > { %v13658_v9 = vadd.f32 %v3982_v2, %v3745_v49 }
 0x2e0   : > { %v3709_v53 = vpop.f32.mrf.mxu3 }
 0x2e1   : > { %15894 = vst [vmem:[#allocation43_spill] sm:$0xff] %v13658_v9  ;;  %10630 = vmatmul.msk.f32.gmra.mxu0 %vm1628_vm6, %v4602_v46  ;;  %v4603_v9 = vld [vmem:[#allocation2 + $0xc8] sm:$0xff]  ;;  %v3747_v19 = vadd.f32 %v3709_v53, %v3463_v18 }
 0x2e2   : > { %v4045_v46 = vld [vmem:[#allocation2 + $0xc3] sm:$0xff] }
 0x2e3   : > { %v13656_v11 = vpop.f32.mrf.mxu1  ;;  %10663 = vmatmul.msk.f32.gmra.mxu2 %vm1628_vm6, %v4879_v4  ;;  %v3718_v4 = vadd.f32 %v3622_v26, %v3376_v57 }
 0x2e4   : > { %v3469_v21 = vadd.f32 %v13248_v33, %v13656_v11  ;;  %v4048_v33 = vld [vmem:[#allocation2 + $0xe3] sm:$0xff] }
 0x2e5   : > { %10595 = vmatmul.msk.f32.gmra.mxu3 %vm1628_vm6, %v4322_v47  ;;  %v3997_v60 = vadd.f32 %v13258_v29, %v3718_v4  ;;  %v4326_v11 = vld [vmem:[#allocation2 + $0xdc] sm:$0xff] }
 0x2e6   : > { %10561 = vmatmul.msk.f32.gmra.mxu1 %vm1628_vm6, %v4044_v28  ;;  %v3628_v3 = vpop.f32.mrf.mxu0  ;;  %v3985_v13 = vpop.f32.mrf.mxu2  ;;  %v4880_v28 = vld [vmem:[#allocation2 + $0xb1] sm:$0xff] }
 0x2e7   : > { %v13665_v2 = vadd.f32 %v3985_v13, %v3746_v51 }
 0x2e8   : > { %v3712_v39 = vpop.f32.mrf.mxu3 }
 0x2e9   : > { %15895 = vst [vmem:[#allocation46_spill] sm:$0xff] %v13665_v2  ;;  %10631 = vmatmul.msk.f32.gmra.mxu0 %vm1628_vm6, %v4603_v9  ;;  %v4604_v2 = vld [vmem:[#allocation2 + $0xd8] sm:$0xff]  ;;  %v3748_v53 = vadd.f32 %v3712_v39, %v3466_v17 }
 0x2eb   : > { %v4180_v49 = vpop.f32.mrf.mxu1  ;;  %10664 = vmatmul.msk.f32.gmra.mxu2 %vm1628_vm6, %v4880_v28 }
 0x2ec   : > { %v4276_v26 = vadd.f32 %v4180_v49, %v3997_v60 }
 0x2ed   : > { %10596 = vmatmul.msk.f32.gmra.mxu3 %vm1628_vm6, %v4323_v43  ;;  %v4046_v43 = vld [vmem:[#allocation2 + $0xcb] sm:$0xff] }
 0x2ee   : > { %10562 = vmatmul.msk.f32.gmra.mxu1 %vm1628_vm6, %v4045_v46  ;;  %v4739_v35 = vpop.f32.mrf.mxu0  ;;  %v3988_v51 = vpop.f32.mrf.mxu2  ;;  %v4324_v46 = vld [vmem:[#allocation2 + $0xc4] sm:$0xff] }
 0x2ef   : > { %v13674_v13 = vadd.f32 %v3988_v51, %v3747_v19  ;;  %v4605_v51 = vld [vmem:[#allocation2 + $0xe0] sm:$0xff] }
 0x2f0   : > { %v3715_v47 = vpop.f32.mrf.mxu3 }
 0x2f1   : > { %10632 = vmatmul.msk.f32.gmra.mxu0 %vm1628_vm6, %v4604_v2  ;;  %v3719_v2 = vadd.f32 %v3625_v52, %v3379_v62  ;;  %v3382_v52 = vadd.f32 %v13634_v63, %v13607_v27  ;;  %v3749_v49 = vadd.f32 %v3715_v47, %v3469_v21  ;;  %v4883_v27 = vld [vmem:[#allocation2 + $0xd9] sm:$0xff]  ;;  %v15896_v47 = vld [vmem:[#allocation48_spill] sm:$0xff] }
 0x2f2   : > { %v4049_v21 = vld [vmem:[#allocation2 + $0xf3] sm:$0xff] }
 0x2f3   : > { %v4183_v9 = vpop.f32.mrf.mxu1  ;;  %10665 = vmatmul.msk.f32.gmra.mxu2 %vm1628_vm6, %v4881_v16  ;;  %v3720_v60 = vadd.f32 %v3628_v3, %v3382_v52  ;;  %v4327_v52 = vld [vmem:[#allocation2 + $0xe4] sm:$0xff] }
 0x2f5   : > { %10597 = vmatmul.msk.f32.gmra.mxu3 %vm1628_vm6, %v4324_v46  ;;  %v3998_v46 = vadd.f32 %v13269_v50, %v3719_v2  ;;  %v3999_v2 = vadd.f32 %v13278_v61, %v3720_v60 }
 0x2f6   : > { %10563 = vmatmul.msk.f32.gmra.mxu1 %vm1628_vm6, %v4046_v43  ;;  %v4742_v57 = vpop.f32.mrf.mxu0  ;;  %v3991_v19 = vpop.f32.mrf.mxu2 }
 0x2f7   : > { %v13684_v4 = vadd.f32 %v3991_v19, %v3748_v53  ;;  %v4277_v39 = vadd.f32 %v4183_v9, %v3998_v46  ;;  %v4606_v53 = vld [vmem:[#allocation2 + $0xf0] sm:$0xff]  ;;  %v3385_v9 = vadd.f32 %v15896_v47, %v13250_v31  ;;  %v4607_v46 = vld [vmem:[#allocation2 + $0xf8] sm:$0xff]  ;;  %v4884_v31 = vld [vmem:[#allocation2 + $0xe1] sm:$0xff] }
 0x2f8   : > { %v4459_v28 = vpop.f32.mrf.mxu3 }
 0x2f9   : > { %v4555_v18 = vadd.f32 %v4459_v28, %v4276_v26  ;;  %10633 = vmatmul.msk.f32.gmra.mxu0 %vm1628_vm6, %v4605_v51 }
 0x2fb   : > { %v4186_v29 = vpop.f32.mrf.mxu1  ;;  %v4835_v43 = vadd.f32 %v4739_v35, %v4555_v18  ;;  %10666 = vmatmul.msk.f32.gmra.mxu2 %vm1628_vm6, %v4882_v41 }
 0x2fc   : > { %v4278_v63 = vadd.f32 %v4186_v29, %v3999_v2  ;;  %v4328_v2 = vld [vmem:[#allocation2 + $0xf4] sm:$0xff] }
 0x2fd   : > { %10598 = vmatmul.msk.f32.gmra.mxu3 %vm1628_vm6, %v4325_v38  ;;  %v15897_v38 = vld [vmem:[#allocation33_spill] sm:$0xff] }
 0x2fe   : > { %10564 = vmatmul.msk.f32.gmra.mxu1 %vm1628_vm6, %v4047_v42  ;;  %v4745_v17 = vpop.f32.mrf.mxu0  ;;  %v3994_v50 = vpop.f32.mrf.mxu2  ;;  %v3721_v61 = vadd.f32 %v15897_v38, %v3385_v9 }
 0x2ff   : > { %v13695_v26 = vadd.f32 %v3994_v50, %v3749_v49 }
 0x300   : > { %v4462_v35 = vpop.f32.mrf.mxu3 }
 0x301   : > { %v4556_v16 = vadd.f32 %v4462_v35, %v4277_v39  ;;  %10634 = vmatmul.msk.f32.gmra.mxu0 %vm1628_vm6, %v4606_v53  ;;  %v15898_v39 = vld [vmem:[#allocation39_spill] sm:$0xff] }
 0x302   : > { %v4000_v29 = vadd.f32 %v15898_v39, %v3721_v61  ;;  %v4608_v53 = vld [vmem:[#allocation2 + $0x108] sm:$0xff] }
 0x303   : > { %v4189_v62 = vpop.f32.mrf.mxu1  ;;  %v4836_v28 = vadd.f32 %v4742_v57, %v4556_v16  ;;  %10667 = vmatmul.msk.f32.gmra.mxu2 %vm1628_vm6, %v4883_v27  ;;  %v4885_v27 = vld [vmem:[#allocation2 + $0xf1] sm:$0xff] }
 0x304   : > { %v4279_v49 = vadd.f32 %v4189_v62, %v4000_v29  ;;  %v15899_v62 = vld [vmem:[#allocation41_spill] sm:$0xff]  ;;  %v4051_v61 = vld [vmem:[#allocation2 + $0x10b] sm:$0xff] }
 0x305   : > { %10599 = vmatmul.msk.f32.gmra.mxu3 %vm1628_vm6, %v4326_v11  ;;  %v4050_v11 = vld [vmem:[#allocation2 + $0xfb] sm:$0xff] }
 0x306   : > { %10565 = vmatmul.msk.f32.gmra.mxu1 %vm1628_vm6, %v4048_v33  ;;  %v4748_v57 = vpop.f32.mrf.mxu0  ;;  %v5018_v19 = vpop.f32.mrf.mxu2 }
 0x307   : > { %v13704_v42 = vadd.f32 %v5018_v19, %v4835_v43 }
 0x308   : > { %v4465_v3 = vpop.f32.mrf.mxu3 }
 0x309   : > { %v4557_v18 = vadd.f32 %v4465_v3, %v4278_v63  ;;  %10635 = vmatmul.msk.f32.gmra.mxu0 %vm1628_vm6, %v4607_v46  ;;  %v4329_v46 = vld [vmem:[#allocation2 + $0xfc] sm:$0xff] }
 0x30b   : > { %v4192_v51 = vpop.f32.mrf.mxu1  ;;  %v4837_v41 = vadd.f32 %v4745_v17, %v4557_v18  ;;  %10668 = vmatmul.msk.f32.gmra.mxu2 %vm1628_vm6, %v4884_v31 }
 0x30c   : > { %v4280_v63 = vadd.f32 %v4192_v51, %v15899_v62  ;;  %v15900_v51 = vld [vmem:[#allocation51_spill] sm:$0xff] }
 0x30d   : > { %10600 = vmatmul.msk.f32.gmra.mxu3 %vm1628_vm6, %v4327_v52 }
 0x30e   : > { %10566 = vmatmul.msk.f32.gmra.mxu1 %vm1628_vm6, %v4049_v21  ;;  %v4751_v60 = vpop.f32.mrf.mxu0  ;;  %v5021_v16 = vpop.f32.mrf.mxu2  ;;  %v4886_v21 = vld [vmem:[#allocation2 + $0xf9] sm:$0xff] }
 0x30f   : > { %v13712_v17 = vadd.f32 %v5021_v16, %v4836_v28  ;;  %v4052_v16 = vld [vmem:[#allocation2 + $0x113] sm:$0xff] }
 0x310   : > { %v4468_v43 = vpop.f32.mrf.mxu3 }
 0x311   : > { %v4558_v35 = vadd.f32 %v4468_v43, %v4279_v49  ;;  %10636 = vmatmul.msk.f32.gmra.mxu0 %vm1628_vm6, %v4608_v53  ;;  %v4330_v53 = vld [vmem:[#allocation2 + $0x10c] sm:$0xff] }
 0x313   : > { %v4195_v50 = vpop.f32.mrf.mxu1  ;;  %v4838_v33 = vadd.f32 %v4748_v57, %v4558_v35  ;;  %10669 = vmatmul.msk.f32.gmra.mxu2 %vm1628_vm6, %v4885_v27  ;;  %v4609_v57 = vld [vmem:[#allocation2 + $0x110] sm:$0xff]  ;;  %v4610_v35 = vld [vmem:[#allocation2 + $0x120] sm:$0xff] }
 0x314   : > { %v4281_v52 = vadd.f32 %v4195_v50, %v15900_v51 }
 0x315   : > { %10601 = vmatmul.msk.f32.gmra.mxu3 %vm1628_vm6, %v4328_v2 }
 0x316   : > { %10567 = vmatmul.msk.f32.gmra.mxu1 %vm1628_vm6, %v4050_v11  ;;  %v4754_v9 = vpop.f32.mrf.mxu0  ;;  %v5024_v28 = vpop.f32.mrf.mxu2  ;;  %v4887_v11 = vld [vmem:[#allocation2 + $0x109] sm:$0xff] }
 0x317   : > { %v13719_v19 = vadd.f32 %v5024_v28, %v4837_v41  ;;  %v4053_v28 = vld [vmem:[#allocation2 + $0x123] sm:$0xff] }
 0x318   : > { %v4471_v3 = vpop.f32.mrf.mxu3 }
 0x319   : > { %v4559_v47 = vadd.f32 %v4471_v3, %v4280_v63  ;;  %10637 = vmatmul.msk.f32.gmra.mxu0 %vm1628_vm6, %v4609_v57  ;;  %v4331_v57 = vld [vmem:[#allocation2 + $0x114] sm:$0xff] }
 0x31b   : > { %v4198_v18 = vpop.f32.mrf.mxu1  ;;  %v4839_v38 = vadd.f32 %v4751_v60, %v4559_v47  ;;  %10670 = vmatmul.msk.f32.gmra.mxu2 %vm1628_vm6, %v4886_v21  ;;  %v4611_v47 = vld [vmem:[#allocation2 + $0x128] sm:$0xff] }
 0x31c   : > { %v4282_v50 = vadd.f32 %v4198_v18, %v13366_v54 }
 0x31d   : > { %10602 = vmatmul.msk.f32.gmra.mxu3 %vm1628_vm6, %v4329_v46 }
 0x31e   : > { %10568 = vmatmul.msk.f32.gmra.mxu1 %vm1628_vm6, %v4051_v61  ;;  %v4757_v31 = vpop.f32.mrf.mxu0  ;;  %v5027_v41 = vpop.f32.mrf.mxu2  ;;  %v4888_v61 = vld [vmem:[#allocation2 + $0x111] sm:$0xff] }
 0x31f   : > { %v13726_v43 = vadd.f32 %v5027_v41, %v4838_v33  ;;  %v4332_v41 = vld [vmem:[#allocation2 + $0x124] sm:$0xff] }
 0x320   : > { %v4474_v39 = vpop.f32.mrf.mxu3 }
 0x321   : > { %v4560_v29 = vadd.f32 %v4474_v39, %v4281_v52  ;;  %10638 = vmatmul.msk.f32.gmra.mxu0 %vm1628_vm6, %v4610_v35  ;;  %v4612_v39 = vld [vmem:[#allocation2 + $0x138] sm:$0xff]  ;;  %v4889_v35 = vld [vmem:[#allocation2 + $0x121] sm:$0xff] }
 0x323   : > { %v4201_v49 = vpop.f32.mrf.mxu1  ;;  %v4840_v60 = vadd.f32 %v4754_v9, %v4560_v29  ;;  %10671 = vmatmul.msk.f32.gmra.mxu2 %vm1628_vm6, %v4887_v11 }
 0x324   : > { %v4283_v54 = vadd.f32 %v4201_v49, %v13389_v20 }
 0x325   : > { %10603 = vmatmul.msk.f32.gmra.mxu3 %vm1628_vm6, %v4330_v53 }
 0x326   : > { %10569 = vmatmul.msk.f32.gmra.mxu1 %vm1628_vm6, %v4052_v16  ;;  %v4760_v62 = vpop.f32.mrf.mxu0  ;;  %v5030_v33 = vpop.f32.mrf.mxu2 }
 0x327   : > { %v13733_v3 = vadd.f32 %v5030_v33, %v4839_v38  ;;  %v4333_v33 = vld [vmem:[#allocation2 + $0x12c] sm:$0xff] }
 0x328   : > { %v4477_v2 = vpop.f32.mrf.mxu3 }
 0x329   : > { %v4561_v27 = vadd.f32 %v4477_v2, %v4282_v50  ;;  %10639 = vmatmul.msk.f32.gmra.mxu0 %vm1628_vm6, %v4611_v47  ;;  %v4613_v2 = vld [vmem:[#allocation2 + $0x140] sm:$0xff]  ;;  %v1144_v47 = vrot.slane %v13465_v6, 4  ;;  %v4614_v6 = vld [vmem:[#allocation2 + $0x150] sm:$0xff] }
 0x32b   : > { %v4204_v63 = vpop.f32.mrf.mxu1  ;;  %v4841_v9 = vadd.f32 %v4757_v31, %v4561_v27  ;;  %10672 = vmatmul.msk.f32.gmra.mxu2 %vm1628_vm6, %v4888_v61  ;;  %v4054_v31 = vld [vmem:[#allocation2 + $0x12b] sm:$0xff] }
 0x32c   : > { %v4284_v20 = vadd.f32 %v4204_v63, %v13416_v23  ;;  %v4890_v23 = vld [vmem:[#allocation2 + $0x129] sm:$0xff] }
 0x32d   : > { %10604 = vmatmul.msk.f32.gmra.mxu3 %vm1628_vm6, %v4331_v57 }
 0x32e   : > { %10570 = vmatmul.msk.f32.gmra.mxu1 %vm1628_vm6, %v4053_v28  ;;  %v4763_v21 = vpop.f32.mrf.mxu0  ;;  %v5033_v38 = vpop.f32.mrf.mxu2 }
 0x32f   : > { %v13740_v52 = vadd.f32 %v5033_v38, %v4840_v60 }
 0x330   : > { %v4480_v18 = vpop.f32.mrf.mxu3 }
 0x331   : > { %v4562_v46 = vadd.f32 %v4480_v18, %v4283_v54  ;;  %10640 = vmatmul.msk.f32.gmra.mxu0 %vm1628_vm6, %v4612_v39  ;;  %v1289_v18 = vmax.f32 %v13512_v15, 0.0  ;;  %v1541_v39 = vld.sshfl [vmem:[#allocation1] sm:$0xff pattern:$0x75316420] }
 0x332   : > { %1678 = vst.msk [vmem:[#allocation2 + $0x180] sm:$0xff] %vm1628_vm6, %v1541_v39 }
 0x333   : > { %v4207_v51 = vpop.f32.mrf.mxu1  ;;  %v4842_v29 = vadd.f32 %v4760_v62, %v4562_v46  ;;  %10673 = vmatmul.msk.f32.gmra.mxu2 %vm1628_vm6, %v4889_v35  ;;  %v4055_v62 = vld [vmem:[#allocation2 + $0x13b] sm:$0xff]  ;;  %1548 = vst [vmem:[#allocation1 + $0x1] ss:$2 sm:$0xff] %v1289_v18 }
 0x334   : > { %v4285_v63 = vadd.f32 %v4207_v51, %v13432_v45  ;;  %v4891_v45 = vld [vmem:[#allocation2 + $0x139] sm:$0xff] }
 0x335   : > { %10605 = vmatmul.msk.f32.gmra.mxu3 %vm1628_vm6, %v4332_v41  ;;  %v4334_v41 = vld [vmem:[#allocation2 + $0x13c] sm:$0xff] }
 0x336   : > { %10571 = vmatmul.msk.f32.gmra.mxu1 %vm1628_vm6, %v4054_v31  ;;  %v4766_v53 = vpop.f32.mrf.mxu0  ;;  %v5036_v60 = vpop.f32.mrf.mxu2  ;;  %v4056_v31 = vld [vmem:[#allocation2 + $0x143] sm:$0xff]  ;;  %v4058_v18 = vld [vmem:[#allocation2 + $0x15b] sm:$0xff] }
 0x337   : > { %v13747_v50 = vadd.f32 %v5036_v60, %v4841_v9  ;;  %v1288_v9 = vmax.f32 %v1144_v47, 0.0 }
 0x338   : > { %v4483_v49 = vpop.f32.mrf.mxu3 }
 0x339   : > { %v4563_v16 = vadd.f32 %v4483_v49, %v4284_v20  ;;  %10641 = vmatmul.msk.f32.gmra.mxu0 %vm1628_vm6, %v4613_v2  ;;  %1547 = vst [vmem:[#allocation1] ss:$2 sm:$0xff] %v1288_v9  ;;  %v4057_v2 = vld [vmem:[#allocation2 + $0x153] sm:$0xff] }
 0x33b   : > { %v4210_v11 = vpop.f32.mrf.mxu1  ;;  %v4843_v27 = vadd.f32 %v4763_v21, %v4563_v16  ;;  %10674 = vmatmul.msk.f32.gmra.mxu2 %vm1628_vm6, %v4890_v23 }
 0x33c   : > { %v4286_v15 = vadd.f32 %v4210_v11, %v13444_v34  ;;  %v4892_v34 = vld [vmem:[#allocation2 + $0x141] sm:$0xff] }
 0x33d   : > { %10606 = vmatmul.msk.f32.gmra.mxu3 %vm1628_vm6, %v4333_v33 }
 0x33e   : > { %10572 = vmatmul.msk.f32.gmra.mxu1 %vm1628_vm6, %v4055_v62  ;;  %v4769_v61 = vpop.f32.mrf.mxu0  ;;  %v5039_v54 = vpop.f32.mrf.mxu2  ;;  %v13767_v62 = vld [vmem:[#allocation2 + $0x144] sm:$0xff] }
 0x33f   : > { %v13756_v21 = vadd.f32 %v5039_v54, %v4842_v29  ;;  %v10753_v54 = vld [vmem:[%s15663_s3 + $0x90] sm:$0xff] }
 0x340   : > { %v4486_v28 = vpop.f32.mrf.mxu3 }
 0x341   : > { %v4564_v57 = vadd.f32 %v4486_v28, %v4285_v63  ;;  %10642 = vmatmul.msk.f32.gmra.mxu0 %vm1628_vm6, %v4614_v6  ;;  %v10754_v63 = vld [vmem:[%s15663_s3 + $0x98] sm:$0x3]  ;;  %v10789_v28 = vld [vmem:[%s15663_s3 + $0xa8] sm:$0x3] }
 0x342   : > { %10755 = vmatpush.msk.msrb.mxu0 %vm1867_vm3, %v10754_v63  ;;  %10790 = vmatpush.msk.msrb.mxu2 %vm1867_vm3, %v10789_v28  ;;  %v4893_v6 = vld [vmem:[#allocation2 + $0x151] sm:$0xff] }
 0x343   : > { %v4213_v46 = vpop.f32.mrf.mxu1  ;;  %v4844_v38 = vadd.f32 %v4766_v53, %v4564_v57  ;;  %10675 = vmatmul.msk.f32.gmra.mxu2 %vm1628_vm6, %v4891_v45  ;;  %v4615_v53 = vld [vmem:[#allocation2 + $0x158] sm:$0xff] }
 0x344   : > { %v4287_v11 = vadd.f32 %v4213_v46, %v13462_v12  ;;  %v4616_v12 = vld [vmem:[#allocation2 + $0x168] sm:$0xff]  ;;  %v13788_v46 = vld [vmem:[#allocation2 + $0x154] sm:$0xff]  ;;  %5853 = vmatpush.msrb.mxu0 %v10753_v54 }
 0x345   : > { %10607 = vmatmul.msk.f32.gmra.mxu3 %vm1628_vm6, %v4334_v41  ;;  %v13816_v54 = vld [vmem:[#allocation2 + $0x16c] sm:$0xff] }
 0x346   : > { %10573 = vmatmul.msk.f32.gmra.mxu1 %vm1628_vm6, %v4056_v31  ;;  %v4772_v35 = vpop.f32.mrf.mxu0  ;;  %v5042_v20 = vpop.f32.mrf.mxu2 }
 0x347   : > { %v13764_v16 = vadd.f32 %v5042_v20, %v4843_v27  ;;  %v4617_v20 = vld [vmem:[#allocation2 + $0x170] sm:$0xff] }
 0x348   : > { %v4489_v51 = vpop.f32.mrf.mxu3 }
 0x349   : > { %v4565_v29 = vadd.f32 %v4489_v51, %v4286_v15  ;;  %10643 = vmatmul.msk.f32.gmra.mxu0 %vm1628_vm6, %v4615_v53  ;;  %v10824_v51 = vld [vmem:[%s15663_s3 + $0xb8] sm:$0x3] }
 0x34a   : > { %10825 = vmatpush.msk.msrb.mxu1 %vm1867_vm3, %v10824_v51  ;;  %v5146_v51 = vld [vmem:[#allocation2 + $0x1a] sm:$0xff] }
 0x34b   : > { %v4216_v49 = vpop.f32.mrf.mxu1  ;;  %v4845_v60 = vadd.f32 %v4769_v61, %v4565_v29  ;;  %10676 = vmatmul.msk.f32.gmra.mxu2 %vm1628_vm6, %v4892_v34 }
 0x34c   : > { %v4288_v39 = vadd.f32 %v4216_v49, %v13486_v32  ;;  %v4059_v32 = vld [vmem:[#allocation2 + $0x16b] sm:$0xff]  ;;  %v13806_v49 = vld [vmem:[#allocation2 + $0x15c] sm:$0xff] }
 0x34d   : > { %10608 = vmatmul.msk.f32.gmra.mxu3 %vm1628_vm6, %v13767_v62 }
 0x34e   : > { %10574 = vmatmul.msk.f32.gmra.mxu1 %vm1628_vm6, %v4057_v2  ;;  %v4775_v47 = vpop.f32.mrf.mxu0  ;;  %v5045_v23 = vpop.f32.mrf.mxu2  ;;  %v4894_v2 = vld [vmem:[#allocation2 + $0x159] sm:$0xff] }
 0x34f   : > { %v13780_v57 = vadd.f32 %v5045_v23, %v4844_v38  ;;  %v10859_v38 = vld [vmem:[%s15663_s3 + $0xc8] sm:$0x3] }
 0x350   : > { %v4492_v33 = vpop.f32.mrf.mxu3  ;;  %10860 = vmatpush.msk.msrb.mxu3 %vm1867_vm3, %v10859_v38  ;;  %v4619_v38 = vld [vmem:[#allocation2 + $0x188] sm:$0xff] }
 0x351   : > { %v4566_v27 = vadd.f32 %v4492_v33, %v4287_v11  ;;  %10644 = vmatmul.msk.f32.gmra.mxu0 %vm1628_vm6, %v4616_v12  ;;  %v4060_v12 = vld [vmem:[#allocation2 + $0x173] sm:$0xff] }
 0x353   : > { %v4219_v9 = vpop.f32.mrf.mxu1  ;;  %v4846_v61 = vadd.f32 %v4772_v35, %v4566_v27  ;;  %10677 = vmatmul.msk.f32.gmra.mxu2 %vm1628_vm6, %v4893_v6  ;;  %v4618_v27 = vld [vmem:[#allocation2 + $0x180] sm:$0xff] }
 0x355   : > { %10609 = vmatmul.msk.f32.gmra.mxu3 %vm1628_vm6, %v13788_v46 }
 0x356   : > { %10575 = vmatmul.msk.f32.gmra.mxu1 %vm1628_vm6, %v4058_v18  ;;  %v4778_v45 = vpop.f32.mrf.mxu0  ;;  %v5048_v15 = vpop.f32.mrf.mxu2 }
 0x357   : > { %v13802_v35 = vadd.f32 %v5048_v15, %v4845_v60  ;;  %v4289_v60 = vadd.f32 %v4219_v9, %v13497_v48  ;;  %v4895_v48 = vld [vmem:[#allocation2 + $0x169] sm:$0xff]  ;;  %v13826_v15 = vld [vmem:[#allocation2 + $0x174] sm:$0xff] }
 0x358   : > { %v4495_v31 = vpop.f32.mrf.mxu3 }
 0x359   : > { %v4567_v41 = vadd.f32 %v4495_v31, %v4288_v39  ;;  %10645 = vmatmul.msk.f32.gmra.mxu0 %vm1628_vm6, %v4617_v20  ;;  %v10788_v20 = vld [vmem:[%s15663_s3 + $0xa0] sm:$0xff] }
 0x35a   : > { %6133 = vmatpush.msrb.mxu2 %v10788_v20 }
 0x35b   : > { %v4222_v29 = vpop.f32.mrf.mxu1  ;;  %v4847_v53 = vadd.f32 %v4775_v47, %v4567_v41  ;;  %10678 = vmatmul.msk.f32.gmra.mxu2 %vm1628_vm6, %v4894_v2 }
 0x35c   : > { %v4290_v9 = vadd.f32 %v4222_v29, %v13514_v56  ;;  %v4896_v56 = vld [vmem:[#allocation2 + $0x171] sm:$0xff] }
 0x35d   : > { %10610 = vmatmul.msk.f32.gmra.mxu3 %vm1628_vm6, %v13806_v49 }
 0x35e   : > { %10576 = vmatmul.msk.f32.gmra.mxu1 %vm1628_vm6, %v4059_v32  ;;  %v4781_v33 = vpop.f32.mrf.mxu0  ;;  %v5051_v47 = vpop.f32.mrf.mxu2 }
 0x35f   : > { %v13813_v63 = vadd.f32 %v5051_v47, %v4846_v61  ;;  %v5425_v47 = vld [vmem:[#allocation2 + $0x1b] sm:$0xff] }
 0x360   : > { %v4498_v34 = vpop.f32.mrf.mxu3 }
 0x361   : > { %v4568_v11 = vadd.f32 %v4498_v34, %v4289_v60  ;;  %10646 = vmatmul.msk.f32.gmra.mxu0 %vm1628_vm6, %v4618_v27  ;;  %v5147_v27 = vld [vmem:[#allocation2 + $0x22] sm:$0xff] }
 0x363   : > { %v4225_v23 = vpop.f32.mrf.mxu1  ;;  %v4848_v28 = vadd.f32 %v4778_v45, %v4568_v11  ;;  %10679 = vmatmul.msk.f32.gmra.mxu2 %vm1628_vm6, %v4895_v48 }
 0x364   : > { %v4291_v29 = vadd.f32 %v4225_v23, %v13527_v36 }
 0x365   : > { %10611 = vmatmul.msk.f32.gmra.mxu3 %vm1628_vm6, %v13816_v54 }
 0x366   : > { %10577 = vmatmul.msk.f32.gmra.mxu1 %vm1628_vm6, %v4060_v12  ;;  %v4784_v61 = vpop.f32.mrf.mxu0  ;;  %v5054_v39 = vpop.f32.mrf.mxu2  ;;  %v4897_v12 = vld [vmem:[#allocation2 + $0x181] sm:$0xff] }
 0x367   : > { %v13823_v41 = vadd.f32 %v5054_v39, %v4847_v53  ;;  %v4898_v39 = vld [vmem:[#allocation2 + $0x189] sm:$0xff] }
 0x368   : > { %v4501_v18 = vpop.f32.mrf.mxu3 }
 0x369   : > { %v4569_v6 = vadd.f32 %v4501_v18, %v4290_v9  ;;  %10647 = vmatmul.msk.f32.gmra.mxu0 %vm1628_vm6, %v4619_v38  ;;  %v5426_v38 = vld [vmem:[#allocation2 + $0x23] sm:$0xff] }
 0x36b   : > { %v4228_v31 = vpop.f32.mrf.mxu1  ;;  %v4849_v45 = vadd.f32 %v4781_v33, %v4569_v6  ;;  %10680 = vmatmul.msk.f32.gmra.mxu2 %vm1628_vm6, %v4896_v56 }
 0x36c   : > { %v4292_v36 = vadd.f32 %v4228_v31, %v13541_v24 }
 0x36d   : > { %10612 = vmatmul.msk.f32.gmra.mxu3 %vm1628_vm6, %v13826_v15 }
 0x36e   : > { %10686 = vmatmul.msk.f32.vlgmr.msra.gmra.mxu1 %vm1628_vm6, %v5146_v51  ;;  %v4787_v2 = vpop.f32.mrf.mxu0  ;;  %v5057_v60 = vpop.f32.mrf.mxu2 }
 0x36f   : > { %v13836_v11 = vadd.f32 %v5057_v60, %v4848_v28 }
 0x370   : > { %v4504_v53 = vpop.f32.mrf.mxu3 }
 0x371   : > { %v4570_v32 = vadd.f32 %v4504_v53, %v4291_v29  ;;  %10756 = vmatmul.msk.f32.vlgmr.msrb.gmra.mxu0 %vm1628_vm6, %v13531_v8  ;;  %v5148_v8 = vld [vmem:[#allocation2 + $0x32] sm:$0xff] }
 0x373   : > { %v4231_v34 = vpop.f32.mrf.mxu1  ;;  %v4850_v33 = vadd.f32 %v4784_v61, %v4570_v32  ;;  %10681 = vmatmul.msk.f32.gmra.mxu2 %vm1628_vm6, %v4897_v12  ;;  %v13856_v32 = vld [vmem:[#allocation2 + $0x33] sm:$0xff] }
 0x374   : > { %v4293_v24 = vadd.f32 %v4231_v34, %v13555_v7  ;;  %v5984_v7 = vld [vmem:[#allocation2 + $0x30] sm:$0xff] }
 0x375   : > { %10721 = vmatmul.msk.f32.vlgmr.msra.gmra.mxu3 %vm1628_vm6, %v5425_v47 }
 0x376   : > { %10687 = vmatmul.msk.f32.gmra.mxu1 %vm1628_vm6, %v5147_v27  ;;  %v4790_v9 = vpop.f32.mrf.mxu0  ;;  %v5060_v28 = vpop.f32.mrf.mxu2 }
 0x377   : > { %v13844_v6 = vadd.f32 %v5060_v28, %v4849_v45 }
 0x378   : > { %v4507_v23 = vpop.f32.mrf.mxu3 }
 0x379   : > { %v4571_v48 = vadd.f32 %v4507_v23, %v4292_v36  ;;  %10757 = vmatmul.msk.f32.gmra.mxu0 %vm1628_vm6, %v13544_v14  ;;  %v5149_v14 = vld [vmem:[#allocation2 + $0x3a] sm:$0xff]  ;;  %v5150_v36 = vld [vmem:[#allocation2 + $0x4a] sm:$0xff] }
 0x37a   : > { %v13867_v23 = vld [vmem:[#allocation2 + $0x3b] sm:$0xff] }
 0x37b   : > { %v4234_v18 = vpop.f32.mrf.mxu1  ;;  %v4851_v61 = vadd.f32 %v4787_v2, %v4571_v48  ;;  %10682 = vmatmul.msk.f32.gmra.mxu2 %vm1628_vm6, %v4898_v39  ;;  %v15901_v48 = vld [vmem:[#allocation36_spill] sm:$0xff] }
 0x37c   : > { %v4294_v2 = vadd.f32 %v4234_v18, %v13568_v44  ;;  %v5985_v44 = vld [vmem:[#allocation2 + $0x38] sm:$0xff] }
 0x37d   : > { %10722 = vmatmul.msk.f32.gmra.mxu3 %vm1628_vm6, %v5426_v38 }
 0x37e   : > { %10688 = vmatmul.msk.f32.gmra.mxu1 %vm1628_vm6, %v5148_v8  ;;  %v4793_v20 = vpop.f32.mrf.mxu0  ;;  %v5063_v45 = vpop.f32.mrf.mxu2 }
 0x37f   : > { %v13852_v29 = vadd.f32 %v5063_v45, %v4850_v33 }
 0x380   : > { %v4510_v31 = vpop.f32.mrf.mxu3 }
 0x381   : > { %v4572_v51 = vadd.f32 %v4510_v31, %v4293_v24  ;;  %10758 = vmatmul.msk.f32.gmra.mxu0 %vm1628_vm6, %v13558_v30 }
 0x383   : > { %v4237_v56 = vpop.f32.mrf.mxu1  ;;  %v4852_v53 = vadd.f32 %v4790_v9, %v4572_v51  ;;  %10791 = vmatmul.msk.f32.vlgmr.msrb.gmra.mxu2 %vm1628_vm6, %v5984_v7  ;;  %v1043_v9 = vadd.f32 %v13536_v40, %v15901_v48  ;;  %v13882_v40 = vld [vmem:[#allocation2 + $0x4b] sm:$0xff]  ;;  %v1550_v7 = vld.sshfl [vmem:[#allocation1] sm:$0xff pattern:$0x75316420] }
 0x384   : > { %v4295_v28 = vadd.f32 %v4237_v56, %v13579_v22  ;;  %v15903_v22 = vld [vmem:[#allocation77_spill] sm:$0xff]  ;;  %1682 = vst.msk [vmem:[#allocation2 + $0x1a0] sm:$0xff] %vm1628_vm6, %v1550_v7  ;;  %v15904_v7 = vld [vmem:[#allocation78_spill] sm:$0xff] }
 0x385   : > { %10723 = vmatmul.msk.f32.gmra.mxu3 %vm1628_vm6, %v13856_v32  ;;  %v1148_v38 = vrot.slane %v1043_v9, 4  ;;  %v1295_v31 = vmax.f32 %v1043_v9, 0.0  ;;  %v13886_v56 = vadd.f32 %v13553_v5, %v15903_v22 }
 0x386   : > { %10689 = vmatmul.msk.f32.gmra.mxu1 %vm1628_vm6, %v5149_v14  ;;  %v4796_v33 = vpop.f32.mrf.mxu0  ;;  %v5066_v27 = vpop.f32.mrf.mxu2  ;;  %v5151_v14 = vld [vmem:[#allocation2 + $0x52] sm:$0xff] }
 0x387   : > { %v13863_v12 = vadd.f32 %v5066_v27, %v4851_v61  ;;  %1558 = vst [vmem:[#allocation1] ss:$2 sm:$0xff] %v1295_v31 }
 0x388   : > { %v4513_v60 = vpop.f32.mrf.mxu3 }
 0x389   : > { %v4573_v34 = vadd.f32 %v4513_v60, %v4294_v2  ;;  %10759 = vmatmul.msk.f32.gmra.mxu0 %vm1628_vm6, %v13571_v37  ;;  %v1296_v2 = vmax.f32 %v1148_v38, 0.0  ;;  %v1546_v38 = vld.sshfl [vmem:[#allocation1 + $0x30] sm:$0xff pattern:$0x75316420] }
 0x38a   : > { %1681 = vst.msk [vmem:[#allocation2 + $0x198] sm:$0xff] %vm1628_vm6, %v1546_v38 }
 0x38b   : > { %v4240_v47 = vpop.f32.mrf.mxu1  ;;  %v4853_v30 = vadd.f32 %v4793_v20, %v4573_v34  ;;  %10792 = vmatmul.msk.f32.gmra.mxu2 %vm1628_vm6, %v5985_v44  ;;  %v15902_v20 = vld [vmem:[#allocation28_spill] sm:$0xff]  ;;  %v1551_v34 = vld.sshfl [vmem:[#allocation1 + $0x10] sm:$0xff pattern:$0x75316420] }
 0x38c   : > { %v1040_v45 = vadd.f32 %v13516_v59, %v15902_v20  ;;  %v1297_v59 = vmax.f32 %v13886_v56, 0.0  ;;  %1683 = vst.msk [vmem:[#allocation2 + $0x1a8] sm:$0xf] %vm1631_vm7, %v1551_v34 }
 0x38d   : > { %10724 = vmatmul.msk.f32.gmra.mxu3 %vm1628_vm6, %v13867_v23  ;;  %1560 = vst [vmem:[#allocation1 + $0x10] ss:$2 sm:$0xff] %v1296_v2  ;;  %v1049_v2 = vadd.f32 %v13566_v55, %v15904_v7 }
 0x38e   : > { %10690 = vmatmul.msk.f32.gmra.mxu1 %vm1628_vm6, %v5150_v36  ;;  %v4799_v8 = vpop.f32.mrf.mxu0  ;;  %v5069_v37 = vpop.f32.mrf.mxu2  ;;  %v1147_v60 = vrot.slane %v1040_v45, 4  ;;  %v1293_v9 = vmax.f32 %v1040_v45, 0.0  ;;  %1561 = vst [vmem:[#allocation1 + $0x11] ss:$2 sm:$0xff] %v1297_v59  ;;  %v11372_v59 = vld [vmem:[#allocation2 + $0x64] sm:$0xff] }
 0x38f   : > { %v13876_v24 = vadd.f32 %v5069_v37, %v4852_v53  ;;  %v5986_v53 = vld [vmem:[#allocation2 + $0x48] sm:$0xff]  ;;  %v5987_v37 = vld [vmem:[#allocation2 + $0x50] sm:$0xff]  ;;  %v1559_v38 = vld.sshfl [vmem:[#allocation1] sm:$0xff pattern:$0x75316420] }
 0x390   : > { %v4516_v18 = vpop.f32.mrf.mxu3  ;;  %1554 = vst [vmem:[#allocation1 + $0x30] ss:$2 sm:$0xff] %v1293_v9 }
 0x391   : > { %v4574_v61 = vadd.f32 %v4516_v18, %v4295_v28  ;;  %10760 = vmatmul.msk.f32.gmra.mxu0 %vm1628_vm6, %v13584_v25  ;;  %v4296_v25 = vadd.f32 %v4240_v47, %v13591_v1  ;;  %v1294_v18 = vmax.f32 %v1147_v60, 0.0  ;;  %v5152_v1 = vld [vmem:[#allocation2 + $0x62] sm:$0xff]  ;;  %v13899_v47 = vld [vmem:[#allocation2 + $0x53] sm:$0xff]  ;;  %1686 = vst.msk [vmem:[#allocation2 + $0x1c0] sm:$0xf] %vm1631_vm7, %v1559_v38 }
 0x392   : > { %v13912_v60 = vld [vmem:[#allocation2 + $0x63] sm:$0xff]  ;;  %v5156_v38 = vld [vmem:[#allocation2 + $0x92] sm:$0xff] }
 0x393   : > { %v4243_v39 = vpop.f32.mrf.mxu1  ;;  %v4854_v51 = vadd.f32 %v4796_v33, %v4574_v61  ;;  %10793 = vmatmul.msk.f32.gmra.mxu2 %vm1628_vm6, %v5986_v53  ;;  %v11371_v61 = vld [vmem:[#allocation2 + $0x54] sm:$0xff]  ;;  %1555 = vst [vmem:[#allocation1 + $0x31] ss:$2 sm:$0xff] %v1294_v18 }
 0x395   : > { %10725 = vmatmul.msk.f32.gmra.mxu3 %vm1628_vm6, %v13882_v40 }
 0x396   : > { %10691 = vmatmul.msk.f32.gmra.mxu1 %vm1628_vm6, %v5151_v14  ;;  %v4802_v27 = vpop.f32.mrf.mxu0  ;;  %v5072_v36 = vpop.f32.mrf.mxu2 }
 0x397   : > { %v13896_v48 = vadd.f32 %v5072_v36, %v4853_v30  ;;  %v4297_v30 = vadd.f32 %v4243_v39, %v13600_v58  ;;  %v5988_v58 = vld [vmem:[#allocation2 + $0x60] sm:$0xff] }
 0x398   : > { %v4519_v5 = vpop.f32.mrf.mxu3 }
 0x399   : > { %v4575_v33 = vadd.f32 %v4519_v5, %v4296_v25  ;;  %10761 = vmatmul.msk.f32.gmra.mxu0 %vm1628_vm6, %v11371_v61  ;;  %v5153_v25 = vld [vmem:[#allocation2 + $0x6a] sm:$0xff] }
 0x39a   : > { %v11373_v61 = vld [vmem:[#allocation2 + $0x6c] sm:$0xff] }
 0x39b   : > { %v4246_v44 = vpop.f32.mrf.mxu1  ;;  %v4855_v28 = vadd.f32 %v4799_v8, %v4575_v33  ;;  %10794 = vmatmul.msk.f32.gmra.mxu2 %vm1628_vm6, %v5987_v37  ;;  %v13922_v37 = vld [vmem:[#allocation2 + $0x6b] sm:$0xff] }
 0x39c   : > { %v4298_v39 = vadd.f32 %v4246_v44, %v13609_v10  ;;  %v5989_v10 = vld [vmem:[#allocation2 + $0x68] sm:$0xff] }
 0x39d   : > { %10726 = vmatmul.msk.f32.gmra.mxu3 %vm1628_vm6, %v13899_v47  ;;  %v1557_v44 = vld.sshfl [vmem:[#allocation1 + $0x30] sm:$0xff pattern:$0x75316420] }
 0x39e   : > { %10692 = vmatmul.msk.f32.gmra.mxu1 %vm1628_vm6, %v5152_v1  ;;  %v4805_v20 = vpop.f32.mrf.mxu0  ;;  %v5075_v45 = vpop.f32.mrf.mxu2  ;;  %v5154_v1 = vld [vmem:[#allocation2 + $0x7a] sm:$0xff]  ;;  %1685 = vst.msk [vmem:[#allocation2 + $0x1b8] sm:$0xff] %vm1628_vm6, %v1557_v44  ;;  %v11375_v44 = vld [vmem:[#allocation2 + $0x84] sm:$0xff] }
 0x39f   : > { %v13907_v22 = vadd.f32 %v5075_v45, %v4854_v51  ;;  %v1150_v51 = vrot.slane %v1049_v2, 4 }
 0x3a0   : > { %v4522_v8 = vpop.f32.mrf.mxu3 }
 0x3a1   : > { %v4576_v31 = vadd.f32 %v4522_v8, %v4297_v30  ;;  %10762 = vmatmul.msk.f32.gmra.mxu0 %vm1628_vm6, %v11372_v59  ;;  %v1300_v18 = vmax.f32 %v1150_v51, 0.0  ;;  %v1149_v30 = vrot.slane %v13886_v56, 4  ;;  %v1299_v51 = vmax.f32 %v1049_v2, 0.0  ;;  %v5990_v56 = vld [vmem:[#allocation2 + $0x78] sm:$0xff] }
 0x3a3   : > { %v4249_v14 = vpop.f32.mrf.mxu1  ;;  %v4856_v53 = vadd.f32 %v4802_v27, %v4576_v31  ;;  %10795 = vmatmul.msk.f32.gmra.mxu2 %vm1628_vm6, %v5988_v58  ;;  %1564 = vst [vmem:[#allocation1 + $0x30] ss:$2 sm:$0xff] %v1300_v18  ;;  %v1298_v58 = vmax.f32 %v1149_v30, 0.0  ;;  %v15906_v30 = vld [vmem:[#allocation38_spill] sm:$0xff] }
 0x3a5   : > { %10727 = vmatmul.msk.f32.gmra.mxu3 %vm1628_vm6, %v13912_v60 }
 0x3a6   : > { %10693 = vmatmul.msk.f32.gmra.mxu1 %vm1628_vm6, %v5153_v25  ;;  %v4808_v55 = vpop.f32.mrf.mxu0  ;;  %v5078_v33 = vpop.f32.mrf.mxu2 }
 0x3a7   : > { %v13919_v36 = vadd.f32 %v5078_v33, %v4855_v28  ;;  %v4299_v28 = vadd.f32 %v4249_v14, %v13618_v0  ;;  %v5155_v0 = vld [vmem:[#allocation2 + $0x82] sm:$0xff] }
 0x3a8   : > { %v4525_v5 = vpop.f32.mrf.mxu3  ;;  %v13935_v14 = vld [vmem:[#allocation2 + $0x7b] sm:$0xff] }
 0x3a9   : > { %v4577_v34 = vadd.f32 %v4525_v5, %v4298_v39  ;;  %10763 = vmatmul.msk.f32.gmra.mxu0 %vm1628_vm6, %v11373_v61  ;;  %v11374_v39 = vld [vmem:[#allocation2 + $0x7c] sm:$0xff] }
 0x3aa   : > { %v1556_v5 = vld.sshfl [vmem:[#allocation1 + $0x20] sm:$0xff pattern:$0x75316420] }
 0x3ab   : > { %v4252_v27 = vpop.f32.mrf.mxu1  ;;  %v4857_v9 = vadd.f32 %v4805_v20, %v4577_v34  ;;  %10796 = vmatmul.msk.f32.gmra.mxu2 %vm1628_vm6, %v5989_v10  ;;  %1684 = vst.msk [vmem:[#allocation2 + $0x1b0] sm:$0xff] %vm1628_vm6, %v1556_v5  ;;  %v11376_v5 = vld [vmem:[#allocation2 + $0x94] sm:$0xff] }
 0x3ac   : > { %1562 = vst [vmem:[#allocation1 + $0x20] ss:$2 sm:$0xff] %v1298_v58 }
 0x3ad   : > { %10728 = vmatmul.msk.f32.gmra.mxu3 %vm1628_vm6, %v13922_v37  ;;  %1563 = vst [vmem:[#allocation1 + $0x21] ss:$2 sm:$0xff] %v1299_v51  ;;  %v1567_v51 = vld.sshfl [vmem:[#allocation1 + $0x30] sm:$0xff pattern:$0x75316420] }
 0x3ae   : > { %10694 = vmatmul.msk.f32.gmra.mxu1 %vm1628_vm6, %v5154_v1  ;;  %v4811_v20 = vpop.f32.mrf.mxu0  ;;  %v5081_v45 = vpop.f32.mrf.mxu2  ;;  %1689 = vst.msk [vmem:[#allocation2 + $0x1d8] sm:$0xf] %vm1631_vm7, %v1567_v51 }
 0x3af   : > { %v13932_v59 = vadd.f32 %v5081_v45, %v4856_v53  ;;  %v15905_v53 = vld [vmem:[#allocation32_spill] sm:$0xff] }
 0x3b0   : > { %v4528_v8 = vpop.f32.mrf.mxu3  ;;  %v4300_v34 = vadd.f32 %v4252_v27, %v15905_v53  ;;  %v5991_v27 = vld [vmem:[#allocation2 + $0x80] sm:$0xff] }
 0x3b1   : > { %v4578_v31 = vadd.f32 %v4528_v8, %v4299_v28  ;;  %10764 = vmatmul.msk.f32.gmra.mxu0 %vm1628_vm6, %v11374_v39  ;;  %v13946_v28 = vld [vmem:[#allocation2 + $0x83] sm:$0xff]  ;;  %v5157_v53 = vld [vmem:[#allocation2 + $0x9a] sm:$0xff] }
 0x3b3   : > { %v4255_v7 = vpop.f32.mrf.mxu1  ;;  %v4858_v25 = vadd.f32 %v4808_v55, %v4578_v31  ;;  %10797 = vmatmul.msk.f32.gmra.mxu2 %vm1628_vm6, %v5990_v56 }
 0x3b4   : > { %v4301_v8 = vadd.f32 %v4255_v7, %v15906_v30  ;;  %v5992_v7 = vld [vmem:[#allocation2 + $0x90] sm:$0xff]  ;;  %v1565_v30 = vld.sshfl [vmem:[#allocation1 + $0x10] sm:$0xff pattern:$0x75316420] }
 0x3b5   : > { %10729 = vmatmul.msk.f32.gmra.mxu3 %vm1628_vm6, %v13935_v14  ;;  %1687 = vst.msk [vmem:[#allocation2 + $0x1c8] sm:$0xff] %vm1628_vm6, %v1565_v30  ;;  %v10858_v30 = vld [vmem:[%s15663_s3 + $0xc0] sm:$0xff] }
 0x3b6   : > { %10695 = vmatmul.msk.f32.gmra.mxu1 %vm1628_vm6, %v5155_v0  ;;  %v4814_v18 = vpop.f32.mrf.mxu0  ;;  %v5084_v61 = vpop.f32.mrf.mxu2  ;;  %v1566_v0 = vld.sshfl [vmem:[#allocation1 + $0x20] sm:$0xff pattern:$0x75316420]  ;;  %6691 = vmatpush.msrb.mxu3 %v10858_v30 }
 0x3b7   : > { %v13943_v1 = vadd.f32 %v5084_v61, %v4857_v9  ;;  %1688 = vst.msk [vmem:[#allocation2 + $0x1d0] sm:$0xff] %vm1628_vm6, %v1566_v0 }
 0x3b8   : > { %v4531_v55 = vpop.f32.mrf.mxu3 }
 0x3b9   : > { %v4579_v33 = vadd.f32 %v4531_v55, %v4300_v34  ;;  %10765 = vmatmul.msk.f32.gmra.mxu0 %vm1628_vm6, %v11375_v44  ;;  %v13957_v34 = vld [vmem:[#allocation2 + $0x93] sm:$0xff] }
 0x3bb   : > { %v4258_v2 = vpop.f32.mrf.mxu1  ;;  %v4859_v10 = vadd.f32 %v4811_v20, %v4579_v33  ;;  %10798 = vmatmul.msk.f32.gmra.mxu2 %vm1628_vm6, %v5991_v27 }
 0x3bd   : > { %10730 = vmatmul.msk.f32.gmra.mxu3 %vm1628_vm6, %v13946_v28 }
 0x3be   : > { %10696 = vmatmul.msk.f32.gmra.mxu1 %vm1628_vm6, %v5156_v38  ;;  %v4817_v45 = vpop.f32.mrf.mxu0  ;;  %v5087_v20 = vpop.f32.mrf.mxu2 }
 0x3bf   : > { %v13953_v39 = vadd.f32 %v5087_v20, %v4858_v25  ;;  %v15907_v25 = vld [vmem:[#allocation53_spill] sm:$0xff] }
 0x3c0   : > { %v4534_v31 = vpop.f32.mrf.mxu3  ;;  %v4302_v55 = vadd.f32 %v4258_v2, %v15907_v25  ;;  %v13969_v20 = vld [vmem:[#allocation2 + $0x9b] sm:$0xff] }
 0x3c1   : > { %v4580_v9 = vadd.f32 %v4534_v31, %v4301_v8  ;;  %10766 = vmatmul.msk.f32.gmra.mxu0 %vm1628_vm6, %v11376_v5  ;;  %v11377_v31 = vld [vmem:[#allocation2 + $0x9c] sm:$0xff] }
 0x3c2   : > { %v5993_v2 = vld [vmem:[#allocation2 + $0x98] sm:$0xff] }
 0x3c3   : > { %v4261_v58 = vpop.f32.mrf.mxu1  ;;  %v4860_v56 = vadd.f32 %v4814_v18, %v4580_v9  ;;  %10799 = vmatmul.msk.f32.gmra.mxu2 %vm1628_vm6, %v5992_v7  ;;  %v5158_v9 = vld [vmem:[#allocation2 + $0xaa] sm:$0xff] }
 0x3c5   : > { %10731 = vmatmul.msk.f32.gmra.mxu3 %vm1628_vm6, %v13957_v34 }
 0x3c6   : > { %10697 = vmatmul.msk.f32.gmra.mxu1 %vm1628_vm6, %v5157_v53  ;;  %v4820_v61 = vpop.f32.mrf.mxu0  ;;  %v5090_v44 = vpop.f32.mrf.mxu2 }
 0x3c7   : > { %v13965_v27 = vadd.f32 %v5090_v44, %v4859_v10  ;;  %v15908_v10 = vld [vmem:[#allocation43_spill] sm:$0xff] }
 0x3c8   : > { %v4537_v33 = vpop.f32.mrf.mxu3  ;;  %v4303_v0 = vadd.f32 %v4261_v58, %v15908_v10  ;;  %v13979_v44 = vld [vmem:[#allocation2 + $0xab] sm:$0xff] }
 0x3c9   : > { %v4581_v18 = vadd.f32 %v4537_v33, %v4302_v55  ;;  %10767 = vmatmul.msk.f32.gmra.mxu0 %vm1628_vm6, %v11377_v31  ;;  %v11378_v33 = vld [vmem:[#allocation2 + $0xac] sm:$0xff] }
 0x3ca   : > { %v5994_v58 = vld [vmem:[#allocation2 + $0xa8] sm:$0xff] }
 0x3cb   : > { %v4264_v38 = vpop.f32.mrf.mxu1  ;;  %v4861_v8 = vadd.f32 %v4817_v45, %v4581_v18  ;;  %10800 = vmatmul.msk.f32.gmra.mxu2 %vm1628_vm6, %v5993_v2  ;;  %v5159_v18 = vld [vmem:[#allocation2 + $0xb2] sm:$0xff] }
 0x3cd   : > { %10732 = vmatmul.msk.f32.gmra.mxu3 %vm1628_vm6, %v13969_v20 }
 0x3ce   : > { %10698 = vmatmul.msk.f32.gmra.mxu1 %vm1628_vm6, %v5158_v9  ;;  %v4823_v5 = vpop.f32.mrf.mxu0  ;;  %v5093_v53 = vpop.f32.mrf.mxu2 }
 0x3cf   : > { %v13976_v25 = vadd.f32 %v5093_v53, %v4860_v56  ;;  %v15909_v56 = vld [vmem:[#allocation46_spill] sm:$0xff] }
 0x3d0   : > { %v4540_v51 = vpop.f32.mrf.mxu3 }
 0x3d1   : > { %v4582_v45 = vadd.f32 %v4540_v51, %v4303_v0  ;;  %10768 = vmatmul.msk.f32.gmra.mxu0 %vm1628_vm6, %v11378_v33  ;;  %v10823_v0 = vld [vmem:[%s15663_s3 + $0xb0] sm:$0xff]  ;;  %v11379_v33 = vld [vmem:[#allocation2 + $0xb4] sm:$0xff] }
 0x3d2   : > { %6412 = vmatpush.msrb.mxu1 %v10823_v0  ;;  %v11380_v0 = vld [vmem:[#allocation2 + $0xc4] sm:$0xff] }
 0x3d3   : > { %v4267_v7 = vpop.f32.mrf.mxu1  ;;  %v4862_v55 = vadd.f32 %v4820_v61, %v4582_v45  ;;  %10801 = vmatmul.msk.f32.gmra.mxu2 %vm1628_vm6, %v5994_v58  ;;  %v4304_v61 = vadd.f32 %v4264_v38, %v15909_v56  ;;  %v13995_v58 = vld [vmem:[#allocation2 + $0xb3] sm:$0xff] }
 0x3d4   : > { %v5995_v38 = vld [vmem:[#allocation2 + $0xb0] sm:$0xff]  ;;  %v4305_v30 = vadd.f32 %v4267_v7, %v13674_v13  ;;  %v5996_v13 = vld [vmem:[#allocation2 + $0xc0] sm:$0xff] }
 0x3d5   : > { %10733 = vmatmul.msk.f32.gmra.mxu3 %vm1628_vm6, %v13979_v44 }
 0x3d6   : > { %10699 = vmatmul.msk.f32.gmra.mxu1 %vm1628_vm6, %v5159_v18  ;;  %v4826_v2 = vpop.f32.mrf.mxu0  ;;  %v5096_v10 = vpop.f32.mrf.mxu2  ;;  %v5160_v18 = vld [vmem:[#allocation2 + $0xc2] sm:$0xff] }
 0x3d7   : > { %v13992_v45 = vadd.f32 %v5096_v10, %v4861_v8 }
 0x3d8   : > { %v4543_v31 = vpop.f32.mrf.mxu3 }
 0x3d9   : > { %v4583_v9 = vadd.f32 %v4543_v31, %v4304_v61  ;;  %10769 = vmatmul.msk.f32.gmra.mxu0 %vm1628_vm6, %v11379_v33  ;;  %v5161_v33 = vld [vmem:[#allocation2 + $0xca] sm:$0xff] }
 0x3db   : > { %v4270_v51 = vpop.f32.mrf.mxu1  ;;  %v4863_v53 = vadd.f32 %v4823_v5, %v4583_v9  ;;  %10802 = vmatmul.msk.f32.gmra.mxu2 %vm1628_vm6, %v5995_v38 }
 0x3dc   : > { %v4306_v7 = vadd.f32 %v4270_v51, %v13684_v4  ;;  %v5997_v4 = vld [vmem:[#allocation2 + $0xc8] sm:$0xff] }
 0x3dd   : > { %10734 = vmatmul.msk.f32.gmra.mxu3 %vm1628_vm6, %v13995_v58 }
 0x3de   : > { %10700 = vmatmul.msk.f32.gmra.mxu1 %vm1628_vm6, %v5160_v18  ;;  %v4829_v61 = vpop.f32.mrf.mxu0  ;;  %v5099_v5 = vpop.f32.mrf.mxu2  ;;  %v14005_v18 = vld [vmem:[#allocation2 + $0xc3] sm:$0xff] }
 0x3df   : > { %v14002_v9 = vadd.f32 %v5099_v5, %v4862_v55 }
 0x3e0   : > { %v4546_v8 = vpop.f32.mrf.mxu3 }
 0x3e1   : > { %v4584_v56 = vadd.f32 %v4546_v8, %v4305_v30  ;;  %15910 = vst [vmem:[#allocation37_spill] sm:$0xff] %v14002_v9  ;;  %10770 = vmatmul.msk.f32.gmra.mxu0 %vm1628_vm6, %v11380_v0  ;;  %v11381_v0 = vld [vmem:[#allocation2 + $0xcc] sm:$0xff] }
 0x3e2   : > { %v14015_v9 = vld [vmem:[#allocation2 + $0xcb] sm:$0xff] }
 0x3e3   : > { %v4273_v31 = vpop.f32.mrf.mxu1  ;;  %v4864_v10 = vadd.f32 %v4826_v2, %v4584_v56  ;;  %10803 = vmatmul.msk.f32.gmra.mxu2 %vm1628_vm6, %v5996_v13 }
 0x3e4   : > { %v4307_v51 = vadd.f32 %v4273_v31, %v13695_v26  ;;  %v5998_v26 = vld [vmem:[#allocation2 + $0xd8] sm:$0xff] }
 0x3e5   : > { %10735 = vmatmul.msk.f32.gmra.mxu3 %vm1628_vm6, %v14005_v18 }
 0x3e6   : > { %10701 = vmatmul.msk.f32.gmra.mxu1 %vm1628_vm6, %v5161_v33  ;;  %v4832_v30 = vpop.f32.mrf.mxu0  ;;  %v5102_v2 = vpop.f32.mrf.mxu2  ;;  %v5162_v33 = vld [vmem:[#allocation2 + $0xda] sm:$0xff] }
 0x3e7   : > { %v14012_v56 = vadd.f32 %v5102_v2, %v4863_v53 }
 0x3e8   : > { %v4549_v38 = vpop.f32.mrf.mxu3 }
 0x3e9   : > { %v4585_v55 = vadd.f32 %v4549_v38, %v4306_v7  ;;  %15911 = vst [vmem:[#allocation55_spill] sm:$0xff] %v14012_v56  ;;  %10771 = vmatmul.msk.f32.gmra.mxu0 %vm1628_vm6, %v11381_v0  ;;  %v11382_v0 = vld [vmem:[#allocation2 + $0xdc] sm:$0xff] }
 0x3ea   : > { %v14025_v56 = vld [vmem:[#allocation2 + $0xdb] sm:$0xff] }
 0x3eb   : > { %v5297_v8 = vpop.f32.mrf.mxu1  ;;  %v4865_v5 = vadd.f32 %v4829_v61, %v4585_v55  ;;  %10804 = vmatmul.msk.f32.gmra.mxu2 %vm1628_vm6, %v5997_v4 }
 0x3ec   : > { %v5393_v31 = vadd.f32 %v5297_v8, %v13704_v42  ;;  %v5999_v42 = vld [vmem:[#allocation2 + $0xe0] sm:$0xff] }
 0x3ed   : > { %10736 = vmatmul.msk.f32.gmra.mxu3 %vm1628_vm6, %v14015_v9 }
 0x3ee   : > { %10702 = vmatmul.msk.f32.gmra.mxu1 %vm1628_vm6, %v5162_v33  ;;  %v5855_v7 = vpop.f32.mrf.mxu0  ;;  %v5105_v61 = vpop.f32.mrf.mxu2  ;;  %v5163_v33 = vld [vmem:[#allocation2 + $0xe2] sm:$0xff] }
 0x3ef   : > { %v14022_v55 = vadd.f32 %v5105_v61, %v4864_v10 }
 0x3f0   : > { %v4552_v13 = vpop.f32.mrf.mxu3 }
 0x3f1   : > { %v4586_v53 = vadd.f32 %v4552_v13, %v4307_v51  ;;  %15912 = vst [vmem:[#allocation42_spill] sm:$0xff] %v14022_v55  ;;  %10772 = vmatmul.msk.f32.gmra.mxu0 %vm1628_vm6, %v11382_v0  ;;  %v11383_v0 = vld [vmem:[#allocation2 + $0xe4] sm:$0xff] }
 0x3f2   : > { %v14035_v55 = vld [vmem:[#allocation2 + $0xe3] sm:$0xff] }
 0x3f3   : > { %v5300_v38 = vpop.f32.mrf.mxu1  ;;  %v4866_v2 = vadd.f32 %v4832_v30, %v4586_v53  ;;  %10805 = vmatmul.msk.f32.gmra.mxu2 %vm1628_vm6, %v5998_v26 }
 0x3f4   : > { %v5394_v8 = vadd.f32 %v5300_v38, %v13712_v17  ;;  %v6000_v17 = vld [vmem:[#allocation2 + $0xf0] sm:$0xff] }
 0x3f5   : > { %10737 = vmatmul.msk.f32.gmra.mxu3 %vm1628_vm6, %v14025_v56 }
 0x3f6   : > { %10703 = vmatmul.msk.f32.gmra.mxu1 %vm1628_vm6, %v5163_v33  ;;  %v5858_v51 = vpop.f32.mrf.mxu0  ;;  %v5108_v30 = vpop.f32.mrf.mxu2  ;;  %v5164_v33 = vld [vmem:[#allocation2 + $0xf2] sm:$0xff] }
 0x3f7   : > { %v14032_v53 = vadd.f32 %v5108_v30, %v4865_v5 }
 0x3f8   : > { %v5576_v4 = vpop.f32.mrf.mxu3 }
 0x3f9   : > { %v5672_v10 = vadd.f32 %v5576_v4, %v5393_v31  ;;  %15913 = vst [vmem:[#allocation45_spill] sm:$0xff] %v14032_v53  ;;  %10773 = vmatmul.msk.f32.gmra.mxu0 %vm1628_vm6, %v11383_v0  ;;  %v11384_v0 = vld [vmem:[#allocation2 + $0xf4] sm:$0xff] }
 0x3fa   : > { %v14045_v53 = vld [vmem:[#allocation2 + $0xf3] sm:$0xff] }
 0x3fb   : > { %v5303_v13 = vpop.f32.mrf.mxu1  ;;  %v5951_v61 = vadd.f32 %v5855_v7, %v5672_v10  ;;  %10806 = vmatmul.msk.f32.gmra.mxu2 %vm1628_vm6, %v5999_v42 }
 0x3fc   : > { %v5395_v38 = vadd.f32 %v5303_v13, %v13719_v19  ;;  %v6001_v19 = vld [vmem:[#allocation2 + $0xf8] sm:$0xff] }
 0x3fd   : > { %10738 = vmatmul.msk.f32.gmra.mxu3 %vm1628_vm6, %v14035_v55 }
 0x3fe   : > { %10704 = vmatmul.msk.f32.gmra.mxu1 %vm1628_vm6, %v5164_v33  ;;  %v5861_v31 = vpop.f32.mrf.mxu0  ;;  %v5111_v7 = vpop.f32.mrf.mxu2  ;;  %v5165_v33 = vld [vmem:[#allocation2 + $0xfa] sm:$0xff] }
 0x3ff   : > { %v14042_v10 = vadd.f32 %v5111_v7, %v4866_v2 }
 0x400   : > { %v5579_v26 = vpop.f32.mrf.mxu3 }
 0x401   : > { %v5673_v5 = vadd.f32 %v5579_v26, %v5394_v8  ;;  %15914 = vst [vmem:[#allocation57_spill] sm:$0xff] %v14042_v10  ;;  %10774 = vmatmul.msk.f32.gmra.mxu0 %vm1628_vm6, %v11384_v0  ;;  %v11385_v0 = vld [vmem:[#allocation2 + $0xfc] sm:$0xff] }
 0x402   : > { %v14055_v10 = vld [vmem:[#allocation2 + $0xfb] sm:$0xff] }
 0x403   : > { %v5306_v4 = vpop.f32.mrf.mxu1  ;;  %v5952_v30 = vadd.f32 %v5858_v51, %v5673_v5  ;;  %10807 = vmatmul.msk.f32.gmra.mxu2 %vm1628_vm6, %v6000_v17 }
 0x404   : > { %v5396_v13 = vadd.f32 %v5306_v4, %v13726_v43  ;;  %v6002_v43 = vld [vmem:[#allocation2 + $0x108] sm:$0xff] }
 0x405   : > { %10739 = vmatmul.msk.f32.gmra.mxu3 %vm1628_vm6, %v14045_v53 }
 0x406   : > { %10705 = vmatmul.msk.f32.gmra.mxu1 %vm1628_vm6, %v5165_v33  ;;  %v5864_v8 = vpop.f32.mrf.mxu0  ;;  %v6135_v51 = vpop.f32.mrf.mxu2  ;;  %v5166_v33 = vld [vmem:[#allocation2 + $0x10a] sm:$0xff] }
 0x407   : > { %v14052_v5 = vadd.f32 %v6135_v51, %v5951_v61 }
 0x408   : > { %v5582_v42 = vpop.f32.mrf.mxu3 }
 0x409   : > { %v5674_v2 = vadd.f32 %v5582_v42, %v5395_v38  ;;  %15915 = vst [vmem:[#allocation58_spill] sm:$0xff] %v14052_v5  ;;  %10775 = vmatmul.msk.f32.gmra.mxu0 %vm1628_vm6, %v11385_v0  ;;  %v11386_v0 = vld [vmem:[#allocation2 + $0x10c] sm:$0xff] }
 0x40a   : > { %v14065_v5 = vld [vmem:[#allocation2 + $0x10b] sm:$0xff] }
 0x40b   : > { %v5309_v26 = vpop.f32.mrf.mxu1  ;;  %v5953_v7 = vadd.f32 %v5861_v31, %v5674_v2  ;;  %10808 = vmatmul.msk.f32.gmra.mxu2 %vm1628_vm6, %v6001_v19 }
 0x40c   : > { %v5397_v4 = vadd.f32 %v5309_v26, %v13733_v3  ;;  %v6003_v3 = vld [vmem:[#allocation2 + $0x110] sm:$0xff] }
 0x40d   : > { %10740 = vmatmul.msk.f32.gmra.mxu3 %vm1628_vm6, %v14055_v10 }
 0x40e   : > { %10706 = vmatmul.msk.f32.gmra.mxu1 %vm1628_vm6, %v5166_v33  ;;  %v5867_v38 = vpop.f32.mrf.mxu0  ;;  %v6138_v31 = vpop.f32.mrf.mxu2  ;;  %v5167_v33 = vld [vmem:[#allocation2 + $0x112] sm:$0xff] }
 0x40f   : > { %v14062_v2 = vadd.f32 %v6138_v31, %v5952_v30 }
 0x410   : > { %v5585_v17 = vpop.f32.mrf.mxu3 }
 0x411   : > { %v5675_v61 = vadd.f32 %v5585_v17, %v5396_v13  ;;  %15916 = vst [vmem:[#allocation47_spill] sm:$0xff] %v14062_v2  ;;  %10776 = vmatmul.msk.f32.gmra.mxu0 %vm1628_vm6, %v11386_v0  ;;  %v11387_v0 = vld [vmem:[#allocation2 + $0x114] sm:$0xff] }
 0x412   : > { %v14075_v2 = vld [vmem:[#allocation2 + $0x113] sm:$0xff] }
 0x413   : > { %v5312_v42 = vpop.f32.mrf.mxu1  ;;  %v5954_v51 = vadd.f32 %v5864_v8, %v5675_v61  ;;  %10809 = vmatmul.msk.f32.gmra.mxu2 %vm1628_vm6, %v6002_v43 }
 0x414   : > { %v5398_v26 = vadd.f32 %v5312_v42, %v13740_v52  ;;  %v6004_v52 = vld [vmem:[#allocation2 + $0x120] sm:$0xff] }
 0x415   : > { %10741 = vmatmul.msk.f32.gmra.mxu3 %vm1628_vm6, %v14065_v5 }
 0x416   : > { %10707 = vmatmul.msk.f32.gmra.mxu1 %vm1628_vm6, %v5167_v33  ;;  %v5870_v13 = vpop.f32.mrf.mxu0  ;;  %v6141_v8 = vpop.f32.mrf.mxu2  ;;  %v5168_v33 = vld [vmem:[#allocation2 + $0x122] sm:$0xff] }
 0x417   : > { %v14072_v61 = vadd.f32 %v6141_v8, %v5953_v7 }
 0x418   : > { %v5588_v19 = vpop.f32.mrf.mxu3 }
 0x419   : > { %v5676_v30 = vadd.f32 %v5588_v19, %v5397_v4  ;;  %15917 = vst [vmem:[#allocation26_spill] sm:$0xff] %v14072_v61  ;;  %10777 = vmatmul.msk.f32.gmra.mxu0 %vm1628_vm6, %v11387_v0  ;;  %v11388_v0 = vld [vmem:[#allocation2 + $0x124] sm:$0xff] }
 0x41a   : > { %v14085_v61 = vld [vmem:[#allocation2 + $0x123] sm:$0xff] }
 0x41b   : > { %v5315_v17 = vpop.f32.mrf.mxu1  ;;  %v5955_v31 = vadd.f32 %v5867_v38, %v5676_v30  ;;  %10810 = vmatmul.msk.f32.gmra.mxu2 %vm1628_vm6, %v6003_v3 }
 0x41c   : > { %v5399_v42 = vadd.f32 %v5315_v17, %v13747_v50  ;;  %v6005_v50 = vld [vmem:[#allocation2 + $0x128] sm:$0xff] }
 0x41d   : > { %10742 = vmatmul.msk.f32.gmra.mxu3 %vm1628_vm6, %v14075_v2 }
 0x41e   : > { %10708 = vmatmul.msk.f32.gmra.mxu1 %vm1628_vm6, %v5168_v33  ;;  %v5873_v4 = vpop.f32.mrf.mxu0  ;;  %v6144_v38 = vpop.f32.mrf.mxu2  ;;  %v5169_v33 = vld [vmem:[#allocation2 + $0x12a] sm:$0xff] }
 0x41f   : > { %v14082_v30 = vadd.f32 %v6144_v38, %v5954_v51 }
 0x420   : > { %v5591_v43 = vpop.f32.mrf.mxu3 }
 0x421   : > { %v5677_v7 = vadd.f32 %v5591_v43, %v5398_v26  ;;  %15918 = vst [vmem:[#allocation40_spill] sm:$0xff] %v14082_v30  ;;  %10778 = vmatmul.msk.f32.gmra.mxu0 %vm1628_vm6, %v11388_v0  ;;  %v11389_v0 = vld [vmem:[#allocation2 + $0x12c] sm:$0xff] }
 0x422   : > { %v14095_v30 = vld [vmem:[#allocation2 + $0x12b] sm:$0xff] }
 0x423   : > { %v5318_v19 = vpop.f32.mrf.mxu1  ;;  %v5956_v8 = vadd.f32 %v5870_v13, %v5677_v7  ;;  %10811 = vmatmul.msk.f32.gmra.mxu2 %vm1628_vm6, %v6004_v52 }
 0x424   : > { %v5400_v17 = vadd.f32 %v5318_v19, %v13756_v21  ;;  %v6006_v21 = vld [vmem:[#allocation2 + $0x138] sm:$0xff] }
 0x425   : > { %10743 = vmatmul.msk.f32.gmra.mxu3 %vm1628_vm6, %v14085_v61 }
 0x426   : > { %10709 = vmatmul.msk.f32.gmra.mxu1 %vm1628_vm6, %v5169_v33  ;;  %v5876_v26 = vpop.f32.mrf.mxu0  ;;  %v6147_v13 = vpop.f32.mrf.mxu2  ;;  %v5170_v33 = vld [vmem:[#allocation2 + $0x13a] sm:$0xff] }
 0x427   : > { %v14092_v7 = vadd.f32 %v6147_v13, %v5955_v31 }
 0x428   : > { %v5594_v3 = vpop.f32.mrf.mxu3 }
 0x429   : > { %v5678_v51 = vadd.f32 %v5594_v3, %v5399_v42  ;;  %15919 = vst [vmem:[#allocation62_spill] sm:$0xff] %v14092_v7  ;;  %10779 = vmatmul.msk.f32.gmra.mxu0 %vm1628_vm6, %v11389_v0  ;;  %v11390_v0 = vld [vmem:[#allocation2 + $0x13c] sm:$0xff] }
 0x42a   : > { %v14105_v7 = vld [vmem:[#allocation2 + $0x13b] sm:$0xff] }
 0x42b   : > { %v5321_v43 = vpop.f32.mrf.mxu1  ;;  %v5957_v38 = vadd.f32 %v5873_v4, %v5678_v51  ;;  %10812 = vmatmul.msk.f32.gmra.mxu2 %vm1628_vm6, %v6005_v50 }
 0x42c   : > { %v5401_v19 = vadd.f32 %v5321_v43, %v13764_v16  ;;  %v6007_v16 = vld [vmem:[#allocation2 + $0x140] sm:$0xff] }
 0x42d   : > { %10744 = vmatmul.msk.f32.gmra.mxu3 %vm1628_vm6, %v14095_v30 }
 0x42e   : > { %10710 = vmatmul.msk.f32.gmra.mxu1 %vm1628_vm6, %v5170_v33  ;;  %v5879_v42 = vpop.f32.mrf.mxu0  ;;  %v6150_v4 = vpop.f32.mrf.mxu2  ;;  %v5171_v33 = vld [vmem:[#allocation2 + $0x142] sm:$0xff] }
 0x42f   : > { %v14102_v51 = vadd.f32 %v6150_v4, %v5956_v8 }
 0x430   : > { %v5597_v52 = vpop.f32.mrf.mxu3 }
 0x431   : > { %v5679_v31 = vadd.f32 %v5597_v52, %v5400_v17  ;;  %10780 = vmatmul.msk.f32.gmra.mxu0 %vm1628_vm6, %v11390_v0  ;;  %v5172_v0 = vld [vmem:[#allocation2 + $0x152] sm:$0xff] }
 0x433   : > { %v5324_v3 = vpop.f32.mrf.mxu1  ;;  %v5958_v13 = vadd.f32 %v5876_v26, %v5679_v31  ;;  %10813 = vmatmul.msk.f32.gmra.mxu2 %vm1628_vm6, %v6006_v21 }
 0x434   : > { %v5402_v43 = vadd.f32 %v5324_v3, %v13780_v57  ;;  %v6008_v57 = vld [vmem:[#allocation2 + $0x150] sm:$0xff] }
 0x435   : > { %10745 = vmatmul.msk.f32.gmra.mxu3 %vm1628_vm6, %v14105_v7 }
 0x436   : > { %10711 = vmatmul.msk.f32.gmra.mxu1 %vm1628_vm6, %v5171_v33  ;;  %v5882_v17 = vpop.f32.mrf.mxu0  ;;  %v6153_v26 = vpop.f32.mrf.mxu2  ;;  %v14116_v33 = vld [vmem:[#allocation2 + $0x143] sm:$0xff] }
 0x437   : > { %v14112_v31 = vadd.f32 %v6153_v26, %v5957_v38  ;;  %v5173_v26 = vld [vmem:[#allocation2 + $0x15a] sm:$0xff] }
 0x438   : > { %v5600_v50 = vpop.f32.mrf.mxu3 }
 0x439   : > { %v5680_v8 = vadd.f32 %v5600_v50, %v5401_v19  ;;  %10781 = vmatmul.msk.f32.gmra.mxu0 %vm1628_vm6, %v13767_v62 }
 0x43b   : > { %v5327_v52 = vpop.f32.mrf.mxu1  ;;  %v5959_v4 = vadd.f32 %v5879_v42, %v5680_v8  ;;  %10814 = vmatmul.msk.f32.gmra.mxu2 %vm1628_vm6, %v6007_v16 }
 0x43c   : > { %v5403_v3 = vadd.f32 %v5327_v52, %v13802_v35  ;;  %v6009_v35 = vld [vmem:[#allocation2 + $0x158] sm:$0xff] }
 0x43d   : > { %10746 = vmatmul.msk.f32.gmra.mxu3 %vm1628_vm6, %v14116_v33 }
 0x43e   : > { %10712 = vmatmul.msk.f32.gmra.mxu1 %vm1628_vm6, %v5172_v0  ;;  %v5885_v19 = vpop.f32.mrf.mxu0  ;;  %v6156_v42 = vpop.f32.mrf.mxu2  ;;  %v14127_v0 = vld [vmem:[#allocation2 + $0x153] sm:$0xff] }
 0x43f   : > { %v14123_v8 = vadd.f32 %v6156_v42, %v5958_v13  ;;  %v5174_v42 = vld [vmem:[#allocation2 + $0x16a] sm:$0xff] }
 0x440   : > { %v5603_v21 = vpop.f32.mrf.mxu3 }
 0x441   : > { %v5681_v38 = vadd.f32 %v5603_v21, %v5402_v43  ;;  %10782 = vmatmul.msk.f32.gmra.mxu0 %vm1628_vm6, %v13788_v46 }
 0x443   : > { %v5330_v50 = vpop.f32.mrf.mxu1  ;;  %v5960_v62 = vadd.f32 %v5882_v17, %v5681_v38  ;;  %10815 = vmatmul.msk.f32.gmra.mxu2 %vm1628_vm6, %v6008_v57 }
 0x444   : > { %v5404_v52 = vadd.f32 %v5330_v50, %v13813_v63  ;;  %v10893_v50 = vld [vmem:[%s15663_s3 + $0xd0] sm:$0xff] }
 0x445   : > { %10747 = vmatmul.msk.f32.gmra.mxu3 %vm1628_vm6, %v14127_v0 }
 0x446   : > { %10713 = vmatmul.msk.f32.gmra.mxu1 %vm1628_vm6, %v5173_v26  ;;  %v5888_v43 = vpop.f32.mrf.mxu0  ;;  %v6159_v17 = vpop.f32.mrf.mxu2  ;;  %v14138_v26 = vld [vmem:[#allocation2 + $0x15b] sm:$0xff] }
 0x447   : > { %v14134_v38 = vadd.f32 %v6159_v17, %v5959_v4 }
 0x448   : > { %v5606_v16 = vpop.f32.mrf.mxu3 }
 0x449   : > { %v5682_v13 = vadd.f32 %v5606_v16, %v5403_v3  ;;  %10783 = vmatmul.msk.f32.gmra.mxu0 %vm1628_vm6, %v13806_v49  ;;  %v10894_v49 = vld [vmem:[%s15663_s3 + $0xd8] sm:$0x3]  ;;  %v10929_v16 = vld [vmem:[%s15663_s3 + $0xe8] sm:$0x3] }
 0x44a   : > { %10895 = vmatpush.msk.msra.mxu0 %vm1867_vm3, %v10894_v49  ;;  %10930 = vmatpush.msk.msra.mxu2 %vm1867_vm3, %v10929_v16  ;;  %v10964_v49 = vld [vmem:[%s15663_s3 + $0xf8] sm:$0x3] }
 0x44b   : > { %v5333_v21 = vpop.f32.mrf.mxu1  ;;  %v5961_v46 = vadd.f32 %v5885_v19, %v5682_v13  ;;  %10816 = vmatmul.msk.f32.gmra.mxu2 %vm1628_vm6, %v6009_v35  ;;  %v14160_v35 = vld [vmem:[#allocation2 + $0x16b] sm:$0xff]  ;;  %10965 = vmatpush.msk.msra.mxu1 %vm1867_vm3, %v10964_v49 }
 0x44c   : > { %15920 = vst [vmem:[#allocation44_spill] sm:$0xff] %v14160_v35  ;;  %6970 = vmatpush.msra.mxu0 %v10893_v50  ;;  %v6011_v50 = vld [vmem:[#allocation2 + $0x170] sm:$0xff] }
 0x44d   : > { %10748 = vmatmul.msk.f32.gmra.mxu3 %vm1628_vm6, %v14138_v26  ;;  %v5177_v49 = vld [vmem:[#allocation2 + $0x18a] sm:$0xff] }
 0x44e   : > { %10714 = vmatmul.msk.f32.gmra.mxu1 %vm1628_vm6, %v5174_v42  ;;  %v5891_v3 = vpop.f32.mrf.mxu0  ;;  %v6162_v19 = vpop.f32.mrf.mxu2  ;;  %v5175_v42 = vld [vmem:[#allocation2 + $0x172] sm:$0xff] }
 0x44f   : > { %v14151_v17 = vadd.f32 %v6162_v19, %v5960_v62  ;;  %v6010_v62 = vld [vmem:[#allocation2 + $0x168] sm:$0xff] }
 0x450   : > { %v5609_v57 = vpop.f32.mrf.mxu3 }
 0x451   : > { %v5683_v4 = vadd.f32 %v5609_v57, %v5404_v52  ;;  %10784 = vmatmul.msk.f32.gmra.mxu0 %vm1628_vm6, %v13816_v54  ;;  %v5405_v52 = vadd.f32 %v5333_v21, %v13823_v41  ;;  %v5176_v41 = vld [vmem:[#allocation2 + $0x182] sm:$0xff]  ;;  %v14179_v21 = vld [vmem:[#allocation2 + $0x173] sm:$0xff] }
 0x453   : > { %v5336_v13 = vpop.f32.mrf.mxu1  ;;  %v5962_v63 = vadd.f32 %v5888_v43, %v5683_v4  ;;  %v10999_v43 = vld [vmem:[%s15663_s3 + $0x108] sm:$0x3]  ;;  %10817 = vmatmul.msk.f32.gmra.mxu2 %vm1628_vm6, %v6010_v62 }
 0x454   : > { %11000 = vmatpush.msk.msra.mxu3 %vm1867_vm3, %v10999_v43 }
 0x455   : > { %10749 = vmatmul.msk.f32.gmra.mxu3 %vm1628_vm6, %v14160_v35 }
 0x456   : > { %10715 = vmatmul.msk.f32.gmra.mxu1 %vm1628_vm6, %v5175_v42  ;;  %v5894_v4 = vpop.f32.mrf.mxu0  ;;  %v6165_v19 = vpop.f32.mrf.mxu2 }
 0x457   : > { %v14174_v42 = vadd.f32 %v6165_v19, %v5961_v46  ;;  %v5406_v46 = vadd.f32 %v5336_v13, %v13836_v11  ;;  %v6012_v11 = vld [vmem:[#allocation2 + $0x180] sm:$0xff] }
 0x458   : > { %v5612_v54 = vpop.f32.mrf.mxu3 }
 0x459   : > { %v5684_v57 = vadd.f32 %v5612_v54, %v5405_v52  ;;  %10785 = vmatmul.msk.f32.gmra.mxu0 %vm1628_vm6, %v13826_v15  ;;  %v5734_v15 = vld [vmem:[#allocation2 + $0x184] sm:$0xff] }
 0x45b   : > { %v5339_v16 = vpop.f32.mrf.mxu1  ;;  %v5963_v35 = vadd.f32 %v5891_v3, %v5684_v57  ;;  %10818 = vmatmul.msk.f32.gmra.mxu2 %vm1628_vm6, %v6011_v50 }
 0x45c   : > { %v5407_v13 = vadd.f32 %v5339_v16, %v13844_v6  ;;  %v6013_v6 = vld [vmem:[#allocation2 + $0x188] sm:$0xff] }
 0x45d   : > { %10750 = vmatmul.msk.f32.gmra.mxu3 %vm1628_vm6, %v14179_v21 }
 0x45e   : > { %10716 = vmatmul.msk.f32.gmra.mxu1 %vm1628_vm6, %v5176_v41  ;;  %v5897_v52 = vpop.f32.mrf.mxu0  ;;  %v6168_v3 = vpop.f32.mrf.mxu2  ;;  %v14189_v41 = vld [vmem:[#allocation2 + $0x183] sm:$0xff] }
 0x45f   : > { %v14186_v57 = vadd.f32 %v6168_v3, %v5962_v63  ;;  %v5735_v3 = vld [vmem:[#allocation2 + $0x18c] sm:$0xff] }
 0x460   : > { %v5615_v62 = vpop.f32.mrf.mxu3 }
 0x461   : > { %v5685_v43 = vadd.f32 %v5615_v62, %v5406_v46  ;;  %15921 = vst [vmem:[#allocation60_spill] sm:$0xff] %v14186_v57  ;;  %10786 = vmatmul.msk.f32.gmra.mxu0 %vm1628_vm6, %v5734_v15  ;;  %v6263_v57 = vld [vmem:[#allocation2 + $0x31] sm:$0xff] }
 0x463   : > { %v5342_v54 = vpop.f32.mrf.mxu1  ;;  %v5964_v19 = vadd.f32 %v5894_v4, %v5685_v43  ;;  %10819 = vmatmul.msk.f32.gmra.mxu2 %vm1628_vm6, %v6012_v11  ;;  %v10928_v11 = vld [vmem:[%s15663_s3 + $0xe0] sm:$0xff] }
 0x464   : > { %7249 = vmatpush.msra.mxu2 %v10928_v11 }
 0x465   : > { %10751 = vmatmul.msk.f32.gmra.mxu3 %vm1628_vm6, %v14189_v41 }
 0x466   : > { %10717 = vmatmul.msk.f32.gmra.mxu1 %vm1628_vm6, %v5177_v49  ;;  %v5900_v46 = vpop.f32.mrf.mxu0  ;;  %v6171_v62 = vpop.f32.mrf.mxu2  ;;  %v14199_v49 = vld [vmem:[#allocation2 + $0x18b] sm:$0xff] }
 0x467   : > { %v14196_v43 = vadd.f32 %v6171_v62, %v5963_v35  ;;  %15923 = vst [vmem:[#allocation61_spill] sm:$0xff] %v14199_v49  ;;  %v5408_v35 = vadd.f32 %v5342_v54, %v13852_v29 }
 0x468   : > { %v5618_v50 = vpop.f32.mrf.mxu3 }
 0x469   : > { %v5686_v63 = vadd.f32 %v5618_v50, %v5407_v13  ;;  %15922 = vst [vmem:[#allocation29_spill] sm:$0xff] %v14196_v43  ;;  %10787 = vmatmul.msk.f32.gmra.mxu0 %vm1628_vm6, %v5735_v3  ;;  %v6542_v43 = vld [vmem:[#allocation2 + $0x32] sm:$0xff] }
 0x46b   : > { %v5345_v4 = vpop.f32.mrf.mxu1  ;;  %v5965_v15 = vadd.f32 %v5897_v52, %v5686_v63  ;;  %10820 = vmatmul.msk.f32.gmra.mxu2 %vm1628_vm6, %v6013_v6 }
 0x46c   : > { %v5409_v29 = vadd.f32 %v5345_v4, %v13863_v12 }
 0x46d   : > { %10752 = vmatmul.msk.f32.gmra.mxu3 %vm1628_vm6, %v14199_v49  ;;  %v6264_v49 = vld [vmem:[#allocation2 + $0x39] sm:$0xff] }
 0x46e   : > { %10826 = vmatmul.msk.f32.vlgmr.msrb.gmra.mxu1 %vm1628_vm6, %v6263_v57  ;;  %v5903_v13 = vpop.f32.mrf.mxu0  ;;  %v6174_v50 = vpop.f32.mrf.mxu2  ;;  %v6014_v57 = vld [vmem:[#allocation2 + $0x198] sm:$0xff] }
 0x46f   : > { %v14209_v62 = vadd.f32 %v6174_v50, %v5964_v19 }
 0x470   : > { %v5621_v16 = vpop.f32.mrf.mxu3 }
 0x471   : > { %v5687_v52 = vadd.f32 %v5621_v16, %v5408_v35  ;;  %10896 = vmatmul.msk.f32.vlgmr.msra.gmra.mxu0 %vm1628_vm6, %v13856_v32  ;;  %v6265_v32 = vld [vmem:[#allocation2 + $0x49] sm:$0xff] }
 0x473   : > { %v5348_v63 = vpop.f32.mrf.mxu1  ;;  %v5966_v3 = vadd.f32 %v5900_v46, %v5687_v52  ;;  %10821 = vmatmul.msk.f32.gmra.mxu2 %vm1628_vm6, %v6014_v57 }
 0x474   : > { %v5410_v12 = vadd.f32 %v5348_v63, %v13876_v24  ;;  %v7100_v24 = vld [vmem:[#allocation2 + $0x34] sm:$0xff] }
 0x475   : > { %10861 = vmatmul.msk.f32.vlgmr.msrb.gmra.mxu3 %vm1628_vm6, %v6542_v43  ;;  %v6015_v43 = vld [vmem:[#allocation2 + $0x1a0] sm:$0xff] }
 0x476   : > { %10827 = vmatmul.msk.f32.gmra.mxu1 %vm1628_vm6, %v6264_v49  ;;  %v5906_v6 = vpop.f32.mrf.mxu0  ;;  %v6177_v19 = vpop.f32.mrf.mxu2  ;;  %v6543_v49 = vld [vmem:[#allocation2 + $0x3a] sm:$0xff] }
 0x477   : > { %v14217_v46 = vadd.f32 %v6177_v19, %v5965_v15 }
 0x478   : > { %v5624_v54 = vpop.f32.mrf.mxu3 }
 0x479   : > { %v5688_v11 = vadd.f32 %v5624_v54, %v5409_v29  ;;  %10897 = vmatmul.msk.f32.gmra.mxu0 %vm1628_vm6, %v13867_v23  ;;  %v6266_v23 = vld [vmem:[#allocation2 + $0x51] sm:$0xff] }
 0x47a   : > { %v14229_v54 = vld [vmem:[#allocation2 + $0x4a] sm:$0xff] }
 0x47b   : > { %v5351_v35 = vpop.f32.mrf.mxu1  ;;  %v5967_v16 = vadd.f32 %v5903_v13, %v5688_v11  ;;  %10822 = vmatmul.msk.f32.gmra.mxu2 %vm1628_vm6, %v6015_v43  ;;  %v6267_v43 = vld [vmem:[#allocation2 + $0x61] sm:$0xff] }
 0x47c   : > { %v5411_v63 = vadd.f32 %v5351_v35, %v13896_v48  ;;  %v7101_v48 = vld [vmem:[#allocation2 + $0x3c] sm:$0xff] }
 0x47d   : > { %10862 = vmatmul.msk.f32.gmra.mxu3 %vm1628_vm6, %v6543_v49 }
 0x47e   : > { %10828 = vmatmul.msk.f32.gmra.mxu1 %vm1628_vm6, %v6265_v32  ;;  %v5909_v50 = vpop.f32.mrf.mxu0  ;;  %v6180_v15 = vpop.f32.mrf.mxu2 }
 0x47f   : > { %v14225_v13 = vadd.f32 %v6180_v15, %v5966_v3 }
 0x480   : > { %v5627_v4 = vpop.f32.mrf.mxu3 }
 0x481   : > { %v5689_v52 = vadd.f32 %v5627_v4, %v5410_v12  ;;  %10898 = vmatmul.msk.f32.gmra.mxu0 %vm1628_vm6, %v13882_v40  ;;  %v14240_v12 = vld [vmem:[#allocation2 + $0x52] sm:$0xff] }
 0x483   : > { %v5354_v57 = vpop.f32.mrf.mxu1  ;;  %v5968_v29 = vadd.f32 %v5906_v6, %v5689_v52  ;;  %10931 = vmatmul.msk.f32.vlgmr.msra.gmra.mxu2 %vm1628_vm6, %v7100_v24  ;;  %v6268_v24 = vld [vmem:[#allocation2 + $0x69] sm:$0xff] }
 0x484   : > { %v5412_v35 = vadd.f32 %v5354_v57, %v13907_v22  ;;  %v7102_v22 = vld [vmem:[#allocation2 + $0x4c] sm:$0xff] }
 0x485   : > { %10863 = vmatmul.msk.f32.gmra.mxu3 %vm1628_vm6, %v14229_v54 }
 0x486   : > { %10829 = vmatmul.msk.f32.gmra.mxu1 %vm1628_vm6, %v6266_v23  ;;  %v5912_v19 = vpop.f32.mrf.mxu0  ;;  %v6183_v6 = vpop.f32.mrf.mxu2 }
 0x487   : > { %v14236_v49 = vadd.f32 %v6183_v6, %v5967_v16 }
 0x488   : > { %v5630_v11 = vpop.f32.mrf.mxu3 }
 0x489   : > { %v5690_v3 = vadd.f32 %v5630_v11, %v5411_v63  ;;  %10899 = vmatmul.msk.f32.gmra.mxu0 %vm1628_vm6, %v13899_v47  ;;  %v14251_v63 = vld [vmem:[#allocation2 + $0x62] sm:$0xff] }
 0x48b   : > { %v5357_v32 = vpop.f32.mrf.mxu1  ;;  %v5969_v40 = vadd.f32 %v5909_v50, %v5690_v3  ;;  %10932 = vmatmul.msk.f32.gmra.mxu2 %vm1628_vm6, %v7101_v48  ;;  %v6269_v48 = vld [vmem:[#allocation2 + $0x79] sm:$0xff] }
 0x48c   : > { %v5413_v57 = vadd.f32 %v5357_v32, %v13919_v36  ;;  %v7103_v36 = vld [vmem:[#allocation2 + $0x54] sm:$0xff] }
 0x48d   : > { %10864 = vmatmul.msk.f32.gmra.mxu3 %vm1628_vm6, %v14240_v12 }
 0x48e   : > { %10830 = vmatmul.msk.f32.gmra.mxu1 %vm1628_vm6, %v6267_v43  ;;  %v5915_v52 = vpop.f32.mrf.mxu0  ;;  %v6186_v50 = vpop.f32.mrf.mxu2 }
 0x48f   : > { %v14247_v23 = vadd.f32 %v6186_v50, %v5968_v29 }
 0x490   : > { %v5633_v4 = vpop.f32.mrf.mxu3 }
 0x491   : > { %v5691_v16 = vadd.f32 %v5633_v4, %v5412_v35  ;;  %10900 = vmatmul.msk.f32.gmra.mxu0 %vm1628_vm6, %v13912_v60  ;;  %v14262_v35 = vld [vmem:[#allocation2 + $0x6a] sm:$0xff] }
 0x493   : > { %v5360_v15 = vpop.f32.mrf.mxu1  ;;  %v5970_v47 = vadd.f32 %v5912_v19, %v5691_v16  ;;  %10933 = vmatmul.msk.f32.gmra.mxu2 %vm1628_vm6, %v7102_v22  ;;  %v6270_v22 = vld [vmem:[#allocation2 + $0x81] sm:$0xff] }
 0x494   : > { %v5414_v32 = vadd.f32 %v5360_v15, %v13932_v59  ;;  %v7104_v59 = vld [vmem:[#allocation2 + $0x64] sm:$0xff] }
 0x495   : > { %10865 = vmatmul.msk.f32.gmra.mxu3 %vm1628_vm6, %v14251_v63 }
 0x496   : > { %10831 = vmatmul.msk.f32.gmra.mxu1 %vm1628_vm6, %v6268_v24  ;;  %v5918_v3 = vpop.f32.mrf.mxu0  ;;  %v6189_v19 = vpop.f32.mrf.mxu2 }
 0x497   : > { %v14258_v43 = vadd.f32 %v6189_v19, %v5969_v40 }
 0x498   : > { %v5636_v11 = vpop.f32.mrf.mxu3 }
 0x499   : > { %v5692_v29 = vadd.f32 %v5636_v11, %v5413_v57  ;;  %10901 = vmatmul.msk.f32.gmra.mxu0 %vm1628_vm6, %v13922_v37  ;;  %v14273_v57 = vld [vmem:[#allocation2 + $0x7a] sm:$0xff] }
 0x49b   : > { %v5363_v6 = vpop.f32.mrf.mxu1  ;;  %v5971_v60 = vadd.f32 %v5915_v52, %v5692_v29  ;;  %10934 = vmatmul.msk.f32.gmra.mxu2 %vm1628_vm6, %v7103_v36  ;;  %v6271_v36 = vld [vmem:[#allocation2 + $0x91] sm:$0xff] }
 0x49c   : > { %v5415_v15 = vadd.f32 %v5363_v6, %v13943_v1  ;;  %v7105_v1 = vld [vmem:[#allocation2 + $0x6c] sm:$0xff] }
 0x49d   : > { %10866 = vmatmul.msk.f32.gmra.mxu3 %vm1628_vm6, %v14262_v35 }
 0x49e   : > { %10832 = vmatmul.msk.f32.gmra.mxu1 %vm1628_vm6, %v6269_v48  ;;  %v5921_v16 = vpop.f32.mrf.mxu0  ;;  %v6192_v52 = vpop.f32.mrf.mxu2 }
 0x49f   : > { %v14269_v24 = vadd.f32 %v6192_v52, %v5970_v47 }
 0x4a0   : > { %v5639_v4 = vpop.f32.mrf.mxu3 }
 0x4a1   : > { %v5693_v40 = vadd.f32 %v5639_v4, %v5414_v32  ;;  %10902 = vmatmul.msk.f32.gmra.mxu0 %vm1628_vm6, %v13935_v14  ;;  %v14284_v32 = vld [vmem:[#allocation2 + $0x82] sm:$0xff] }
 0x4a3   : > { %v5366_v50 = vpop.f32.mrf.mxu1  ;;  %v5972_v37 = vadd.f32 %v5918_v3, %v5693_v40  ;;  %10935 = vmatmul.msk.f32.gmra.mxu2 %vm1628_vm6, %v7104_v59  ;;  %v6272_v59 = vld [vmem:[#allocation2 + $0x99] sm:$0xff] }
 0x4a4   : > { %v5416_v6 = vadd.f32 %v5366_v50, %v13953_v39  ;;  %v7106_v39 = vld [vmem:[#allocation2 + $0x7c] sm:$0xff] }
 0x4a5   : > { %10867 = vmatmul.msk.f32.gmra.mxu3 %vm1628_vm6, %v14273_v57 }
 0x4a6   : > { %10833 = vmatmul.msk.f32.gmra.mxu1 %vm1628_vm6, %v6270_v22  ;;  %v5924_v29 = vpop.f32.mrf.mxu0  ;;  %v6195_v3 = vpop.f32.mrf.mxu2 }
 0x4a7   : > { %v14280_v48 = vadd.f32 %v6195_v3, %v5971_v60 }
 0x4a8   : > { %v5642_v11 = vpop.f32.mrf.mxu3 }
 0x4a9   : > { %v5694_v47 = vadd.f32 %v5642_v11, %v5415_v15  ;;  %10903 = vmatmul.msk.f32.gmra.mxu0 %vm1628_vm6, %v13946_v28  ;;  %v14295_v15 = vld [vmem:[#allocation2 + $0x92] sm:$0xff] }
 0x4ab   : > { %v5369_v19 = vpop.f32.mrf.mxu1  ;;  %v5973_v14 = vadd.f32 %v5921_v16, %v5694_v47  ;;  %10936 = vmatmul.msk.f32.gmra.mxu2 %vm1628_vm6, %v7105_v1  ;;  %v6273_v1 = vld [vmem:[#allocation2 + $0xa9] sm:$0xff] }
 0x4ac   : > { %v5417_v50 = vadd.f32 %v5369_v19, %v13965_v27  ;;  %v7107_v27 = vld [vmem:[#allocation2 + $0x84] sm:$0xff] }
 0x4ad   : > { %10868 = vmatmul.msk.f32.gmra.mxu3 %vm1628_vm6, %v14284_v32 }
 0x4ae   : > { %10834 = vmatmul.msk.f32.gmra.mxu1 %vm1628_vm6, %v6271_v36  ;;  %v5927_v40 = vpop.f32.mrf.mxu0  ;;  %v6198_v16 = vpop.f32.mrf.mxu2 }
 0x4af   : > { %v14291_v22 = vadd.f32 %v6198_v16, %v5972_v37 }
 0x4b0   : > { %v5645_v4 = vpop.f32.mrf.mxu3 }
 0x4b1   : > { %v5695_v60 = vadd.f32 %v5645_v4, %v5416_v6  ;;  %10904 = vmatmul.msk.f32.gmra.mxu0 %vm1628_vm6, %v13957_v34  ;;  %v14306_v6 = vld [vmem:[#allocation2 + $0x9a] sm:$0xff] }
 0x4b3   : > { %v5372_v52 = vpop.f32.mrf.mxu1  ;;  %v5974_v28 = vadd.f32 %v5924_v29, %v5695_v60  ;;  %10937 = vmatmul.msk.f32.gmra.mxu2 %vm1628_vm6, %v7106_v39  ;;  %v6274_v39 = vld [vmem:[#allocation2 + $0xb1] sm:$0xff] }
 0x4b4   : > { %v5418_v19 = vadd.f32 %v5372_v52, %v13976_v25  ;;  %v7108_v25 = vld [vmem:[#allocation2 + $0x94] sm:$0xff] }
 0x4b5   : > { %10869 = vmatmul.msk.f32.gmra.mxu3 %vm1628_vm6, %v14295_v15 }
 0x4b6   : > { %10835 = vmatmul.msk.f32.gmra.mxu1 %vm1628_vm6, %v6272_v59  ;;  %v5930_v47 = vpop.f32.mrf.mxu0  ;;  %v6201_v29 = vpop.f32.mrf.mxu2 }
 0x4b7   : > { %v14302_v36 = vadd.f32 %v6201_v29, %v5973_v14 }
 0x4b8   : > { %v5648_v11 = vpop.f32.mrf.mxu3 }
 0x4b9   : > { %v5696_v37 = vadd.f32 %v5648_v11, %v5417_v50  ;;  %10905 = vmatmul.msk.f32.gmra.mxu0 %vm1628_vm6, %v13969_v20  ;;  %v14317_v50 = vld [vmem:[#allocation2 + $0xaa] sm:$0xff] }
 0x4bb   : > { %v5375_v3 = vpop.f32.mrf.mxu1  ;;  %v5975_v34 = vadd.f32 %v5927_v40, %v5696_v37  ;;  %10938 = vmatmul.msk.f32.gmra.mxu2 %vm1628_vm6, %v7107_v27  ;;  %v6275_v27 = vld [vmem:[#allocation2 + $0xc1] sm:$0xff] }
 0x4bc   : > { %v5419_v52 = vadd.f32 %v5375_v3, %v13992_v45  ;;  %v7109_v45 = vld [vmem:[#allocation2 + $0x9c] sm:$0xff] }
 0x4bd   : > { %10870 = vmatmul.msk.f32.gmra.mxu3 %vm1628_vm6, %v14306_v6  ;;  %v15924_v3 = vld [vmem:[#allocation37_spill] sm:$0xff] }
 0x4be   : > { %10836 = vmatmul.msk.f32.gmra.mxu1 %vm1628_vm6, %v6273_v1  ;;  %v5933_v60 = vpop.f32.mrf.mxu0  ;;  %v6204_v40 = vpop.f32.mrf.mxu2 }
 0x4bf   : > { %v14313_v59 = vadd.f32 %v6204_v40, %v5974_v28 }
 0x4c0   : > { %v5651_v4 = vpop.f32.mrf.mxu3 }
 0x4c1   : > { %v5697_v14 = vadd.f32 %v5651_v4, %v5418_v19  ;;  %10906 = vmatmul.msk.f32.gmra.mxu0 %vm1628_vm6, %v13979_v44  ;;  %v14328_v19 = vld [vmem:[#allocation2 + $0xb2] sm:$0xff] }
 0x4c3   : > { %v5378_v16 = vpop.f32.mrf.mxu1  ;;  %v5976_v20 = vadd.f32 %v5930_v47, %v5697_v14  ;;  %10939 = vmatmul.msk.f32.gmra.mxu2 %vm1628_vm6, %v7108_v25 }
 0x4c4   : > { %v5420_v4 = vadd.f32 %v5378_v16, %v15924_v3  ;;  %v7110_v16 = vld [vmem:[#allocation2 + $0xac] sm:$0xff] }
 0x4c5   : > { %10871 = vmatmul.msk.f32.gmra.mxu3 %vm1628_vm6, %v14317_v50  ;;  %v10963_v3 = vld [vmem:[%s15663_s3 + $0xf0] sm:$0xff] }
 0x4c6   : > { %10837 = vmatmul.msk.f32.gmra.mxu1 %vm1628_vm6, %v6274_v39  ;;  %v5936_v37 = vpop.f32.mrf.mxu0  ;;  %v6207_v47 = vpop.f32.mrf.mxu2 }
 0x4c7   : > { %v14324_v1 = vadd.f32 %v6207_v47, %v5975_v34  ;;  %7529 = vmatpush.msra.mxu1 %v10963_v3  ;;  %v14367_v3 = vld [vmem:[#allocation2 + $0xda] sm:$0xff] }
 0x4c8   : > { %v5654_v11 = vpop.f32.mrf.mxu3 }
 0x4c9   : > { %v5698_v28 = vadd.f32 %v5654_v11, %v5419_v52  ;;  %10907 = vmatmul.msk.f32.gmra.mxu0 %vm1628_vm6, %v13995_v58  ;;  %v6276_v52 = vld [vmem:[#allocation2 + $0xc9] sm:$0xff] }
 0x4ca   : > { %v14339_v11 = vld [vmem:[#allocation2 + $0xc2] sm:$0xff] }
 0x4cb   : > { %v5381_v29 = vpop.f32.mrf.mxu1  ;;  %v5977_v44 = vadd.f32 %v5933_v60, %v5698_v28  ;;  %10940 = vmatmul.msk.f32.gmra.mxu2 %vm1628_vm6, %v7109_v45  ;;  %v10998_v28 = vld [vmem:[%s15663_s3 + $0x100] sm:$0xff] }
 0x4cc   : > { %7808 = vmatpush.msra.mxu3 %v10998_v28 }
 0x4cd   : > { %10872 = vmatmul.msk.f32.gmra.mxu3 %vm1628_vm6, %v14328_v19 }
 0x4ce   : > { %10838 = vmatmul.msk.f32.gmra.mxu1 %vm1628_vm6, %v6275_v27  ;;  %v5939_v40 = vpop.f32.mrf.mxu0  ;;  %v6210_v60 = vpop.f32.mrf.mxu2 }
 0x4cf   : > { %v14335_v25 = vadd.f32 %v6210_v60, %v5976_v20  ;;  %v15925_v20 = vld [vmem:[#allocation55_spill] sm:$0xff]  ;;  %v6277_v60 = vld [vmem:[#allocation2 + $0xd9] sm:$0xff] }
 0x4d0   : > { %v5657_v14 = vpop.f32.mrf.mxu3 }
 0x4d1   : > { %v5699_v34 = vadd.f32 %v5657_v14, %v5420_v4  ;;  %10908 = vmatmul.msk.f32.gmra.mxu0 %vm1628_vm6, %v14005_v18 }
 0x4d3   : > { %v5384_v39 = vpop.f32.mrf.mxu1  ;;  %v5978_v58 = vadd.f32 %v5936_v37, %v5699_v34  ;;  %10941 = vmatmul.msk.f32.gmra.mxu2 %vm1628_vm6, %v7110_v16  ;;  %v5421_v37 = vadd.f32 %v5381_v29, %v15925_v20  ;;  %v7111_v29 = vld [vmem:[#allocation2 + $0xb4] sm:$0xff]  ;;  %v15926_v16 = vld [vmem:[#allocation42_spill] sm:$0xff] }
 0x4d4   : > { %v5422_v28 = vadd.f32 %v5384_v39, %v15926_v16  ;;  %v7112_v39 = vld [vmem:[#allocation2 + $0xc4] sm:$0xff] }
 0x4d5   : > { %10873 = vmatmul.msk.f32.gmra.mxu3 %vm1628_vm6, %v14339_v11 }
 0x4d6   : > { %10839 = vmatmul.msk.f32.gmra.mxu1 %vm1628_vm6, %v6276_v52  ;;  %v5942_v27 = vpop.f32.mrf.mxu0  ;;  %v6213_v45 = vpop.f32.mrf.mxu2  ;;  %v14356_v52 = vld [vmem:[#allocation2 + $0xca] sm:$0xff] }
 0x4d7   : > { %v14352_v14 = vadd.f32 %v6213_v45, %v5977_v44  ;;  %v6278_v45 = vld [vmem:[#allocation2 + $0xe1] sm:$0xff] }
 0x4d8   : > { %v5660_v47 = vpop.f32.mrf.mxu3 }
 0x4d9   : > { %v5700_v18 = vadd.f32 %v5660_v47, %v5421_v37  ;;  %10909 = vmatmul.msk.f32.gmra.mxu0 %vm1628_vm6, %v14015_v9 }
 0x4db   : > { %v5387_v4 = vpop.f32.mrf.mxu1  ;;  %v5979_v34 = vadd.f32 %v5939_v40, %v5700_v18  ;;  %10942 = vmatmul.msk.f32.gmra.mxu2 %vm1628_vm6, %v7111_v29 }
 0x4dd   : > { %10874 = vmatmul.msk.f32.gmra.mxu3 %vm1628_vm6, %v14356_v52 }
 0x4de   : > { %10840 = vmatmul.msk.f32.gmra.mxu1 %vm1628_vm6, %v6277_v60  ;;  %v5945_v37 = vpop.f32.mrf.mxu0  ;;  %v6216_v40 = vpop.f32.mrf.mxu2  ;;  %v15927_v60 = vld [vmem:[#allocation45_spill] sm:$0xff] }
 0x4df   : > { %v14363_v18 = vadd.f32 %v6216_v40, %v5978_v58  ;;  %v5423_v29 = vadd.f32 %v5387_v4, %v15927_v60  ;;  %v6279_v40 = vld [vmem:[#allocation2 + $0xf1] sm:$0xff] }
 0x4e0   : > { %v5663_v44 = vpop.f32.mrf.mxu3  ;;  %v7113_v4 = vld [vmem:[#allocation2 + $0xcc] sm:$0xff] }
 0x4e1   : > { %v5701_v20 = vadd.f32 %v5663_v44, %v5422_v28  ;;  %10910 = vmatmul.msk.f32.gmra.mxu0 %vm1628_vm6, %v14025_v56 }
 0x4e3   : > { %v5390_v47 = vpop.f32.mrf.mxu1  ;;  %v5980_v9 = vadd.f32 %v5942_v27, %v5701_v20  ;;  %10943 = vmatmul.msk.f32.gmra.mxu2 %vm1628_vm6, %v7112_v39  ;;  %v15929_v39 = vld [vmem:[#allocation57_spill] sm:$0xff] }
 0x4e4   : > { %v5424_v60 = vadd.f32 %v5390_v47, %v15929_v39  ;;  %v7114_v47 = vld [vmem:[#allocation2 + $0xdc] sm:$0xff] }
 0x4e5   : > { %10875 = vmatmul.msk.f32.gmra.mxu3 %vm1628_vm6, %v14367_v3 }
 0x4e6   : > { %10841 = vmatmul.msk.f32.gmra.mxu1 %vm1628_vm6, %v6278_v45  ;;  %v5948_v28 = vpop.f32.mrf.mxu0  ;;  %v6219_v27 = vpop.f32.mrf.mxu2  ;;  %v14378_v45 = vld [vmem:[#allocation2 + $0xe2] sm:$0xff] }
 0x4e7   : > { %v14374_v20 = vadd.f32 %v6219_v27, %v5979_v34 }
 0x4e8   : > { %v5666_v16 = vpop.f32.mrf.mxu3 }
 0x4e9   : > { %v5702_v58 = vadd.f32 %v5666_v16, %v5423_v29  ;;  %15928 = vst [vmem:[#allocation66_spill] sm:$0xff] %v14374_v20  ;;  %10911 = vmatmul.msk.f32.gmra.mxu0 %vm1628_vm6, %v14035_v55  ;;  %v14389_v20 = vld [vmem:[#allocation2 + $0xf2] sm:$0xff] }
 0x4eb   : > { %v6414_v44 = vpop.f32.mrf.mxu1  ;;  %v5981_v56 = vadd.f32 %v5945_v37, %v5702_v58  ;;  %10944 = vmatmul.msk.f32.gmra.mxu2 %vm1628_vm6, %v7113_v4  ;;  %v15931_v4 = vld [vmem:[#allocation58_spill] sm:$0xff] }
 0x4ec   : > { %v6510_v39 = vadd.f32 %v6414_v44, %v15931_v4  ;;  %v7115_v44 = vld [vmem:[#allocation2 + $0xe4] sm:$0xff] }
 0x4ed   : > { %10876 = vmatmul.msk.f32.gmra.mxu3 %vm1628_vm6, %v14378_v45 }
 0x4ee   : > { %10842 = vmatmul.msk.f32.gmra.mxu1 %vm1628_vm6, %v6279_v40  ;;  %v6972_v16 = vpop.f32.mrf.mxu0  ;;  %v6222_v37 = vpop.f32.mrf.mxu2  ;;  %v6280_v40 = vld [vmem:[#allocation2 + $0xf9] sm:$0xff] }
 0x4ef   : > { %v14385_v27 = vadd.f32 %v6222_v37, %v5980_v9 }
 0x4f0   : > { %v5669_v29 = vpop.f32.mrf.mxu3 }
 0x4f1   : > { %v5703_v34 = vadd.f32 %v5669_v29, %v5424_v60  ;;  %15930 = vst [vmem:[#allocation64_spill] sm:$0xff] %v14385_v27  ;;  %10912 = vmatmul.msk.f32.gmra.mxu0 %vm1628_vm6, %v14045_v53  ;;  %v14400_v27 = vld [vmem:[#allocation2 + $0xfa] sm:$0xff] }
 0x4f3   : > { %v6417_v58 = vpop.f32.mrf.mxu1  ;;  %v5982_v55 = vadd.f32 %v5948_v28, %v5703_v34  ;;  %10945 = vmatmul.msk.f32.gmra.mxu2 %vm1628_vm6, %v7114_v47  ;;  %v15933_v47 = vld [vmem:[#allocation47_spill] sm:$0xff] }
 0x4f4   : > { %v6511_v4 = vadd.f32 %v6417_v58, %v15933_v47  ;;  %v7116_v58 = vld [vmem:[#allocation2 + $0xf4] sm:$0xff] }
 0x4f5   : > { %10877 = vmatmul.msk.f32.gmra.mxu3 %vm1628_vm6, %v14389_v20 }
 0x4f6   : > { %10843 = vmatmul.msk.f32.gmra.mxu1 %vm1628_vm6, %v6280_v40  ;;  %v6975_v29 = vpop.f32.mrf.mxu0  ;;  %v6225_v28 = vpop.f32.mrf.mxu2  ;;  %v6281_v40 = vld [vmem:[#allocation2 + $0x109] sm:$0xff] }
 0x4f7   : > { %v14396_v37 = vadd.f32 %v6225_v28, %v5981_v56 }
 0x4f8   : > { %v6693_v60 = vpop.f32.mrf.mxu3 }
 0x4f9   : > { %v6789_v9 = vadd.f32 %v6693_v60, %v6510_v39  ;;  %15932 = vst [vmem:[#allocation31_spill] sm:$0xff] %v14396_v37  ;;  %10913 = vmatmul.msk.f32.gmra.mxu0 %vm1628_vm6, %v14055_v10  ;;  %v14411_v37 = vld [vmem:[#allocation2 + $0x10a] sm:$0xff] }
 0x4fb   : > { %v6420_v34 = vpop.f32.mrf.mxu1  ;;  %v7068_v53 = vadd.f32 %v6972_v16, %v6789_v9  ;;  %10946 = vmatmul.msk.f32.gmra.mxu2 %vm1628_vm6, %v7115_v44  ;;  %v15935_v44 = vld [vmem:[#allocation26_spill] sm:$0xff] }
 0x4fc   : > { %v6512_v47 = vadd.f32 %v6420_v34, %v15935_v44  ;;  %v7117_v34 = vld [vmem:[#allocation2 + $0xfc] sm:$0xff] }
 0x4fd   : > { %10878 = vmatmul.msk.f32.gmra.mxu3 %vm1628_vm6, %v14400_v27 }
 0x4fe   : > { %10844 = vmatmul.msk.f32.gmra.mxu1 %vm1628_vm6, %v6281_v40  ;;  %v6978_v60 = vpop.f32.mrf.mxu0  ;;  %v6228_v16 = vpop.f32.mrf.mxu2  ;;  %v6282_v40 = vld [vmem:[#allocation2 + $0x111] sm:$0xff] }
 0x4ff   : > { %v14407_v28 = vadd.f32 %v6228_v16, %v5982_v55 }
 0x500   : > { %v6696_v39 = vpop.f32.mrf.mxu3 }
 0x501   : > { %v6790_v56 = vadd.f32 %v6696_v39, %v6511_v4  ;;  %15934 = vst [vmem:[#allocation65_spill] sm:$0xff] %v14407_v28  ;;  %10914 = vmatmul.msk.f32.gmra.mxu0 %vm1628_vm6, %v14065_v5  ;;  %v14422_v28 = vld [vmem:[#allocation2 + $0x112] sm:$0xff] }
 0x503   : > { %v6423_v9 = vpop.f32.mrf.mxu1  ;;  %v7069_v10 = vadd.f32 %v6975_v29, %v6790_v56  ;;  %10947 = vmatmul.msk.f32.gmra.mxu2 %vm1628_vm6, %v7116_v58  ;;  %v15937_v58 = vld [vmem:[#allocation40_spill] sm:$0xff] }
 0x504   : > { %v6513_v44 = vadd.f32 %v6423_v9, %v15937_v58  ;;  %v7118_v9 = vld [vmem:[#allocation2 + $0x10c] sm:$0xff] }
 0x505   : > { %10879 = vmatmul.msk.f32.gmra.mxu3 %vm1628_vm6, %v14411_v37 }
 0x506   : > { %10845 = vmatmul.msk.f32.gmra.mxu1 %vm1628_vm6, %v6282_v40  ;;  %v6981_v39 = vpop.f32.mrf.mxu0  ;;  %v7251_v29 = vpop.f32.mrf.mxu2  ;;  %v6283_v40 = vld [vmem:[#allocation2 + $0x121] sm:$0xff] }
 0x507   : > { %v14418_v16 = vadd.f32 %v7251_v29, %v7068_v53 }
 0x508   : > { %v6699_v4 = vpop.f32.mrf.mxu3 }
 0x509   : > { %v6791_v55 = vadd.f32 %v6699_v4, %v6512_v47  ;;  %15936 = vst [vmem:[#allocation70_spill] sm:$0xff] %v14418_v16  ;;  %10915 = vmatmul.msk.f32.gmra.mxu0 %vm1628_vm6, %v14075_v2  ;;  %v14433_v16 = vld [vmem:[#allocation2 + $0x122] sm:$0xff] }
 0x50b   : > { %v6426_v56 = vpop.f32.mrf.mxu1  ;;  %v7070_v5 = vadd.f32 %v6978_v60, %v6791_v55  ;;  %10948 = vmatmul.msk.f32.gmra.mxu2 %vm1628_vm6, %v7117_v34  ;;  %v15939_v34 = vld [vmem:[#allocation62_spill] sm:$0xff] }
 0x50c   : > { %v6514_v58 = vadd.f32 %v6426_v56, %v15939_v34  ;;  %v7119_v56 = vld [vmem:[#allocation2 + $0x114] sm:$0xff] }
 0x50d   : > { %10880 = vmatmul.msk.f32.gmra.mxu3 %vm1628_vm6, %v14422_v28 }
 0x50e   : > { %10846 = vmatmul.msk.f32.gmra.mxu1 %vm1628_vm6, %v6283_v40  ;;  %v6984_v4 = vpop.f32.mrf.mxu0  ;;  %v7254_v60 = vpop.f32.mrf.mxu2  ;;  %v6284_v40 = vld [vmem:[#allocation2 + $0x129] sm:$0xff] }
 0x50f   : > { %v14429_v29 = vadd.f32 %v7254_v60, %v7069_v10 }
 0x510   : > { %v6702_v47 = vpop.f32.mrf.mxu3 }
 0x511   : > { %v6792_v53 = vadd.f32 %v6702_v47, %v6513_v44  ;;  %15938 = vst [vmem:[#allocation67_spill] sm:$0xff] %v14429_v29  ;;  %10916 = vmatmul.msk.f32.gmra.mxu0 %vm1628_vm6, %v14085_v61  ;;  %v14444_v29 = vld [vmem:[#allocation2 + $0x12a] sm:$0xff] }
 0x513   : > { %v6429_v55 = vpop.f32.mrf.mxu1  ;;  %v7071_v2 = vadd.f32 %v6981_v39, %v6792_v53  ;;  %10949 = vmatmul.msk.f32.gmra.mxu2 %vm1628_vm6, %v7118_v9 }
 0x514   : > { %v6515_v9 = vadd.f32 %v6429_v55, %v14102_v51  ;;  %v7120_v51 = vld [vmem:[#allocation2 + $0x124] sm:$0xff] }
 0x515   : > { %10881 = vmatmul.msk.f32.gmra.mxu3 %vm1628_vm6, %v14433_v16 }
 0x516   : > { %10847 = vmatmul.msk.f32.gmra.mxu1 %vm1628_vm6, %v6284_v40  ;;  %v6987_v47 = vpop.f32.mrf.mxu0  ;;  %v7257_v39 = vpop.f32.mrf.mxu2  ;;  %v6285_v40 = vld [vmem:[#allocation2 + $0x139] sm:$0xff] }
 0x517   : > { %v14440_v60 = vadd.f32 %v7257_v39, %v7070_v5  ;;  %v6286_v39 = vld [vmem:[#allocation2 + $0x141] sm:$0xff] }
 0x518   : > { %v6705_v44 = vpop.f32.mrf.mxu3 }
 0x519   : > { %v6793_v10 = vadd.f32 %v6705_v44, %v6514_v58  ;;  %10917 = vmatmul.msk.f32.gmra.mxu0 %vm1628_vm6, %v14095_v30 }
 0x51b   : > { %v6432_v53 = vpop.f32.mrf.mxu1  ;;  %v7072_v61 = vadd.f32 %v6984_v4, %v6793_v10  ;;  %10950 = vmatmul.msk.f32.gmra.mxu2 %vm1628_vm6, %v7119_v56 }
 0x51c   : > { %v6516_v55 = vadd.f32 %v6432_v53, %v14112_v31  ;;  %v7121_v31 = vld [vmem:[#allocation2 + $0x12c] sm:$0xff] }
 0x51d   : > { %10882 = vmatmul.msk.f32.gmra.mxu3 %vm1628_vm6, %v14444_v29 }
 0x51e   : > { %10848 = vmatmul.msk.f32.gmra.mxu1 %vm1628_vm6, %v6285_v40  ;;  %v6990_v58 = vpop.f32.mrf.mxu0  ;;  %v7260_v4 = vpop.f32.mrf.mxu2  ;;  %v14455_v40 = vld [vmem:[#allocation2 + $0x13a] sm:$0xff] }
 0x51f   : > { %v14451_v10 = vadd.f32 %v7260_v4, %v7071_v2  ;;  %v6287_v4 = vld [vmem:[#allocation2 + $0x151] sm:$0xff] }
 0x520   : > { %v6708_v34 = vpop.f32.mrf.mxu3 }
 0x521   : > { %v6794_v5 = vadd.f32 %v6708_v34, %v6515_v9  ;;  %10918 = vmatmul.msk.f32.gmra.mxu0 %vm1628_vm6, %v14105_v7 }
 0x523   : > { %v6435_v44 = vpop.f32.mrf.mxu1  ;;  %v7073_v30 = vadd.f32 %v6987_v47, %v6794_v5  ;;  %10951 = vmatmul.msk.f32.gmra.mxu2 %vm1628_vm6, %v7120_v51 }
 0x524   : > { %v6517_v53 = vadd.f32 %v6435_v44, %v14123_v8  ;;  %v7122_v8 = vld [vmem:[#allocation2 + $0x13c] sm:$0xff] }
 0x525   : > { %10883 = vmatmul.msk.f32.gmra.mxu3 %vm1628_vm6, %v14455_v40 }
 0x526   : > { %10849 = vmatmul.msk.f32.gmra.mxu1 %vm1628_vm6, %v6286_v39  ;;  %v6993_v9 = vpop.f32.mrf.mxu0  ;;  %v7263_v47 = vpop.f32.mrf.mxu2  ;;  %v14466_v39 = vld [vmem:[#allocation2 + $0x142] sm:$0xff] }
 0x527   : > { %v14462_v5 = vadd.f32 %v7263_v47, %v7072_v61  ;;  %v6288_v47 = vld [vmem:[#allocation2 + $0x159] sm:$0xff] }
 0x528   : > { %v6711_v56 = vpop.f32.mrf.mxu3 }
 0x529   : > { %v6795_v2 = vadd.f32 %v6711_v56, %v6516_v55  ;;  %10919 = vmatmul.msk.f32.gmra.mxu0 %vm1628_vm6, %v14116_v33 }
 0x52b   : > { %v6438_v34 = vpop.f32.mrf.mxu1  ;;  %v7074_v7 = vadd.f32 %v6990_v58, %v6795_v2  ;;  %10952 = vmatmul.msk.f32.gmra.mxu2 %vm1628_vm6, %v7121_v31 }
 0x52c   : > { %v6518_v44 = vadd.f32 %v6438_v34, %v14134_v38  ;;  %v7123_v38 = vld [vmem:[#allocation2 + $0x144] sm:$0xff] }
 0x52d   : > { %10884 = vmatmul.msk.f32.gmra.mxu3 %vm1628_vm6, %v14466_v39 }
 0x52e   : > { %10850 = vmatmul.msk.f32.gmra.mxu1 %vm1628_vm6, %v6287_v4  ;;  %v6996_v55 = vpop.f32.mrf.mxu0  ;;  %v7266_v58 = vpop.f32.mrf.mxu2  ;;  %v14477_v4 = vld [vmem:[#allocation2 + $0x152] sm:$0xff] }
 0x52f   : > { %v14473_v2 = vadd.f32 %v7266_v58, %v7073_v30  ;;  %v6289_v58 = vld [vmem:[#allocation2 + $0x169] sm:$0xff] }
 0x530   : > { %v6714_v51 = vpop.f32.mrf.mxu3 }
 0x531   : > { %v6796_v61 = vadd.f32 %v6714_v51, %v6517_v53  ;;  %10920 = vmatmul.msk.f32.gmra.mxu0 %vm1628_vm6, %v14127_v0 }
 0x533   : > { %v6441_v56 = vpop.f32.mrf.mxu1  ;;  %v7075_v33 = vadd.f32 %v6993_v9, %v6796_v61  ;;  %10953 = vmatmul.msk.f32.gmra.mxu2 %vm1628_vm6, %v7122_v8 }
 0x534   : > { %v6519_v34 = vadd.f32 %v6441_v56, %v14151_v17  ;;  %v7124_v17 = vld [vmem:[#allocation2 + $0x154] sm:$0xff] }
 0x535   : > { %10885 = vmatmul.msk.f32.gmra.mxu3 %vm1628_vm6, %v14477_v4 }
 0x536   : > { %10851 = vmatmul.msk.f32.gmra.mxu1 %vm1628_vm6, %v6288_v47  ;;  %v6999_v53 = vpop.f32.mrf.mxu0  ;;  %v7269_v9 = vpop.f32.mrf.mxu2  ;;  %v14488_v47 = vld [vmem:[#allocation2 + $0x15a] sm:$0xff] }
 0x537   : > { %v14484_v61 = vadd.f32 %v7269_v9, %v7074_v7  ;;  %v15941_v9 = vld [vmem:[#allocation44_spill] sm:$0xff] }
 0x538   : > { %v6717_v31 = vpop.f32.mrf.mxu3 }
 0x539   : > { %v6797_v30 = vadd.f32 %v6717_v31, %v6518_v44  ;;  %15940 = vst [vmem:[#allocation49_spill] sm:$0xff] %v14484_v61  ;;  %10921 = vmatmul.msk.f32.gmra.mxu0 %vm1628_vm6, %v14138_v26  ;;  %v14499_v61 = vld [vmem:[#allocation2 + $0x16a] sm:$0xff] }
 0x53b   : > { %v6444_v51 = vpop.f32.mrf.mxu1  ;;  %v7076_v0 = vadd.f32 %v6996_v55, %v6797_v30  ;;  %10954 = vmatmul.msk.f32.gmra.mxu2 %vm1628_vm6, %v7123_v38 }
 0x53c   : > { %v6520_v56 = vadd.f32 %v6444_v51, %v14174_v42  ;;  %v7125_v42 = vld [vmem:[#allocation2 + $0x15c] sm:$0xff]  ;;  %v15943_v51 = vld [vmem:[#allocation60_spill] sm:$0xff] }
 0x53d   : > { %10886 = vmatmul.msk.f32.gmra.mxu3 %vm1628_vm6, %v14488_v47 }
 0x53e   : > { %10852 = vmatmul.msk.f32.gmra.mxu1 %vm1628_vm6, %v6289_v58  ;;  %v7002_v44 = vpop.f32.mrf.mxu0  ;;  %v7272_v55 = vpop.f32.mrf.mxu2  ;;  %v6290_v58 = vld [vmem:[#allocation2 + $0x171] sm:$0xff] }
 0x53f   : > { %v14495_v30 = vadd.f32 %v7272_v55, %v7075_v33 }
 0x540   : > { %v6720_v8 = vpop.f32.mrf.mxu3 }
 0x541   : > { %v6798_v7 = vadd.f32 %v6720_v8, %v6519_v34  ;;  %10922 = vmatmul.msk.f32.gmra.mxu0 %vm1628_vm6, %v15941_v9  ;;  %v6291_v9 = vld [vmem:[#allocation2 + $0x181] sm:$0xff] }
 0x543   : > { %v6447_v31 = vpop.f32.mrf.mxu1  ;;  %v7077_v26 = vadd.f32 %v6999_v53, %v6798_v7  ;;  %10955 = vmatmul.msk.f32.gmra.mxu2 %vm1628_vm6, %v7124_v17 }
 0x544   : > { %v6521_v17 = vadd.f32 %v6447_v31, %v15943_v51  ;;  %v6292_v51 = vld [vmem:[#allocation2 + $0x189] sm:$0xff] }
 0x545   : > { %10887 = vmatmul.msk.f32.gmra.mxu3 %vm1628_vm6, %v14499_v61 }
 0x546   : > { %10853 = vmatmul.msk.f32.gmra.mxu1 %vm1628_vm6, %v6290_v58  ;;  %v7005_v34 = vpop.f32.mrf.mxu0  ;;  %v7275_v53 = vpop.f32.mrf.mxu2  ;;  %v14510_v58 = vld [vmem:[#allocation2 + $0x172] sm:$0xff] }
 0x547   : > { %v14506_v7 = vadd.f32 %v7275_v53, %v7076_v0  ;;  %15942 = vst [vmem:[#allocation68_spill] sm:$0xff] %v14510_v58 }
 0x548   : > { %v6723_v38 = vpop.f32.mrf.mxu3 }
 0x549   : > { %v6799_v33 = vadd.f32 %v6723_v38, %v6520_v56  ;;  %10923 = vmatmul.msk.f32.gmra.mxu0 %vm1628_vm6, %v14179_v21  ;;  %v11034_v21 = vld [vmem:[%s15663_s3 + $0x118] sm:$0x3] }
 0x54a   : > { %11035 = vmatpush.msk.msrb.mxu0 %vm1867_vm3, %v11034_v21 }
 0x54b   : > { %v6450_v8 = vpop.f32.mrf.mxu1  ;;  %v7078_v55 = vadd.f32 %v7002_v44, %v6799_v33  ;;  %10956 = vmatmul.msk.f32.gmra.mxu2 %vm1628_vm6, %v7125_v42  ;;  %v11069_v33 = vld [vmem:[%s15663_s3 + $0x128] sm:$0x3]  ;;  %v11033_v42 = vld [vmem:[%s15663_s3 + $0x110] sm:$0xff] }
 0x54c   : > { %11070 = vmatpush.msk.msrb.mxu2 %vm1867_vm3, %v11069_v33  ;;  %8087 = vmatpush.msrb.mxu0 %v11033_v42  ;;  %v14551_v42 = vld [vmem:[#allocation2 + $0x18a] sm:$0xff] }
 0x54d   : > { %10888 = vmatmul.msk.f32.gmra.mxu3 %vm1628_vm6, %v14510_v58 }
 0x54e   : > { %10854 = vmatmul.msk.f32.gmra.mxu1 %vm1628_vm6, %v6291_v9  ;;  %v7008_v38 = vpop.f32.mrf.mxu0  ;;  %v7278_v44 = vpop.f32.mrf.mxu2 }
 0x54f   : > { %v14523_v9 = vadd.f32 %v7278_v44, %v7077_v26  ;;  %v7126_v26 = vld [vmem:[#allocation2 + $0x16c] sm:$0xff] }
 0x550   : > { %v6726_v56 = vpop.f32.mrf.mxu3 }
 0x551   : > { %v6800_v0 = vadd.f32 %v6726_v56, %v6521_v17  ;;  %15944 = vst [vmem:[#allocation14_spill] sm:$0xff] %v14523_v9  ;;  %10924 = vmatmul.msk.f32.gmra.mxu0 %vm1628_vm6, %v14189_v41  ;;  %v14532_v17 = vld [vmem:[#allocation2 + $0x182] sm:$0xff]  ;;  %v15946_v56 = vld [vmem:[#allocation29_spill] sm:$0xff] }
 0x552   : > { %15945 = vst [vmem:[#allocation50_spill] sm:$0xff] %v14532_v17 }
 0x553   : > { %v6453_v53 = vpop.f32.mrf.mxu1  ;;  %v7079_v31 = vadd.f32 %v7005_v34, %v6800_v0  ;;  %v11139_v34 = vld [vmem:[%s15663_s3 + $0x148] sm:$0x3]  ;;  %10957 = vmatmul.msk.f32.gmra.mxu2 %vm1628_vm6, %v7126_v26  ;;  %v6522_v0 = vadd.f32 %v6450_v8, %v15946_v56  ;;  %v15948_v26 = vld [vmem:[#allocation61_spill] sm:$0xff] }
 0x554   : > { %11140 = vmatpush.msk.msrb.mxu3 %vm1867_vm3, %v11139_v34  ;;  %v6293_v8 = vld [vmem:[#allocation2 + $0x199] sm:$0xff] }
 0x555   : > { %10889 = vmatmul.msk.f32.gmra.mxu3 %vm1628_vm6, %v14532_v17  ;;  %v7127_v34 = vld [vmem:[#allocation2 + $0x174] sm:$0xff] }
 0x556   : > { %10855 = vmatmul.msk.f32.gmra.mxu1 %vm1628_vm6, %v6292_v51  ;;  %v7011_v21 = vpop.f32.mrf.mxu0  ;;  %v7281_v33 = vpop.f32.mrf.mxu2  ;;  %v11104_v51 = vld [vmem:[%s15663_s3 + $0x138] sm:$0x3] }
 0x557   : > { %v14546_v9 = vadd.f32 %v7281_v33, %v7078_v55  ;;  %11105 = vmatpush.msk.msrb.mxu1 %vm1867_vm3, %v11104_v51  ;;  %v6523_v55 = vadd.f32 %v6453_v53, %v14209_v62  ;;  %v6851_v51 = vld [vmem:[#allocation2 + $0x19b] sm:$0xff]  ;;  %v7128_v62 = vld [vmem:[#allocation2 + $0x184] sm:$0xff] }
 0x558   : > { %v6729_v41 = vpop.f32.mrf.mxu3 }
 0x559   : > { %v6801_v44 = vadd.f32 %v6729_v41, %v6522_v0  ;;  %15947 = vst [vmem:[#allocation9_spill] sm:$0xff] %v14546_v9  ;;  %10925 = vmatmul.msk.f32.gmra.mxu0 %vm1628_vm6, %v15948_v26  ;;  %v14561_v9 = vld [vmem:[#allocation2 + $0x19a] sm:$0xff] }
 0x55b   : > { %v6456_v17 = vpop.f32.mrf.mxu1  ;;  %v7080_v58 = vadd.f32 %v7008_v38, %v6801_v44  ;;  %10958 = vmatmul.msk.f32.gmra.mxu2 %vm1628_vm6, %v7127_v34 }
 0x55c   : > { %v6524_v53 = vadd.f32 %v6456_v17, %v14217_v46  ;;  %v7129_v46 = vld [vmem:[#allocation2 + $0x18c] sm:$0xff] }
 0x55d   : > { %10890 = vmatmul.msk.f32.gmra.mxu3 %vm1628_vm6, %v14551_v42 }
 0x55e   : > { %10856 = vmatmul.msk.f32.gmra.mxu1 %vm1628_vm6, %v6293_v8  ;;  %v7014_v41 = vpop.f32.mrf.mxu0  ;;  %v7284_v38 = vpop.f32.mrf.mxu2  ;;  %v6294_v8 = vld [vmem:[#allocation2 + $0x1a1] sm:$0xff] }
 0x55f   : > { %v14558_v33 = vadd.f32 %v7284_v38, %v7079_v31  ;;  %v6852_v38 = vld [vmem:[#allocation2 + $0x1a3] sm:$0xff] }
 0x560   : > { %v6732_v56 = vpop.f32.mrf.mxu3 }
 0x561   : > { %v6802_v0 = vadd.f32 %v6732_v56, %v6523_v55  ;;  %15949 = vst [vmem:[#allocation8_spill] sm:$0xff] %v14558_v33  ;;  %10926 = vmatmul.msk.f32.gmra.mxu0 %vm1628_vm6, %v6851_v51  ;;  %v7380_v33 = vld [vmem:[#allocation2 + $0x48] sm:$0xff] }
 0x563   : > { %v6459_v44 = vpop.f32.mrf.mxu1  ;;  %v7081_v26 = vadd.f32 %v7011_v21, %v6802_v0  ;;  %10959 = vmatmul.msk.f32.gmra.mxu2 %vm1628_vm6, %v7128_v62  ;;  %v11068_v62 = vld [vmem:[%s15663_s3 + $0x120] sm:$0xff] }
 0x564   : > { %8366 = vmatpush.msrb.mxu2 %v11068_v62 }
 0x565   : > { %10891 = vmatmul.msk.f32.gmra.mxu3 %vm1628_vm6, %v14561_v9 }
 0x566   : > { %10857 = vmatmul.msk.f32.gmra.mxu1 %vm1628_vm6, %v6294_v8  ;;  %v7017_v55 = vpop.f32.mrf.mxu0  ;;  %v7287_v56 = vpop.f32.mrf.mxu2  ;;  %v14571_v8 = vld [vmem:[#allocation2 + $0x1a2] sm:$0xff] }
 0x567   : > { %v14568_v0 = vadd.f32 %v7287_v56, %v7080_v58  ;;  %15951 = vst [vmem:[#allocation21_spill] sm:$0xff] %v14571_v8  ;;  %v6525_v58 = vadd.f32 %v6459_v44, %v14225_v13 }
 0x568   : > { %v6735_v34 = vpop.f32.mrf.mxu3 }
 0x569   : > { %v6803_v31 = vadd.f32 %v6735_v34, %v6524_v53  ;;  %15950 = vst [vmem:[#allocation19_spill] sm:$0xff] %v14568_v0  ;;  %10927 = vmatmul.msk.f32.gmra.mxu0 %vm1628_vm6, %v6852_v38  ;;  %v7659_v0 = vld [vmem:[#allocation2 + $0x49] sm:$0xff] }
 0x56b   : > { %v6462_v21 = vpop.f32.mrf.mxu1  ;;  %v7082_v51 = vadd.f32 %v7014_v41, %v6803_v31  ;;  %10960 = vmatmul.msk.f32.gmra.mxu2 %vm1628_vm6, %v7129_v46 }
 0x56c   : > { %v6526_v13 = vadd.f32 %v6462_v21, %v14236_v49 }
 0x56d   : > { %10892 = vmatmul.msk.f32.gmra.mxu3 %vm1628_vm6, %v14571_v8  ;;  %v7381_v8 = vld [vmem:[#allocation2 + $0x50] sm:$0xff] }
 0x56e   : > { %10966 = vmatmul.msk.f32.vlgmr.msra.gmra.mxu1 %vm1628_vm6, %v7380_v33  ;;  %v7020_v53 = vpop.f32.mrf.mxu0  ;;  %v7290_v34 = vpop.f32.mrf.mxu2  ;;  %v7130_v33 = vld [vmem:[#allocation2 + $0x19c] sm:$0xff] }
 0x56f   : > { %v14581_v56 = vadd.f32 %v7290_v34, %v7081_v26 }
 0x570   : > { %v6738_v17 = vpop.f32.mrf.mxu3 }
 0x571   : > { %v6804_v41 = vadd.f32 %v6738_v17, %v6525_v58  ;;  %11036 = vmatmul.msk.f32.vlgmr.msrb.gmra.mxu0 %vm1628_vm6, %v14229_v54  ;;  %v7382_v54 = vld [vmem:[#allocation2 + $0x60] sm:$0xff] }
 0x573   : > { %v6465_v31 = vpop.f32.mrf.mxu1  ;;  %v7083_v38 = vadd.f32 %v7017_v55, %v6804_v41  ;;  %10961 = vmatmul.msk.f32.gmra.mxu2 %vm1628_vm6, %v7130_v33 }
 0x574   : > { %v6527_v49 = vadd.f32 %v6465_v31, %v14247_v23  ;;  %v8217_v23 = vld [vmem:[#allocation2 + $0x4b] sm:$0xff] }
 0x575   : > { %11001 = vmatmul.msk.f32.vlgmr.msra.gmra.mxu3 %vm1628_vm6, %v7659_v0  ;;  %v7131_v0 = vld [vmem:[#allocation2 + $0x1a4] sm:$0xff] }
 0x576   : > { %10967 = vmatmul.msk.f32.gmra.mxu1 %vm1628_vm6, %v7381_v8  ;;  %v7023_v46 = vpop.f32.mrf.mxu0  ;;  %v7293_v26 = vpop.f32.mrf.mxu2  ;;  %v7660_v8 = vld [vmem:[#allocation2 + $0x51] sm:$0xff] }
 0x577   : > { %v14589_v55 = vadd.f32 %v7293_v26, %v7082_v51 }
 0x578   : > { %v6741_v44 = vpop.f32.mrf.mxu3 }
 0x579   : > { %v6805_v62 = vadd.f32 %v6741_v44, %v6526_v13  ;;  %11037 = vmatmul.msk.f32.gmra.mxu0 %vm1628_vm6, %v14240_v12  ;;  %v7383_v12 = vld [vmem:[#allocation2 + $0x68] sm:$0xff] }
 0x57a   : > { %v14601_v44 = vld [vmem:[#allocation2 + $0x61] sm:$0xff] }
 0x57b   : > { %v6468_v58 = vpop.f32.mrf.mxu1  ;;  %v7084_v17 = vadd.f32 %v7020_v53, %v6805_v62  ;;  %10962 = vmatmul.msk.f32.gmra.mxu2 %vm1628_vm6, %v7131_v0  ;;  %v7384_v0 = vld [vmem:[#allocation2 + $0x78] sm:$0xff] }
 0x57c   : > { %v6528_v31 = vadd.f32 %v6468_v58, %v14258_v43  ;;  %v8218_v43 = vld [vmem:[#allocation2 + $0x53] sm:$0xff] }
 0x57d   : > { %11002 = vmatmul.msk.f32.gmra.mxu3 %vm1628_vm6, %v7660_v8 }
 0x57e   : > { %10968 = vmatmul.msk.f32.gmra.mxu1 %vm1628_vm6, %v7382_v54  ;;  %v7026_v34 = vpop.f32.mrf.mxu0  ;;  %v7296_v51 = vpop.f32.mrf.mxu2 }
 0x57f   : > { %v14597_v53 = vadd.f32 %v7296_v51, %v7083_v38 }
 0x580   : > { %v6744_v21 = vpop.f32.mrf.mxu3 }
 0x581   : > { %v6806_v41 = vadd.f32 %v6744_v21, %v6527_v49  ;;  %11038 = vmatmul.msk.f32.gmra.mxu0 %vm1628_vm6, %v14251_v63  ;;  %v14612_v49 = vld [vmem:[#allocation2 + $0x69] sm:$0xff] }
 0x583   : > { %v6471_v33 = vpop.f32.mrf.mxu1  ;;  %v7085_v13 = vadd.f32 %v7023_v46, %v6806_v41  ;;  %11071 = vmatmul.msk.f32.vlgmr.msrb.gmra.mxu2 %vm1628_vm6, %v8217_v23  ;;  %v7385_v23 = vld [vmem:[#allocation2 + $0x80] sm:$0xff] }
 0x584   : > { %v6529_v58 = vadd.f32 %v6471_v33, %v14269_v24  ;;  %v8219_v24 = vld [vmem:[#allocation2 + $0x63] sm:$0xff] }
 0x585   : > { %11003 = vmatmul.msk.f32.gmra.mxu3 %vm1628_vm6, %v14601_v44 }
 0x586   : > { %10969 = vmatmul.msk.f32.gmra.mxu1 %vm1628_vm6, %v7383_v12  ;;  %v7029_v26 = vpop.f32.mrf.mxu0  ;;  %v7299_v46 = vpop.f32.mrf.mxu2 }
 0x587   : > { %v14608_v8 = vadd.f32 %v7299_v46, %v7084_v17 }
 0x588   : > { %v6747_v62 = vpop.f32.mrf.mxu3 }
 0x589   : > { %v6807_v38 = vadd.f32 %v6747_v62, %v6528_v31  ;;  %11039 = vmatmul.msk.f32.gmra.mxu0 %vm1628_vm6, %v14262_v35  ;;  %v14623_v31 = vld [vmem:[#allocation2 + $0x79] sm:$0xff] }
 0x58b   : > { %v6474_v54 = vpop.f32.mrf.mxu1  ;;  %v7086_v63 = vadd.f32 %v7026_v34, %v6807_v38  ;;  %11072 = vmatmul.msk.f32.gmra.mxu2 %vm1628_vm6, %v8218_v43  ;;  %v7386_v43 = vld [vmem:[#allocation2 + $0x90] sm:$0xff] }
 0x58c   : > { %v6530_v33 = vadd.f32 %v6474_v54, %v14280_v48  ;;  %v8220_v48 = vld [vmem:[#allocation2 + $0x6b] sm:$0xff] }
 0x58d   : > { %11004 = vmatmul.msk.f32.gmra.mxu3 %vm1628_vm6, %v14612_v49 }
 0x58e   : > { %10970 = vmatmul.msk.f32.gmra.mxu1 %vm1628_vm6, %v7384_v0  ;;  %v7032_v41 = vpop.f32.mrf.mxu0  ;;  %v7302_v34 = vpop.f32.mrf.mxu2 }
 0x58f   : > { %v14619_v12 = vadd.f32 %v7302_v34, %v7085_v13 }
 0x590   : > { %v6750_v21 = vpop.f32.mrf.mxu3 }
 0x591   : > { %v6808_v17 = vadd.f32 %v6750_v21, %v6529_v58  ;;  %11040 = vmatmul.msk.f32.gmra.mxu0 %vm1628_vm6, %v14273_v57  ;;  %v14634_v58 = vld [vmem:[#allocation2 + $0x81] sm:$0xff] }
 0x593   : > { %v6477_v51 = vpop.f32.mrf.mxu1  ;;  %v7087_v35 = vadd.f32 %v7029_v26, %v6808_v17  ;;  %11073 = vmatmul.msk.f32.gmra.mxu2 %vm1628_vm6, %v8219_v24  ;;  %v7387_v24 = vld [vmem:[#allocation2 + $0x98] sm:$0xff] }
 0x594   : > { %v6531_v54 = vadd.f32 %v6477_v51, %v14291_v22  ;;  %v8221_v22 = vld [vmem:[#allocation2 + $0x7b] sm:$0xff] }
 0x595   : > { %11005 = vmatmul.msk.f32.gmra.mxu3 %vm1628_vm6, %v14623_v31 }
 0x596   : > { %10971 = vmatmul.msk.f32.gmra.mxu1 %vm1628_vm6, %v7385_v23  ;;  %v7035_v38 = vpop.f32.mrf.mxu0  ;;  %v7305_v26 = vpop.f32.mrf.mxu2 }
 0x597   : > { %v14630_v0 = vadd.f32 %v7305_v26, %v7086_v63 }
 0x598   : > { %v6753_v62 = vpop.f32.mrf.mxu3 }
 0x599   : > { %v6809_v13 = vadd.f32 %v6753_v62, %v6530_v33  ;;  %11041 = vmatmul.msk.f32.gmra.mxu0 %vm1628_vm6, %v14284_v32  ;;  %v14645_v33 = vld [vmem:[#allocation2 + $0x91] sm:$0xff] }
 0x59b   : > { %v6480_v46 = vpop.f32.mrf.mxu1  ;;  %v7088_v57 = vadd.f32 %v7032_v41, %v6809_v13  ;;  %11074 = vmatmul.msk.f32.gmra.mxu2 %vm1628_vm6, %v8220_v48  ;;  %v7388_v48 = vld [vmem:[#allocation2 + $0xa8] sm:$0xff] }
 0x59c   : > { %v6532_v51 = vadd.f32 %v6480_v46, %v14302_v36  ;;  %v8222_v36 = vld [vmem:[#allocation2 + $0x83] sm:$0xff] }
 0x59d   : > { %11006 = vmatmul.msk.f32.gmra.mxu3 %vm1628_vm6, %v14634_v58 }
 0x59e   : > { %10972 = vmatmul.msk.f32.gmra.mxu1 %vm1628_vm6, %v7386_v43  ;;  %v7038_v17 = vpop.f32.mrf.mxu0  ;;  %v7308_v41 = vpop.f32.mrf.mxu2 }
 0x59f   : > { %v14641_v23 = vadd.f32 %v7308_v41, %v7087_v35 }
 0x5a0   : > { %v6756_v21 = vpop.f32.mrf.mxu3 }
 0x5a1   : > { %v6810_v63 = vadd.f32 %v6756_v21, %v6531_v54  ;;  %11042 = vmatmul.msk.f32.gmra.mxu0 %vm1628_vm6, %v14295_v15  ;;  %v14656_v54 = vld [vmem:[#allocation2 + $0x99] sm:$0xff] }
 0x5a3   : > { %v6483_v34 = vpop.f32.mrf.mxu1  ;;  %v7089_v32 = vadd.f32 %v7035_v38, %v6810_v63  ;;  %11075 = vmatmul.msk.f32.gmra.mxu2 %vm1628_vm6, %v8221_v22  ;;  %v7389_v22 = vld [vmem:[#allocation2 + $0xb0] sm:$0xff] }
 0x5a4   : > { %v6533_v46 = vadd.f32 %v6483_v34, %v14313_v59  ;;  %v8223_v59 = vld [vmem:[#allocation2 + $0x93] sm:$0xff] }
 0x5a5   : > { %11007 = vmatmul.msk.f32.gmra.mxu3 %vm1628_vm6, %v14645_v33 }
 0x5a6   : > { %10973 = vmatmul.msk.f32.gmra.mxu1 %vm1628_vm6, %v7387_v24  ;;  %v7041_v13 = vpop.f32.mrf.mxu0  ;;  %v7311_v38 = vpop.f32.mrf.mxu2 }
 0x5a7   : > { %v14652_v43 = vadd.f32 %v7311_v38, %v7088_v57 }
 0x5a8   : > { %v6759_v62 = vpop.f32.mrf.mxu3 }
 0x5a9   : > { %v6811_v35 = vadd.f32 %v6759_v62, %v6532_v51  ;;  %11043 = vmatmul.msk.f32.gmra.mxu0 %vm1628_vm6, %v14306_v6  ;;  %v14667_v51 = vld [vmem:[#allocation2 + $0xa9] sm:$0xff] }
 0x5ab   : > { %v6486_v26 = vpop.f32.mrf.mxu1  ;;  %v7090_v15 = vadd.f32 %v7038_v17, %v6811_v35  ;;  %11076 = vmatmul.msk.f32.gmra.mxu2 %vm1628_vm6, %v8222_v36  ;;  %v7390_v36 = vld [vmem:[#allocation2 + $0xc0] sm:$0xff] }
 0x5ac   : > { %v6534_v34 = vadd.f32 %v6486_v26, %v14324_v1  ;;  %v8224_v1 = vld [vmem:[#allocation2 + $0x9b] sm:$0xff] }
 0x5ad   : > { %11008 = vmatmul.msk.f32.gmra.mxu3 %vm1628_vm6, %v14656_v54 }
 0x5ae   : > { %10974 = vmatmul.msk.f32.gmra.mxu1 %vm1628_vm6, %v7388_v48  ;;  %v7044_v63 = vpop.f32.mrf.mxu0  ;;  %v7314_v17 = vpop.f32.mrf.mxu2 }
 0x5af   : > { %v14663_v24 = vadd.f32 %v7314_v17, %v7089_v32 }
 0x5b0   : > { %v6762_v21 = vpop.f32.mrf.mxu3 }
 0x5b1   : > { %v6812_v57 = vadd.f32 %v6762_v21, %v6533_v46  ;;  %11044 = vmatmul.msk.f32.gmra.mxu0 %vm1628_vm6, %v14317_v50  ;;  %v14678_v46 = vld [vmem:[#allocation2 + $0xb1] sm:$0xff] }
 0x5b3   : > { %v6489_v41 = vpop.f32.mrf.mxu1  ;;  %v7091_v6 = vadd.f32 %v7041_v13, %v6812_v57  ;;  %11077 = vmatmul.msk.f32.gmra.mxu2 %vm1628_vm6, %v8223_v59  ;;  %v7391_v59 = vld [vmem:[#allocation2 + $0xc8] sm:$0xff] }
 0x5b4   : > { %v6535_v26 = vadd.f32 %v6489_v41, %v14335_v25  ;;  %v8225_v25 = vld [vmem:[#allocation2 + $0xab] sm:$0xff] }
 0x5b5   : > { %11009 = vmatmul.msk.f32.gmra.mxu3 %vm1628_vm6, %v14667_v51 }
 0x5b6   : > { %10975 = vmatmul.msk.f32.gmra.mxu1 %vm1628_vm6, %v7389_v22  ;;  %v7047_v35 = vpop.f32.mrf.mxu0  ;;  %v7317_v13 = vpop.f32.mrf.mxu2 }
 0x5b7   : > { %v14674_v48 = vadd.f32 %v7317_v13, %v7090_v15 }
 0x5b8   : > { %v6765_v62 = vpop.f32.mrf.mxu3 }
 0x5b9   : > { %v6813_v32 = vadd.f32 %v6765_v62, %v6534_v34  ;;  %11045 = vmatmul.msk.f32.gmra.mxu0 %vm1628_vm6, %v14328_v19  ;;  %v14689_v34 = vld [vmem:[#allocation2 + $0xc1] sm:$0xff] }
 0x5bb   : > { %v6492_v38 = vpop.f32.mrf.mxu1  ;;  %v7092_v50 = vadd.f32 %v7044_v63, %v6813_v32  ;;  %11078 = vmatmul.msk.f32.gmra.mxu2 %vm1628_vm6, %v8224_v1  ;;  %v7392_v1 = vld [vmem:[#allocation2 + $0xd8] sm:$0xff] }
 0x5bc   : > { %v6536_v41 = vadd.f32 %v6492_v38, %v14352_v14  ;;  %v8226_v14 = vld [vmem:[#allocation2 + $0xb3] sm:$0xff] }
 0x5bd   : > { %11010 = vmatmul.msk.f32.gmra.mxu3 %vm1628_vm6, %v14678_v46 }
 0x5be   : > { %10976 = vmatmul.msk.f32.gmra.mxu1 %vm1628_vm6, %v7390_v36  ;;  %v7050_v57 = vpop.f32.mrf.mxu0  ;;  %v7320_v63 = vpop.f32.mrf.mxu2 }
 0x5bf   : > { %v14685_v22 = vadd.f32 %v7320_v63, %v7091_v6 }
 0x5c0   : > { %v6768_v21 = vpop.f32.mrf.mxu3 }
 0x5c1   : > { %v6814_v15 = vadd.f32 %v6768_v21, %v6535_v26  ;;  %11046 = vmatmul.msk.f32.gmra.mxu0 %vm1628_vm6, %v14339_v11  ;;  %v14700_v26 = vld [vmem:[#allocation2 + $0xc9] sm:$0xff] }
 0x5c3   : > { %v6495_v17 = vpop.f32.mrf.mxu1  ;;  %v7093_v19 = vadd.f32 %v7047_v35, %v6814_v15  ;;  %11079 = vmatmul.msk.f32.gmra.mxu2 %vm1628_vm6, %v8225_v25  ;;  %v7393_v25 = vld [vmem:[#allocation2 + $0xe0] sm:$0xff] }
 0x5c4   : > { %v6537_v38 = vadd.f32 %v6495_v17, %v14363_v18  ;;  %v8227_v18 = vld [vmem:[#allocation2 + $0xc3] sm:$0xff]  ;;  %v11138_v17 = vld [vmem:[%s15663_s3 + $0x140] sm:$0xff] }
 0x5c5   : > { %11011 = vmatmul.msk.f32.gmra.mxu3 %vm1628_vm6, %v14689_v34 }
 0x5c6   : > { %10977 = vmatmul.msk.f32.gmra.mxu1 %vm1628_vm6, %v7391_v59  ;;  %v7053_v32 = vpop.f32.mrf.mxu0  ;;  %v7323_v35 = vpop.f32.mrf.mxu2  ;;  %8925 = vmatpush.msrb.mxu3 %v11138_v17 }
 0x5c7   : > { %v14696_v36 = vadd.f32 %v7323_v35, %v7092_v50 }
 0x5c8   : > { %v6771_v62 = vpop.f32.mrf.mxu3 }
 0x5c9   : > { %v6815_v6 = vadd.f32 %v6771_v62, %v6536_v41  ;;  %11047 = vmatmul.msk.f32.gmra.mxu0 %vm1628_vm6, %v14356_v52  ;;  %v14711_v41 = vld [vmem:[#allocation2 + $0xd9] sm:$0xff] }
 0x5cb   : > { %v6498_v13 = vpop.f32.mrf.mxu1  ;;  %v7094_v11 = vadd.f32 %v7050_v57, %v6815_v6  ;;  %11080 = vmatmul.msk.f32.gmra.mxu2 %vm1628_vm6, %v8226_v14 }
 0x5cd   : > { %11012 = vmatmul.msk.f32.gmra.mxu3 %vm1628_vm6, %v14700_v26 }
 0x5ce   : > { %10978 = vmatmul.msk.f32.gmra.mxu1 %vm1628_vm6, %v7392_v1  ;;  %v7056_v15 = vpop.f32.mrf.mxu0  ;;  %v7326_v57 = vpop.f32.mrf.mxu2  ;;  %v11103_v1 = vld [vmem:[%s15663_s3 + $0x130] sm:$0xff] }
 0x5cf   : > { %v14707_v59 = vadd.f32 %v7326_v57, %v7093_v19  ;;  %v15952_v19 = vld [vmem:[#allocation66_spill] sm:$0xff]  ;;  %8645 = vmatpush.msrb.mxu1 %v11103_v1  ;;  %v15954_v1 = vld [vmem:[#allocation31_spill] sm:$0xff] }
 0x5d0   : > { %v6774_v21 = vpop.f32.mrf.mxu3  ;;  %v6538_v62 = vadd.f32 %v6498_v13, %v15952_v19  ;;  %v14728_v57 = vld [vmem:[#allocation2 + $0xe1] sm:$0xff]  ;;  %v8228_v13 = vld [vmem:[#allocation2 + $0xcb] sm:$0xff] }
 0x5d1   : > { %v6816_v50 = vadd.f32 %v6774_v21, %v6537_v38  ;;  %11048 = vmatmul.msk.f32.gmra.mxu0 %vm1628_vm6, %v14367_v3 }
 0x5d3   : > { %v6501_v63 = vpop.f32.mrf.mxu1  ;;  %v7095_v52 = vadd.f32 %v7053_v32, %v6816_v50  ;;  %11081 = vmatmul.msk.f32.gmra.mxu2 %vm1628_vm6, %v8227_v18  ;;  %v7394_v50 = vld [vmem:[#allocation2 + $0xf0] sm:$0xff] }
 0x5d5   : > { %11013 = vmatmul.msk.f32.gmra.mxu3 %vm1628_vm6, %v14711_v41 }
 0x5d6   : > { %10979 = vmatmul.msk.f32.gmra.mxu1 %vm1628_vm6, %v7393_v25  ;;  %v7059_v32 = vpop.f32.mrf.mxu0  ;;  %v7329_v35 = vpop.f32.mrf.mxu2  ;;  %v15953_v25 = vld [vmem:[#allocation64_spill] sm:$0xff] }
 0x5d7   : > { %v14724_v38 = vadd.f32 %v7329_v35, %v7094_v11  ;;  %v6539_v18 = vadd.f32 %v6501_v63, %v15953_v25  ;;  %v14739_v35 = vld [vmem:[#allocation2 + $0xf1] sm:$0xff]  ;;  %v8229_v63 = vld [vmem:[#allocation2 + $0xdb] sm:$0xff] }
 0x5d8   : > { %v6777_v6 = vpop.f32.mrf.mxu3 }
 0x5d9   : > { %v6817_v3 = vadd.f32 %v6777_v6, %v6538_v62  ;;  %11049 = vmatmul.msk.f32.gmra.mxu0 %vm1628_vm6, %v14378_v45 }
 0x5db   : > { %v6504_v14 = vpop.f32.mrf.mxu1  ;;  %v7096_v21 = vadd.f32 %v7056_v15, %v6817_v3  ;;  %11082 = vmatmul.msk.f32.gmra.mxu2 %vm1628_vm6, %v8228_v13  ;;  %v7395_v3 = vld [vmem:[#allocation2 + $0xf8] sm:$0xff] }
 0x5dd   : > { %11014 = vmatmul.msk.f32.gmra.mxu3 %vm1628_vm6, %v14728_v57 }
 0x5de   : > { %10980 = vmatmul.msk.f32.gmra.mxu1 %vm1628_vm6, %v7394_v50  ;;  %v7062_v19 = vpop.f32.mrf.mxu0  ;;  %v7332_v15 = vpop.f32.mrf.mxu2  ;;  %v6540_v50 = vadd.f32 %v6504_v14, %v15954_v1  ;;  %v8230_v14 = vld [vmem:[#allocation2 + $0xe3] sm:$0xff] }
 0x5df   : > { %v14735_v6 = vadd.f32 %v7332_v15, %v7095_v52  ;;  %v14750_v15 = vld [vmem:[#allocation2 + $0xf9] sm:$0xff] }
 0x5e0   : > { %v6780_v11 = vpop.f32.mrf.mxu3 }
 0x5e1   : > { %v6818_v17 = vadd.f32 %v6780_v11, %v6539_v18  ;;  %11050 = vmatmul.msk.f32.gmra.mxu0 %vm1628_vm6, %v14389_v20 }
 0x5e3   : > { %v6507_v62 = vpop.f32.mrf.mxu1  ;;  %v7097_v45 = vadd.f32 %v7059_v32, %v6818_v17  ;;  %11083 = vmatmul.msk.f32.gmra.mxu2 %vm1628_vm6, %v8229_v63  ;;  %v7396_v17 = vld [vmem:[#allocation2 + $0x108] sm:$0xff] }
 0x5e5   : > { %11015 = vmatmul.msk.f32.gmra.mxu3 %vm1628_vm6, %v14739_v35 }
 0x5e6   : > { %10981 = vmatmul.msk.f32.gmra.mxu1 %vm1628_vm6, %v7395_v3  ;;  %v7065_v25 = vpop.f32.mrf.mxu0  ;;  %v7335_v32 = vpop.f32.mrf.mxu2  ;;  %v15955_v3 = vld [vmem:[#allocation65_spill] sm:$0xff] }
 0x5e7   : > { %v14746_v11 = vadd.f32 %v7335_v32, %v7096_v21  ;;  %v6541_v63 = vadd.f32 %v6507_v62, %v15955_v3  ;;  %v7397_v32 = vld [vmem:[#allocation2 + $0x110] sm:$0xff] }
 0x5e8   : > { %v6783_v13 = vpop.f32.mrf.mxu3  ;;  %v8231_v62 = vld [vmem:[#allocation2 + $0xf3] sm:$0xff] }
 0x5e9   : > { %v6819_v52 = vadd.f32 %v6783_v13, %v6540_v50  ;;  %11051 = vmatmul.msk.f32.gmra.mxu0 %vm1628_vm6, %v14400_v27 }
 0x5eb   : > { %v7531_v18 = vpop.f32.mrf.mxu1  ;;  %v7098_v20 = vadd.f32 %v7062_v19, %v6819_v52  ;;  %11084 = vmatmul.msk.f32.gmra.mxu2 %vm1628_vm6, %v8230_v14  ;;  %v15957_v14 = vld [vmem:[#allocation70_spill] sm:$0xff] }
 0x5ec   : > { %v7627_v3 = vadd.f32 %v7531_v18, %v15957_v14  ;;  %v8232_v18 = vld [vmem:[#allocation2 + $0xfb] sm:$0xff] }
 0x5ed   : > { %11016 = vmatmul.msk.f32.gmra.mxu3 %vm1628_vm6, %v14750_v15 }
 0x5ee   : > { %10982 = vmatmul.msk.f32.gmra.mxu1 %vm1628_vm6, %v7396_v17  ;;  %v8089_v50 = vpop.f32.mrf.mxu0  ;;  %v7338_v19 = vpop.f32.mrf.mxu2  ;;  %v14761_v17 = vld [vmem:[#allocation2 + $0x109] sm:$0xff] }
 0x5ef   : > { %v14757_v52 = vadd.f32 %v7338_v19, %v7097_v45 }
 0x5f0   : > { %v6786_v1 = vpop.f32.mrf.mxu3 }
 0x5f1   : > { %v6820_v21 = vadd.f32 %v6786_v1, %v6541_v63  ;;  %15956 = vst [vmem:[#allocation20_spill] sm:$0xff] %v14757_v52  ;;  %11052 = vmatmul.msk.f32.gmra.mxu0 %vm1628_vm6, %v14411_v37  ;;  %v14772_v52 = vld [vmem:[#allocation2 + $0x111] sm:$0xff] }
 0x5f3   : > { %v7534_v13 = vpop.f32.mrf.mxu1  ;;  %v7099_v27 = vadd.f32 %v7065_v25, %v6820_v21  ;;  %11085 = vmatmul.msk.f32.gmra.mxu2 %vm1628_vm6, %v8231_v62  ;;  %v15959_v62 = vld [vmem:[#allocation67_spill] sm:$0xff] }
 0x5f4   : > { %v7628_v14 = vadd.f32 %v7534_v13, %v15959_v62  ;;  %v8233_v13 = vld [vmem:[#allocation2 + $0x10b] sm:$0xff] }
 0x5f5   : > { %11017 = vmatmul.msk.f32.gmra.mxu3 %vm1628_vm6, %v14761_v17 }
 0x5f6   : > { %10983 = vmatmul.msk.f32.gmra.mxu1 %vm1628_vm6, %v7397_v32  ;;  %v8092_v1 = vpop.f32.mrf.mxu0  ;;  %v7341_v25 = vpop.f32.mrf.mxu2  ;;  %v7398_v32 = vld [vmem:[#allocation2 + $0x120] sm:$0xff] }
 0x5f7   : > { %v14768_v19 = vadd.f32 %v7341_v25, %v7098_v20 }
 0x5f8   : > { %v7810_v63 = vpop.f32.mrf.mxu3 }
 0x5f9   : > { %v7906_v45 = vadd.f32 %v7810_v63, %v7627_v3  ;;  %15958 = vst [vmem:[#allocation22_spill] sm:$0xff] %v14768_v19  ;;  %11053 = vmatmul.msk.f32.gmra.mxu0 %vm1628_vm6, %v14422_v28  ;;  %v14783_v19 = vld [vmem:[#allocation2 + $0x121] sm:$0xff] }
 0x5fb   : > { %v7537_v21 = vpop.f32.mrf.mxu1  ;;  %v8185_v37 = vadd.f32 %v8089_v50, %v7906_v45  ;;  %11086 = vmatmul.msk.f32.gmra.mxu2 %vm1628_vm6, %v8232_v18 }
 0x5fc   : > { %v7629_v18 = vadd.f32 %v7537_v21, %v14440_v60  ;;  %v8234_v60 = vld [vmem:[#allocation2 + $0x113] sm:$0xff] }
 0x5fd   : > { %11018 = vmatmul.msk.f32.gmra.mxu3 %vm1628_vm6, %v14772_v52 }
 0x5fe   : > { %10984 = vmatmul.msk.f32.gmra.mxu1 %vm1628_vm6, %v7398_v32  ;;  %v8095_v63 = vpop.f32.mrf.mxu0  ;;  %v7344_v50 = vpop.f32.mrf.mxu2  ;;  %v7399_v32 = vld [vmem:[#allocation2 + $0x128] sm:$0xff] }
 0x5ff   : > { %v14779_v25 = vadd.f32 %v7344_v50, %v7099_v27  ;;  %v7400_v50 = vld [vmem:[#allocation2 + $0x138] sm:$0xff] }
 0x600   : > { %v7813_v3 = vpop.f32.mrf.mxu3 }
 0x601   : > { %v7907_v20 = vadd.f32 %v7813_v3, %v7628_v14  ;;  %11054 = vmatmul.msk.f32.gmra.mxu0 %vm1628_vm6, %v14433_v16 }
 0x603   : > { %v7540_v45 = vpop.f32.mrf.mxu1  ;;  %v8186_v28 = vadd.f32 %v8092_v1, %v7907_v20  ;;  %11087 = vmatmul.msk.f32.gmra.mxu2 %vm1628_vm6, %v8233_v13 }
 0x604   : > { %v7630_v21 = vadd.f32 %v7540_v45, %v14451_v10  ;;  %v8235_v10 = vld [vmem:[#allocation2 + $0x123] sm:$0xff] }
 0x605   : > { %11019 = vmatmul.msk.f32.gmra.mxu3 %vm1628_vm6, %v14783_v19 }
 0x606   : > { %10985 = vmatmul.msk.f32.gmra.mxu1 %vm1628_vm6, %v7399_v32  ;;  %v8098_v14 = vpop.f32.mrf.mxu0  ;;  %v8368_v1 = vpop.f32.mrf.mxu2  ;;  %v14794_v32 = vld [vmem:[#allocation2 + $0x129] sm:$0xff] }
 0x607   : > { %v14790_v20 = vadd.f32 %v8368_v1, %v8185_v37  ;;  %v7401_v1 = vld [vmem:[#allocation2 + $0x140] sm:$0xff] }
 0x608   : > { %v7816_v62 = vpop.f32.mrf.mxu3 }
 0x609   : > { %v7908_v27 = vadd.f32 %v7816_v62, %v7629_v18  ;;  %11055 = vmatmul.msk.f32.gmra.mxu0 %vm1628_vm6, %v14444_v29 }
 0x60b   : > { %v7543_v3 = vpop.f32.mrf.mxu1  ;;  %v8187_v16 = vadd.f32 %v8095_v63, %v7908_v27  ;;  %11088 = vmatmul.msk.f32.gmra.mxu2 %vm1628_vm6, %v8234_v60 }
 0x60c   : > { %v7631_v45 = vadd.f32 %v7543_v3, %v14462_v5  ;;  %v8236_v5 = vld [vmem:[#allocation2 + $0x12b] sm:$0xff] }
 0x60d   : > { %11020 = vmatmul.msk.f32.gmra.mxu3 %vm1628_vm6, %v14794_v32 }
 0x60e   : > { %10986 = vmatmul.msk.f32.gmra.mxu1 %vm1628_vm6, %v7400_v50  ;;  %v8101_v18 = vpop.f32.mrf.mxu0  ;;  %v8371_v63 = vpop.f32.mrf.mxu2  ;;  %v14805_v50 = vld [vmem:[#allocation2 + $0x139] sm:$0xff] }
 0x60f   : > { %v14801_v27 = vadd.f32 %v8371_v63, %v8186_v28  ;;  %v7402_v63 = vld [vmem:[#allocation2 + $0x150] sm:$0xff] }
 0x610   : > { %v7819_v13 = vpop.f32.mrf.mxu3 }
 0x611   : > { %v7909_v37 = vadd.f32 %v7819_v13, %v7630_v21  ;;  %11056 = vmatmul.msk.f32.gmra.mxu0 %vm1628_vm6, %v14455_v40 }
 0x613   : > { %v7546_v62 = vpop.f32.mrf.mxu1  ;;  %v8188_v29 = vadd.f32 %v8098_v14, %v7909_v37  ;;  %11089 = vmatmul.msk.f32.gmra.mxu2 %vm1628_vm6, %v8235_v10 }
 0x614   : > { %v7632_v3 = vadd.f32 %v7546_v62, %v14473_v2  ;;  %v8237_v2 = vld [vmem:[#allocation2 + $0x13b] sm:$0xff] }
 0x615   : > { %11021 = vmatmul.msk.f32.gmra.mxu3 %vm1628_vm6, %v14805_v50  ;;  %v15961_v62 = vld [vmem:[#allocation49_spill] sm:$0xff] }
 0x616   : > { %10987 = vmatmul.msk.f32.gmra.mxu1 %vm1628_vm6, %v7401_v1  ;;  %v8104_v21 = vpop.f32.mrf.mxu0  ;;  %v8374_v14 = vpop.f32.mrf.mxu2  ;;  %v14816_v1 = vld [vmem:[#allocation2 + $0x141] sm:$0xff] }
 0x617   : > { %v14812_v37 = vadd.f32 %v8374_v14, %v8187_v16  ;;  %v7403_v14 = vld [vmem:[#allocation2 + $0x158] sm:$0xff] }
 0x618   : > { %v7822_v60 = vpop.f32.mrf.mxu3 }
 0x619   : > { %v7910_v28 = vadd.f32 %v7822_v60, %v7631_v45  ;;  %11057 = vmatmul.msk.f32.gmra.mxu0 %vm1628_vm6, %v14466_v39 }
 0x61b   : > { %v7549_v13 = vpop.f32.mrf.mxu1  ;;  %v8189_v40 = vadd.f32 %v8101_v18, %v7910_v28  ;;  %11090 = vmatmul.msk.f32.gmra.mxu2 %vm1628_vm6, %v8236_v5 }
 0x61c   : > { %v7633_v5 = vadd.f32 %v7549_v13, %v15961_v62  ;;  %v8238_v13 = vld [vmem:[#allocation2 + $0x143] sm:$0xff] }
 0x61d   : > { %11022 = vmatmul.msk.f32.gmra.mxu3 %vm1628_vm6, %v14816_v1 }
 0x61e   : > { %10988 = vmatmul.msk.f32.gmra.mxu1 %vm1628_vm6, %v7402_v63  ;;  %v8107_v45 = vpop.f32.mrf.mxu0  ;;  %v8377_v18 = vpop.f32.mrf.mxu2  ;;  %v14827_v63 = vld [vmem:[#allocation2 + $0x151] sm:$0xff] }
 0x61f   : > { %v14823_v28 = vadd.f32 %v8377_v18, %v8188_v29 }
 0x620   : > { %v7825_v10 = vpop.f32.mrf.mxu3 }
 0x621   : > { %v7911_v16 = vadd.f32 %v7825_v10, %v7632_v3  ;;  %15960 = vst [vmem:[#allocation52_spill] sm:$0xff] %v14823_v28  ;;  %11058 = vmatmul.msk.f32.gmra.mxu0 %vm1628_vm6, %v14477_v4  ;;  %v14838_v28 = vld [vmem:[#allocation2 + $0x159] sm:$0xff] }
 0x623   : > { %v7552_v60 = vpop.f32.mrf.mxu1  ;;  %v8190_v39 = vadd.f32 %v8104_v21, %v7911_v16  ;;  %11091 = vmatmul.msk.f32.gmra.mxu2 %vm1628_vm6, %v8237_v2 }
 0x624   : > { %v7634_v2 = vadd.f32 %v7552_v60, %v14495_v30  ;;  %v8239_v30 = vld [vmem:[#allocation2 + $0x153] sm:$0xff] }
 0x625   : > { %11023 = vmatmul.msk.f32.gmra.mxu3 %vm1628_vm6, %v14827_v63 }
 0x626   : > { %10989 = vmatmul.msk.f32.gmra.mxu1 %vm1628_vm6, %v7403_v14  ;;  %v8110_v10 = vpop.f32.mrf.mxu0  ;;  %v8380_v21 = vpop.f32.mrf.mxu2  ;;  %v7404_v14 = vld [vmem:[#allocation2 + $0x168] sm:$0xff] }
 0x627   : > { %v14834_v18 = vadd.f32 %v8380_v21, %v8189_v40  ;;  %v7405_v21 = vld [vmem:[#allocation2 + $0x170] sm:$0xff] }
 0x628   : > { %v7828_v3 = vpop.f32.mrf.mxu3 }
 0x629   : > { %v7912_v29 = vadd.f32 %v7828_v3, %v7633_v5  ;;  %11059 = vmatmul.msk.f32.gmra.mxu0 %vm1628_vm6, %v14488_v47 }
 0x62b   : > { %v7555_v16 = vpop.f32.mrf.mxu1  ;;  %v8191_v4 = vadd.f32 %v8107_v45, %v7912_v29  ;;  %11092 = vmatmul.msk.f32.gmra.mxu2 %vm1628_vm6, %v8238_v13 }
 0x62c   : > { %v7635_v60 = vadd.f32 %v7555_v16, %v14506_v7  ;;  %v8240_v7 = vld [vmem:[#allocation2 + $0x15b] sm:$0xff] }
 0x62d   : > { %11024 = vmatmul.msk.f32.gmra.mxu3 %vm1628_vm6, %v14838_v28  ;;  %v15966_v16 = vld [vmem:[#allocation14_spill] sm:$0xff] }
 0x62e   : > { %10990 = vmatmul.msk.f32.gmra.mxu1 %vm1628_vm6, %v7404_v14  ;;  %v8113_v5 = vpop.f32.mrf.mxu0  ;;  %v8383_v45 = vpop.f32.mrf.mxu2  ;;  %v14849_v14 = vld [vmem:[#allocation2 + $0x169] sm:$0xff] }
 0x62f   : > { %v14845_v29 = vadd.f32 %v8383_v45, %v8190_v39  ;;  %15963 = vst [vmem:[#allocation7_spill] sm:$0xff] %v14849_v14  ;;  %v15965_v45 = vld [vmem:[#allocation68_spill] sm:$0xff] }
 0x630   : > { %v7831_v62 = vpop.f32.mrf.mxu3 }
 0x631   : > { %v7913_v40 = vadd.f32 %v7831_v62, %v7634_v2  ;;  %15962 = vst [vmem:[#allocation6_spill] sm:$0xff] %v14845_v29  ;;  %11060 = vmatmul.msk.f32.gmra.mxu0 %vm1628_vm6, %v14499_v61  ;;  %v14860_v29 = vld [vmem:[#allocation2 + $0x171] sm:$0xff] }
 0x633   : > { %v7558_v3 = vpop.f32.mrf.mxu1  ;;  %v8192_v47 = vadd.f32 %v8110_v10, %v7913_v40  ;;  %11093 = vmatmul.msk.f32.gmra.mxu2 %vm1628_vm6, %v8239_v30 }
 0x634   : > { %v7636_v30 = vadd.f32 %v7558_v3, %v15966_v16  ;;  %v8241_v3 = vld [vmem:[#allocation2 + $0x16b] sm:$0xff] }
 0x635   : > { %11025 = vmatmul.msk.f32.gmra.mxu3 %vm1628_vm6, %v14849_v14  ;;  %v14871_v14 = vld [vmem:[#allocation2 + $0x181] sm:$0xff] }
 0x636   : > { %10991 = vmatmul.msk.f32.gmra.mxu1 %vm1628_vm6, %v7405_v21  ;;  %v8116_v2 = vpop.f32.mrf.mxu0  ;;  %v8386_v10 = vpop.f32.mrf.mxu2  ;;  %v7406_v21 = vld [vmem:[#allocation2 + $0x180] sm:$0xff] }
 0x637   : > { %v14856_v40 = vadd.f32 %v8386_v10, %v8191_v4 }
 0x638   : > { %v7834_v13 = vpop.f32.mrf.mxu3 }
 0x639   : > { %v7914_v39 = vadd.f32 %v7834_v13, %v7635_v60  ;;  %15964 = vst [vmem:[#allocation16_spill] sm:$0xff] %v14856_v40  ;;  %11061 = vmatmul.msk.f32.gmra.mxu0 %vm1628_vm6, %v15965_v45  ;;  %v15968_v40 = vld [vmem:[#allocation50_spill] sm:$0xff] }
 0x63b   : > { %v7561_v62 = vpop.f32.mrf.mxu1  ;;  %v8193_v61 = vadd.f32 %v8113_v5, %v7914_v39  ;;  %11094 = vmatmul.msk.f32.gmra.mxu2 %vm1628_vm6, %v8240_v7  ;;  %v15969_v7 = vld [vmem:[#allocation9_spill] sm:$0xff] }
 0x63c   : > { %v7637_v16 = vadd.f32 %v7561_v62, %v15969_v7  ;;  %v8242_v62 = vld [vmem:[#allocation2 + $0x173] sm:$0xff] }
 0x63d   : > { %11026 = vmatmul.msk.f32.gmra.mxu3 %vm1628_vm6, %v14860_v29 }
 0x63e   : > { %10992 = vmatmul.msk.f32.gmra.mxu1 %vm1628_vm6, %v7406_v21  ;;  %v8119_v13 = vpop.f32.mrf.mxu0  ;;  %v8389_v5 = vpop.f32.mrf.mxu2  ;;  %v7407_v21 = vld [vmem:[#allocation2 + $0x188] sm:$0xff] }
 0x63f   : > { %v14867_v10 = vadd.f32 %v8389_v5, %v8192_v47 }
 0x640   : > { %v7837_v60 = vpop.f32.mrf.mxu3 }
 0x641   : > { %v7915_v4 = vadd.f32 %v7837_v60, %v7636_v30  ;;  %15967 = vst [vmem:[#allocation69_spill] sm:$0xff] %v14867_v10  ;;  %11062 = vmatmul.msk.f32.gmra.mxu0 %vm1628_vm6, %v15968_v40  ;;  %v14882_v10 = vld [vmem:[#allocation2 + $0x189] sm:$0xff] }
 0x642   : > { %15970 = vst [vmem:[#allocation17_spill] sm:$0xff] %v14882_v10 }
 0x643   : > { %v7564_v39 = vpop.f32.mrf.mxu1  ;;  %v8194_v45 = vadd.f32 %v8116_v2, %v7915_v4  ;;  %11095 = vmatmul.msk.f32.gmra.mxu2 %vm1628_vm6, %v8241_v3  ;;  %v15971_v3 = vld [vmem:[#allocation8_spill] sm:$0xff] }
 0x644   : > { %v7638_v7 = vadd.f32 %v7564_v39, %v15971_v3  ;;  %v7409_v3 = vld [vmem:[#allocation2 + $0x1a0] sm:$0xff] }
 0x645   : > { %11027 = vmatmul.msk.f32.gmra.mxu3 %vm1628_vm6, %v14871_v14 }
 0x646   : > { %10993 = vmatmul.msk.f32.gmra.mxu1 %vm1628_vm6, %v7407_v21  ;;  %v8122_v60 = vpop.f32.mrf.mxu0  ;;  %v8392_v2 = vpop.f32.mrf.mxu2  ;;  %v7408_v21 = vld [vmem:[#allocation2 + $0x198] sm:$0xff] }
 0x647   : > { %v14878_v5 = vadd.f32 %v8392_v2, %v8193_v61 }
 0x648   : > { %v7840_v30 = vpop.f32.mrf.mxu3 }
 0x649   : > { %v7916_v47 = vadd.f32 %v7840_v30, %v7637_v16  ;;  %11063 = vmatmul.msk.f32.gmra.mxu0 %vm1628_vm6, %v14551_v42  ;;  %v11174_v42 = vld [vmem:[%s15663_s3 + $0x158] sm:$0x3] }
 0x64a   : > { %11175 = vmatpush.msk.msra.mxu0 %vm1867_vm3, %v11174_v42 }
 0x64b   : > { %v7567_v4 = vpop.f32.mrf.mxu1  ;;  %v8195_v40 = vadd.f32 %v8119_v13, %v7916_v47  ;;  %11096 = vmatmul.msk.f32.gmra.mxu2 %vm1628_vm6, %v8242_v62  ;;  %v11209_v47 = vld [vmem:[%s15663_s3 + $0x168] sm:$0x3]  ;;  %v11173_v62 = vld [vmem:[%s15663_s3 + $0x150] sm:$0xff] }
 0x64c   : > { %11210 = vmatpush.msk.msra.mxu2 %vm1867_vm3, %v11209_v47  ;;  %9204 = vmatpush.msra.mxu0 %v11173_v62  ;;  %v14923_v62 = vld [vmem:[#allocation2 + $0x1a1] sm:$0xff] }
 0x64d   : > { %11028 = vmatmul.msk.f32.gmra.mxu3 %vm1628_vm6, %v14882_v10 }
 0x64e   : > { %10994 = vmatmul.msk.f32.gmra.mxu1 %vm1628_vm6, %v7408_v21  ;;  %v8125_v30 = vpop.f32.mrf.mxu0  ;;  %v8395_v13 = vpop.f32.mrf.mxu2 }
 0x64f   : > { %v14895_v21 = vadd.f32 %v8395_v13, %v8194_v45  ;;  %v8243_v45 = vld [vmem:[#allocation2 + $0x183] sm:$0xff] }
 0x650   : > { %v7843_v16 = vpop.f32.mrf.mxu3 }
 0x651   : > { %v7917_v61 = vadd.f32 %v7843_v16, %v7638_v7  ;;  %15972 = vst [vmem:[#allocation15_spill] sm:$0xff] %v14895_v21  ;;  %11064 = vmatmul.msk.f32.gmra.mxu0 %vm1628_vm6, %v14561_v9  ;;  %v14904_v7 = vld [vmem:[#allocation2 + $0x199] sm:$0xff]  ;;  %v15974_v16 = vld [vmem:[#allocation19_spill] sm:$0xff] }
 0x652   : > { %15973 = vst [vmem:[#allocation10_spill] sm:$0xff] %v14904_v7 }
 0x653   : > { %v7570_v2 = vpop.f32.mrf.mxu1  ;;  %v8196_v39 = vadd.f32 %v8122_v60, %v7917_v61  ;;  %v11279_v60 = vld [vmem:[%s15663_s3 + $0x188] sm:$0x3]  ;;  %11097 = vmatmul.msk.f32.gmra.mxu2 %vm1628_vm6, %v8243_v45  ;;  %v7639_v61 = vadd.f32 %v7567_v4, %v15974_v16  ;;  %v15976_v45 = vld [vmem:[#allocation21_spill] sm:$0xff]  ;;  %v7410_v4 = vld [vmem:[#allocation2 + $0x1b0] sm:$0xff] }
 0x654   : > { %11280 = vmatpush.msk.msra.mxu3 %vm1867_vm3, %v11279_v60  ;;  %v8244_v60 = vld [vmem:[#allocation2 + $0x18b] sm:$0xff] }
 0x655   : > { %11029 = vmatmul.msk.f32.gmra.mxu3 %vm1628_vm6, %v14904_v7 }
 0x656   : > { %10995 = vmatmul.msk.f32.gmra.mxu1 %vm1628_vm6, %v7409_v3  ;;  %v8128_v42 = vpop.f32.mrf.mxu0  ;;  %v8398_v47 = vpop.f32.mrf.mxu2  ;;  %v11244_v3 = vld [vmem:[%s15663_s3 + $0x178] sm:$0x3] }
 0x657   : > { %v14918_v21 = vadd.f32 %v8398_v47, %v8195_v40  ;;  %11245 = vmatpush.msk.msra.mxu1 %vm1867_vm3, %v11244_v3  ;;  %v7640_v40 = vadd.f32 %v7570_v2, %v14581_v56  ;;  %v7968_v3 = vld [vmem:[#allocation2 + $0x1b2] sm:$0xff]  ;;  %v8245_v56 = vld [vmem:[#allocation2 + $0x19b] sm:$0xff] }
 0x658   : > { %v7846_v9 = vpop.f32.mrf.mxu3 }
 0x659   : > { %v7918_v13 = vadd.f32 %v7846_v9, %v7639_v61  ;;  %15975 = vst [vmem:[#allocation11_spill] sm:$0xff] %v14918_v21  ;;  %11065 = vmatmul.msk.f32.gmra.mxu0 %vm1628_vm6, %v15976_v45  ;;  %v14933_v21 = vld [vmem:[#allocation2 + $0x1b1] sm:$0xff] }
 0x65b   : > { %v7573_v7 = vpop.f32.mrf.mxu1  ;;  %v8197_v10 = vadd.f32 %v8125_v30, %v7918_v13  ;;  %11098 = vmatmul.msk.f32.gmra.mxu2 %vm1628_vm6, %v8244_v60 }
 0x65c   : > { %v7641_v2 = vadd.f32 %v7573_v7, %v14589_v55  ;;  %v8246_v55 = vld [vmem:[#allocation2 + $0x1a3] sm:$0xff] }
 0x65d   : > { %11030 = vmatmul.msk.f32.gmra.mxu3 %vm1628_vm6, %v14923_v62 }
 0x65e   : > { %10996 = vmatmul.msk.f32.gmra.mxu1 %vm1628_vm6, %v7410_v4  ;;  %v8131_v9 = vpop.f32.mrf.mxu0  ;;  %v8401_v30 = vpop.f32.mrf.mxu2  ;;  %v7411_v4 = vld [vmem:[#allocation2 + $0x1b8] sm:$0xff] }
 0x65f   : > { %v14930_v47 = vadd.f32 %v8401_v30, %v8196_v39  ;;  %v7969_v30 = vld [vmem:[#allocation2 + $0x1ba] sm:$0xff] }
 0x660   : > { %v7849_v16 = vpop.f32.mrf.mxu3 }
 0x661   : > { %v7919_v61 = vadd.f32 %v7849_v16, %v7640_v40  ;;  %15977 = vst [vmem:[#allocation74_spill] sm:$0xff] %v14930_v47  ;;  %11066 = vmatmul.msk.f32.gmra.mxu0 %vm1628_vm6, %v7968_v3  ;;  %v8496_v47 = vld [vmem:[#allocation2 + $0x4c] sm:$0xff] }
 0x663   : > { %v7576_v13 = vpop.f32.mrf.mxu1  ;;  %v8198_v45 = vadd.f32 %v8128_v42, %v7919_v61  ;;  %11099 = vmatmul.msk.f32.gmra.mxu2 %vm1628_vm6, %v8245_v56  ;;  %v11208_v56 = vld [vmem:[%s15663_s3 + $0x160] sm:$0xff] }
 0x664   : > { %9483 = vmatpush.msra.mxu2 %v11208_v56 }
 0x665   : > { %11031 = vmatmul.msk.f32.gmra.mxu3 %vm1628_vm6, %v14933_v21 }
 0x666   : > { %10997 = vmatmul.msk.f32.gmra.mxu1 %vm1628_vm6, %v7411_v4  ;;  %v8134_v40 = vpop.f32.mrf.mxu0  ;;  %v8404_v16 = vpop.f32.mrf.mxu2  ;;  %v14943_v4 = vld [vmem:[#allocation2 + $0x1b9] sm:$0xff] }
 0x667   : > { %v14940_v61 = vadd.f32 %v8404_v16, %v8197_v10  ;;  %15979 = vst [vmem:[#allocation30_spill] sm:$0xff] %v14943_v4  ;;  %v7642_v10 = vadd.f32 %v7576_v13, %v14597_v53 }
 0x668   : > { %v7852_v60 = vpop.f32.mrf.mxu3 }
 0x669   : > { %v7920_v39 = vadd.f32 %v7852_v60, %v7641_v2  ;;  %15978 = vst [vmem:[#allocation54_spill] sm:$0xff] %v14940_v61  ;;  %11067 = vmatmul.msk.f32.gmra.mxu0 %vm1628_vm6, %v7969_v30  ;;  %v8776_v61 = vld [vmem:[#allocation2 + $0x60] sm:$0xff] }
 0x66b   : > { %v7579_v42 = vpop.f32.mrf.mxu1  ;;  %v8199_v3 = vadd.f32 %v8131_v9, %v7920_v39  ;;  %11100 = vmatmul.msk.f32.gmra.mxu2 %vm1628_vm6, %v8246_v55 }
 0x66c   : > { %v7643_v53 = vadd.f32 %v7579_v42, %v14608_v8  ;;  %v8248_v8 = vld [vmem:[#allocation2 + $0x1bb] sm:$0xff] }
 0x66d   : > { %11032 = vmatmul.msk.f32.gmra.mxu3 %vm1628_vm6, %v14943_v4  ;;  %v8497_v4 = vld [vmem:[#allocation2 + $0x54] sm:$0xff] }
 0x66e   : > { %11106 = vmatmul.msk.f32.vlgmr.msrb.gmra.mxu1 %vm1628_vm6, %v8496_v47  ;;  %v8137_v2 = vpop.f32.mrf.mxu0  ;;  %v8407_v60 = vpop.f32.mrf.mxu2  ;;  %v8247_v47 = vld [vmem:[#allocation2 + $0x1b3] sm:$0xff] }
 0x66f   : > { %v14953_v16 = vadd.f32 %v8407_v60, %v8198_v45 }
 0x670   : > { %v7855_v7 = vpop.f32.mrf.mxu3 }
 0x671   : > { %v7921_v9 = vadd.f32 %v7855_v7, %v7642_v10  ;;  %11176 = vmatmul.msk.f32.vlgmr.msra.gmra.mxu0 %vm1628_vm6, %v14601_v44  ;;  %v14965_v44 = vld [vmem:[#allocation2 + $0x64] sm:$0xff] }
 0x673   : > { %v7582_v39 = vpop.f32.mrf.mxu1  ;;  %v8200_v30 = vadd.f32 %v8134_v40, %v7921_v9  ;;  %11101 = vmatmul.msk.f32.gmra.mxu2 %vm1628_vm6, %v8247_v47 }
 0x674   : > { %v7644_v42 = vadd.f32 %v7582_v39, %v14619_v12  ;;  %v9334_v12 = vld [vmem:[#allocation2 + $0x62] sm:$0xff] }
 0x675   : > { %11141 = vmatmul.msk.f32.vlgmr.msrb.gmra.mxu3 %vm1628_vm6, %v8776_v61 }
 0x676   : > { %11107 = vmatmul.msk.f32.gmra.mxu1 %vm1628_vm6, %v8497_v4  ;;  %v8140_v55 = vpop.f32.mrf.mxu0  ;;  %v8410_v45 = vpop.f32.mrf.mxu2  ;;  %v8777_v4 = vld [vmem:[#allocation2 + $0x68] sm:$0xff] }
 0x677   : > { %v14961_v40 = vadd.f32 %v8410_v45, %v8199_v3 }
 0x678   : > { %v7858_v13 = vpop.f32.mrf.mxu3 }
 0x679   : > { %v7922_v56 = vadd.f32 %v7858_v13, %v7643_v53  ;;  %11177 = vmatmul.msk.f32.gmra.mxu0 %vm1628_vm6, %v14612_v49  ;;  %v14976_v53 = vld [vmem:[#allocation2 + $0x6c] sm:$0xff]  ;;  %v8778_v13 = vld [vmem:[#allocation2 + $0x78] sm:$0xff] }
 0x67b   : > { %v7585_v10 = vpop.f32.mrf.mxu1  ;;  %v8201_v7 = vadd.f32 %v8137_v2, %v7922_v56  ;;  %11102 = vmatmul.msk.f32.gmra.mxu2 %vm1628_vm6, %v8248_v8 }
 0x67c   : > { %v7645_v39 = vadd.f32 %v7585_v10, %v14630_v0  ;;  %v9335_v0 = vld [vmem:[#allocation2 + $0x6a] sm:$0xff] }
 0x67d   : > { %11142 = vmatmul.msk.f32.gmra.mxu3 %vm1628_vm6, %v8777_v4 }
 0x67e   : > { %11108 = vmatmul.msk.f32.gmra.mxu1 %vm1628_vm6, %v14965_v44  ;;  %v8143_v9 = vpop.f32.mrf.mxu0  ;;  %v8413_v2 = vpop.f32.mrf.mxu2 }
 0x67f   : > { %v14972_v47 = vadd.f32 %v8413_v2, %v8200_v30 }
 0x680   : > { %v7861_v61 = vpop.f32.mrf.mxu3 }
 0x681   : > { %v7923_v3 = vadd.f32 %v7861_v61, %v7644_v42  ;;  %11178 = vmatmul.msk.f32.gmra.mxu0 %vm1628_vm6, %v14623_v31  ;;  %v14987_v42 = vld [vmem:[#allocation2 + $0x7c] sm:$0xff] }
 0x682   : > { %v8779_v61 = vld [vmem:[#allocation2 + $0x80] sm:$0xff] }
 0x683   : > { %v7588_v60 = vpop.f32.mrf.mxu1  ;;  %v8202_v49 = vadd.f32 %v8140_v55, %v7923_v3  ;;  %11211 = vmatmul.msk.f32.vlgmr.msra.gmra.mxu2 %vm1628_vm6, %v9334_v12 }
 0x684   : > { %v7646_v10 = vadd.f32 %v7588_v60, %v14641_v23  ;;  %v9336_v23 = vld [vmem:[#allocation2 + $0x7a] sm:$0xff] }
 0x685   : > { %11143 = vmatmul.msk.f32.gmra.mxu3 %vm1628_vm6, %v8778_v13 }
 0x686   : > { %11109 = vmatmul.msk.f32.gmra.mxu1 %vm1628_vm6, %v14976_v53  ;;  %v8146_v45 = vpop.f32.mrf.mxu0  ;;  %v8416_v55 = vpop.f32.mrf.mxu2 }
 0x687   : > { %v14983_v8 = vadd.f32 %v8416_v55, %v8201_v7 }
 0x688   : > { %v7864_v56 = vpop.f32.mrf.mxu3 }
 0x689   : > { %v7924_v30 = vadd.f32 %v7864_v56, %v7645_v39  ;;  %11179 = vmatmul.msk.f32.gmra.mxu0 %vm1628_vm6, %v14634_v58  ;;  %v14998_v39 = vld [vmem:[#allocation2 + $0x84] sm:$0xff]  ;;  %v8780_v56 = vld [vmem:[#allocation2 + $0x90] sm:$0xff] }
 0x68b   : > { %v7591_v4 = vpop.f32.mrf.mxu1  ;;  %v8203_v31 = vadd.f32 %v8143_v9, %v7924_v30  ;;  %11212 = vmatmul.msk.f32.gmra.mxu2 %vm1628_vm6, %v9335_v0 }
 0x68c   : > { %v7647_v60 = vadd.f32 %v7591_v4, %v14652_v43  ;;  %v9337_v43 = vld [vmem:[#allocation2 + $0x82] sm:$0xff] }
 0x68d   : > { %11144 = vmatmul.msk.f32.gmra.mxu3 %vm1628_vm6, %v8779_v61 }
 0x68e   : > { %11110 = vmatmul.msk.f32.gmra.mxu1 %vm1628_vm6, %v14987_v42  ;;  %v8149_v2 = vpop.f32.mrf.mxu0  ;;  %v8419_v9 = vpop.f32.mrf.mxu2 }
 0x68f   : > { %v14994_v12 = vadd.f32 %v8419_v9, %v8202_v49 }
 0x690   : > { %v7867_v3 = vpop.f32.mrf.mxu3 }
 0x691   : > { %v7925_v7 = vadd.f32 %v7867_v3, %v7646_v10  ;;  %11180 = vmatmul.msk.f32.gmra.mxu0 %vm1628_vm6, %v14645_v33  ;;  %v15009_v10 = vld [vmem:[#allocation2 + $0x94] sm:$0xff] }
 0x692   : > { %v8781_v3 = vld [vmem:[#allocation2 + $0x98] sm:$0xff] }
 0x693   : > { %v7594_v13 = vpop.f32.mrf.mxu1  ;;  %v8204_v58 = vadd.f32 %v8146_v45, %v7925_v7  ;;  %11213 = vmatmul.msk.f32.gmra.mxu2 %vm1628_vm6, %v9336_v23 }
 0x694   : > { %v7648_v4 = vadd.f32 %v7594_v13, %v14663_v24  ;;  %v9338_v24 = vld [vmem:[#allocation2 + $0x92] sm:$0xff] }
 0x695   : > { %11145 = vmatmul.msk.f32.gmra.mxu3 %vm1628_vm6, %v8780_v56 }
 0x696   : > { %11111 = vmatmul.msk.f32.gmra.mxu1 %vm1628_vm6, %v14998_v39  ;;  %v8152_v55 = vpop.f32.mrf.mxu0  ;;  %v8422_v45 = vpop.f32.mrf.mxu2 }
 0x697   : > { %v15005_v0 = vadd.f32 %v8422_v45, %v8203_v31 }
 0x698   : > { %v7870_v30 = vpop.f32.mrf.mxu3 }
 0x699   : > { %v7926_v49 = vadd.f32 %v7870_v30, %v7647_v60  ;;  %11181 = vmatmul.msk.f32.gmra.mxu0 %vm1628_vm6, %v14656_v54  ;;  %v15020_v60 = vld [vmem:[#allocation2 + $0x9c] sm:$0xff]  ;;  %v8782_v30 = vld [vmem:[#allocation2 + $0xa8] sm:$0xff] }
 0x69b   : > { %v7597_v61 = vpop.f32.mrf.mxu1  ;;  %v8205_v33 = vadd.f32 %v8149_v2, %v7926_v49  ;;  %11214 = vmatmul.msk.f32.gmra.mxu2 %vm1628_vm6, %v9337_v43 }
 0x69c   : > { %v7649_v13 = vadd.f32 %v7597_v61, %v14674_v48  ;;  %v9339_v48 = vld [vmem:[#allocation2 + $0x9a] sm:$0xff] }
 0x69d   : > { %11146 = vmatmul.msk.f32.gmra.mxu3 %vm1628_vm6, %v8781_v3 }
 0x69e   : > { %11112 = vmatmul.msk.f32.gmra.mxu1 %vm1628_vm6, %v15009_v10  ;;  %v8155_v9 = vpop.f32.mrf.mxu0  ;;  %v8425_v2 = vpop.f32.mrf.mxu2 }
 0x69f   : > { %v15016_v23 = vadd.f32 %v8425_v2, %v8204_v58 }
 0x6a0   : > { %v7873_v7 = vpop.f32.mrf.mxu3 }
 0x6a1   : > { %v7927_v31 = vadd.f32 %v7873_v7, %v7648_v4  ;;  %11182 = vmatmul.msk.f32.gmra.mxu0 %vm1628_vm6, %v14667_v51  ;;  %v15031_v4 = vld [vmem:[#allocation2 + $0xac] sm:$0xff] }
 0x6a2   : > { %v8783_v7 = vld [vmem:[#allocation2 + $0xb0] sm:$0xff] }
 0x6a3   : > { %v7600_v56 = vpop.f32.mrf.mxu1  ;;  %v8206_v54 = vadd.f32 %v8152_v55, %v7927_v31  ;;  %11215 = vmatmul.msk.f32.gmra.mxu2 %vm1628_vm6, %v9338_v24 }
 0x6a4   : > { %v7650_v61 = vadd.f32 %v7600_v56, %v14685_v22  ;;  %v9340_v22 = vld [vmem:[#allocation2 + $0xaa] sm:$0xff] }
 0x6a5   : > { %11147 = vmatmul.msk.f32.gmra.mxu3 %vm1628_vm6, %v8782_v30 }
 0x6a6   : > { %11113 = vmatmul.msk.f32.gmra.mxu1 %vm1628_vm6, %v15020_v60  ;;  %v8158_v45 = vpop.f32.mrf.mxu0  ;;  %v8428_v55 = vpop.f32.mrf.mxu2 }
 0x6a7   : > { %v15027_v43 = vadd.f32 %v8428_v55, %v8205_v33 }
 0x6a8   : > { %v7876_v49 = vpop.f32.mrf.mxu3 }
 0x6a9   : > { %v7928_v58 = vadd.f32 %v7876_v49, %v7649_v13  ;;  %11183 = vmatmul.msk.f32.gmra.mxu0 %vm1628_vm6, %v14678_v46  ;;  %v15042_v13 = vld [vmem:[#allocation2 + $0xb4] sm:$0xff]  ;;  %v8784_v49 = vld [vmem:[#allocation2 + $0xc0] sm:$0xff] }
 0x6ab   : > { %v7603_v3 = vpop.f32.mrf.mxu1  ;;  %v8207_v51 = vadd.f32 %v8155_v9, %v7928_v58  ;;  %11216 = vmatmul.msk.f32.gmra.mxu2 %vm1628_vm6, %v9339_v48 }
 0x6ac   : > { %v7651_v56 = vadd.f32 %v7603_v3, %v14696_v36  ;;  %v9341_v36 = vld [vmem:[#allocation2 + $0xb2] sm:$0xff] }
 0x6ad   : > { %11148 = vmatmul.msk.f32.gmra.mxu3 %vm1628_vm6, %v8783_v7 }
 0x6ae   : > { %11114 = vmatmul.msk.f32.gmra.mxu1 %vm1628_vm6, %v15031_v4  ;;  %v8161_v2 = vpop.f32.mrf.mxu0  ;;  %v8431_v9 = vpop.f32.mrf.mxu2 }
 0x6af   : > { %v15038_v24 = vadd.f32 %v8431_v9, %v8206_v54 }
 0x6b0   : > { %v7879_v31 = vpop.f32.mrf.mxu3 }
 0x6b1   : > { %v7929_v33 = vadd.f32 %v7879_v31, %v7650_v61  ;;  %11184 = vmatmul.msk.f32.gmra.mxu0 %vm1628_vm6, %v14689_v34  ;;  %v15053_v61 = vld [vmem:[#allocation2 + $0xc4] sm:$0xff] }
 0x6b2   : > { %v8785_v31 = vld [vmem:[#allocation2 + $0xc8] sm:$0xff] }
 0x6b3   : > { %v7606_v30 = vpop.f32.mrf.mxu1  ;;  %v8208_v46 = vadd.f32 %v8158_v45, %v7929_v33  ;;  %11217 = vmatmul.msk.f32.gmra.mxu2 %vm1628_vm6, %v9340_v22 }
 0x6b4   : > { %v7652_v3 = vadd.f32 %v7606_v30, %v14707_v59  ;;  %v9342_v59 = vld [vmem:[#allocation2 + $0xc2] sm:$0xff] }
 0x6b5   : > { %11149 = vmatmul.msk.f32.gmra.mxu3 %vm1628_vm6, %v8784_v49 }
 0x6b6   : > { %11115 = vmatmul.msk.f32.gmra.mxu1 %vm1628_vm6, %v15042_v13  ;;  %v8164_v55 = vpop.f32.mrf.mxu0  ;;  %v8434_v45 = vpop.f32.mrf.mxu2 }
 0x6b7   : > { %v15049_v48 = vadd.f32 %v8434_v45, %v8207_v51 }
 0x6b8   : > { %v7882_v58 = vpop.f32.mrf.mxu3 }
 0x6b9   : > { %v7930_v54 = vadd.f32 %v7882_v58, %v7651_v56  ;;  %11185 = vmatmul.msk.f32.gmra.mxu0 %vm1628_vm6, %v14700_v26  ;;  %v15064_v56 = vld [vmem:[#allocation2 + $0xcc] sm:$0xff]  ;;  %v8786_v58 = vld [vmem:[#allocation2 + $0xd8] sm:$0xff] }
 0x6bb   : > { %v7609_v7 = vpop.f32.mrf.mxu1  ;;  %v8209_v34 = vadd.f32 %v8161_v2, %v7930_v54  ;;  %11218 = vmatmul.msk.f32.gmra.mxu2 %vm1628_vm6, %v9341_v36 }
 0x6bc   : > { %v7653_v30 = vadd.f32 %v7609_v7, %v14724_v38  ;;  %v9343_v38 = vld [vmem:[#allocation2 + $0xca] sm:$0xff] }
 0x6bd   : > { %11150 = vmatmul.msk.f32.gmra.mxu3 %vm1628_vm6, %v8785_v31 }
 0x6be   : > { %11116 = vmatmul.msk.f32.gmra.mxu1 %vm1628_vm6, %v15053_v61  ;;  %v8167_v9 = vpop.f32.mrf.mxu0  ;;  %v8437_v2 = vpop.f32.mrf.mxu2 }
 0x6bf   : > { %v15060_v22 = vadd.f32 %v8437_v2, %v8208_v46 }
 0x6c0   : > { %v7885_v33 = vpop.f32.mrf.mxu3 }
 0x6c1   : > { %v7931_v51 = vadd.f32 %v7885_v33, %v7652_v3  ;;  %11186 = vmatmul.msk.f32.gmra.mxu0 %vm1628_vm6, %v14711_v41  ;;  %v15075_v3 = vld [vmem:[#allocation2 + $0xdc] sm:$0xff] }
 0x6c2   : > { %v8787_v33 = vld [vmem:[#allocation2 + $0xe0] sm:$0xff] }
 0x6c3   : > { %v7612_v49 = vpop.f32.mrf.mxu1  ;;  %v8210_v26 = vadd.f32 %v8164_v55, %v7931_v51  ;;  %11219 = vmatmul.msk.f32.gmra.mxu2 %vm1628_vm6, %v9342_v59 }
 0x6c4   : > { %v7654_v7 = vadd.f32 %v7612_v49, %v14735_v6  ;;  %v9344_v6 = vld [vmem:[#allocation2 + $0xda] sm:$0xff] }
 0x6c5   : > { %11151 = vmatmul.msk.f32.gmra.mxu3 %vm1628_vm6, %v8786_v58  ;;  %v11278_v49 = vld [vmem:[%s15663_s3 + $0x180] sm:$0xff] }
 0x6c6   : > { %11117 = vmatmul.msk.f32.gmra.mxu1 %vm1628_vm6, %v15064_v56  ;;  %v8170_v45 = vpop.f32.mrf.mxu0  ;;  %v8440_v55 = vpop.f32.mrf.mxu2  ;;  %10041 = vmatpush.msra.mxu3 %v11278_v49 }
 0x6c7   : > { %v15071_v36 = vadd.f32 %v8440_v55, %v8209_v34 }
 0x6c8   : > { %v7888_v54 = vpop.f32.mrf.mxu3 }
 0x6c9   : > { %v7932_v46 = vadd.f32 %v7888_v54, %v7653_v30  ;;  %11187 = vmatmul.msk.f32.gmra.mxu0 %vm1628_vm6, %v14728_v57  ;;  %v15086_v30 = vld [vmem:[#allocation2 + $0xe4] sm:$0xff]  ;;  %v8788_v54 = vld [vmem:[#allocation2 + $0xf0] sm:$0xff] }
 0x6cb   : > { %v7615_v31 = vpop.f32.mrf.mxu1  ;;  %v8211_v41 = vadd.f32 %v8167_v9, %v7932_v46  ;;  %11220 = vmatmul.msk.f32.gmra.mxu2 %vm1628_vm6, %v9343_v38 }
 0x6cd   : > { %11152 = vmatmul.msk.f32.gmra.mxu3 %vm1628_vm6, %v8787_v33  ;;  %v11243_v33 = vld [vmem:[%s15663_s3 + $0x170] sm:$0xff] }
 0x6ce   : > { %11118 = vmatmul.msk.f32.gmra.mxu1 %vm1628_vm6, %v15075_v3  ;;  %v8173_v2 = vpop.f32.mrf.mxu0  ;;  %v8443_v9 = vpop.f32.mrf.mxu2 }
 0x6cf   : > { %v15082_v59 = vadd.f32 %v8443_v9, %v8210_v26  ;;  %v7655_v26 = vadd.f32 %v7615_v31, %v14746_v11  ;;  %9762 = vmatpush.msra.mxu1 %v11243_v33  ;;  %v8789_v9 = vld [vmem:[#allocation2 + $0xf8] sm:$0xff]  ;;  %v9345_v11 = vld [vmem:[#allocation2 + $0xe2] sm:$0xff]  ;;  %v15980_v31 = vld [vmem:[#allocation20_spill] sm:$0xff] }
 0x6d0   : > { %v7891_v51 = vpop.f32.mrf.mxu3  ;;  %v15981_v33 = vld [vmem:[#allocation22_spill] sm:$0xff] }
 0x6d1   : > { %v7933_v34 = vadd.f32 %v7891_v51, %v7654_v7  ;;  %11188 = vmatmul.msk.f32.gmra.mxu0 %vm1628_vm6, %v14739_v35 }
 0x6d3   : > { %v7618_v58 = vpop.f32.mrf.mxu1  ;;  %v8212_v57 = vadd.f32 %v8170_v45, %v7933_v34  ;;  %11221 = vmatmul.msk.f32.gmra.mxu2 %vm1628_vm6, %v9344_v6  ;;  %v15103_v34 = vld [vmem:[#allocation2 + $0xf4] sm:$0xff] }
 0x6d5   : > { %11153 = vmatmul.msk.f32.gmra.mxu3 %vm1628_vm6, %v8788_v54  ;;  %v7656_v54 = vadd.f32 %v7618_v58, %v15980_v31  ;;  %v9346_v58 = vld [vmem:[#allocation2 + $0xf2] sm:$0xff] }
 0x6d6   : > { %11119 = vmatmul.msk.f32.gmra.mxu1 %vm1628_vm6, %v15086_v30  ;;  %v8176_v45 = vpop.f32.mrf.mxu0  ;;  %v8446_v55 = vpop.f32.mrf.mxu2 }
 0x6d7   : > { %v15099_v7 = vadd.f32 %v8446_v55, %v8211_v41  ;;  %v8790_v55 = vld [vmem:[#allocation2 + $0x108] sm:$0xff] }
 0x6d8   : > { %v7894_v46 = vpop.f32.mrf.mxu3 }
 0x6d9   : > { %v7934_v35 = vadd.f32 %v7894_v46, %v7655_v26  ;;  %11189 = vmatmul.msk.f32.gmra.mxu0 %vm1628_vm6, %v14750_v15 }
 0x6db   : > { %v7621_v38 = vpop.f32.mrf.mxu1  ;;  %v8213_v51 = vadd.f32 %v8173_v2, %v7934_v35  ;;  %11222 = vmatmul.msk.f32.gmra.mxu2 %vm1628_vm6, %v9345_v11  ;;  %v15114_v35 = vld [vmem:[#allocation2 + $0xfc] sm:$0xff] }
 0x6dd   : > { %11154 = vmatmul.msk.f32.gmra.mxu3 %vm1628_vm6, %v8789_v9  ;;  %v7657_v9 = vadd.f32 %v7621_v38, %v15981_v33  ;;  %v9347_v38 = vld [vmem:[#allocation2 + $0xfa] sm:$0xff] }
 0x6de   : > { %11120 = vmatmul.msk.f32.gmra.mxu1 %vm1628_vm6, %v15103_v34  ;;  %v8179_v49 = vpop.f32.mrf.mxu0  ;;  %v8449_v2 = vpop.f32.mrf.mxu2 }
 0x6df   : > { %v15110_v46 = vadd.f32 %v8449_v2, %v8212_v57  ;;  %v8791_v2 = vld [vmem:[#allocation2 + $0x110] sm:$0xff] }
 0x6e0   : > { %v7897_v41 = vpop.f32.mrf.mxu3 }
 0x6e1   : > { %v7935_v6 = vadd.f32 %v7897_v41, %v7656_v54  ;;  %11190 = vmatmul.msk.f32.gmra.mxu0 %vm1628_vm6, %v14761_v17 }
 0x6e3   : > { %v7624_v26 = vpop.f32.mrf.mxu1  ;;  %v8214_v15 = vadd.f32 %v8176_v45, %v7935_v6  ;;  %11223 = vmatmul.msk.f32.gmra.mxu2 %vm1628_vm6, %v9346_v58  ;;  %v15125_v6 = vld [vmem:[#allocation2 + $0x10c] sm:$0xff] }
 0x6e5   : > { %11155 = vmatmul.msk.f32.gmra.mxu3 %vm1628_vm6, %v8790_v55  ;;  %v7658_v55 = vadd.f32 %v7624_v26, %v14779_v25  ;;  %v9348_v25 = vld [vmem:[#allocation2 + $0x10a] sm:$0xff] }
 0x6e6   : > { %11121 = vmatmul.msk.f32.gmra.mxu1 %vm1628_vm6, %v15114_v35  ;;  %v8182_v31 = vpop.f32.mrf.mxu0  ;;  %v8452_v45 = vpop.f32.mrf.mxu2 }
 0x6e7   : > { %v15121_v41 = vadd.f32 %v8452_v45, %v8213_v51  ;;  %v8792_v45 = vld [vmem:[#allocation2 + $0x120] sm:$0xff] }
 0x6e8   : > { %v7900_v11 = vpop.f32.mrf.mxu3 }
 0x6e9   : > { %v7936_v57 = vadd.f32 %v7900_v11, %v7657_v9  ;;  %11191 = vmatmul.msk.f32.gmra.mxu0 %vm1628_vm6, %v14772_v52 }
 0x6eb   : > { %v8647_v54 = vpop.f32.mrf.mxu1  ;;  %v8215_v17 = vadd.f32 %v8179_v49, %v7936_v57  ;;  %11224 = vmatmul.msk.f32.gmra.mxu2 %vm1628_vm6, %v9347_v38  ;;  %v15136_v57 = vld [vmem:[#allocation2 + $0x114] sm:$0xff] }
 0x6ec   : > { %v8743_v26 = vadd.f32 %v8647_v54, %v14790_v20  ;;  %v9349_v20 = vld [vmem:[#allocation2 + $0x112] sm:$0xff] }
 0x6ed   : > { %11156 = vmatmul.msk.f32.gmra.mxu3 %vm1628_vm6, %v8791_v2 }
 0x6ee   : > { %11122 = vmatmul.msk.f32.gmra.mxu1 %vm1628_vm6, %v15125_v6  ;;  %v9206_v33 = vpop.f32.mrf.mxu0  ;;  %v8455_v49 = vpop.f32.mrf.mxu2 }
 0x6ef   : > { %v15132_v11 = vadd.f32 %v8455_v49, %v8214_v15  ;;  %v8793_v49 = vld [vmem:[#allocation2 + $0x128] sm:$0xff] }
 0x6f0   : > { %v7903_v58 = vpop.f32.mrf.mxu3 }
 0x6f1   : > { %v7937_v51 = vadd.f32 %v7903_v58, %v7658_v55  ;;  %11192 = vmatmul.msk.f32.gmra.mxu0 %vm1628_vm6, %v14783_v19 }
 0x6f3   : > { %v8650_v9 = vpop.f32.mrf.mxu1  ;;  %v8216_v52 = vadd.f32 %v8182_v31, %v7937_v51  ;;  %11225 = vmatmul.msk.f32.gmra.mxu2 %vm1628_vm6, %v9348_v25  ;;  %v15147_v51 = vld [vmem:[#allocation2 + $0x124] sm:$0xff] }
 0x6f4   : > { %v8744_v54 = vadd.f32 %v8650_v9, %v14801_v27  ;;  %v9350_v27 = vld [vmem:[#allocation2 + $0x122] sm:$0xff] }
 0x6f5   : > { %11157 = vmatmul.msk.f32.gmra.mxu3 %vm1628_vm6, %v8792_v45 }
 0x6f6   : > { %11123 = vmatmul.msk.f32.gmra.mxu1 %vm1628_vm6, %v15136_v57  ;;  %v9209_v38 = vpop.f32.mrf.mxu0  ;;  %v8458_v31 = vpop.f32.mrf.mxu2 }
 0x6f7   : > { %v15143_v58 = vadd.f32 %v8458_v31, %v8215_v17  ;;  %v8794_v31 = vld [vmem:[#allocation2 + $0x138] sm:$0xff] }
 0x6f8   : > { %v8927_v2 = vpop.f32.mrf.mxu3 }
 0x6f9   : > { %v9023_v15 = vadd.f32 %v8927_v2, %v8743_v26  ;;  %11193 = vmatmul.msk.f32.gmra.mxu0 %vm1628_vm6, %v14794_v32 }
 0x6fb   : > { %v8653_v55 = vpop.f32.mrf.mxu1  ;;  %v9302_v19 = vadd.f32 %v9206_v33, %v9023_v15  ;;  %11226 = vmatmul.msk.f32.gmra.mxu2 %vm1628_vm6, %v9349_v20  ;;  %v15158_v15 = vld [vmem:[#allocation2 + $0x12c] sm:$0xff] }
 0x6fc   : > { %v8745_v9 = vadd.f32 %v8653_v55, %v14812_v37  ;;  %v9351_v37 = vld [vmem:[#allocation2 + $0x12a] sm:$0xff] }
 0x6fd   : > { %11158 = vmatmul.msk.f32.gmra.mxu3 %vm1628_vm6, %v8793_v49  ;;  %v15983_v55 = vld [vmem:[#allocation52_spill] sm:$0xff] }
 0x6fe   : > { %11124 = vmatmul.msk.f32.gmra.mxu1 %vm1628_vm6, %v15147_v51  ;;  %v9212_v25 = vpop.f32.mrf.mxu0  ;;  %v8461_v33 = vpop.f32.mrf.mxu2 }
 0x6ff   : > { %v15154_v2 = vadd.f32 %v8461_v33, %v8216_v52  ;;  %v8795_v33 = vld [vmem:[#allocation2 + $0x140] sm:$0xff] }
 0x700   : > { %v8930_v45 = vpop.f32.mrf.mxu3 }
 0x701   : > { %v9024_v17 = vadd.f32 %v8930_v45, %v8744_v54  ;;  %11194 = vmatmul.msk.f32.gmra.mxu0 %vm1628_vm6, %v14805_v50 }
 0x703   : > { %v8656_v26 = vpop.f32.mrf.mxu1  ;;  %v9303_v32 = vadd.f32 %v9209_v38, %v9024_v17  ;;  %11227 = vmatmul.msk.f32.gmra.mxu2 %vm1628_vm6, %v9350_v27  ;;  %v15169_v17 = vld [vmem:[#allocation2 + $0x13c] sm:$0xff] }
 0x704   : > { %15982 = vst [vmem:[#allocation18_spill] sm:$0xff] %v15169_v17 }
 0x705   : > { %11159 = vmatmul.msk.f32.gmra.mxu3 %vm1628_vm6, %v8794_v31  ;;  %v8746_v31 = vadd.f32 %v8656_v26, %v15983_v55  ;;  %v9352_v26 = vld [vmem:[#allocation2 + $0x13a] sm:$0xff] }
 0x706   : > { %11125 = vmatmul.msk.f32.gmra.mxu1 %vm1628_vm6, %v15158_v15  ;;  %v9485_v20 = vpop.f32.mrf.mxu2  ;;  %v9215_v38 = vpop.f32.mrf.mxu0 }
 0x707   : > { %v15165_v45 = vadd.f32 %v9485_v20, %v9302_v19  ;;  %v15180_v20 = vld [vmem:[#allocation2 + $0x144] sm:$0xff] }
 0x708   : > { %v8933_v49 = vpop.f32.mrf.mxu3 }
 0x709   : > { %v9025_v52 = vadd.f32 %v8933_v49, %v8745_v9  ;;  %11195 = vmatmul.msk.f32.gmra.mxu0 %vm1628_vm6, %v14816_v1 }
 0x70b   : > { %v8659_v54 = vpop.f32.mrf.mxu1  ;;  %v9304_v50 = vadd.f32 %v9212_v25, %v9025_v52  ;;  %11228 = vmatmul.msk.f32.gmra.mxu2 %vm1628_vm6, %v9351_v37 }
 0x70d   : > { %11160 = vmatmul.msk.f32.gmra.mxu3 %vm1628_vm6, %v8795_v33  ;;  %v8747_v33 = vadd.f32 %v8659_v54, %v14834_v18  ;;  %v15985_v54 = vld [vmem:[#allocation6_spill] sm:$0xff] }
 0x70e   : > { %11126 = vmatmul.msk.f32.gmra.mxu1 %vm1628_vm6, %v15169_v17  ;;  %v9488_v9 = vpop.f32.mrf.mxu2  ;;  %v9218_v52 = vpop.f32.mrf.mxu0  ;;  %v8796_v17 = vld [vmem:[#allocation2 + $0x150] sm:$0xff] }
 0x70f   : > { %v15176_v49 = vadd.f32 %v9488_v9, %v9303_v32 }
 0x710   : > { %v8936_v27 = vpop.f32.mrf.mxu3 }
 0x711   : > { %v9026_v19 = vadd.f32 %v8936_v27, %v8746_v31  ;;  %11196 = vmatmul.msk.f32.gmra.mxu0 %vm1628_vm6, %v14827_v63  ;;  %v15191_v27 = vld [vmem:[#allocation2 + $0x154] sm:$0xff] }
 0x712   : > { %15984 = vst [vmem:[#allocation12_spill] sm:$0xff] %v15191_v27 }
 0x713   : > { %v8662_v25 = vpop.f32.mrf.mxu1  ;;  %v9305_v1 = vadd.f32 %v9215_v38, %v9026_v19  ;;  %11229 = vmatmul.msk.f32.gmra.mxu2 %vm1628_vm6, %v9352_v26  ;;  %v8797_v19 = vld [vmem:[#allocation2 + $0x158] sm:$0xff] }
 0x714   : > { %v8748_v9 = vadd.f32 %v8662_v25, %v15985_v54  ;;  %v15988_v25 = vld [vmem:[#allocation16_spill] sm:$0xff] }
 0x715   : > { %11161 = vmatmul.msk.f32.gmra.mxu3 %vm1628_vm6, %v8796_v17  ;;  %v9353_v17 = vld [vmem:[#allocation2 + $0x142] sm:$0xff] }
 0x716   : > { %11127 = vmatmul.msk.f32.gmra.mxu1 %vm1628_vm6, %v15180_v20  ;;  %v9491_v38 = vpop.f32.mrf.mxu2  ;;  %v9221_v18 = vpop.f32.mrf.mxu0 }
 0x717   : > { %v15187_v31 = vadd.f32 %v9491_v38, %v9304_v50  ;;  %v15202_v38 = vld [vmem:[#allocation2 + $0x15c] sm:$0xff] }
 0x718   : > { %v8939_v32 = vpop.f32.mrf.mxu3  ;;  %15987 = vst [vmem:[#allocation23_spill] sm:$0xff] %v15202_v38 }
 0x719   : > { %v9027_v37 = vadd.f32 %v8939_v32, %v8747_v33  ;;  %11197 = vmatmul.msk.f32.gmra.mxu0 %vm1628_vm6, %v14838_v28 }
 0x71b   : > { %v8665_v55 = vpop.f32.mrf.mxu1  ;;  %v9306_v63 = vadd.f32 %v9218_v52, %v9027_v37  ;;  %11230 = vmatmul.msk.f32.gmra.mxu2 %vm1628_vm6, %v9353_v17  ;;  %v15986_v37 = vld [vmem:[#allocation7_spill] sm:$0xff] }
 0x71c   : > { %v8749_v17 = vadd.f32 %v8665_v55, %v15988_v25  ;;  %v9355_v55 = vld [vmem:[#allocation2 + $0x15a] sm:$0xff] }
 0x71d   : > { %11162 = vmatmul.msk.f32.gmra.mxu3 %vm1628_vm6, %v8797_v19  ;;  %v9354_v19 = vld [vmem:[#allocation2 + $0x152] sm:$0xff] }
 0x71e   : > { %11128 = vmatmul.msk.f32.gmra.mxu1 %vm1628_vm6, %v15191_v27  ;;  %v9494_v52 = vpop.f32.mrf.mxu2  ;;  %v8798_v27 = vld [vmem:[#allocation2 + $0x168] sm:$0xff]  ;;  %v9224_v54 = vpop.f32.mrf.mxu0 }
 0x71f   : > { %v15198_v32 = vadd.f32 %v9494_v52, %v9305_v1 }
 0x720   : > { %v8942_v50 = vpop.f32.mrf.mxu3 }
 0x721   : > { %v9028_v26 = vadd.f32 %v8942_v50, %v8748_v9  ;;  %11198 = vmatmul.msk.f32.gmra.mxu0 %vm1628_vm6, %v15986_v37  ;;  %v15213_v37 = vld [vmem:[#allocation2 + $0x16c] sm:$0xff] }
 0x722   : > { %15989 = vst [vmem:[#allocation56_spill] sm:$0xff] %v15213_v37 }
 0x723   : > { %v8668_v33 = vpop.f32.mrf.mxu1  ;;  %v9307_v28 = vadd.f32 %v9221_v18, %v9028_v26  ;;  %11231 = vmatmul.msk.f32.gmra.mxu2 %vm1628_vm6, %v9354_v19 }
 0x725   : > { %11163 = vmatmul.msk.f32.gmra.mxu3 %vm1628_vm6, %v8798_v27  ;;  %v15990_v27 = vld [vmem:[#allocation69_spill] sm:$0xff] }
 0x726   : > { %11129 = vmatmul.msk.f32.gmra.mxu1 %vm1628_vm6, %v15202_v38  ;;  %v9497_v18 = vpop.f32.mrf.mxu2  ;;  %v8799_v38 = vld [vmem:[#allocation2 + $0x170] sm:$0xff]  ;;  %v8750_v19 = vadd.f32 %v8668_v33, %v15990_v27 }
 0x727   : > { %v15209_v26 = vadd.f32 %v9497_v18, %v9306_v63  ;;  %v15224_v18 = vld [vmem:[#allocation2 + $0x174] sm:$0xff]  ;;  %v9356_v33 = vld [vmem:[#allocation2 + $0x16a] sm:$0xff] }
 0x728   : > { %v8945_v1 = vpop.f32.mrf.mxu3 }
 0x729   : > { %v9029_v9 = vadd.f32 %v8945_v1, %v8749_v17  ;;  %11199 = vmatmul.msk.f32.gmra.mxu0 %vm1628_vm6, %v14860_v29 }
 0x72b   : > { %v8671_v50 = vpop.f32.mrf.mxu1  ;;  %v9308_v52 = vadd.f32 %v9224_v54, %v9029_v9  ;;  %11232 = vmatmul.msk.f32.gmra.mxu2 %vm1628_vm6, %v9355_v55  ;;  %v9227_v54 = vpop.f32.mrf.mxu0 }
 0x72d   : > { %11164 = vmatmul.msk.f32.gmra.mxu3 %vm1628_vm6, %v8799_v38  ;;  %v8751_v38 = vadd.f32 %v8671_v50, %v14878_v5  ;;  %v15993_v5 = vld [vmem:[#allocation15_spill] sm:$0xff] }
 0x72e   : > { %11130 = vmatmul.msk.f32.gmra.mxu1 %vm1628_vm6, %v15213_v37  ;;  %v9500_v17 = vpop.f32.mrf.mxu2  ;;  %v8800_v37 = vld [vmem:[#allocation2 + $0x180] sm:$0xff] }
 0x72f   : > { %v15220_v9 = vadd.f32 %v9500_v17, %v9307_v28  ;;  %v8801_v17 = vld [vmem:[#allocation2 + $0x188] sm:$0xff] }
 0x730   : > { %v8948_v25 = vpop.f32.mrf.mxu3 }
 0x731   : > { %v9030_v63 = vadd.f32 %v8948_v25, %v8750_v19  ;;  %11200 = vmatmul.msk.f32.gmra.mxu0 %vm1628_vm6, %v14871_v14  ;;  %v15991_v14 = vld [vmem:[#allocation17_spill] sm:$0xff] }
 0x733   : > { %v8674_v1 = vpop.f32.mrf.mxu1  ;;  %v9309_v29 = vadd.f32 %v9227_v54, %v9030_v63  ;;  %11233 = vmatmul.msk.f32.gmra.mxu2 %vm1628_vm6, %v9356_v33  ;;  %v15237_v63 = vld [vmem:[#allocation2 + $0x184] sm:$0xff] }
 0x734   : > { %15992 = vst [vmem:[#allocation24_spill] sm:$0xff] %v15237_v63  ;;  %v8752_v50 = vadd.f32 %v8674_v1, %v15993_v5  ;;  %v15995_v1 = vld [vmem:[#allocation11_spill] sm:$0xff] }
 0x735   : > { %11165 = vmatmul.msk.f32.gmra.mxu3 %vm1628_vm6, %v8800_v37  ;;  %v9357_v37 = vld [vmem:[#allocation2 + $0x172] sm:$0xff] }
 0x736   : > { %11131 = vmatmul.msk.f32.gmra.mxu1 %vm1628_vm6, %v15224_v18  ;;  %v9503_v27 = vpop.f32.mrf.mxu2 }
 0x737   : > { %v15233_v25 = vadd.f32 %v9503_v27, %v9308_v52  ;;  %v15994_v27 = vld [vmem:[#allocation10_spill] sm:$0xff] }
 0x738   : > { %v8951_v55 = vpop.f32.mrf.mxu3 }
 0x739   : > { %v15231_v28 = vadd.f32 %v8951_v55, %v8751_v38  ;;  %11201 = vmatmul.msk.f32.gmra.mxu0 %vm1628_vm6, %v15991_v14  ;;  %v15250_v14 = vld [vmem:[#allocation2 + $0x18c] sm:$0xff] }
 0x73b   : > { %v8677_v19 = vpop.f32.mrf.mxu1  ;;  %11234 = vmatmul.msk.f32.gmra.mxu2 %vm1628_vm6, %v9357_v37 }
 0x73c   : > { %v8753_v37 = vadd.f32 %v8677_v19, %v15995_v1 }
 0x73d   : > { %11166 = vmatmul.msk.f32.gmra.mxu3 %vm1628_vm6, %v8801_v17  ;;  %v9358_v17 = vld [vmem:[#allocation2 + $0x182] sm:$0xff] }
 0x73e   : > { %11132 = vmatmul.msk.f32.gmra.mxu1 %vm1628_vm6, %v15237_v63  ;;  %v9506_v52 = vpop.f32.mrf.mxu2  ;;  %v8802_v63 = vld [vmem:[#allocation2 + $0x198] sm:$0xff] }
 0x73f   : > { %v15246_v55 = vadd.f32 %v9506_v52, %v9309_v29  ;;  %v8803_v52 = vld [vmem:[#allocation2 + $0x1a0] sm:$0xff] }
 0x740   : > { %v8954_v54 = vpop.f32.mrf.mxu3 }
 0x741   : > { %v15244_v33 = vadd.f32 %v8954_v54, %v8752_v50  ;;  %11202 = vmatmul.msk.f32.gmra.mxu0 %vm1628_vm6, %v15994_v27  ;;  %v15261_v54 = vld [vmem:[#allocation2 + $0x19c] sm:$0xff] }
 0x742   : > { %15996 = vst [vmem:[#allocation13_spill] sm:$0xff] %v15261_v54  ;;  %v15997_v27 = vld [vmem:[#allocation74_spill] sm:$0xff] }
 0x743   : > { %v8680_v38 = vpop.f32.mrf.mxu1  ;;  %11235 = vmatmul.msk.f32.gmra.mxu2 %vm1628_vm6, %v9358_v17 }
 0x744   : > { %v8754_v19 = vadd.f32 %v8680_v38, %v15997_v27 }
 0x745   : > { %11167 = vmatmul.msk.f32.gmra.mxu3 %vm1628_vm6, %v8802_v63  ;;  %v9359_v63 = vld [vmem:[#allocation2 + $0x18a] sm:$0xff] }
 0x746   : > { %11133 = vmatmul.msk.f32.gmra.mxu1 %vm1628_vm6, %v15250_v14 }
 0x748   : > { %v8957_v5 = vpop.f32.mrf.mxu3 }
 0x749   : > { %v15257_v50 = vadd.f32 %v8957_v5, %v8753_v37  ;;  %11203 = vmatmul.msk.f32.gmra.mxu0 %vm1628_vm6, %v14923_v62  ;;  %v15272_v62 = vld [vmem:[#allocation2 + $0x1a4] sm:$0xff]  ;;  %v8804_v5 = vld [vmem:[#allocation2 + $0x1b0] sm:$0xff] }
 0x74b   : > { %v8683_v29 = vpop.f32.mrf.mxu1  ;;  %11236 = vmatmul.msk.f32.gmra.mxu2 %vm1628_vm6, %v9359_v63  ;;  %v15999_v63 = vld [vmem:[#allocation54_spill] sm:$0xff] }
 0x74c   : > { %v8755_v38 = vadd.f32 %v8683_v29, %v15999_v63 }
 0x74d   : > { %11168 = vmatmul.msk.f32.gmra.mxu3 %vm1628_vm6, %v8803_v52  ;;  %v9360_v52 = vld [vmem:[#allocation2 + $0x19a] sm:$0xff] }
 0x74e   : > { %11134 = vmatmul.msk.f32.gmra.mxu1 %vm1628_vm6, %v15261_v54  ;;  %v8805_v54 = vld [vmem:[#allocation2 + $0x1b8] sm:$0xff] }
 0x750   : > { %v8960_v17 = vpop.f32.mrf.mxu3 }
 0x751   : > { %v15268_v1 = vadd.f32 %v8960_v17, %v8754_v19  ;;  %11204 = vmatmul.msk.f32.gmra.mxu0 %vm1628_vm6, %v14933_v21  ;;  %v15283_v21 = vld [vmem:[#allocation2 + $0x1b4] sm:$0xff] }
 0x753   : > { %15998 = vst [vmem:[#allocation72_spill] sm:$0xff] %v15268_v1  ;;  %v8686_v37 = vpop.f32.mrf.mxu1  ;;  %11237 = vmatmul.msk.f32.gmra.mxu2 %vm1628_vm6, %v9360_v52  ;;  %v16001_v1 = vld [vmem:[#allocation30_spill] sm:$0xff] }
 0x754   : > { %v8756_v29 = vadd.f32 %v8686_v37, %v14953_v16 }
 0x755   : > { %11169 = vmatmul.msk.f32.gmra.mxu3 %vm1628_vm6, %v8804_v5  ;;  %v9361_v5 = vld [vmem:[#allocation2 + $0x1a2] sm:$0xff] }
 0x756   : > { %11135 = vmatmul.msk.f32.gmra.mxu1 %vm1628_vm6, %v15272_v62 }
 0x758   : > { %v8963_v27 = vpop.f32.mrf.mxu3 }
 0x759   : > { %v15279_v19 = vadd.f32 %v8963_v27, %v8755_v38  ;;  %11205 = vmatmul.msk.f32.gmra.mxu0 %vm1628_vm6, %v16001_v1  ;;  %v9085_v27 = vld [vmem:[#allocation2 + $0x1c9] sm:$0xff]  ;;  %v15293_v1 = vld [vmem:[#allocation2 + $0x1bc] sm:$0xff] }
 0x75a   : > { %16003 = vst [vmem:[#allocation73_spill] sm:$0xff] %v15293_v1 }
 0x75b   : > { %16000 = vst [vmem:[#allocation59_spill] sm:$0xff] %v15279_v19  ;;  %v8689_v17 = vpop.f32.mrf.mxu1  ;;  %11238 = vmatmul.msk.f32.gmra.mxu2 %vm1628_vm6, %v9361_v5  ;;  %v8806_v19 = vld [vmem:[#allocation2 + $0x1c8] sm:$0xff] }
 0x75c   : > { %v8757_v16 = vadd.f32 %v8689_v17, %v14961_v40 }
 0x75d   : > { %11170 = vmatmul.msk.f32.gmra.mxu3 %vm1628_vm6, %v8805_v54  ;;  %v9362_v54 = vld [vmem:[#allocation2 + $0x1b2] sm:$0xff] }
 0x75e   : > { %11136 = vmatmul.msk.f32.gmra.mxu1 %vm1628_vm6, %v15283_v21 }
 0x760   : > { %v8966_v52 = vpop.f32.mrf.mxu3 }
 0x761   : > { %v15290_v63 = vadd.f32 %v8966_v52, %v8756_v29  ;;  %11206 = vmatmul.msk.f32.gmra.mxu0 %vm1628_vm6, %v9085_v27  ;;  %v9086_v52 = vld [vmem:[#allocation2 + $0x1d1] sm:$0xff] }
 0x762   : > { %v8807_v27 = vld [vmem:[#allocation2 + $0x1d0] sm:$0xff] }
 0x763   : > { %16002 = vst [vmem:[#allocation25_spill] sm:$0xff] %v15290_v63  ;;  %v8692_v38 = vpop.f32.mrf.mxu1  ;;  %11239 = vmatmul.msk.f32.gmra.mxu2 %vm1628_vm6, %v9362_v54  ;;  %v9613_v63 = vld [vmem:[#allocation2 + $0x63] sm:$0xff] }
 0x765   : > { %11171 = vmatmul.msk.f32.gmra.mxu3 %vm1628_vm6, %v8806_v19  ;;  %v8758_v19 = vadd.f32 %v8692_v38, %v14972_v47  ;;  %v9615_v47 = vld [vmem:[#allocation2 + $0x7b] sm:$0xff]  ;;  %v9365_v38 = vld [vmem:[#allocation2 + $0x1d2] sm:$0xff] }
 0x766   : > { %11137 = vmatmul.msk.f32.gmra.mxu1 %vm1628_vm6, %v15293_v1  ;;  %v9363_v1 = vld [vmem:[#allocation2 + $0x1ba] sm:$0xff] }
 0x768   : > { %v8969_v37 = vpop.f32.mrf.mxu3 }
 0x769   : > { %v15300_v5 = vadd.f32 %v8969_v37, %v8757_v16  ;;  %11207 = vmatmul.msk.f32.gmra.mxu0 %vm1628_vm6, %v9086_v52  ;;  %v9614_v16 = vld [vmem:[#allocation2 + $0x6b] sm:$0xff] }
 0x76a   : > { %v9364_v37 = vld [vmem:[#allocation2 + $0x1ca] sm:$0xff] }
 0x76b   : > { %v8695_v29 = vpop.f32.mrf.mxu1  ;;  %11240 = vmatmul.msk.f32.gmra.mxu2 %vm1628_vm6, %v9363_v1 }
 0x76d   : > { %11172 = vmatmul.msk.f32.gmra.mxu3 %vm1628_vm6, %v8807_v27 }
 0x76e   : > { %11246 = vmatmul.msk.f32.vlgmr.msra.gmra.mxu1 %vm1628_vm6, %v9613_v63  ;;  %v8759_v63 = vadd.f32 %v8695_v29, %v14983_v8  ;;  %v9616_v8 = vld [vmem:[#allocation2 + $0x83] sm:$0xff] }
 0x770   : > { %v8972_v54 = vpop.f32.mrf.mxu3 }
 0x771   : > { %v15307_v40 = vadd.f32 %v8972_v54, %v8758_v19 }
 0x773   : > { %v8698_v17 = vpop.f32.mrf.mxu1  ;;  %11241 = vmatmul.msk.f32.gmra.mxu2 %vm1628_vm6, %v9364_v37 }
 0x775   : > { %11281 = vmatmul.msk.f32.vlgmr.msra.gmra.mxu3 %vm1628_vm6, %v14965_v44  ;;  %v8760_v44 = vadd.f32 %v8698_v17, %v14994_v12 }
 0x776   : > { %11247 = vmatmul.msk.f32.gmra.mxu1 %vm1628_vm6, %v9614_v16 }
 0x778   : > { %v8975_v52 = vpop.f32.mrf.mxu3 }
 0x779   : > { %v15314_v27 = vadd.f32 %v8975_v52, %v8759_v63  ;;  %v9617_v52 = vld [vmem:[#allocation2 + $0x93] sm:$0xff] }
 0x77b   : > { %v8701_v1 = vpop.f32.mrf.mxu1  ;;  %11242 = vmatmul.msk.f32.gmra.mxu2 %vm1628_vm6, %v9365_v38 }
 0x77c   : > { %v8761_v29 = vadd.f32 %v8701_v1, %v15005_v0 }
 0x77d   : > { %11282 = vmatmul.msk.f32.gmra.mxu3 %vm1628_vm6, %v14976_v53 }
 0x77e   : > { %11248 = vmatmul.msk.f32.gmra.mxu1 %vm1628_vm6, %v9615_v47 }
 0x780   : > { %v8978_v19 = vpop.f32.mrf.mxu3 }
 0x781   : > { %v15321_v54 = vadd.f32 %v8978_v19, %v8760_v44  ;;  %v9618_v44 = vld [vmem:[#allocation2 + $0x9b] sm:$0xff] }
 0x783   : > { %v8704_v16 = vpop.f32.mrf.mxu1 }
 0x784   : > { %v8762_v12 = vadd.f32 %v8704_v16, %v15016_v23 }
 0x785   : > { %11283 = vmatmul.msk.f32.gmra.mxu3 %vm1628_vm6, %v14987_v42 }
 0x786   : > { %11249 = vmatmul.msk.f32.gmra.mxu1 %vm1628_vm6, %v9616_v8  ;;  %v9619_v8 = vld [vmem:[#allocation2 + $0xab] sm:$0xff] }
 0x788   : > { %v8981_v37 = vpop.f32.mrf.mxu3 }
 0x789   : > { %v15327_v63 = vadd.f32 %v8981_v37, %v8761_v29  ;;  %v9620_v37 = vld [vmem:[#allocation2 + $0xb3] sm:$0xff] }
 0x78b   : > { %v8707_v53 = vpop.f32.mrf.mxu1 }
 0x78c   : > { %v8763_v42 = vadd.f32 %v8707_v53, %v15027_v43 }
 0x78d   : > { %11284 = vmatmul.msk.f32.gmra.mxu3 %vm1628_vm6, %v14998_v39 }
 0x78e   : > { %11250 = vmatmul.msk.f32.gmra.mxu1 %vm1628_vm6, %v9617_v52 }
 0x790   : > { %v8984_v17 = vpop.f32.mrf.mxu3 }
 0x791   : > { %v15333_v47 = vadd.f32 %v8984_v17, %v8762_v12  ;;  %v9621_v12 = vld [vmem:[#allocation2 + $0xc3] sm:$0xff] }
 0x793   : > { %v8710_v38 = vpop.f32.mrf.mxu1 }
 0x794   : > { %v8764_v39 = vadd.f32 %v8710_v38, %v15038_v24 }
 0x795   : > { %11285 = vmatmul.msk.f32.gmra.mxu3 %vm1628_vm6, %v15009_v10 }
 0x796   : > { %11251 = vmatmul.msk.f32.gmra.mxu1 %vm1628_vm6, %v9618_v44  ;;  %v9622_v44 = vld [vmem:[#allocation2 + $0xcb] sm:$0xff] }
 0x798   : > { %v8987_v0 = vpop.f32.mrf.mxu3 }
 0x799   : > { %v15339_v1 = vadd.f32 %v8987_v0, %v8763_v42 }
 0x79b   : > { %v8713_v19 = vpop.f32.mrf.mxu1 }
 0x79c   : > { %v8765_v10 = vadd.f32 %v8713_v19, %v15049_v48  ;;  %v9623_v19 = vld [vmem:[#allocation2 + $0xdb] sm:$0xff] }
 0x79d   : > { %11286 = vmatmul.msk.f32.gmra.mxu3 %vm1628_vm6, %v15020_v60 }
 0x79e   : > { %11252 = vmatmul.msk.f32.gmra.mxu1 %vm1628_vm6, %v9619_v8 }
 0x7a0   : > { %v8990_v23 = vpop.f32.mrf.mxu3 }
 0x7a1   : > { %v15345_v16 = vadd.f32 %v8990_v23, %v8764_v39  ;;  %v9624_v23 = vld [vmem:[#allocation2 + $0xe3] sm:$0xff] }
 0x7a3   : > { %v8716_v29 = vpop.f32.mrf.mxu1 }
 0x7a4   : > { %v8766_v60 = vadd.f32 %v8716_v29, %v15060_v22 }
 0x7a5   : > { %11287 = vmatmul.msk.f32.gmra.mxu3 %vm1628_vm6, %v15031_v4 }
 0x7a6   : > { %11253 = vmatmul.msk.f32.gmra.mxu1 %vm1628_vm6, %v9620_v37 }
 0x7a8   : > { %v8993_v43 = vpop.f32.mrf.mxu3 }
 0x7a9   : > { %v15351_v53 = vadd.f32 %v8993_v43, %v8765_v10  ;;  %v9625_v10 = vld [vmem:[#allocation2 + $0xf3] sm:$0xff] }
 0x7ab   : > { %v8719_v52 = vpop.f32.mrf.mxu1 }
 0x7ac   : > { %v8767_v4 = vadd.f32 %v8719_v52, %v15071_v36 }
 0x7ad   : > { %11288 = vmatmul.msk.f32.gmra.mxu3 %vm1628_vm6, %v15042_v13 }
 0x7ae   : > { %11254 = vmatmul.msk.f32.gmra.mxu1 %vm1628_vm6, %v9621_v12  ;;  %v9626_v12 = vld [vmem:[#allocation2 + $0xfb] sm:$0xff] }
 0x7b0   : > { %v8996_v24 = vpop.f32.mrf.mxu3 }
 0x7b1   : > { %v15357_v17 = vadd.f32 %v8996_v24, %v8766_v60 }
 0x7b3   : > { %v8722_v38 = vpop.f32.mrf.mxu1 }
 0x7b4   : > { %v8768_v13 = vadd.f32 %v8722_v38, %v15082_v59  ;;  %v9627_v38 = vld [vmem:[#allocation2 + $0x10b] sm:$0xff] }
 0x7b5   : > { %11289 = vmatmul.msk.f32.gmra.mxu3 %vm1628_vm6, %v15053_v61 }
 0x7b6   : > { %11255 = vmatmul.msk.f32.gmra.mxu1 %vm1628_vm6, %v9622_v44 }
 0x7b8   : > { %v8999_v48 = vpop.f32.mrf.mxu3 }
 0x7b9   : > { %v15363_v42 = vadd.f32 %v8999_v48, %v8767_v4  ;;  %v9628_v48 = vld [vmem:[#allocation2 + $0x113] sm:$0xff] }
 0x7bb   : > { %v8725_v0 = vpop.f32.mrf.mxu1 }
 0x7bc   : > { %v8769_v61 = vadd.f32 %v8725_v0, %v15099_v7 }
 0x7bd   : > { %11290 = vmatmul.msk.f32.gmra.mxu3 %vm1628_vm6, %v15064_v56 }
 0x7be   : > { %11256 = vmatmul.msk.f32.gmra.mxu1 %vm1628_vm6, %v9623_v19  ;;  %v9629_v19 = vld [vmem:[#allocation2 + $0x123] sm:$0xff] }
 0x7c0   : > { %v9002_v22 = vpop.f32.mrf.mxu3 }
 0x7c1   : > { %v15369_v8 = vadd.f32 %v9002_v22, %v8768_v13 }
 0x7c3   : > { %v8728_v39 = vpop.f32.mrf.mxu1 }
 0x7c4   : > { %v8770_v56 = vadd.f32 %v8728_v39, %v15110_v46 }
 0x7c5   : > { %11291 = vmatmul.msk.f32.gmra.mxu3 %vm1628_vm6, %v15075_v3 }
 0x7c6   : > { %11257 = vmatmul.msk.f32.gmra.mxu1 %vm1628_vm6, %v9624_v23  ;;  %v15415_v23 = vld [vmem:[%s15665_s5] ss:$0 sm:$0xff] }
 0x7c8   : > { %v9005_v36 = vpop.f32.mrf.mxu3 }
 0x7c9   : > { %v15375_v29 = vadd.f32 %v9005_v36, %v8769_v61 }
 0x7cb   : > { %v8731_v37 = vpop.f32.mrf.mxu1 }
 0x7cc   : > { %v8771_v3 = vadd.f32 %v8731_v37, %v15121_v41  ;;  %v9631_v37 = vld [vmem:[#allocation2 + $0x13b] sm:$0xff] }
 0x7cd   : > { %11292 = vmatmul.msk.f32.gmra.mxu3 %vm1628_vm6, %v15086_v30 }
 0x7ce   : > { %11258 = vmatmul.msk.f32.gmra.mxu1 %vm1628_vm6, %v9625_v10 }
 0x7d0   : > { %v9008_v59 = vpop.f32.mrf.mxu3 }
 0x7d1   : > { %v15381_v43 = vadd.f32 %v9008_v59, %v8770_v56 }
 0x7d3   : > { %v8734_v52 = vpop.f32.mrf.mxu1 }
 0x7d4   : > { %v8772_v30 = vadd.f32 %v8734_v52, %v15132_v11  ;;  %v15428_v52 = vpop.f32.mrf.mxu0 }
 0x7d5   : > { %11293 = vmatmul.msk.f32.gmra.mxu3 %vm1628_vm6, %v15103_v34 }
 0x7d6   : > { %11259 = vmatmul.msk.f32.gmra.mxu1 %vm1628_vm6, %v9626_v12 }
 0x7d8   : > { %v9011_v7 = vpop.f32.mrf.mxu3 }
 0x7d9   : > { %v15387_v60 = vadd.f32 %v9011_v7, %v8771_v3  ;;  %v15431_v3 = vpop.f32.mrf.mxu2  ;;  %v9632_v7 = vld [vmem:[#allocation2 + $0x143] sm:$0xff] }
 0x7db   : > { %v8737_v24 = vpop.f32.mrf.mxu1 }
 0x7dc   : > { %v8773_v34 = vadd.f32 %v8737_v24, %v15143_v58 }
 0x7dd   : > { %11294 = vmatmul.msk.f32.gmra.mxu3 %vm1628_vm6, %v15114_v35 }
 0x7de   : > { %11260 = vmatmul.msk.f32.gmra.mxu1 %vm1628_vm6, %v9627_v38 }
 0x7e0   : > { %v9014_v46 = vpop.f32.mrf.mxu3 }
 0x7e1   : > { %v15393_v44 = vadd.f32 %v9014_v46, %v8772_v30 }
 0x7e3   : > { %v8740_v4 = vpop.f32.mrf.mxu1 }
 0x7e4   : > { %v8774_v11 = vadd.f32 %v8740_v4, %v15154_v2 }
 0x7e5   : > { %11295 = vmatmul.msk.f32.gmra.mxu3 %vm1628_vm6, %v15125_v6  ;;  %v9630_v6 = vld [vmem:[#allocation2 + $0x12b] sm:$0xff] }
 0x7e6   : > { %11261 = vmatmul.msk.f32.gmra.mxu1 %vm1628_vm6, %v9628_v48  ;;  %v9633_v48 = vld [vmem:[#allocation2 + $0x153] sm:$0xff] }
 0x7e8   : > { %v9017_v41 = vpop.f32.mrf.mxu3 }
 0x7e9   : > { %v15399_v0 = vadd.f32 %v9017_v41, %v8773_v34  ;;  %v15440_v34 = vpop.f32.mrf.mxu0 }
 0x7eb   : > { %v9764_v35 = vpop.f32.mrf.mxu1 }
 0x7ec   : > { %v9860_v58 = vadd.f32 %v9764_v35, %v15165_v45  ;;  %v15445_v35 = vpop.f32.mrf.mxu2 }
 0x7ed   : > { %11296 = vmatmul.msk.f32.gmra.mxu3 %vm1628_vm6, %v15136_v57 }
 0x7ee   : > { %11262 = vmatmul.msk.f32.gmra.mxu1 %vm1628_vm6, %v9629_v19 }
 0x7f0   : > { %v9020_v13 = vpop.f32.mrf.mxu3 }
 0x7f1   : > { %v15405_v22 = vadd.f32 %v9020_v13, %v8774_v11 }
 0x7f3   : > { %v9767_v39 = vpop.f32.mrf.mxu1 }
 0x7f5   : > { %11297 = vmatmul.msk.f32.gmra.mxu3 %vm1628_vm6, %v15147_v51  ;;  %v9861_v51 = vadd.f32 %v9767_v39, %v15176_v49 }
 0x7f6   : > { %11263 = vmatmul.msk.f32.gmra.mxu1 %vm1628_vm6, %v9630_v6  ;;  %v9634_v6 = vld [vmem:[#allocation2 + $0x15b] sm:$0xff] }
 0x7f8   : > { %v10043_v57 = vpop.f32.mrf.mxu3 }
 0x7f9   : > { %v10139_v2 = vadd.f32 %v10043_v57, %v9860_v58  ;;  %v16005_v57 = vld [vmem:[#allocation12_spill] sm:$0xff] }
 0x7fb   : > { %v9770_v61 = vpop.f32.mrf.mxu1  ;;  %v10175_v36 = vadd.f32 %v15415_v23, %v10139_v2 }
 0x7fc   : > { %v9862_v49 = vadd.f32 %v9770_v61, %v15187_v31 }
 0x7fd   : > { %v10207_v10 = vmax.f32 %v10175_v36, 0.0  ;;  %11298 = vmatmul.msk.f32.gmra.mxu3 %vm1628_vm6, %v15158_v15  ;;  %v16004_v15 = vld [vmem:[#allocation18_spill] sm:$0xff] }
 0x7fe   : > { %11264 = vmatmul.msk.f32.gmra.mxu1 %vm1628_vm6, %v9631_v37 }
 0x7ff   : > { %10240 = vst.msk [vmem:[%s15424_s10] sm:$0xff] %vm10239_vm8, %v10207_v10 }
 0x800   : > { %v10046_v45 = vpop.f32.mrf.mxu3 }
 0x801   : > { %v10140_v56 = vadd.f32 %v10046_v45, %v9861_v51  ;;  %v9635_v51 = vld [vmem:[#allocation2 + $0x16b] sm:$0xff] }
 0x803   : > { %v9773_v59 = vpop.f32.mrf.mxu1  ;;  %v10176_v12 = vadd.f32 %v15415_v23, %v10140_v56  ;;  %v16006_v56 = vld [vmem:[#allocation23_spill] sm:$0xff] }
 0x804   : > { %v9863_v31 = vadd.f32 %v9773_v59, %v15198_v32  ;;  %v15459_v32 = vpop.f32.mrf.mxu2 }
 0x805   : > { %v10208_v24 = vmax.f32 %v10176_v12, 0.0  ;;  %11299 = vmatmul.msk.f32.gmra.mxu3 %vm1628_vm6, %v16004_v15 }
 0x806   : > { %11265 = vmatmul.msk.f32.gmra.mxu1 %vm1628_vm6, %v9632_v7 }
 0x807   : > { %10241 = vst.msk [vmem:[%s15424_s10 + $0x8] sm:$0xff] %vm10239_vm8, %v10208_v24 }
 0x808   : > { %v10049_v38 = vpop.f32.mrf.mxu3 }
 0x809   : > { %v10141_v30 = vadd.f32 %v10049_v38, %v9862_v49  ;;  %v9636_v38 = vld [vmem:[#allocation2 + $0x173] sm:$0xff] }
 0x80b   : > { %v9776_v46 = vpop.f32.mrf.mxu1  ;;  %v10177_v4 = vadd.f32 %v15415_v23, %v10141_v30 }
 0x80c   : > { %v9864_v2 = vadd.f32 %v9776_v46, %v15209_v26  ;;  %v15470_v24 = vpop.f32.mrf.mxu2  ;;  %v16007_v46 = vld [vmem:[#allocation56_spill] sm:$0xff] }
 0x80d   : > { %v10209_v41 = vmax.f32 %v10177_v4, 0.0  ;;  %11300 = vmatmul.msk.f32.gmra.mxu3 %vm1628_vm6, %v15180_v20  ;;  %v15454_v20 = vpop.f32.mrf.mxu0 }
 0x80e   : > { %11266 = vmatmul.msk.f32.gmra.mxu1 %vm1628_vm6, %v9633_v48 }
 0x80f   : > { %10242 = vst.msk [vmem:[%s15424_s10 + $0x10] sm:$0xff] %vm10239_vm8, %v10209_v41 }
 0x810   : > { %v10052_v19 = vpop.f32.mrf.mxu3 }
 0x811   : > { %v10142_v11 = vadd.f32 %v10052_v19, %v9863_v31 }
 0x813   : > { %v9779_v13 = vpop.f32.mrf.mxu1  ;;  %v10178_v39 = vadd.f32 %v15415_v23, %v10142_v11 }
 0x814   : > { %v9865_v59 = vadd.f32 %v9779_v13, %v15220_v9  ;;  %v15482_v11 = vpop.f32.mrf.mxu2  ;;  %v9637_v13 = vld [vmem:[#allocation2 + $0x183] sm:$0xff] }
 0x815   : > { %v10210_v58 = vmax.f32 %v10178_v39, 0.0  ;;  %11301 = vmatmul.msk.f32.gmra.mxu3 %vm1628_vm6, %v16005_v57  ;;  %v15468_v12 = vpop.f32.mrf.mxu0 }
 0x816   : > { %11267 = vmatmul.msk.f32.gmra.mxu1 %vm1628_vm6, %v9634_v6 }
 0x817   : > { %10243 = vst.msk [vmem:[%s15424_s10 + $0x18] sm:$0xff] %vm10239_vm8, %v10210_v58 }
 0x818   : > { %v10055_v61 = vpop.f32.mrf.mxu3 }
 0x819   : > { %v10143_v36 = vadd.f32 %v10055_v61, %v9864_v2  ;;  %v9310_v2 = vadd.f32 %v15428_v52, %v15231_v28 }
 0x81b   : > { %v9782_v37 = vpop.f32.mrf.mxu1  ;;  %v10179_v10 = vadd.f32 %v15415_v23, %v10143_v36  ;;  %v9638_v36 = vld [vmem:[#allocation2 + $0x18b] sm:$0xff] }
 0x81c   : > { %v9866_v9 = vadd.f32 %v9782_v37, %v15233_v25  ;;  %v9589_v37 = vadd.f32 %v15431_v3, %v9310_v2  ;;  %v9311_v3 = vadd.f32 %v15440_v34, %v15244_v33  ;;  %v9312_v34 = vadd.f32 %v15454_v20, %v15257_v50  ;;  %v16010_v20 = vld [vmem:[#allocation72_spill] sm:$0xff] }
 0x81d   : > { %v10211_v45 = vmax.f32 %v10179_v10, 0.0  ;;  %11302 = vmatmul.msk.f32.gmra.mxu3 %vm1628_vm6, %v16006_v56  ;;  %v15479_v31 = vpop.f32.mrf.mxu0 }
 0x81e   : > { %11268 = vmatmul.msk.f32.gmra.mxu1 %vm1628_vm6, %v9635_v51 }
 0x81f   : > { %10244 = vst.msk [vmem:[%s15424_s10 + $0x20] sm:$0xff] %vm10239_vm8, %v10211_v45 }
 0x820   : > { %v10058_v26 = vpop.f32.mrf.mxu3 }
 0x821   : > { %v10144_v7 = vadd.f32 %v10058_v26, %v9865_v59  ;;  %v9639_v26 = vld [vmem:[#allocation2 + $0x19b] sm:$0xff] }
 0x823   : > { %v9785_v15 = vpop.f32.mrf.mxu1  ;;  %v10180_v49 = vadd.f32 %v15415_v23, %v10144_v7  ;;  %v9590_v7 = vadd.f32 %v15445_v35, %v9311_v3 }
 0x824   : > { %v9867_v25 = vadd.f32 %v9785_v15, %v15246_v55  ;;  %v15499_v55 = vpop.f32.mrf.mxu2 }
 0x825   : > { %v10212_v30 = vmax.f32 %v10180_v49, 0.0  ;;  %11303 = vmatmul.msk.f32.gmra.mxu3 %vm1628_vm6, %v16007_v46  ;;  %v15494_v10 = vpop.f32.mrf.mxu0 }
 0x826   : > { %11269 = vmatmul.msk.f32.gmra.mxu1 %vm1628_vm6, %v9636_v38 }
 0x827   : > { %10245 = vst.msk [vmem:[%s15424_s10 + $0x28] sm:$0xff] %vm10239_vm8, %v10212_v30 }
 0x828   : > { %v10061_v4 = vpop.f32.mrf.mxu3 }
 0x829   : > { %v10145_v48 = vadd.f32 %v10061_v4, %v9866_v9  ;;  %v9640_v4 = vld [vmem:[#allocation2 + $0x1a3] sm:$0xff] }
 0x82b   : > { %v9788_v41 = vpop.f32.mrf.mxu1  ;;  %v10181_v19 = vadd.f32 %v15415_v23, %v10145_v48  ;;  %v9591_v48 = vadd.f32 %v15459_v32, %v9312_v34 }
 0x82c   : > { %v9868_v45 = vadd.f32 %v9788_v41, %v9589_v37  ;;  %v9527_v30 = vpop.f32.mrf.mxu2 }
 0x82d   : > { %v10213_v39 = vmax.f32 %v10181_v19, 0.0  ;;  %11304 = vmatmul.msk.f32.gmra.mxu3 %vm1628_vm6, %v15224_v18  ;;  %v16008_v18 = vld [vmem:[#allocation24_spill] sm:$0xff]  ;;  %v9248_v49 = vpop.f32.mrf.mxu0 }
 0x82e   : > { %11270 = vmatmul.msk.f32.gmra.mxu1 %vm1628_vm6, %v9637_v13 }
 0x82f   : > { %10246 = vst.msk [vmem:[%s15424_s10 + $0x30] sm:$0xff] %vm10239_vm8, %v10213_v39 }
 0x830   : > { %v10064_v6 = vpop.f32.mrf.mxu3 }
 0x831   : > { %v10146_v58 = vadd.f32 %v10064_v6, %v9867_v25 }
 0x833   : > { %v9791_v57 = vpop.f32.mrf.mxu1  ;;  %v10182_v61 = vadd.f32 %v15415_v23, %v10146_v58  ;;  %v9313_v58 = vadd.f32 %v15468_v12, %v16010_v20  ;;  %v16011_v12 = vld [vmem:[#allocation59_spill] sm:$0xff] }
 0x834   : > { %v9869_v38 = vadd.f32 %v9791_v57, %v9590_v7  ;;  %v9530_v6 = vpop.f32.mrf.mxu2  ;;  %v9641_v57 = vld [vmem:[#allocation2 + $0x1b3] sm:$0xff] }
 0x835   : > { %v10214_v51 = vmax.f32 %v10182_v61, 0.0  ;;  %11305 = vmatmul.msk.f32.gmra.mxu3 %vm1628_vm6, %v16008_v18  ;;  %v9251_v39 = vpop.f32.mrf.mxu0  ;;  %v9592_v2 = vadd.f32 %v15470_v24, %v9313_v58 }
 0x836   : > { %11271 = vmatmul.msk.f32.gmra.mxu1 %vm1628_vm6, %v9638_v36 }
 0x837   : > { %10247 = vst.msk [vmem:[%s15424_s10 + $0x38] sm:$0xff] %vm10239_vm8, %v10214_v51 }
 0x838   : > { %v10067_v28 = vpop.f32.mrf.mxu3 }
 0x839   : > { %v10147_v52 = vadd.f32 %v10067_v28, %v9868_v45  ;;  %v9314_v28 = vadd.f32 %v15479_v31, %v16011_v12  ;;  %v16012_v31 = vld [vmem:[#allocation25_spill] sm:$0xff] }
 0x83b   : > { %v9794_v56 = vpop.f32.mrf.mxu1  ;;  %v10183_v59 = vadd.f32 %v15415_v23, %v10147_v52  ;;  %v9593_v3 = vadd.f32 %v15482_v11, %v9314_v28 }
 0x83c   : > { %v9870_v19 = vadd.f32 %v9794_v56, %v9591_v48  ;;  %v9533_v24 = vpop.f32.mrf.mxu2  ;;  %v9642_v56 = vld [vmem:[#allocation2 + $0x1bb] sm:$0xff] }
 0x83d   : > { %v10215_v15 = vmax.f32 %v10183_v59, 0.0  ;;  %11306 = vmatmul.msk.f32.gmra.mxu3 %vm1628_vm6, %v15250_v14  ;;  %v16009_v14 = vld [vmem:[#allocation13_spill] sm:$0xff]  ;;  %v9254_v45 = vpop.f32.mrf.mxu0 }
 0x83e   : > { %11272 = vmatmul.msk.f32.gmra.mxu1 %vm1628_vm6, %v9639_v26 }
 0x83f   : > { %10248 = vst.msk [vmem:[%s15424_s10 + $0x40] sm:$0xff] %vm10239_vm8, %v10215_v15 }
 0x840   : > { %v10070_v46 = vpop.f32.mrf.mxu3 }
 0x841   : > { %v10148_v9 = vadd.f32 %v10070_v46, %v9869_v38  ;;  %v9315_v38 = vadd.f32 %v15494_v10, %v16012_v31 }
 0x843   : > { %v9797_v33 = vpop.f32.mrf.mxu1  ;;  %v10184_v35 = vadd.f32 %v15415_v23, %v10148_v9  ;;  %v9643_v9 = vld [vmem:[#allocation2 + $0x1cb] sm:$0xff] }
 0x844   : > { %v9871_v36 = vadd.f32 %v9797_v33, %v9592_v2  ;;  %v9594_v33 = vadd.f32 %v15499_v55, %v9315_v38  ;;  %v9922_v55 = vld [vmem:[#allocation2 + $0x1cc] sm:$0xff] }
 0x845   : > { %v10216_v41 = vmax.f32 %v10184_v35, 0.0  ;;  %11307 = vmatmul.msk.f32.gmra.mxu3 %vm1628_vm6, %v16009_v14  ;;  %v9257_v11 = vpop.f32.mrf.mxu0  ;;  %v9536_v35 = vpop.f32.mrf.mxu2  ;;  %v9316_v14 = vadd.f32 %v9248_v49, %v15300_v5  ;;  %v9317_v5 = vadd.f32 %v9251_v39, %v15307_v40 }
 0x846   : > { %11273 = vmatmul.msk.f32.gmra.mxu1 %vm1628_vm6, %v9640_v4  ;;  %v9319_v31 = vadd.f32 %v9257_v11, %v15321_v54 }
 0x847   : > { %10249 = vst.msk [vmem:[%s15424_s10 + $0x48] sm:$0xff] %vm10239_vm8, %v10216_v41 }
 0x848   : > { %v10073_v13 = vpop.f32.mrf.mxu3 }
 0x849   : > { %v10149_v25 = vadd.f32 %v10073_v13, %v9870_v19  ;;  %v9644_v13 = vld [vmem:[#allocation2 + $0x1d3] sm:$0xff] }
 0x84b   : > { %v9800_v50 = vpop.f32.mrf.mxu1  ;;  %v10185_v32 = vadd.f32 %v15415_v23, %v10149_v25  ;;  %v9595_v25 = vadd.f32 %v9527_v30, %v9316_v14  ;;  %v9596_v30 = vadd.f32 %v9530_v6, %v9317_v5 }
 0x84d   : > { %v10217_v61 = vmax.f32 %v10185_v32, 0.0  ;;  %11308 = vmatmul.msk.f32.gmra.mxu3 %vm1628_vm6, %v15272_v62  ;;  %v9872_v62 = vadd.f32 %v9800_v50, %v9593_v3  ;;  %v9260_v20 = vpop.f32.mrf.mxu0  ;;  %v9539_v32 = vpop.f32.mrf.mxu2  ;;  %v9318_v3 = vadd.f32 %v9254_v45, %v15314_v27 }
 0x84e   : > { %11274 = vmatmul.msk.f32.gmra.mxu1 %vm1628_vm6, %v9641_v57 }
 0x84f   : > { %10250 = vst.msk [vmem:[%s15424_s10 + $0x50] sm:$0xff] %vm10239_vm8, %v10217_v61  ;;  %v9597_v39 = vadd.f32 %v9533_v24, %v9318_v3 }
 0x850   : > { %v10076_v37 = vpop.f32.mrf.mxu3 }
 0x851   : > { %v10150_v51 = vadd.f32 %v10076_v37, %v9871_v36  ;;  %v9923_v36 = vld [vmem:[#allocation2 + $0x1d4] sm:$0xff] }
 0x853   : > { %v9803_v18 = vpop.f32.mrf.mxu1  ;;  %v10186_v52 = vadd.f32 %v15415_v23, %v10150_v51 }
 0x854   : > { %v9873_v4 = vadd.f32 %v9803_v18, %v9594_v33 }
 0x855   : > { %v10218_v59 = vmax.f32 %v10186_v52, 0.0  ;;  %11309 = vmatmul.msk.f32.gmra.mxu3 %vm1628_vm6, %v15283_v21  ;;  %v16013_v21 = vld [vmem:[#allocation73_spill] sm:$0xff]  ;;  %v9263_v12 = vpop.f32.mrf.mxu0  ;;  %v9542_v52 = vpop.f32.mrf.mxu2 }
 0x856   : > { %11275 = vmatmul.msk.f32.gmra.mxu1 %vm1628_vm6, %v9642_v56 }
 0x857   : > { %10251 = vst.msk [vmem:[%s15424_s10 + $0x58] sm:$0xff] %vm10239_vm8, %v10218_v59 }
 0x858   : > { %v10079_v26 = vpop.f32.mrf.mxu3 }
 0x859   : > { %v10151_v7 = vadd.f32 %v10079_v26, %v9872_v62 }
 0x85b   : > { %v9806_v15 = vpop.f32.mrf.mxu1  ;;  %v10187_v46 = vadd.f32 %v15415_v23, %v10151_v7 }
 0x85c   : > { %v9874_v58 = vadd.f32 %v9806_v15, %v9595_v25 }
 0x85d   : > { %v10219_v34 = vmax.f32 %v10187_v46, 0.0  ;;  %11310 = vmatmul.msk.f32.gmra.mxu3 %vm1628_vm6, %v16013_v21  ;;  %v9266_v15 = vpop.f32.mrf.mxu0  ;;  %v9545_v46 = vpop.f32.mrf.mxu2  ;;  %v9320_v21 = vadd.f32 %v9260_v20, %v15327_v63 }
 0x85e   : > { %11276 = vmatmul.msk.f32.gmra.mxu1 %vm1628_vm6, %v9643_v9  ;;  %v9598_v9 = vadd.f32 %v9536_v35, %v9319_v31 }
 0x85f   : > { %10252 = vst.msk [vmem:[%s15424_s10 + $0x60] sm:$0xff] %vm10239_vm8, %v10219_v34 }
 0x860   : > { %v10082_v48 = vpop.f32.mrf.mxu3 }
 0x861   : > { %v10152_v41 = vadd.f32 %v10082_v48, %v9873_v4 }
 0x863   : > { %v9809_v10 = vpop.f32.mrf.mxu1  ;;  %v10188_v19 = vadd.f32 %v15415_v23, %v10152_v41  ;;  %v9599_v41 = vadd.f32 %v9539_v32, %v9320_v21 }
 0x864   : > { %v9875_v51 = vadd.f32 %v9809_v10, %v9596_v30 }
 0x865   : > { %v10220_v50 = vmax.f32 %v10188_v19, 0.0  ;;  %11311 = vmatmul.msk.f32.gmra.mxu3 %vm1628_vm6, %v9922_v55  ;;  %v9269_v48 = vpop.f32.mrf.mxu0  ;;  %v9548_v11 = vpop.f32.mrf.mxu2 }
 0x866   : > { %11277 = vmatmul.msk.f32.gmra.mxu1 %vm1628_vm6, %v9644_v13  ;;  %v9321_v13 = vadd.f32 %v9263_v12, %v15333_v47 }
 0x867   : > { %10253 = vst.msk [vmem:[%s15424_s10 + $0x68] sm:$0xff] %vm10239_vm8, %v10220_v50 }
 0x868   : > { %v10085_v57 = vpop.f32.mrf.mxu3  ;;  %v9600_v25 = vadd.f32 %v9542_v52, %v9321_v13 }
 0x869   : > { %v10153_v2 = vadd.f32 %v10085_v57, %v9874_v58 }
 0x86b   : > { %v9812_v61 = vpop.f32.mrf.mxu1  ;;  %v10189_v49 = vadd.f32 %v15415_v23, %v10153_v2 }
 0x86c   : > { %v9876_v62 = vadd.f32 %v9812_v61, %v9597_v39  ;;  %v9322_v61 = vadd.f32 %v9266_v15, %v15339_v1 }
 0x86d   : > { %v10221_v37 = vmax.f32 %v10189_v49, 0.0  ;;  %11312 = vmatmul.msk.f32.gmra.mxu3 %vm1628_vm6, %v9923_v36  ;;  %v9272_v50 = vpop.f32.mrf.mxu0  ;;  %v9551_v58 = vpop.f32.mrf.mxu2 }
 0x86e   : > { %v9601_v49 = vadd.f32 %v9545_v46, %v9322_v61 }
 0x86f   : > { %10254 = vst.msk [vmem:[%s15424_s10 + $0x70] sm:$0xff] %vm10239_vm8, %v10221_v37 }
 0x870   : > { %v10088_v18 = vpop.f32.mrf.mxu3 }
 0x871   : > { %v10154_v28 = vadd.f32 %v10088_v18, %v9875_v51 }
 0x873   : > { %v9815_v56 = vpop.f32.mrf.mxu1  ;;  %v10190_v40 = vadd.f32 %v15415_v23, %v10154_v28  ;;  %v9323_v28 = vadd.f32 %v9269_v48, %v15345_v16 }
 0x874   : > { %v9877_v45 = vadd.f32 %v9815_v56, %v9598_v9 }
 0x875   : > { %v10222_v59 = vmax.f32 %v10190_v40, 0.0  ;;  %v9275_v37 = vpop.f32.mrf.mxu0  ;;  %v9554_v18 = vpop.f32.mrf.mxu2  ;;  %v9602_v56 = vadd.f32 %v9548_v11, %v9323_v28 }
 0x877   : > { %10255 = vst.msk [vmem:[%s15424_s10 + $0x78] sm:$0xff] %vm10239_vm8, %v10222_v59 }
 0x878   : > { %v10091_v6 = vpop.f32.mrf.mxu3 }
 0x879   : > { %v10155_v26 = vadd.f32 %v10091_v6, %v9876_v62  ;;  %v9324_v6 = vadd.f32 %v9272_v50, %v15351_v53 }
 0x87b   : > { %v9818_v7 = vpop.f32.mrf.mxu1  ;;  %v10191_v38 = vadd.f32 %v15415_v23, %v10155_v26  ;;  %v9603_v15 = vadd.f32 %v9551_v58, %v9324_v6 }
 0x87c   : > { %v9878_v10 = vadd.f32 %v9818_v7, %v9599_v41 }
 0x87d   : > { %v10223_v27 = vmax.f32 %v10191_v38, 0.0  ;;  %v9278_v62 = vpop.f32.mrf.mxu0  ;;  %v9557_v7 = vpop.f32.mrf.mxu2 }
 0x87f   : > { %10256 = vst.msk [vmem:[%s15424_s10 + $0x80] sm:$0xff] %vm10239_vm8, %v10223_v27  ;;  %v9325_v27 = vadd.f32 %v9275_v37, %v15357_v17 }
 0x880   : > { %v10094_v24 = vpop.f32.mrf.mxu3 }
 0x881   : > { %v10156_v33 = vadd.f32 %v10094_v24, %v9877_v45 }
 0x883   : > { %v9821_v34 = vpop.f32.mrf.mxu1  ;;  %v10192_v4 = vadd.f32 %v15415_v23, %v10156_v33  ;;  %v9604_v33 = vadd.f32 %v9554_v18, %v9325_v27 }
 0x884   : > { %v9879_v20 = vadd.f32 %v9821_v34, %v9600_v25 }
 0x885   : > { %v10224_v54 = vmax.f32 %v10192_v4, 0.0  ;;  %v9281_v24 = vpop.f32.mrf.mxu0  ;;  %v9560_v34 = vpop.f32.mrf.mxu2 }
 0x887   : > { %10257 = vst.msk [vmem:[%s15424_s10 + $0x88] sm:$0xff] %vm10239_vm8, %v10224_v54  ;;  %v9326_v54 = vadd.f32 %v9278_v62, %v15363_v42 }
 0x888   : > { %v10097_v35 = vpop.f32.mrf.mxu3 }
 0x889   : > { %v10157_v14 = vadd.f32 %v10097_v35, %v9878_v10  ;;  %v9605_v10 = vadd.f32 %v9557_v7, %v9326_v54 }
 0x88b   : > { %v9824_v19 = vpop.f32.mrf.mxu1  ;;  %v10193_v55 = vadd.f32 %v15415_v23, %v10157_v14 }
 0x88c   : > { %v9880_v36 = vadd.f32 %v9824_v19, %v9601_v49 }
 0x88d   : > { %v10225_v63 = vmax.f32 %v10193_v55, 0.0  ;;  %v9284_v35 = vpop.f32.mrf.mxu0  ;;  %v9563_v19 = vpop.f32.mrf.mxu2 }
 0x88f   : > { %10258 = vst.msk [vmem:[%s15424_s10 + $0x90] sm:$0xff] %vm10239_vm8, %v10225_v63  ;;  %v9327_v63 = vadd.f32 %v9281_v24, %v15369_v8 }
 0x890   : > { %v10100_v32 = vpop.f32.mrf.mxu3 }
 0x891   : > { %v10158_v57 = vadd.f32 %v10100_v32, %v9879_v20  ;;  %v9606_v20 = vadd.f32 %v9560_v34, %v9327_v63 }
 0x893   : > { %v9827_v2 = vpop.f32.mrf.mxu1  ;;  %v10194_v5 = vadd.f32 %v15415_v23, %v10158_v57 }
 0x894   : > { %v9881_v3 = vadd.f32 %v9827_v2, %v9602_v56 }
 0x895   : > { %v10226_v47 = vmax.f32 %v10194_v5, 0.0  ;;  %v9287_v57 = vpop.f32.mrf.mxu0  ;;  %v9566_v61 = vpop.f32.mrf.mxu2  ;;  %v9328_v5 = vadd.f32 %v9284_v35, %v15375_v29 }
 0x897   : > { %10259 = vst.msk [vmem:[%s15424_s10 + $0x98] sm:$0xff] %vm10239_vm8, %v10226_v47 }
 0x898   : > { %v10103_v30 = vpop.f32.mrf.mxu3 }
 0x899   : > { %v10159_v51 = vadd.f32 %v10103_v30, %v9880_v36  ;;  %v9607_v36 = vadd.f32 %v9563_v19, %v9328_v5 }
 0x89b   : > { %v9830_v12 = vpop.f32.mrf.mxu1  ;;  %v10195_v52 = vadd.f32 %v15415_v23, %v10159_v51 }
 0x89c   : > { %v9882_v31 = vadd.f32 %v9830_v12, %v9603_v15  ;;  %v9329_v12 = vadd.f32 %v9287_v57, %v15381_v43 }
 0x89d   : > { %v10227_v1 = vmax.f32 %v10195_v52, 0.0  ;;  %v9290_v18 = vpop.f32.mrf.mxu0  ;;  %v9569_v52 = vpop.f32.mrf.mxu2 }
 0x89e   : > { %v9608_v56 = vadd.f32 %v9566_v61, %v9329_v12 }
 0x89f   : > { %10260 = vst.msk [vmem:[%s15424_s10 + $0xa0] sm:$0xff] %vm10239_vm8, %v10227_v1 }
 0x8a0   : > { %v10106_v40 = vpop.f32.mrf.mxu3 }
 0x8a1   : > { %v10160_v39 = vadd.f32 %v10106_v40, %v9881_v3 }
 0x8a3   : > { %v9833_v59 = vpop.f32.mrf.mxu1  ;;  %v10196_v26 = vadd.f32 %v15415_v23, %v10160_v39 }
 0x8a4   : > { %v9883_v21 = vadd.f32 %v9833_v59, %v9604_v33  ;;  %v9330_v59 = vadd.f32 %v9290_v18, %v15387_v60 }
 0x8a5   : > { %v10228_v16 = vmax.f32 %v10196_v26, 0.0  ;;  %v9293_v6 = vpop.f32.mrf.mxu0  ;;  %v9572_v7 = vpop.f32.mrf.mxu2 }
 0x8a6   : > { %v9609_v26 = vadd.f32 %v9569_v52, %v9330_v59 }
 0x8a7   : > { %10261 = vst.msk [vmem:[%s15424_s10 + $0xa8] sm:$0xff] %vm10239_vm8, %v10228_v16 }
 0x8a8   : > { %v10109_v38 = vpop.f32.mrf.mxu3 }
 0x8a9   : > { %v10161_v46 = vadd.f32 %v10109_v38, %v9882_v31 }
 0x8ab   : > { %v9836_v9 = vpop.f32.mrf.mxu1  ;;  %v10197_v45 = vadd.f32 %v15415_v23, %v10161_v46  ;;  %v9331_v46 = vadd.f32 %v9293_v6, %v15393_v44 }
 0x8ac   : > { %v9884_v14 = vadd.f32 %v9836_v9, %v9605_v10 }
 0x8ad   : > { %v10229_v53 = vmax.f32 %v10197_v45, 0.0  ;;  %v9610_v27 = vadd.f32 %v9572_v7, %v9331_v46  ;;  %v9296_v45 = vpop.f32.mrf.mxu0  ;;  %v9575_v33 = vpop.f32.mrf.mxu2 }
 0x8af   : > { %10262 = vst.msk [vmem:[%s15424_s10 + $0xb0] sm:$0xff] %vm10239_vm8, %v10229_v53 }
 0x8b0   : > { %v10112_v4 = vpop.f32.mrf.mxu3 }
 0x8b1   : > { %v10162_v48 = vadd.f32 %v10112_v4, %v9883_v21  ;;  %v9332_v4 = vadd.f32 %v9296_v45, %v15399_v0 }
 0x8b3   : > { %v9839_v41 = vpop.f32.mrf.mxu1  ;;  %v10198_v11 = vadd.f32 %v15415_v23, %v10162_v48 }
 0x8b4   : > { %v9885_v58 = vadd.f32 %v9839_v41, %v9606_v20  ;;  %v9611_v41 = vadd.f32 %v9575_v33, %v9332_v4 }
 0x8b5   : > { %v10230_v17 = vmax.f32 %v10198_v11, 0.0  ;;  %v9578_v35 = vpop.f32.mrf.mxu2 }
 0x8b7   : > { %10263 = vst.msk [vmem:[%s15424_s10 + $0xb8] sm:$0xff] %vm10239_vm8, %v10230_v17  ;;  %v9299_v17 = vpop.f32.mrf.mxu0 }
 0x8b8   : > { %v10115_v13 = vpop.f32.mrf.mxu3 }
 0x8b9   : > { %v10163_v55 = vadd.f32 %v10115_v13, %v9884_v14  ;;  %v9333_v14 = vadd.f32 %v9299_v17, %v15405_v22 }
 0x8bb   : > { %v9842_v25 = vpop.f32.mrf.mxu1  ;;  %v10199_v50 = vadd.f32 %v15415_v23, %v10163_v55  ;;  %v9612_v13 = vadd.f32 %v9578_v35, %v9333_v14 }
 0x8bc   : > { %v9886_v30 = vadd.f32 %v9842_v25, %v9607_v36 }
 0x8bd   : > { %v10231_v42 = vmax.f32 %v10199_v50, 0.0 }
 0x8bf   : > { %10264 = vst.msk [vmem:[%s15424_s10 + $0xc0] sm:$0xff] %vm10239_vm8, %v10231_v42 }
 0x8c0   : > { %v10118_v32 = vpop.f32.mrf.mxu3 }
 0x8c1   : > { %v10164_v2 = vadd.f32 %v10118_v32, %v9885_v58 }
 0x8c3   : > { %v10200_v49 = vadd.f32 %v15415_v23, %v10164_v2  ;;  %v9845_v47 = vpop.f32.mrf.mxu1 }
 0x8c4   : > { %v9887_v3 = vadd.f32 %v9845_v47, %v9608_v56 }
 0x8c5   : > { %v10232_v8 = vmax.f32 %v10200_v49, 0.0 }
 0x8c7   : > { %10265 = vst.msk [vmem:[%s15424_s10 + $0xc8] sm:$0xff] %vm10239_vm8, %v10232_v8 }
 0x8c8   : > { %v10121_v37 = vpop.f32.mrf.mxu3 }
 0x8c9   : > { %v10165_v51 = vadd.f32 %v10121_v37, %v9886_v30 }
 0x8cb   : > { %v10201_v28 = vadd.f32 %v15415_v23, %v10165_v51  ;;  %v9848_v1 = vpop.f32.mrf.mxu1 }
 0x8cc   : > { %v9888_v15 = vadd.f32 %v9848_v1, %v9609_v26 }
 0x8cd   : > { %v10233_v29 = vmax.f32 %v10201_v28, 0.0 }
 0x8cf   : > { %10266 = vst.msk [vmem:[%s15424_s10 + $0xd0] sm:$0xff] %vm10239_vm8, %v10233_v29 }
 0x8d0   : > { %v10124_v40 = vpop.f32.mrf.mxu3 }
 0x8d1   : > { %v10166_v39 = vadd.f32 %v10124_v40, %v9887_v3 }
 0x8d3   : > { %v10202_v62 = vadd.f32 %v15415_v23, %v10166_v39  ;;  %v9851_v16 = vpop.f32.mrf.mxu1 }
 0x8d4   : > { %v9889_v24 = vadd.f32 %v9851_v16, %v9610_v27 }
 0x8d5   : > { %v10234_v43 = vmax.f32 %v10202_v62, 0.0 }
 0x8d7   : > { %10267 = vst.msk [vmem:[%s15424_s10 + $0xd8] sm:$0xff] %vm10239_vm8, %v10234_v43 }
 0x8d8   : > { %v10127_v31 = vpop.f32.mrf.mxu3 }
 0x8d9   : > { %v10167_v38 = vadd.f32 %v10127_v31, %v9888_v15 }
 0x8db   : > { %v10203_v9 = vadd.f32 %v15415_v23, %v10167_v38  ;;  %v9854_v21 = vpop.f32.mrf.mxu1 }
 0x8dc   : > { %v9890_v54 = vadd.f32 %v9854_v21, %v9611_v41 }
 0x8dd   : > { %v10235_v60 = vmax.f32 %v10203_v9, 0.0 }
 0x8df   : > { %10268 = vst.msk [vmem:[%s15424_s10 + $0xe0] sm:$0xff] %vm10239_vm8, %v10235_v60 }
 0x8e0   : > { %v10130_v53 = vpop.f32.mrf.mxu3 }
 0x8e1   : > { %v10168_v34 = vadd.f32 %v10130_v53, %v9889_v24 }
 0x8e3   : > { %v10204_v48 = vadd.f32 %v15415_v23, %v10168_v34  ;;  %v9857_v0 = vpop.f32.mrf.mxu1 }
 0x8e4   : > { %v9891_v25 = vadd.f32 %v9857_v0, %v9612_v13 }
 0x8e5   : > { %v10236_v44 = vmax.f32 %v10204_v48, 0.0 }
 0x8e7   : > { %10269 = vst.msk [vmem:[%s15424_s10 + $0xe8] sm:$0xff] %vm10239_vm8, %v10236_v44 }
 0x8e8   : > { %v10133_v11 = vpop.f32.mrf.mxu3 }
 0x8e9   : > { %v10169_v10 = vadd.f32 %v10133_v11, %v9890_v54 }
 0x8eb   : > { %v10205_v19 = vadd.f32 %v15415_v23, %v10169_v10 }
 0x8ed   : > { %v10237_v55 = vmax.f32 %v10205_v19, 0.0 }
 0x8ef   : > { %10270 = vst.msk [vmem:[%s15424_s10 + $0xf0] sm:$0xff] %vm10239_vm8, %v10237_v55 }
 0x8f0   : > { %v10136_v63 = vpop.f32.mrf.mxu3 }
 0x8f1   : > { %v10170_v50 = vadd.f32 %v10136_v63, %v9891_v25 }
 0x8f3   : > { %v10206_v22 = vadd.f32 %v15415_v23, %v10170_v50 }
 0x8f5   : > { %v10238_v20 = vmax.f32 %v10206_v22, 0.0 }
 0x8f7   : > { %10271 = vst.msk [vmem:[%s15424_s10 + $0xf8] sm:$0xff] %vm10239_vm8, %v10238_v20 }
 0x8f8   : > { %11418 = shalt.err (!%p11415_p3)
}
 0x8f9   : > { %s11455_s26 = smov 128   ;;  %s11456_s10 = smov 8  }
 0x8fa   : > { %11325 = dma.vmem_to_hbm [thread:$0]  (%p11530_p5), %s10286_s15, 4096, %s10288_s16, %s10273_s25, %s11455_s26, %s11455_s26, %s11456_s10  }
 0x8fb PF: > { %p11331_p4 = scmp.ge.s32.totalorder %s11453_s24, 2  ;;  %s10302_s11 = sand.u32 1, %s11441_s21  }
 0x8fc   : > { %s10303_s12 = scalar_lea.sflag [#allocation4], %s10302_s11 }
 0x8fd   : > { %p11328_p7 = pnand %p11331_p4, %p11534_p6 }
 0x8ff   : > { %p11329_p8 = pneg %p11328_p7 }
 0x901   : > { %11436 = dma.done.wait (%p11329_p8), %s10303_s12, 4096  }
 0x902   : > { %11438 = vsyncadd (%p11329_p8), %s10303_s12, 4294963200  ;;  %p16_p9 = scmp.ge.s32.totalorder %s11517_s27, 4   ;;  %s16014_s21 = smov %s11445_s22 }
 0x903   : > { %s16015_s22 = smov %s11449_s23  ;;  %s16016_s23 = smov %s11528_s30 }
 0x904   : > { %s16017_s24 = smov %s11517_s27  ;;  %18 = sbr.rel (!%p16_p9) target bundleno = 3 (0x3), region = 128 }
 0x909   :  { %10309 = vsyncpa [#allocation4], 1 }
 0x90a   :  { %10311 = vsyncpa [#allocation4 + $0x1], 1 }

</bundles_post_ra>
